<compile_context>
chip_gen: v5e
topology: v5e:2x2
jax: 0.10.0
libtpu: 0.0.40
codegen_flags: <defaults>
</compile_context>

<pallas_src>
import functools
import math
import random

import jax
import jax.numpy as jnp
from jax.experimental import pallas as pl
from jax.experimental.pallas import tpu as pltpu

EMBED = 128        # embedding_size (small-shape stand-in for 500)
HIDDEN = 128       # hidden_size    (small-shape stand-in for 512)
NUM_LAYERS = 2     # num_layers (the literal 512 in the reference nn.LSTM call is a bug)
SRC_VOCAB = 48     # len(train_source_vocab)
TGT_VOCAB = 128    # len(target_vocab) == output_size
P_DROP = 0.5       # TODO(synk): dropout treated as identity (eval-mode semantics)
K_ENC = 4          # encoder timesteps processed per grid step


# ----------------------------- in-kernel helpers -----------------------------

def _lstm_gates(gates, c):
    """PyTorch gate order (i, f, g, o); gates:(B,4H) f32, c:(B,H) f32."""
    H = HIDDEN
    i = jax.nn.sigmoid(gates[:, 0 * H:1 * H])
    f = jax.nn.sigmoid(gates[:, 1 * H:2 * H])
    g = jnp.tanh(gates[:, 2 * H:3 * H])
    o = jax.nn.sigmoid(gates[:, 3 * H:4 * H])
    c_new = f * c + i * g
    h_new = o * jnp.tanh(c_new)
    return h_new, c_new


# ----------------------------- Pallas kernels -----------------------------

def _xw_kernel(x_ref, w_ref, b_ref, o_ref):
    """Batched x @ W + b (layer-0 input-to-hidden precompute)."""
    acc = jnp.dot(x_ref[...], w_ref[...], preferred_element_type=jnp.float32)
    o_ref[...] = (acc + b_ref[...]).astype(o_ref.dtype)


def precompute_xw(x, w_t, b):
    """x:(N,I) bf16, w_t:(I,O) bf16, b:(1,O) f32 -> (N,O) bf16."""
    N = x.shape[0]
    O = w_t.shape[1]
    return pl.pallas_call(
        _xw_kernel,
        out_shape=jax.ShapeDtypeStruct((N, O), jnp.bfloat16),
    )(x, w_t, b)


def _enc_recurrence_kernel(xw0_ref, whh0_ref, wih1_ref, whh1_ref, b1_ref,
                           h_ref, c_ref, *, k_steps, seq_len):
    """K encoder timesteps (both stacked layers) per grid step.

    Weights have constant index maps (VMEM-resident); h_ref/c_ref are the
    (L,B,H) resident output blocks used directly as recurrent state.  xw0_ref
    already holds emb_t @ W_ih0 + b0 for k_steps timesteps (bf16).
    Steps beyond seq_len (padding) are masked out with jnp.where.
    """
    pid = pl.program_id(0)

    @pl.when(pid == 0)
    def _():
        h_ref[...] = jnp.zeros_like(h_ref)
        c_ref[...] = jnp.zeros_like(c_ref)

    # bf16 shadow of h for the MXU; c stays fp32.
    h0 = h_ref[0].astype(jnp.bfloat16)
    h1 = h_ref[1].astype(jnp.bfloat16)
    c0 = c_ref[0]
    c1 = c_ref[1]

    for k in range(k_steps):                      # statically unrolled
        valid = (pid * k_steps + k) < seq_len

        # ---- layer 0: only the recurrent matmul remains per step ----
        gates0 = (xw0_ref[k].astype(jnp.float32)
                  + jnp.dot(h0, whh0_ref[...], preferred_element_type=jnp.float32))
        h0n, c0n = _lstm_gates(gates0, c0)
        h0n = h0n.astype(jnp.bfloat16)

        # ---- layer 1: x@W_ih + h@W_hh (no concat in the critical path) ----
        gates1 = (jnp.dot(h0n, wih1_ref[...], preferred_element_type=jnp.float32)
                  + jnp.dot(h1, whh1_ref[...], preferred_element_type=jnp.float32)
                  + b1_ref[...])
        h1n, c1n = _lstm_gates(gates1, c1)
        h1n = h1n.astype(jnp.bfloat16)

        h0 = jnp.where(valid, h0n, h0)
        c0 = jnp.where(valid, c0n, c0)
        h1 = jnp.where(valid, h1n, h1)
        c1 = jnp.where(valid, c1n, c1)

    h_ref[0] = h0.astype(jnp.float32)
    h_ref[1] = h1.astype(jnp.float32)
    c_ref[0] = c0
    c_ref[1] = c1


def _dec_fused_kernel(flips_ref,                      # SMEM scalar-prefetch (T-1,) int32
                      tgt_emb_ref,                    # (1,B,E) bf16  per-step teacher emb
                      h_init_ref, c_init_ref,         # (L,B,H) f32   encoder final state
                      emb_tab_ref,                    # (V,E)  bf16   resident
                      wih0_ref, whh0_ref, b0_ref,
                      wih1_ref, whh1_ref, b1_ref,
                      wfh_ref, bfh_ref, wfo_ref, bfo_ref,
                      pred_ref,                       # (1,B,V) f32   per-step output
                      h_sc, c_sc, emb_sc):            # VMEM scratch (state across steps)
    """One decode step per grid iteration; all weights VMEM-resident.

    Step s corresponds to reference loop iteration t = s+1.  The input
    embedding for step s is selected at the START of the step:
       s == 0 : embed(target[0])
       s  > 0 : flips[s-1] ? embed(target[s]) : embed(argmax of step s-1)
    The "own guess" embedding is computed at the END of each step and kept in
    VMEM scratch, so the whole decode loop is a single serial kernel.
    """
    s = pl.program_id(0)
    B = emb_sc.shape[0]
    V = emb_tab_ref.shape[0]

    @pl.when(s == 0)
    def _():
        h_sc[...] = h_init_ref[...]
        c_sc[...] = c_init_ref[...]
        emb_sc[...] = tgt_emb_ref[0]                  # embed(target[0])

    @pl.when(s > 0)
    def _():
        use_teacher = flips_ref[s - 1] == 1
        emb_sc[...] = jnp.where(use_teacher, tgt_emb_ref[0], emb_sc[...])

    x_emb = emb_sc[...]                               # (B,E) bf16
    h0 = h_sc[0].astype(jnp.bfloat16)
    h1 = h_sc[1].astype(jnp.bfloat16)
    c0 = c_sc[0]
    c1 = c_sc[1]

    # ---- LSTM layer 0 ----
    gates0 = (jnp.dot(x_emb, wih0_ref[...], preferred_element_type=jnp.float32)
              + jnp.dot(h0, whh0_ref[...], preferred_element_type=jnp.float32)
              + b0_ref[...])
    h0n, c0n = _lstm_gates(gates0, c0)

    # ---- LSTM layer 1 ----  (inter-layer dropout is identity in eval mode)
    gates1 = (jnp.dot(h0n.astype(jnp.bfloat16), wih1_ref[...],
                      preferred_element_type=jnp.float32)
              + jnp.dot(h1, whh1_ref[...], preferred_element_type=jnp.float32)
              + b1_ref[...])
    h1n, c1n = _lstm_gates(gates1, c1)

    c_sc[0] = c0n
    c_sc[1] = c1n

    # hidden = fc_hidden(hidden): both layers stacked into ONE (2B,H) dot.
    h_stack = jnp.concatenate([h0n, h1n], axis=0).astype(jnp.bfloat16)   # (2B,H)
    fh = (jnp.dot(h_stack, wfh_ref[...], preferred_element_type=jnp.float32)
          + bfh_ref[...])
    h_sc[0] = fh[:B]
    h_sc[1] = fh[B:]

    # predictions = fc_output(outputs).squeeze(0)  (top-layer pre-fc_hidden h)
    pred = (jnp.dot(h1n.astype(jnp.bfloat16), wfo_ref[...],
                    preferred_element_type=jnp.float32) + bfo_ref[...])
    pred_ref[0] = pred

    # best_guess = argmax(pred, axis=1); compute its embedding for next step.
    col = jax.lax.broadcasted_iota(jnp.int32, (B, V), 1)
    m = jnp.max(pred, axis=1, keepdims=True)
    best = jnp.min(jnp.where(pred == m, col, V), axis=1, keepdims=True)   # (B,1)
    one_hot = (col == best).astype(jnp.bfloat16)                          # (B,V)
    emb_sc[...] = jnp.dot(one_hot, emb_tab_ref[...],
                          preferred_element_type=jnp.float32).astype(jnp.bfloat16)


# ----------------------------- parameter init -----------------------------

def _init_lstm_layer(key, input_size, hidden_size):
    k = 1.0 / math.sqrt(hidden_size)
    key, k1, k2, k3, k4 = jax.random.split(key, 5)
    w_ih = jax.random.uniform(k1, (4 * hidden_size, input_size), jnp.float32, -k, k)
    w_hh = jax.random.uniform(k2, (4 * hidden_size, hidden_size), jnp.float32, -k, k)
    b_ih = jax.random.uniform(k3, (4 * hidden_size,), jnp.float32, -k, k)
    b_hh = jax.random.uniform(k4, (4 * hidden_size,), jnp.float32, -k, k)
    # pre-transpose to (in, 4H); fold b_ih + b_hh into one fp32 bias row
    return key, w_ih.T, w_hh.T, (b_ih + b_hh).reshape(1, -1)


def _init_linear(key, in_features, out_features):
    k = 1.0 / math.sqrt(in_features)
    key, k1, k2 = jax.random.split(key, 3)
    w = jax.random.uniform(k1, (out_features, in_features), jnp.float32, -k, k)
    b = jax.random.uniform(k2, (out_features,), jnp.float32, -k, k)
    return key, dict(w_t=w.T.astype(jnp.bfloat16), b=b.reshape(1, -1))


def init_params(seed=0):
    bf16 = jnp.bfloat16
    key = jax.random.PRNGKey(seed)
    key, ke, kd = jax.random.split(key, 3)
    enc_emb = jax.random.normal(ke, (SRC_VOCAB, EMBED), jnp.float32).astype(bf16)
    dec_emb = jax.random.normal(kd, (TGT_VOCAB, EMBED), jnp.float32).astype(bf16)

    # encoder LSTM (2 layers)
    key, e_wih0, e_whh0, e_b0 = _init_lstm_layer(key, EMBED, HIDDEN)
    key, e_wih1, e_whh1, e_b1 = _init_lstm_layer(key, HIDDEN, HIDDEN)
    enc = dict(emb=enc_emb,
               w_ih0=e_wih0.astype(bf16), w_hh0=e_whh0.astype(bf16), b0=e_b0,
               w_ih1=e_wih1.astype(bf16), w_hh1=e_whh1.astype(bf16), b1=e_b1)

    # decoder LSTM (2 layers) + fc heads
    key, d_wih0, d_whh0, d_b0 = _init_lstm_layer(key, EMBED, HIDDEN)
    key, d_wih1, d_whh1, d_b1 = _init_lstm_layer(key, HIDDEN, HIDDEN)
    key, fc_hidden = _init_linear(key, HIDDEN, HIDDEN)
    key, fc_output = _init_linear(key, HIDDEN, TGT_VOCAB)
    dec = dict(emb=dec_emb,
               w_ih0=d_wih0.astype(bf16), w_hh0=d_whh0.astype(bf16), b0=d_b0,
               w_ih1=d_wih1.astype(bf16), w_hh1=d_whh1.astype(bf16), b1=d_b1,
               fc_hidden=fc_hidden, fc_output=fc_output)
    return dict(enc=enc, dec=dec)


# ----------------------------- model forward -----------------------------

def encoder_forward(enc_params, source):
    """source:(T,B) int32 -> (hidden, cell) each (NUM_LAYERS, B, H) f32."""
    T, B = source.shape
    emb = jnp.take(enc_params["emb"], source, axis=0)            # (T,B,E) bf16

    # Batched layer-0 input projection (bias folded), stored bf16.
    xw0 = precompute_xw(emb.reshape(T * B, EMBED),
                        enc_params["w_ih0"], enc_params["b0"])    # (T*B,4H) bf16
    xw0 = xw0.reshape(T, B, 4 * HIDDEN)

    n_blk = (T + K_ENC - 1) // K_ENC
    Tp = n_blk * K_ENC
    if Tp != T:
        xw0 = jnp.pad(xw0, ((0, Tp - T), (0, 0), (0, 0)))        # masked in-kernel

    hidden, cell = pl.pallas_call(
        functools.partial(_enc_recurrence_kernel, k_steps=K_ENC, seq_len=T),
        grid=(n_blk,),
        in_specs=[
            pl.BlockSpec((K_ENC, B, 4 * HIDDEN), lambda t: (t, 0, 0)),   # xw0 stream
            pl.BlockSpec((HIDDEN, 4 * HIDDEN), lambda t: (0, 0)),        # W_hh0
            pl.BlockSpec((HIDDEN, 4 * HIDDEN), lambda t: (0, 0)),        # W_ih1
            pl.BlockSpec((HIDDEN, 4 * HIDDEN), lambda t: (0, 0)),        # W_hh1
            pl.BlockSpec((1, 4 * HIDDEN), lambda t: (0, 0)),             # b1
        ],
        out_specs=(
            pl.BlockSpec((NUM_LAYERS, B, HIDDEN), lambda t: (0, 0, 0)),  # h (resident)
            pl.BlockSpec((NUM_LAYERS, B, HIDDEN), lambda t: (0, 0, 0)),  # c (resident)
        ),
        out_shape=(jax.ShapeDtypeStruct((NUM_LAYERS, B, HIDDEN), jnp.float32),
                   jax.ShapeDtypeStruct((NUM_LAYERS, B, HIDDEN), jnp.float32)),
        compiler_params=pltpu.CompilerParams(dimension_semantics=("arbitrary",)),
    )(xw0, enc_params["w_hh0"], enc_params["w_ih1"], enc_params["w_hh1"],
      enc_params["b1"])
    return hidden, cell


def decoder_forward(dec_params, target, flips, hidden, cell):
    """Fused full decode loop: one pallas_call, grid=(target_len-1,)."""
    Td = target.shape[0] - 1
    B = target.shape[1]
    # Teacher-token embeddings for target[0 .. T-2] (all tokens ever fed in).
    tgt_emb = jnp.take(dec_params["emb"], target[:-1], axis=0)   # (Td,B,E) bf16
    fh, fo = dec_params["fc_hidden"], dec_params["fc_output"]

    grid_spec = pltpu.PrefetchScalarGridSpec(
        num_scalar_prefetch=1,
        grid=(Td,),
        in_specs=[
            pl.BlockSpec((1, B, EMBED), lambda s, flips: (s, 0, 0)),          # teacher emb
            pl.BlockSpec((NUM_LAYERS, B, HIDDEN), lambda s, flips: (0, 0, 0)),  # h init
            pl.BlockSpec((NUM_LAYERS, B, HIDDEN), lambda s, flips: (0, 0, 0)),  # c init
            pl.BlockSpec((TGT_VOCAB, EMBED), lambda s, flips: (0, 0)),        # emb table
            pl.BlockSpec((EMBED, 4 * HIDDEN), lambda s, flips: (0, 0)),       # W_ih0
            pl.BlockSpec((HIDDEN, 4 * HIDDEN), lambda s, flips: (0, 0)),      # W_hh0
            pl.BlockSpec((1, 4 * HIDDEN), lambda s, flips: (0, 0)),           # b0
            pl.BlockSpec((HIDDEN, 4 * HIDDEN), lambda s, flips: (0, 0)),      # W_ih1
            pl.BlockSpec((HIDDEN, 4 * HIDDEN), lambda s, flips: (0, 0)),      # W_hh1
            pl.BlockSpec((1, 4 * HIDDEN), lambda s, flips: (0, 0)),           # b1
            pl.BlockSpec((HIDDEN, HIDDEN), lambda s, flips: (0, 0)),          # fc_hidden W
            pl.BlockSpec((1, HIDDEN), lambda s, flips: (0, 0)),               # fc_hidden b
            pl.BlockSpec((HIDDEN, TGT_VOCAB), lambda s, flips: (0, 0)),       # fc_output W
            pl.BlockSpec((1, TGT_VOCAB), lambda s, flips: (0, 0)),            # fc_output b
        ],
        out_specs=pl.BlockSpec((1, B, TGT_VOCAB), lambda s, flips: (s, 0, 0)),
        scratch_shapes=[
            pltpu.VMEM((NUM_LAYERS, B, HIDDEN), jnp.float32),   # h state
            pltpu.VMEM((NUM_LAYERS, B, HIDDEN), jnp.float32),   # c state
            pltpu.VMEM((B, EMBED), jnp.bfloat16),               # next-input embedding
        ],
    )
    preds = pl.pallas_call(
        _dec_fused_kernel,
        grid_spec=grid_spec,
        out_shape=jax.ShapeDtypeStruct((Td, B, TGT_VOCAB), jnp.float32),
        compiler_params=pltpu.CompilerParams(dimension_semantics=("arbitrary",)),
    )(flips, tgt_emb, hidden, cell,
      dec_params["emb"],
      dec_params["w_ih0"], dec_params["w_hh0"], dec_params["b0"],
      dec_params["w_ih1"], dec_params["w_hh1"], dec_params["b1"],
      fh["w_t"], fh["b"], fo["w_t"], fo["b"])
    return preds


@jax.jit
def _seq2seq_jit(params, source, target, flips):
    target_len, batch_size = target.shape
    hidden, cell = encoder_forward(params["enc"], source)
    preds = decoder_forward(params["dec"], target, flips, hidden, cell)
    out0 = jnp.zeros((1, batch_size, TGT_VOCAB), jnp.float32)    # outputs[0] stays zero
    return jnp.concatenate([out0, preds], axis=0)


def seq2seq_forward(params, source, target, teacher_forcing_ratio=0.5, tf_seed=0):
    target_len = target.shape[0]
    # TODO(synk): deterministic stand-in for runtime python random.random();
    # coin flips are precomputed host-side (one per decode step, as in the
    # reference) and consumed in-kernel via scalar prefetch.
    rng = random.Random(tf_seed)
    flips = jnp.asarray([1 if rng.random() < teacher_forcing_ratio else 0
                         for _ in range(target_len - 1)], dtype=jnp.int32)
    return _seq2seq_jit(params, source, target, flips)


# ----------------------------- driver -----------------------------

if __name__ == "__main__":
    params = init_params(seed=0)

    key = jax.random.PRNGKey(0)
    k_src, k_tgt = jax.random.split(key)
    # BATCH=16 fills a full (16,128) bf16 sublane tile for the gate matmuls.
    SRC_LEN, TGT_LEN, BATCH = 6, 5, 16
    source = jax.random.randint(k_src, (SRC_LEN, BATCH), 0, SRC_VOCAB, dtype=jnp.int32)
    target = jax.random.randint(k_tgt, (TGT_LEN, BATCH), 0, TGT_VOCAB, dtype=jnp.int32)

    out = seq2seq_forward(params, source, target, teacher_forcing_ratio=0.5)
    out = jax.block_until_ready(out)

    assert out.shape == (TGT_LEN, BATCH, TGT_VOCAB), out.shape
    assert bool(jnp.all(jnp.isfinite(out)))
    assert bool(jnp.all(out[0] == 0.0))
    print("KERNEL_OK")
</pallas_src>

<mosaic_0001>
module attributes {stable_mosaic.version = 11 : i64} {
  func.func @_xw_kernel(%arg0: memref<96x128xbf16, #tpu.memory_space<vmem>>, %arg1: memref<128x512xbf16, #tpu.memory_space<vmem>>, %arg2: memref<1x512xf32, #tpu.memory_space<vmem>>, %arg3: memref<96x512xbf16, #tpu.memory_space<vmem>>) attributes {dimension_semantics = [], scalar_prefetch = 0 : i64, scratch_operands = 0 : i64, tpu.core_type = #tpu.core_type<tc>} {
    %c0 = arith.constant 0 : index
    %c0_0 = arith.constant 0 : index
    %0 = vector.load %arg0[%c0, %c0_0] : memref<96x128xbf16, #tpu.memory_space<vmem>>, vector<96x128xbf16>
    %c0_1 = arith.constant 0 : index
    %c0_2 = arith.constant 0 : index
    %1 = vector.load %arg1[%c0_1, %c0_2] : memref<128x512xbf16, #tpu.memory_space<vmem>>, vector<128x512xbf16>
    %cst = arith.constant dense<0.000000e+00> : vector<96x512xf32>
    %2 = tpu.matmul %0, %1, %cst {dimension_numbers = #tpu.dot_dimension_numbers<[1], [0], [0], [1], [0, 0, 1, 1], [], []>} : vector<96x128xbf16>, vector<128x512xbf16>, vector<96x512xf32> -> vector<96x512xf32>
    %c0_3 = arith.constant 0 : index
    %c0_4 = arith.constant 0 : index
    %3 = vector.load %arg2[%c0_3, %c0_4] : memref<1x512xf32, #tpu.memory_space<vmem>>, vector<1x512xf32>
    %4 = vector.broadcast %3 : vector<1x512xf32> to vector<96x512xf32>
    %5 = arith.addf %2, %4 : vector<96x512xf32>
    %6 = arith.truncf %5 : vector<96x512xf32> to vector<96x512xbf16>
    %c0_5 = arith.constant 0 : index
    %c0_6 = arith.constant 0 : index
    %7 = vector.load %arg3[%c0_5, %c0_6] : memref<96x512xbf16, #tpu.memory_space<vmem>>, vector<96x512xbf16>
    tpu.vector_store %arg3[%c0_5, %c0_6], %6 {strides = array<i32>} : memref<96x512xbf16, #tpu.memory_space<vmem>>, vector<96x512xbf16>,
    return
  }
}

module attributes {stable_mosaic.version = 11 : i64} {
  func.func @_enc_recurrence_kernel(%arg0: i32, %arg1: memref<4x16x512xbf16, #tpu.memory_space<vmem>>, %arg2: memref<128x512xbf16, #tpu.memory_space<vmem>>, %arg3: memref<128x512xbf16, #tpu.memory_space<vmem>>, %arg4: memref<128x512xbf16, #tpu.memory_space<vmem>>, %arg5: memref<1x512xf32, #tpu.memory_space<vmem>>, %arg6: memref<2x16x128xf32, #tpu.memory_space<vmem>>, %arg7: memref<2x16x128xf32, #tpu.memory_space<vmem>>) attributes {dimension_semantics = [#tpu.dimension_semantics<arbitrary>], iteration_bounds = array<i64: 2>, scalar_prefetch = 0 : i64, scratch_operands = 0 : i64, tpu.core_type = #tpu.core_type<tc>, window_params = [{transform_indices = @transform_0, window_bounds = array<i64: 4, 16, 512>}, {pipeline_mode = #tpu.pipeline_mode<synchronous>, transform_indices = @transform_1, window_bounds = array<i64: 128, 512>}, {pipeline_mode = #tpu.pipeline_mode<synchronous>, transform_indices = @transform_2, window_bounds = array<i64: 128, 512>}, {pipeline_mode = #tpu.pipeline_mode<synchronous>, transform_indices = @transform_3, window_bounds = array<i64: 128, 512>}, {pipeline_mode = #tpu.pipeline_mode<synchronous>, transform_indices = @transform_4, window_bounds = array<i64: 1, 512>}, {pipeline_mode = #tpu.pipeline_mode<synchronous>, transform_indices = @transform_5, window_bounds = array<i64: 2, 16, 128>}, {pipeline_mode = #tpu.pipeline_mode<synchronous>, transform_indices = @transform_6, window_bounds = array<i64: 2, 16, 128>}]} {
    %c0_i32 = arith.constant 0 : i32
    %0 = arith.cmpi eq, %arg0, %c0_i32 : i32
    %1 = arith.extui %0 : i1 to i32
    %c0_i32_0 = arith.constant 0 : i32
    %2 = arith.cmpi ne, %1, %c0_i32_0 : i32
    scf.if %2 {
      %cst_107 = arith.constant 0.000000e+00 : f32
      %319 = vector.broadcast %cst_107 : f32 to vector<2x16x128xf32>
      %c0_108 = arith.constant 0 : index
      %c0_109 = arith.constant 0 : index
      %c0_110 = arith.constant 0 : index
      %320 = vector.load %arg6[%c0_108, %c0_109, %c0_110] : memref<2x16x128xf32, #tpu.memory_space<vmem>>, vector<2x16x128xf32>
      tpu.vector_store %arg6[%c0_108, %c0_109, %c0_110], %319 {strides = array<i32>} : memref<2x16x128xf32, #tpu.memory_space<vmem>>, vector<2x16x128xf32>,
      %cst_111 = arith.constant 0.000000e+00 : f32
      %321 = vector.broadcast %cst_111 : f32 to vector<2x16x128xf32>
      %c0_112 = arith.constant 0 : index
      %c0_113 = arith.constant 0 : index
      %c0_114 = arith.constant 0 : index
      %322 = vector.load %arg7[%c0_112, %c0_113, %c0_114] : memref<2x16x128xf32, #tpu.memory_space<vmem>>, vector<2x16x128xf32>
      tpu.vector_store %arg7[%c0_112, %c0_113, %c0_114], %321 {strides = array<i32>} : memref<2x16x128xf32, #tpu.memory_space<vmem>>, vector<2x16x128xf32>,
    } else {
    }
    %c0 = arith.constant 0 : index
    %c0_1 = arith.constant 0 : index
    %c0_2 = arith.constant 0 : index
    %3 = vector.load %arg6[%c0, %c0_1, %c0_2] : memref<2x16x128xf32, #tpu.memory_space<vmem>>, vector<1x16x128xf32>
    %4 = vector.shape_cast %3 : vector<1x16x128xf32> to vector<16x128xf32>
    %5 = arith.truncf %4 : vector<16x128xf32> to vector<16x128xbf16>
    %c1 = arith.constant 1 : index
    %c0_3 = arith.constant 0 : index
    %c0_4 = arith.constant 0 : index
    %6 = vector.load %arg6[%c1, %c0_3, %c0_4] : memref<2x16x128xf32, #tpu.memory_space<vmem>>, vector<1x16x128xf32>
    %7 = vector.shape_cast %6 : vector<1x16x128xf32> to vector<16x128xf32>
    %8 = arith.truncf %7 : vector<16x128xf32> to vector<16x128xbf16>
    %c0_5 = arith.constant 0 : index
    %c0_6 = arith.constant 0 : index
    %c0_7 = arith.constant 0 : index
    %9 = vector.load %arg7[%c0_5, %c0_6, %c0_7] : memref<2x16x128xf32, #tpu.memory_space<vmem>>, vector<1x16x128xf32>
    %10 = vector.shape_cast %9 : vector<1x16x128xf32> to vector<16x128xf32>
    %c1_8 = arith.constant 1 : index
    %c0_9 = arith.constant 0 : index
    %c0_10 = arith.constant 0 : index
    %11 = vector.load %arg7[%c1_8, %c0_9, %c0_10] : memref<2x16x128xf32, #tpu.memory_space<vmem>>, vector<1x16x128xf32>
    %12 = vector.shape_cast %11 : vector<1x16x128xf32> to vector<16x128xf32>
    %c4_i32 = arith.constant 4 : i32
    %13 = arith.muli %arg0, %c4_i32 : i32
    %c0_i32_11 = arith.constant 0 : i32
    %14 = arith.addi %13, %c0_i32_11 : i32
    %c6_i32 = arith.constant 6 : i32
    %15 = arith.cmpi slt, %14, %c6_i32 : i32
    %c0_12 = arith.constant 0 : index
    %c0_13 = arith.constant 0 : index
    %c0_14 = arith.constant 0 : index
    %16 = vector.load %arg1[%c0_12, %c0_13, %c0_14] : memref<4x16x512xbf16, #tpu.memory_space<vmem>>, vector<1x16x512xbf16>
    %17 = vector.shape_cast %16 : vector<1x16x512xbf16> to vector<16x512xbf16>
    %18 = arith.extf %17 : vector<16x512xbf16> to vector<16x512xf32>
    %c0_15 = arith.constant 0 : index
    %c0_16 = arith.constant 0 : index
    %19 = vector.load %arg2[%c0_15, %c0_16] : memref<128x512xbf16, #tpu.memory_space<vmem>>, vector<128x512xbf16>
    %cst = arith.constant dense<0.000000e+00> : vector<16x512xf32>
    %20 = tpu.matmul %5, %19, %cst {dimension_numbers = #tpu.dot_dimension_numbers<[1], [0], [0], [1], [0, 0, 1, 1], [], []>} : vector<16x128xbf16>, vector<128x512xbf16>, vector<16x512xf32> -> vector<16x512xf32>
    %21 = arith.addf %18, %20 : vector<16x512xf32>
    %22 = vector.extract_strided_slice %21 {offsets = [0, 0], sizes = [16, 128], strides = [1, 1]} : vector<16x512xf32> to vector<16x128xf32>
    %23 = arith.negf %22 : vector<16x128xf32>
    %24 = math.exp %23 : vector<16x128xf32>
    %cst_17 = arith.constant 1.000000e+00 : f32
    %25 = vector.broadcast %cst_17 : f32 to vector<16x128xf32>
    %26 = arith.addf %25, %24 : vector<16x128xf32>
    %27 = arith.divf %25, %26 : vector<16x128xf32>
    %28 = vector.extract_strided_slice %21 {offsets = [0, 128], sizes = [16, 128], strides = [1, 1]} : vector<16x512xf32> to vector<16x128xf32>
    %29 = arith.negf %28 : vector<16x128xf32>
    %30 = math.exp %29 : vector<16x128xf32>
    %cst_18 = arith.constant 1.000000e+00 : f32
    %31 = vector.broadcast %cst_18 : f32 to vector<16x128xf32>
    %32 = arith.addf %31, %30 : vector<16x128xf32>
    %33 = arith.divf %31, %32 : vector<16x128xf32>
    %34 = vector.extract_strided_slice %21 {offsets = [0, 256], sizes = [16, 128], strides = [1, 1]} : vector<16x512xf32> to vector<16x128xf32>
    %35 = math.tanh %34 : vector<16x128xf32>
    %36 = vector.extract_strided_slice %21 {offsets = [0, 384], sizes = [16, 128], strides = [1, 1]} : vector<16x512xf32> to vector<16x128xf32>
    %37 = arith.negf %36 : vector<16x128xf32>
    %38 = math.exp %37 : vector<16x128xf32>
    %cst_19 = arith.constant 1.000000e+00 : f32
    %39 = vector.broadcast %cst_19 : f32 to vector<16x128xf32>
    %40 = arith.addf %39, %38 : vector<16x128xf32>
    %41 = arith.divf %39, %40 : vector<16x128xf32>
    %42 = arith.mulf %33, %10 : vector<16x128xf32>
    %43 = arith.mulf %27, %35 : vector<16x128xf32>
    %44 = arith.addf %42, %43 : vector<16x128xf32>
    %45 = math.tanh %44 : vector<16x128xf32>
    %46 = arith.mulf %41, %45 : vector<16x128xf32>
    %47 = arith.truncf %46 : vector<16x128xf32> to vector<16x128xbf16>
    %c0_20 = arith.constant 0 : index
    %c0_21 = arith.constant 0 : index
    %48 = vector.load %arg3[%c0_20, %c0_21] : memref<128x512xbf16, #tpu.memory_space<vmem>>, vector<128x512xbf16>
    %cst_22 = arith.constant dense<0.000000e+00> : vector<16x512xf32>
    %49 = tpu.matmul %47, %48, %cst_22 {dimension_numbers = #tpu.dot_dimension_numbers<[1], [0], [0], [1], [0, 0, 1, 1], [], []>} : vector<16x128xbf16>, vector<128x512xbf16>, vector<16x512xf32> -> vector<16x512xf32>
    %c0_23 = arith.constant 0 : index
    %c0_24 = arith.constant 0 : index
    %50 = vector.load %arg4[%c0_23, %c0_24] : memref<128x512xbf16, #tpu.memory_space<vmem>>, vector<128x512xbf16>
    %cst_25 = arith.constant dense<0.000000e+00> : vector<16x512xf32>
    %51 = tpu.matmul %8, %50, %cst_25 {dimension_numbers = #tpu.dot_dimension_numbers<[1], [0], [0], [1], [0, 0, 1, 1], [], []>} : vector<16x128xbf16>, vector<128x512xbf16>, vector<16x512xf32> -> vector<16x512xf32>
    %52 = arith.addf %49, %51 : vector<16x512xf32>
    %c0_26 = arith.constant 0 : index
    %c0_27 = arith.constant 0 : index
    %53 = vector.load %arg5[%c0_26, %c0_27] : memref<1x512xf32, #tpu.memory_space<vmem>>, vector<1x512xf32>
    %54 = vector.broadcast %53 : vector<1x512xf32> to vector<16x512xf32>
    %55 = arith.addf %52, %54 : vector<16x512xf32>
    %56 = vector.extract_strided_slice %55 {offsets = [0, 0], sizes = [16, 128], strides = [1, 1]} : vector<16x512xf32> to vector<16x128xf32>
    %57 = arith.negf %56 : vector<16x128xf32>
    %58 = math.exp %57 : vector<16x128xf32>
    %cst_28 = arith.constant 1.000000e+00 : f32
    %59 = vector.broadcast %cst_28 : f32 to vector<16x128xf32>
    %60 = arith.addf %59, %58 : vector<16x128xf32>
    %61 = arith.divf %59, %60 : vector<16x128xf32>
    %62 = vector.extract_strided_slice %55 {offsets = [0, 128], sizes = [16, 128], strides = [1, 1]} : vector<16x512xf32> to vector<16x128xf32>
    %63 = arith.negf %62 : vector<16x128xf32>
    %64 = math.exp %63 : vector<16x128xf32>
    %cst_29 = arith.constant 1.000000e+00 : f32
    %65 = vector.broadcast %cst_29 : f32 to vector<16x128xf32>
    %66 = arith.addf %65, %64 : vector<16x128xf32>
    %67 = arith.divf %65, %66 : vector<16x128xf32>
    %68 = vector.extract_strided_slice %55 {offsets = [0, 256], sizes = [16, 128], strides = [1, 1]} : vector<16x512xf32> to vector<16x128xf32>
    %69 = math.tanh %68 : vector<16x128xf32>
    %70 = vector.extract_strided_slice %55 {offsets = [0, 384], sizes = [16, 128], strides = [1, 1]} : vector<16x512xf32> to vector<16x128xf32>
    %71 = arith.negf %70 : vector<16x128xf32>
    %72 = math.exp %71 : vector<16x128xf32>
    %cst_30 = arith.constant 1.000000e+00 : f32
    %73 = vector.broadcast %cst_30 : f32 to vector<16x128xf32>
    %74 = arith.addf %73, %72 : vector<16x128xf32>
    %75 = arith.divf %73, %74 : vector<16x128xf32>
    %76 = arith.mulf %67, %12 : vector<16x128xf32>
    %77 = arith.mulf %61, %69 : vector<16x128xf32>
    %78 = arith.addf %76, %77 : vector<16x128xf32>
    %79 = math.tanh %78 : vector<16x128xf32>
    %80 = arith.mulf %75, %79 : vector<16x128xf32>
    %81 = arith.truncf %80 : vector<16x128xf32> to vector<16x128xbf16>
    %82 = arith.select %15, %47, %5 : vector<16x128xbf16>
    %83 = arith.select %15, %44, %10 : vector<16x128xf32>
    %84 = arith.select %15, %81, %8 : vector<16x128xbf16>
    %85 = arith.select %15, %78, %12 : vector<16x128xf32>
    %c4_i32_31 = arith.constant 4 : i32
    %86 = arith.muli %arg0, %c4_i32_31 : i32
    %c1_i32 = arith.constant 1 : i32
    %87 = arith.addi %86, %c1_i32 : i32
    %c6_i32_32 = arith.constant 6 : i32
    %88 = arith.cmpi slt, %87, %c6_i32_32 : i32
    %c1_33 = arith.constant 1 : index
    %c0_34 = arith.constant 0 : index
    %c0_35 = arith.constant 0 : index
    %89 = vector.load %arg1[%c1_33, %c0_34, %c0_35] : memref<4x16x512xbf16, #tpu.memory_space<vmem>>, vector<1x16x512xbf16>
    %90 = vector.shape_cast %89 : vector<1x16x512xbf16> to vector<16x512xbf16>
    %91 = arith.extf %90 : vector<16x512xbf16> to vector<16x512xf32>
    %c0_36 = arith.constant 0 : index
    %c0_37 = arith.constant 0 : index
    %92 = vector.load %arg2[%c0_36, %c0_37] : memref<128x512xbf16, #tpu.memory_space<vmem>>, vector<128x512xbf16>
    %cst_38 = arith.constant dense<0.000000e+00> : vector<16x512xf32>
    %93 = tpu.matmul %82, %92, %cst_38 {dimension_numbers = #tpu.dot_dimension_numbers<[1], [0], [0], [1], [0, 0, 1, 1], [], []>} : vector<16x128xbf16>, vector<128x512xbf16>, vector<16x512xf32> -> vector<16x512xf32>
    %94 = arith.addf %91, %93 : vector<16x512xf32>
    %95 = vector.extract_strided_slice %94 {offsets = [0, 0], sizes = [16, 128], strides = [1, 1]} : vector<16x512xf32> to vector<16x128xf32>
    %96 = arith.negf %95 : vector<16x128xf32>
    %97 = math.exp %96 : vector<16x128xf32>
    %cst_39 = arith.constant 1.000000e+00 : f32
    %98 = vector.broadcast %cst_39 : f32 to vector<16x128xf32>
    %99 = arith.addf %98, %97 : vector<16x128xf32>
    %100 = arith.divf %98, %99 : vector<16x128xf32>
    %101 = vector.extract_strided_slice %94 {offsets = [0, 128], sizes = [16, 128], strides = [1, 1]} : vector<16x512xf32> to vector<16x128xf32>
    %102 = arith.negf %101 : vector<16x128xf32>
    %103 = math.exp %102 : vector<16x128xf32>
    %cst_40 = arith.constant 1.000000e+00 : f32
    %104 = vector.broadcast %cst_40 : f32 to vector<16x128xf32>
    %105 = arith.addf %104, %103 : vector<16x128xf32>
    %106 = arith.divf %104, %105 : vector<16x128xf32>
    %107 = vector.extract_strided_slice %94 {offsets = [0, 256], sizes = [16, 128], strides = [1, 1]} : vector<16x512xf32> to vector<16x128xf32>
    %108 = math.tanh %107 : vector<16x128xf32>
    %109 = vector.extract_strided_slice %94 {offsets = [0, 384], sizes = [16, 128], strides = [1, 1]} : vector<16x512xf32> to vector<16x128xf32>
    %110 = arith.negf %109 : vector<16x128xf32>
    %111 = math.exp %110 : vector<16x128xf32>
    %cst_41 = arith.constant 1.000000e+00 : f32
    %112 = vector.broadcast %cst_41 : f32 to vector<16x128xf32>
    %113 = arith.addf %112, %111 : vector<16x128xf32>
    %114 = arith.divf %112, %113 : vector<16x128xf32>
    %115 = arith.mulf %106, %83 : vector<16x128xf32>
    %116 = arith.mulf %100, %108 : vector<16x128xf32>
    %117 = arith.addf %115, %116 : vector<16x128xf32>
    %118 = math.tanh %117 : vector<16x128xf32>
    %119 = arith.mulf %114, %118 : vector<16x128xf32>
    %120 = arith.truncf %119 : vector<16x128xf32> to vector<16x128xbf16>
    %c0_42 = arith.constant 0 : index
    %c0_43 = arith.constant 0 : index
    %121 = vector.load %arg3[%c0_42, %c0_43] : memref<128x512xbf16, #tpu.memory_space<vmem>>, vector<128x512xbf16>
    %cst_44 = arith.constant dense<0.000000e+00> : vector<16x512xf32>
    %122 = tpu.matmul %120, %121, %cst_44 {dimension_numbers = #tpu.dot_dimension_numbers<[1], [0], [0], [1], [0, 0, 1, 1], [], []>} : vector<16x128xbf16>, vector<128x512xbf16>, vector<16x512xf32> -> vector<16x512xf32>
    %c0_45 = arith.constant 0 : index
    %c0_46 = arith.constant 0 : index
    %123 = vector.load %arg4[%c0_45, %c0_46] : memref<128x512xbf16, #tpu.memory_space<vmem>>, vector<128x512xbf16>
    %cst_47 = arith.constant dense<0.000000e+00> : vector<16x512xf32>
    %124 = tpu.matmul %84, %123, %cst_47 {dimension_numbers = #tpu.dot_dimension_numbers<[1], [0], [0], [1], [0, 0, 1, 1], [], []>} : vector<16x128xbf16>, vector<128x512xbf16>, vector<16x512xf32> -> vector<16x512xf32>
    %125 = arith.addf %122, %124 : vector<16x512xf32>
    %c0_48 = arith.constant 0 : index
    %c0_49 = arith.constant 0 : index
    %126 = vector.load %arg5[%c0_48, %c0_49] : memref<1x512xf32, #tpu.memory_space<vmem>>, vector<1x512xf32>
    %127 = vector.broadcast %126 : vector<1x512xf32> to vector<16x512xf32>
    %128 = arith.addf %125, %127 : vector<16x512xf32>
    %129 = vector.extract_strided_slice %128 {offsets = [0, 0], sizes = [16, 128], strides = [1, 1]} : vector<16x512xf32> to vector<16x128xf32>
    %130 = arith.negf %129 : vector<16x128xf32>
    %131 = math.exp %130 : vector<16x128xf32>
    %cst_50 = arith.constant 1.000000e+00 : f32
    %132 = vector.broadcast %cst_50 : f32 to vector<16x128xf32>
    %133 = arith.addf %132, %131 : vector<16x128xf32>
    %134 = arith.divf %132, %133 : vector<16x128xf32>
    %135 = vector.extract_strided_slice %128 {offsets = [0, 128], sizes = [16, 128], strides = [1, 1]} : vector<16x512xf32> to vector<16x128xf32>
    %136 = arith.negf %135 : vector<16x128xf32>
    %137 = math.exp %136 : vector<16x128xf32>
    %cst_51 = arith.constant 1.000000e+00 : f32
    %138 = vector.broadcast %cst_51 : f32 to vector<16x128xf32>
    %139 = arith.addf %138, %137 : vector<16x128xf32>
    %140 = arith.divf %138, %139 : vector<16x128xf32>
    %141 = vector.extract_strided_slice %128 {offsets = [0, 256], sizes = [16, 128], strides = [1, 1]} : vector<16x512xf32> to vector<16x128xf32>
    %142 = math.tanh %141 : vector<16x128xf32>
    %143 = vector.extract_strided_slice %128 {offsets = [0, 384], sizes = [16, 128], strides = [1, 1]} : vector<16x512xf32> to vector<16x128xf32>
    %144 = arith.negf %143 : vector<16x128xf32>
    %145 = math.exp %144 : vector<16x128xf32>
    %cst_52 = arith.constant 1.000000e+00 : f32
    %146 = vector.broadcast %cst_52 : f32 to vector<16x128xf32>
    %147 = arith.addf %146, %145 : vector<16x128xf32>
    %148 = arith.divf %146, %147 : vector<16x128xf32>
    %149 = arith.mulf %140, %85 : vector<16x128xf32>
    %150 = arith.mulf %134, %142 : vector<16x128xf32>
    %151 = arith.addf %149, %150 : vector<16x128xf32>
    %152 = math.tanh %151 : vector<16x128xf32>
    %153 = arith.mulf %148, %152 : vector<16x128xf32>
    %154 = arith.truncf %153 : vector<16x128xf32> to vector<16x128xbf16>
    %155 = arith.select %88, %120, %82 : vector<16x128xbf16>
    %156 = arith.select %88, %117, %83 : vector<16x128xf32>
    %157 = arith.select %88, %154, %84 : vector<16x128xbf16>
    %158 = arith.select %88, %151, %85 : vector<16x128xf32>
    %c4_i32_53 = arith.constant 4 : i32
    %159 = arith.muli %arg0, %c4_i32_53 : i32
    %c2_i32 = arith.constant 2 : i32
    %160 = arith.addi %159, %c2_i32 : i32
    %c6_i32_54 = arith.constant 6 : i32
    %161 = arith.cmpi slt, %160, %c6_i32_54 : i32
    %c2 = arith.constant 2 : index
    %c0_55 = arith.constant 0 : index
    %c0_56 = arith.constant 0 : index
    %162 = vector.load %arg1[%c2, %c0_55, %c0_56] : memref<4x16x512xbf16, #tpu.memory_space<vmem>>, vector<1x16x512xbf16>
    %163 = vector.shape_cast %162 : vector<1x16x512xbf16> to vector<16x512xbf16>
    %164 = arith.extf %163 : vector<16x512xbf16> to vector<16x512xf32>
    %c0_57 = arith.constant 0 : index
    %c0_58 = arith.constant 0 : index
    %165 = vector.load %arg2[%c0_57, %c0_58] : memref<128x512xbf16, #tpu.memory_space<vmem>>, vector<128x512xbf16>
    %cst_59 = arith.constant dense<0.000000e+00> : vector<16x512xf32>
    %166 = tpu.matmul %155, %165, %cst_59 {dimension_numbers = #tpu.dot_dimension_numbers<[1], [0], [0], [1], [0, 0, 1, 1], [], []>} : vector<16x128xbf16>, vector<128x512xbf16>, vector<16x512xf32> -> vector<16x512xf32>
    %167 = arith.addf %164, %166 : vector<16x512xf32>
    %168 = vector.extract_strided_slice %167 {offsets = [0, 0], sizes = [16, 128], strides = [1, 1]} : vector<16x512xf32> to vector<16x128xf32>
    %169 = arith.negf %168 : vector<16x128xf32>
    %170 = math.exp %169 : vector<16x128xf32>
    %cst_60 = arith.constant 1.000000e+00 : f32
    %171 = vector.broadcast %cst_60 : f32 to vector<16x128xf32>
    %172 = arith.addf %171, %170 : vector<16x128xf32>
    %173 = arith.divf %171, %172 : vector<16x128xf32>
    %174 = vector.extract_strided_slice %167 {offsets = [0, 128], sizes = [16, 128], strides = [1, 1]} : vector<16x512xf32> to vector<16x128xf32>
    %175 = arith.negf %174 : vector<16x128xf32>
    %176 = math.exp %175 : vector<16x128xf32>
    %cst_61 = arith.constant 1.000000e+00 : f32
    %177 = vector.broadcast %cst_61 : f32 to vector<16x128xf32>
    %178 = arith.addf %177, %176 : vector<16x128xf32>
    %179 = arith.divf %177, %178 : vector<16x128xf32>
    %180 = vector.extract_strided_slice %167 {offsets = [0, 256], sizes = [16, 128], strides = [1, 1]} : vector<16x512xf32> to vector<16x128xf32>
    %181 = math.tanh %180 : vector<16x128xf32>
    %182 = vector.extract_strided_slice %167 {offsets = [0, 384], sizes = [16, 128], strides = [1, 1]} : vector<16x512xf32> to vector<16x128xf32>
    %183 = arith.negf %182 : vector<16x128xf32>
    %184 = math.exp %183 : vector<16x128xf32>
    %cst_62 = arith.constant 1.000000e+00 : f32
    %185 = vector.broadcast %cst_62 : f32 to vector<16x128xf32>
    %186 = arith.addf %185, %184 : vector<16x128xf32>
    %187 = arith.divf %185, %186 : vector<16x128xf32>
    %188 = arith.mulf %179, %156 : vector<16x128xf32>
    %189 = arith.mulf %173, %181 : vector<16x128xf32>
    %190 = arith.addf %188, %189 : vector<16x128xf32>
    %191 = math.tanh %190 : vector<16x128xf32>
    %192 = arith.mulf %187, %191 : vector<16x128xf32>
    %193 = arith.truncf %192 : vector<16x128xf32> to vector<16x128xbf16>
    %c0_63 = arith.constant 0 : index
    %c0_64 = arith.constant 0 : index
    %194 = vector.load %arg3[%c0_63, %c0_64] : memref<128x512xbf16, #tpu.memory_space<vmem>>, vector<128x512xbf16>
    %cst_65 = arith.constant dense<0.000000e+00> : vector<16x512xf32>
    %195 = tpu.matmul %193, %194, %cst_65 {dimension_numbers = #tpu.dot_dimension_numbers<[1], [0], [0], [1], [0, 0, 1, 1], [], []>} : vector<16x128xbf16>, vector<128x512xbf16>, vector<16x512xf32> -> vector<16x512xf32>
    %c0_66 = arith.constant 0 : index
    %c0_67 = arith.constant 0 : index
    %196 = vector.load %arg4[%c0_66, %c0_67] : memref<128x512xbf16, #tpu.memory_space<vmem>>, vector<128x512xbf16>
    %cst_68 = arith.constant dense<0.000000e+00> : vector<16x512xf32>
    %197 = tpu.matmul %157, %196, %cst_68 {dimension_numbers = #tpu.dot_dimension_numbers<[1], [0], [0], [1], [0, 0, 1, 1], [], []>} : vector<16x128xbf16>, vector<128x512xbf16>, vector<16x512xf32> -> vector<16x512xf32>
    %198 = arith.addf %195, %197 : vector<16x512xf32>
    %c0_69 = arith.constant 0 : index
    %c0_70 = arith.constant 0 : index
    %199 = vector.load %arg5[%c0_69, %c0_70] : memref<1x512xf32, #tpu.memory_space<vmem>>, vector<1x512xf32>
    %200 = vector.broadcast %199 : vector<1x512xf32> to vector<16x512xf32>
    %201 = arith.addf %198, %200 : vector<16x512xf32>
    %202 = vector.extract_strided_slice %201 {offsets = [0, 0], sizes = [16, 128], strides = [1, 1]} : vector<16x512xf32> to vector<16x128xf32>
    %203 = arith.negf %202 : vector<16x128xf32>
    %204 = math.exp %203 : vector<16x128xf32>
    %cst_71 = arith.constant 1.000000e+00 : f32
    %205 = vector.broadcast %cst_71 : f32 to vector<16x128xf32>
    %206 = arith.addf %205, %204 : vector<16x128xf32>
    %207 = arith.divf %205, %206 : vector<16x128xf32>
    %208 = vector.extract_strided_slice %201 {offsets = [0, 128], sizes = [16, 128], strides = [1, 1]} : vector<16x512xf32> to vector<16x128xf32>
    %209 = arith.negf %208 : vector<16x128xf32>
    %210 = math.exp %209 : vector<16x128xf32>
    %cst_72 = arith.constant 1.000000e+00 : f32
    %211 = vector.broadcast %cst_72 : f32 to vector<16x128xf32>
    %212 = arith.addf %211, %210 : vector<16x128xf32>
    %213 = arith.divf %211, %212 : vector<16x128xf32>
    %214 = vector.extract_strided_slice %201 {offsets = [0, 256], sizes = [16, 128], strides = [1, 1]} : vector<16x512xf32> to vector<16x128xf32>
    %215 = math.tanh %214 : vector<16x128xf32>
    %216 = vector.extract_strided_slice %201 {offsets = [0, 384], sizes = [16, 128], strides = [1, 1]} : vector<16x512xf32> to vector<16x128xf32>
    %217 = arith.negf %216 : vector<16x128xf32>
    %218 = math.exp %217 : vector<16x128xf32>
    %cst_73 = arith.constant 1.000000e+00 : f32
    %219 = vector.broadcast %cst_73 : f32 to vector<16x128xf32>
    %220 = arith.addf %219, %218 : vector<16x128xf32>
    %221 = arith.divf %219, %220 : vector<16x128xf32>
    %222 = arith.mulf %213, %158 : vector<16x128xf32>
    %223 = arith.mulf %207, %215 : vector<16x128xf32>
    %224 = arith.addf %222, %223 : vector<16x128xf32>
    %225 = math.tanh %224 : vector<16x128xf32>
    %226 = arith.mulf %221, %225 : vector<16x128xf32>
    %227 = arith.truncf %226 : vector<16x128xf32> to vector<16x128xbf16>
    %228 = arith.select %161, %193, %155 : vector<16x128xbf16>
    %229 = arith.select %161, %190, %156 : vector<16x128xf32>
    %230 = arith.select %161, %227, %157 : vector<16x128xbf16>
    %231 = arith.select %161, %224, %158 : vector<16x128xf32>
    %c4_i32_74 = arith.constant 4 : i32
    %232 = arith.muli %arg0, %c4_i32_74 : i32
    %c3_i32 = arith.constant 3 : i32
    %233 = arith.addi %232, %c3_i32 : i32
    %c6_i32_75 = arith.constant 6 : i32
    %234 = arith.cmpi slt, %233, %c6_i32_75 : i32
    %c3 = arith.constant 3 : index
    %c0_76 = arith.constant 0 : index
    %c0_77 = arith.constant 0 : index
    %235 = vector.load %arg1[%c3, %c0_76, %c0_77] : memref<4x16x512xbf16, #tpu.memory_space<vmem>>, vector<1x16x512xbf16>
    %236 = vector.shape_cast %235 : vector<1x16x512xbf16> to vector<16x512xbf16>
    %237 = arith.extf %236 : vector<16x512xbf16> to vector<16x512xf32>
    %c0_78 = arith.constant 0 : index
    %c0_79 = arith.constant 0 : index
    %238 = vector.load %arg2[%c0_78, %c0_79] : memref<128x512xbf16, #tpu.memory_space<vmem>>, vector<128x512xbf16>
    %cst_80 = arith.constant dense<0.000000e+00> : vector<16x512xf32>
    %239 = tpu.matmul %228, %238, %cst_80 {dimension_numbers = #tpu.dot_dimension_numbers<[1], [0], [0], [1], [0, 0, 1, 1], [], []>} : vector<16x128xbf16>, vector<128x512xbf16>, vector<16x512xf32> -> vector<16x512xf32>
    %240 = arith.addf %237, %239 : vector<16x512xf32>
    %241 = vector.extract_strided_slice %240 {offsets = [0, 0], sizes = [16, 128], strides = [1, 1]} : vector<16x512xf32> to vector<16x128xf32>
    %242 = arith.negf %241 : vector<16x128xf32>
    %243 = math.exp %242 : vector<16x128xf32>
    %cst_81 = arith.constant 1.000000e+00 : f32
    %244 = vector.broadcast %cst_81 : f32 to vector<16x128xf32>
    %245 = arith.addf %244, %243 : vector<16x128xf32>
    %246 = arith.divf %244, %245 : vector<16x128xf32>
    %247 = vector.extract_strided_slice %240 {offsets = [0, 128], sizes = [16, 128], strides = [1, 1]} : vector<16x512xf32> to vector<16x128xf32>
    %248 = arith.negf %247 : vector<16x128xf32>
    %249 = math.exp %248 : vector<16x128xf32>
    %cst_82 = arith.constant 1.000000e+00 : f32
    %250 = vector.broadcast %cst_82 : f32 to vector<16x128xf32>
    %251 = arith.addf %250, %249 : vector<16x128xf32>
    %252 = arith.divf %250, %251 : vector<16x128xf32>
    %253 = vector.extract_strided_slice %240 {offsets = [0, 256], sizes = [16, 128], strides = [1, 1]} : vector<16x512xf32> to vector<16x128xf32>
    %254 = math.tanh %253 : vector<16x128xf32>
    %255 = vector.extract_strided_slice %240 {offsets = [0, 384], sizes = [16, 128], strides = [1, 1]} : vector<16x512xf32> to vector<16x128xf32>
    %256 = arith.negf %255 : vector<16x128xf32>
    %257 = math.exp %256 : vector<16x128xf32>
    %cst_83 = arith.constant 1.000000e+00 : f32
    %258 = vector.broadcast %cst_83 : f32 to vector<16x128xf32>
    %259 = arith.addf %258, %257 : vector<16x128xf32>
    %260 = arith.divf %258, %259 : vector<16x128xf32>
    %261 = arith.mulf %252, %229 : vector<16x128xf32>
    %262 = arith.mulf %246, %254 : vector<16x128xf32>
    %263 = arith.addf %261, %262 : vector<16x128xf32>
    %264 = math.tanh %263 : vector<16x128xf32>
    %265 = arith.mulf %260, %264 : vector<16x128xf32>
    %266 = arith.truncf %265 : vector<16x128xf32> to vector<16x128xbf16>
    %c0_84 = arith.constant 0 : index
    %c0_85 = arith.constant 0 : index
    %267 = vector.load %arg3[%c0_84, %c0_85] : memref<128x512xbf16, #tpu.memory_space<vmem>>, vector<128x512xbf16>
    %cst_86 = arith.constant dense<0.000000e+00> : vector<16x512xf32>
    %268 = tpu.matmul %266, %267, %cst_86 {dimension_numbers = #tpu.dot_dimension_numbers<[1], [0], [0], [1], [0, 0, 1, 1], [], []>} : vector<16x128xbf16>, vector<128x512xbf16>, vector<16x512xf32> -> vector<16x512xf32>
    %c0_87 = arith.constant 0 : index
    %c0_88 = arith.constant 0 : index
    %269 = vector.load %arg4[%c0_87, %c0_88] : memref<128x512xbf16, #tpu.memory_space<vmem>>, vector<128x512xbf16>
    %cst_89 = arith.constant dense<0.000000e+00> : vector<16x512xf32>
    %270 = tpu.matmul %230, %269, %cst_89 {dimension_numbers = #tpu.dot_dimension_numbers<[1], [0], [0], [1], [0, 0, 1, 1], [], []>} : vector<16x128xbf16>, vector<128x512xbf16>, vector<16x512xf32> -> vector<16x512xf32>
    %271 = arith.addf %268, %270 : vector<16x512xf32>
    %c0_90 = arith.constant 0 : index
    %c0_91 = arith.constant 0 : index
    %272 = vector.load %arg5[%c0_90, %c0_91] : memref<1x512xf32, #tpu.memory_space<vmem>>, vector<1x512xf32>
    %273 = vector.broadcast %272 : vector<1x512xf32> to vector<16x512xf32>
    %274 = arith.addf %271, %273 : vector<16x512xf32>
    %275 = vector.extract_strided_slice %274 {offsets = [0, 0], sizes = [16, 128], strides = [1, 1]} : vector<16x512xf32> to vector<16x128xf32>
    %276 = arith.negf %275 : vector<16x128xf32>
    %277 = math.exp %276 : vector<16x128xf32>
    %cst_92 = arith.constant 1.000000e+00 : f32
    %278 = vector.broadcast %cst_92 : f32 to vector<16x128xf32>
    %279 = arith.addf %278, %277 : vector<16x128xf32>
    %280 = arith.divf %278, %279 : vector<16x128xf32>
    %281 = vector.extract_strided_slice %274 {offsets = [0, 128], sizes = [16, 128], strides = [1, 1]} : vector<16x512xf32> to vector<16x128xf32>
    %282 = arith.negf %281 : vector<16x128xf32>
    %283 = math.exp %282 : vector<16x128xf32>
    %cst_93 = arith.constant 1.000000e+00 : f32
    %284 = vector.broadcast %cst_93 : f32 to vector<16x128xf32>
    %285 = arith.addf %284, %283 : vector<16x128xf32>
    %286 = arith.divf %284, %285 : vector<16x128xf32>
    %287 = vector.extract_strided_slice %274 {offsets = [0, 256], sizes = [16, 128], strides = [1, 1]} : vector<16x512xf32> to vector<16x128xf32>
    %288 = math.tanh %287 : vector<16x128xf32>
    %289 = vector.extract_strided_slice %274 {offsets = [0, 384], sizes = [16, 128], strides = [1, 1]} : vector<16x512xf32> to vector<16x128xf32>
    %290 = arith.negf %289 : vector<16x128xf32>
    %291 = math.exp %290 : vector<16x128xf32>
    %cst_94 = arith.constant 1.000000e+00 : f32
    %292 = vector.broadcast %cst_94 : f32 to vector<16x128xf32>
    %293 = arith.addf %292, %291 : vector<16x128xf32>
    %294 = arith.divf %292, %293 : vector<16x128xf32>
    %295 = arith.mulf %286, %231 : vector<16x128xf32>
    %296 = arith.mulf %280, %288 : vector<16x128xf32>
    %297 = arith.addf %295, %296 : vector<16x128xf32>
    %298 = math.tanh %297 : vector<16x128xf32>
    %299 = arith.mulf %294, %298 : vector<16x128xf32>
    %300 = arith.truncf %299 : vector<16x128xf32> to vector<16x128xbf16>
    %301 = arith.select %234, %266, %228 : vector<16x128xbf16>
    %302 = arith.select %234, %263, %229 : vector<16x128xf32>
    %303 = arith.select %234, %300, %230 : vector<16x128xbf16>
    %304 = arith.select %234, %297, %231 : vector<16x128xf32>
    %305 = arith.extf %301 : vector<16x128xbf16> to vector<16x128xf32>
    %c0_95 = arith.constant 0 : index
    %c0_96 = arith.constant 0 : index
    %c0_97 = arith.constant 0 : index
    %306 = vector.load %arg6[%c0_95, %c0_96, %c0_97] : memref<2x16x128xf32, #tpu.memory_space<vmem>>, vector<1x16x128xf32>
    %307 = vector.shape_cast %306 : vector<1x16x128xf32> to vector<16x128xf32>
    %308 = vector.shape_cast %305 : vector<16x128xf32> to vector<1x16x128xf32>
    tpu.vector_store %arg6[%c0_95, %c0_96, %c0_97], %308 {strides = array<i32>} : memref<2x16x128xf32, #tpu.memory_space<vmem>>, vector<1x16x128xf32>,
    %309 = arith.extf %303 : vector<16x128xbf16> to vector<16x128xf32>
    %c1_98 = arith.constant 1 : index
    %c0_99 = arith.constant 0 : index
    %c0_100 = arith.constant 0 : index
    %310 = vector.load %arg6[%c1_98, %c0_99, %c0_100] : memref<2x16x128xf32, #tpu.memory_space<vmem>>, vector<1x16x128xf32>
    %311 = vector.shape_cast %310 : vector<1x16x128xf32> to vector<16x128xf32>
    %312 = vector.shape_cast %309 : vector<16x128xf32> to vector<1x16x128xf32>
    tpu.vector_store %arg6[%c1_98, %c0_99, %c0_100], %312 {strides = array<i32>} : memref<2x16x128xf32, #tpu.memory_space<vmem>>, vector<1x16x128xf32>,
    %c0_101 = arith.constant 0 : index
    %c0_102 = arith.constant 0 : index
    %c0_103 = arith.constant 0 : index
    %313 = vector.load %arg7[%c0_101, %c0_102, %c0_103] : memref<2x16x128xf32, #tpu.memory_space<vmem>>, vector<1x16x128xf32>
    %314 = vector.shape_cast %313 : vector<1x16x128xf32> to vector<16x128xf32>
    %315 = vector.shape_cast %302 : vector<16x128xf32> to vector<1x16x128xf32>
    tpu.vector_store %arg7[%c0_101, %c0_102, %c0_103], %315 {strides = array<i32>} : memref<2x16x128xf32, #tpu.memory_space<vmem>>, vector<1x16x128xf32>,
    %c1_104 = arith.constant 1 : index
    %c0_105 = arith.constant 0 : index
    %c0_106 = arith.constant 0 : index
    %316 = vector.load %arg7[%c1_104, %c0_105, %c0_106] : memref<2x16x128xf32, #tpu.memory_space<vmem>>, vector<1x16x128xf32>
    %317 = vector.shape_cast %316 : vector<1x16x128xf32> to vector<16x128xf32>
    %318 = vector.shape_cast %304 : vector<16x128xf32> to vector<1x16x128xf32>
    tpu.vector_store %arg7[%c1_104, %c0_105, %c0_106], %318 {strides = array<i32>} : memref<2x16x128xf32, #tpu.memory_space<vmem>>, vector<1x16x128xf32>,
    return
  }
  func.func @transform_0(%arg0: i32) -> (i32, i32, i32) {
    %c0_i32 = arith.constant 0 : i32
    %c0_i32_0 = arith.constant 0 : i32
    %c0_i32_1 = arith.constant 0 : i32
    return %arg0, %c0_i32, %c0_i32_0 : i32, i32, i32
  }
  func.func @transform_1(%arg0: i32) -> (i32, i32) {
    %c0_i32 = arith.constant 0 : i32
    %c0_i32_0 = arith.constant 0 : i32
    %c0_i32_1 = arith.constant 0 : i32
    return %c0_i32, %c0_i32_0 : i32, i32
  }
  func.func @transform_2(%arg0: i32) -> (i32, i32) {
    %c0_i32 = arith.constant 0 : i32
    %c0_i32_0 = arith.constant 0 : i32
    %c0_i32_1 = arith.constant 0 : i32
    return %c0_i32, %c0_i32_0 : i32, i32
  }
  func.func @transform_3(%arg0: i32) -> (i32, i32) {
    %c0_i32 = arith.constant 0 : i32
    %c0_i32_0 = arith.constant 0 : i32
    %c0_i32_1 = arith.constant 0 : i32
    return %c0_i32, %c0_i32_0 : i32, i32
  }
  func.func @transform_4(%arg0: i32) -> (i32, i32) {
    %c0_i32 = arith.constant 0 : i32
    %c0_i32_0 = arith.constant 0 : i32
    %c0_i32_1 = arith.constant 0 : i32
    return %c0_i32, %c0_i32_0 : i32, i32
  }
  func.func @transform_5(%arg0: i32) -> (i32, i32, i32) {
    %c0_i32 = arith.constant 0 : i32
    %c0_i32_0 = arith.constant 0 : i32
    %c0_i32_1 = arith.constant 0 : i32
    %c0_i32_2 = arith.constant 0 : i32
    return %c0_i32, %c0_i32_0, %c0_i32_1 : i32, i32, i32
  }
  func.func @transform_6(%arg0: i32) -> (i32, i32, i32) {
    %c0_i32 = arith.constant 0 : i32
    %c0_i32_0 = arith.constant 0 : i32
    %c0_i32_1 = arith.constant 0 : i32
    %c0_i32_2 = arith.constant 0 : i32
    return %c0_i32, %c0_i32_0, %c0_i32_1 : i32, i32, i32
  }
}

module attributes {stable_mosaic.version = 11 : i64} {
  func.func @_dec_fused_kernel(%arg0: i32, %arg1: memref<4xi32, #tpu.memory_space<smem>>, %arg2: memref<1x16x128xbf16, #tpu.memory_space<vmem>>, %arg3: memref<2x16x128xf32, #tpu.memory_space<vmem>>, %arg4: memref<2x16x128xf32, #tpu.memory_space<vmem>>, %arg5: memref<128x128xbf16, #tpu.memory_space<vmem>>, %arg6: memref<128x512xbf16, #tpu.memory_space<vmem>>, %arg7: memref<128x512xbf16, #tpu.memory_space<vmem>>, %arg8: memref<1x512xf32, #tpu.memory_space<vmem>>, %arg9: memref<128x512xbf16, #tpu.memory_space<vmem>>, %arg10: memref<128x512xbf16, #tpu.memory_space<vmem>>, %arg11: memref<1x512xf32, #tpu.memory_space<vmem>>, %arg12: memref<128x128xbf16, #tpu.memory_space<vmem>>, %arg13: memref<1x128xf32, #tpu.memory_space<vmem>>, %arg14: memref<128x128xbf16, #tpu.memory_space<vmem>>, %arg15: memref<1x128xf32, #tpu.memory_space<vmem>>, %arg16: memref<1x16x128xf32, #tpu.memory_space<vmem>>, %arg17: memref<2x16x128xf32, #tpu.memory_space<vmem>>, %arg18: memref<2x16x128xf32, #tpu.memory_space<vmem>>, %arg19: memref<16x128xbf16, #tpu.memory_space<vmem>>) attributes {dimension_semantics = [#tpu.dimension_semantics<arbitrary>], iteration_bounds = array<i64: 4>, scalar_prefetch = 1 : i64, scratch_operands = 3 : i64, tpu.core_type = #tpu.core_type<tc>, window_params = [{transform_indices = @transform_0, window_bounds = array<i64: 1, 16, 128>}, {pipeline_mode = #tpu.pipeline_mode<synchronous>, transform_indices = @transform_1, window_bounds = array<i64: 2, 16, 128>}, {pipeline_mode = #tpu.pipeline_mode<synchronous>, transform_indices = @transform_2, window_bounds = array<i64: 2, 16, 128>}, {pipeline_mode = #tpu.pipeline_mode<synchronous>, transform_indices = @transform_3, window_bounds = array<i64: 128, 128>}, {pipeline_mode = #tpu.pipeline_mode<synchronous>, transform_indices = @transform_4, window_bounds = array<i64: 128, 512>}, {pipeline_mode = #tpu.pipeline_mode<synchronous>, transform_indices = @transform_5, window_bounds = array<i64: 128, 512>}, {pipeline_mode = #tpu.pipeline_mode<synchronous>, transform_indices = @transform_6, window_bounds = array<i64: 1, 512>}, {pipeline_mode = #tpu.pipeline_mode<synchronous>, transform_indices = @transform_7, window_bounds = array<i64: 128, 512>}, {pipeline_mode = #tpu.pipeline_mode<synchronous>, transform_indices = @transform_8, window_bounds = array<i64: 128, 512>}, {pipeline_mode = #tpu.pipeline_mode<synchronous>, transform_indices = @transform_9, window_bounds = array<i64: 1, 512>}, {pipeline_mode = #tpu.pipeline_mode<synchronous>, transform_indices = @transform_10, window_bounds = array<i64: 128, 128>}, {pipeline_mode = #tpu.pipeline_mode<synchronous>, transform_indices = @transform_11, window_bounds = array<i64: 1, 128>}, {pipeline_mode = #tpu.pipeline_mode<synchronous>, transform_indices = @transform_12, window_bounds = array<i64: 128, 128>}, {pipeline_mode = #tpu.pipeline_mode<synchronous>, transform_indices = @transform_13, window_bounds = array<i64: 1, 128>}, {transform_indices = @transform_14, window_bounds = array<i64: 1, 16, 128>}]} {
    %c0_i32 = arith.constant 0 : i32
    %0 = arith.cmpi eq, %arg0, %c0_i32 : i32
    %1 = arith.extui %0 : i1 to i32
    %c0_i32_0 = arith.constant 0 : i32
    %2 = arith.cmpi ne, %1, %c0_i32_0 : i32
    scf.if %2 {
      %c0_68 = arith.constant 0 : index
      %c0_69 = arith.constant 0 : index
      %c0_70 = arith.constant 0 : index
      %132 = vector.load %arg3[%c0_68, %c0_69, %c0_70] : memref<2x16x128xf32, #tpu.memory_space<vmem>>, vector<2x16x128xf32>
      %c0_71 = arith.constant 0 : index
      %c0_72 = arith.constant 0 : index
      %c0_73 = arith.constant 0 : index
      %133 = vector.load %arg17[%c0_71, %c0_72, %c0_73] : memref<2x16x128xf32, #tpu.memory_space<vmem>>, vector<2x16x128xf32>
      tpu.vector_store %arg17[%c0_71, %c0_72, %c0_73], %132 {strides = array<i32>} : memref<2x16x128xf32, #tpu.memory_space<vmem>>, vector<2x16x128xf32>,
      %c0_74 = arith.constant 0 : index
      %c0_75 = arith.constant 0 : index
      %c0_76 = arith.constant 0 : index
      %134 = vector.load %arg4[%c0_74, %c0_75, %c0_76] : memref<2x16x128xf32, #tpu.memory_space<vmem>>, vector<2x16x128xf32>
      %c0_77 = arith.constant 0 : index
      %c0_78 = arith.constant 0 : index
      %c0_79 = arith.constant 0 : index
      %135 = vector.load %arg18[%c0_77, %c0_78, %c0_79] : memref<2x16x128xf32, #tpu.memory_space<vmem>>, vector<2x16x128xf32>
      tpu.vector_store %arg18[%c0_77, %c0_78, %c0_79], %134 {strides = array<i32>} : memref<2x16x128xf32, #tpu.memory_space<vmem>>, vector<2x16x128xf32>,
      %c0_80 = arith.constant 0 : index
      %c0_81 = arith.constant 0 : index
      %c0_82 = arith.constant 0 : index
      %136 = vector.load %arg2[%c0_80, %c0_81, %c0_82] : memref<1x16x128xbf16, #tpu.memory_space<vmem>>, vector<1x16x128xbf16>
      %137 = vector.shape_cast %136 : vector<1x16x128xbf16> to vector<16x128xbf16>
      %c0_83 = arith.constant 0 : index
      %c0_84 = arith.constant 0 : index
      %138 = vector.load %arg19[%c0_83, %c0_84] : memref<16x128xbf16, #tpu.memory_space<vmem>>, vector<16x128xbf16>
      tpu.vector_store %arg19[%c0_83, %c0_84], %137 {strides = array<i32>} : memref<16x128xbf16, #tpu.memory_space<vmem>>, vector<16x128xbf16>,
    } else {
    }
    %c0_i32_1 = arith.constant 0 : i32
    %3 = arith.cmpi sgt, %arg0, %c0_i32_1 : i32
    %4 = arith.extui %3 : i1 to i32
    %c0_i32_2 = arith.constant 0 : i32
    %5 = arith.cmpi ne, %4, %c0_i32_2 : i32
    scf.if %5 {
      %c1_i32 = arith.constant 1 : i32
      %132 = arith.subi %arg0, %c1_i32 : i32
      %133 = arith.index_cast %132 : i32 to index
      %134 = memref.load %arg1[%133] : memref<4xi32, #tpu.memory_space<smem>>
      %c1_i32_68 = arith.constant 1 : i32
      %135 = arith.cmpi eq, %134, %c1_i32_68 : i32
      %c0_69 = arith.constant 0 : index
      %c0_70 = arith.constant 0 : index
      %c0_71 = arith.constant 0 : index
      %136 = vector.load %arg2[%c0_69, %c0_70, %c0_71] : memref<1x16x128xbf16, #tpu.memory_space<vmem>>, vector<1x16x128xbf16>
      %137 = vector.shape_cast %136 : vector<1x16x128xbf16> to vector<16x128xbf16>
      %c0_72 = arith.constant 0 : index
      %c0_73 = arith.constant 0 : index
      %138 = vector.load %arg19[%c0_72, %c0_73] : memref<16x128xbf16, #tpu.memory_space<vmem>>, vector<16x128xbf16>
      %139 = arith.select %135, %137, %138 : vector<16x128xbf16>
      %c0_74 = arith.constant 0 : index
      %c0_75 = arith.constant 0 : index
      %140 = vector.load %arg19[%c0_74, %c0_75] : memref<16x128xbf16, #tpu.memory_space<vmem>>, vector<16x128xbf16>
      tpu.vector_store %arg19[%c0_74, %c0_75], %139 {strides = array<i32>} : memref<16x128xbf16, #tpu.memory_space<vmem>>, vector<16x128xbf16>,
    } else {
    }
    %c0 = arith.constant 0 : index
    %c0_3 = arith.constant 0 : index
    %6 = vector.load %arg19[%c0, %c0_3] : memref<16x128xbf16, #tpu.memory_space<vmem>>, vector<16x128xbf16>
    %c0_4 = arith.constant 0 : index
    %c0_5 = arith.constant 0 : index
    %c0_6 = arith.constant 0 : index
    %7 = vector.load %arg17[%c0_4, %c0_5, %c0_6] : memref<2x16x128xf32, #tpu.memory_space<vmem>>, vector<1x16x128xf32>
    %8 = vector.shape_cast %7 : vector<1x16x128xf32> to vector<16x128xf32>
    %9 = arith.truncf %8 : vector<16x128xf32> to vector<16x128xbf16>
    %c1 = arith.constant 1 : index
    %c0_7 = arith.constant 0 : index
    %c0_8 = arith.constant 0 : index
    %10 = vector.load %arg17[%c1, %c0_7, %c0_8] : memref<2x16x128xf32, #tpu.memory_space<vmem>>, vector<1x16x128xf32>
    %11 = vector.shape_cast %10 : vector<1x16x128xf32> to vector<16x128xf32>
    %12 = arith.truncf %11 : vector<16x128xf32> to vector<16x128xbf16>
    %c0_9 = arith.constant 0 : index
    %c0_10 = arith.constant 0 : index
    %c0_11 = arith.constant 0 : index
    %13 = vector.load %arg18[%c0_9, %c0_10, %c0_11] : memref<2x16x128xf32, #tpu.memory_space<vmem>>, vector<1x16x128xf32>
    %14 = vector.shape_cast %13 : vector<1x16x128xf32> to vector<16x128xf32>
    %c1_12 = arith.constant 1 : index
    %c0_13 = arith.constant 0 : index
    %c0_14 = arith.constant 0 : index
    %15 = vector.load %arg18[%c1_12, %c0_13, %c0_14] : memref<2x16x128xf32, #tpu.memory_space<vmem>>, vector<1x16x128xf32>
    %16 = vector.shape_cast %15 : vector<1x16x128xf32> to vector<16x128xf32>
    %c0_15 = arith.constant 0 : index
    %c0_16 = arith.constant 0 : index
    %17 = vector.load %arg6[%c0_15, %c0_16] : memref<128x512xbf16, #tpu.memory_space<vmem>>, vector<128x512xbf16>
    %cst = arith.constant dense<0.000000e+00> : vector<16x512xf32>
    %18 = tpu.matmul %6, %17, %cst {dimension_numbers = #tpu.dot_dimension_numbers<[1], [0], [0], [1], [0, 0, 1, 1], [], []>} : vector<16x128xbf16>, vector<128x512xbf16>, vector<16x512xf32> -> vector<16x512xf32>
    %c0_17 = arith.constant 0 : index
    %c0_18 = arith.constant 0 : index
    %19 = vector.load %arg7[%c0_17, %c0_18] : memref<128x512xbf16, #tpu.memory_space<vmem>>, vector<128x512xbf16>
    %cst_19 = arith.constant dense<0.000000e+00> : vector<16x512xf32>
    %20 = tpu.matmul %9, %19, %cst_19 {dimension_numbers = #tpu.dot_dimension_numbers<[1], [0], [0], [1], [0, 0, 1, 1], [], []>} : vector<16x128xbf16>, vector<128x512xbf16>, vector<16x512xf32> -> vector<16x512xf32>
    %21 = arith.addf %18, %20 : vector<16x512xf32>
    %c0_20 = arith.constant 0 : index
    %c0_21 = arith.constant 0 : index
    %22 = vector.load %arg8[%c0_20, %c0_21] : memref<1x512xf32, #tpu.memory_space<vmem>>, vector<1x512xf32>
    %23 = vector.broadcast %22 : vector<1x512xf32> to vector<16x512xf32>
    %24 = arith.addf %21, %23 : vector<16x512xf32>
    %25 = vector.extract_strided_slice %24 {offsets = [0, 0], sizes = [16, 128], strides = [1, 1]} : vector<16x512xf32> to vector<16x128xf32>
    %26 = arith.negf %25 : vector<16x128xf32>
    %27 = math.exp %26 : vector<16x128xf32>
    %cst_22 = arith.constant 1.000000e+00 : f32
    %28 = vector.broadcast %cst_22 : f32 to vector<16x128xf32>
    %29 = arith.addf %28, %27 : vector<16x128xf32>
    %30 = arith.divf %28, %29 : vector<16x128xf32>
    %31 = vector.extract_strided_slice %24 {offsets = [0, 128], sizes = [16, 128], strides = [1, 1]} : vector<16x512xf32> to vector<16x128xf32>
    %32 = arith.negf %31 : vector<16x128xf32>
    %33 = math.exp %32 : vector<16x128xf32>
    %cst_23 = arith.constant 1.000000e+00 : f32
    %34 = vector.broadcast %cst_23 : f32 to vector<16x128xf32>
    %35 = arith.addf %34, %33 : vector<16x128xf32>
    %36 = arith.divf %34, %35 : vector<16x128xf32>
    %37 = vector.extract_strided_slice %24 {offsets = [0, 256], sizes = [16, 128], strides = [1, 1]} : vector<16x512xf32> to vector<16x128xf32>
    %38 = math.tanh %37 : vector<16x128xf32>
    %39 = vector.extract_strided_slice %24 {offsets = [0, 384], sizes = [16, 128], strides = [1, 1]} : vector<16x512xf32> to vector<16x128xf32>
    %40 = arith.negf %39 : vector<16x128xf32>
    %41 = math.exp %40 : vector<16x128xf32>
    %cst_24 = arith.constant 1.000000e+00 : f32
    %42 = vector.broadcast %cst_24 : f32 to vector<16x128xf32>
    %43 = arith.addf %42, %41 : vector<16x128xf32>
    %44 = arith.divf %42, %43 : vector<16x128xf32>
    %45 = arith.mulf %36, %14 : vector<16x128xf32>
    %46 = arith.mulf %30, %38 : vector<16x128xf32>
    %47 = arith.addf %45, %46 : vector<16x128xf32>
    %48 = math.tanh %47 : vector<16x128xf32>
    %49 = arith.mulf %44, %48 : vector<16x128xf32>
    %50 = arith.truncf %49 : vector<16x128xf32> to vector<16x128xbf16>
    %c0_25 = arith.constant 0 : index
    %c0_26 = arith.constant 0 : index
    %51 = vector.load %arg9[%c0_25, %c0_26] : memref<128x512xbf16, #tpu.memory_space<vmem>>, vector<128x512xbf16>
    %cst_27 = arith.constant dense<0.000000e+00> : vector<16x512xf32>
    %52 = tpu.matmul %50, %51, %cst_27 {dimension_numbers = #tpu.dot_dimension_numbers<[1], [0], [0], [1], [0, 0, 1, 1], [], []>} : vector<16x128xbf16>, vector<128x512xbf16>, vector<16x512xf32> -> vector<16x512xf32>
    %c0_28 = arith.constant 0 : index
    %c0_29 = arith.constant 0 : index
    %53 = vector.load %arg10[%c0_28, %c0_29] : memref<128x512xbf16, #tpu.memory_space<vmem>>, vector<128x512xbf16>
    %cst_30 = arith.constant dense<0.000000e+00> : vector<16x512xf32>
    %54 = tpu.matmul %12, %53, %cst_30 {dimension_numbers = #tpu.dot_dimension_numbers<[1], [0], [0], [1], [0, 0, 1, 1], [], []>} : vector<16x128xbf16>, vector<128x512xbf16>, vector<16x512xf32> -> vector<16x512xf32>
    %55 = arith.addf %52, %54 : vector<16x512xf32>
    %c0_31 = arith.constant 0 : index
    %c0_32 = arith.constant 0 : index
    %56 = vector.load %arg11[%c0_31, %c0_32] : memref<1x512xf32, #tpu.memory_space<vmem>>, vector<1x512xf32>
    %57 = vector.broadcast %56 : vector<1x512xf32> to vector<16x512xf32>
    %58 = arith.addf %55, %57 : vector<16x512xf32>
    %59 = vector.extract_strided_slice %58 {offsets = [0, 0], sizes = [16, 128], strides = [1, 1]} : vector<16x512xf32> to vector<16x128xf32>
    %60 = arith.negf %59 : vector<16x128xf32>
    %61 = math.exp %60 : vector<16x128xf32>
    %cst_33 = arith.constant 1.000000e+00 : f32
    %62 = vector.broadcast %cst_33 : f32 to vector<16x128xf32>
    %63 = arith.addf %62, %61 : vector<16x128xf32>
    %64 = arith.divf %62, %63 : vector<16x128xf32>
    %65 = vector.extract_strided_slice %58 {offsets = [0, 128], sizes = [16, 128], strides = [1, 1]} : vector<16x512xf32> to vector<16x128xf32>
    %66 = arith.negf %65 : vector<16x128xf32>
    %67 = math.exp %66 : vector<16x128xf32>
    %cst_34 = arith.constant 1.000000e+00 : f32
    %68 = vector.broadcast %cst_34 : f32 to vector<16x128xf32>
    %69 = arith.addf %68, %67 : vector<16x128xf32>
    %70 = arith.divf %68, %69 : vector<16x128xf32>
    %71 = vector.extract_strided_slice %58 {offsets = [0, 256], sizes = [16, 128], strides = [1, 1]} : vector<16x512xf32> to vector<16x128xf32>
    %72 = math.tanh %71 : vector<16x128xf32>
    %73 = vector.extract_strided_slice %58 {offsets = [0, 384], sizes = [16, 128], strides = [1, 1]} : vector<16x512xf32> to vector<16x128xf32>
    %74 = arith.negf %73 : vector<16x128xf32>
    %75 = math.exp %74 : vector<16x128xf32>
    %cst_35 = arith.constant 1.000000e+00 : f32
    %76 = vector.broadcast %cst_35 : f32 to vector<16x128xf32>
    %77 = arith.addf %76, %75 : vector<16x128xf32>
    %78 = arith.divf %76, %77 : vector<16x128xf32>
    %79 = arith.mulf %70, %16 : vector<16x128xf32>
    %80 = arith.mulf %64, %72 : vector<16x128xf32>
    %81 = arith.addf %79, %80 : vector<16x128xf32>
    %82 = math.tanh %81 : vector<16x128xf32>
    %83 = arith.mulf %78, %82 : vector<16x128xf32>
    %c0_36 = arith.constant 0 : index
    %c0_37 = arith.constant 0 : index
    %c0_38 = arith.constant 0 : index
    %84 = vector.load %arg18[%c0_36, %c0_37, %c0_38] : memref<2x16x128xf32, #tpu.memory_space<vmem>>, vector<1x16x128xf32>
    %85 = vector.shape_cast %84 : vector<1x16x128xf32> to vector<16x128xf32>
    %86 = vector.shape_cast %47 : vector<16x128xf32> to vector<1x16x128xf32>
    tpu.vector_store %arg18[%c0_36, %c0_37, %c0_38], %86 {strides = array<i32>} : memref<2x16x128xf32, #tpu.memory_space<vmem>>, vector<1x16x128xf32>,
    %c1_39 = arith.constant 1 : index
    %c0_40 = arith.constant 0 : index
    %c0_41 = arith.constant 0 : index
    %87 = vector.load %arg18[%c1_39, %c0_40, %c0_41] : memref<2x16x128xf32, #tpu.memory_space<vmem>>, vector<1x16x128xf32>
    %88 = vector.shape_cast %87 : vector<1x16x128xf32> to vector<16x128xf32>
    %89 = vector.shape_cast %81 : vector<16x128xf32> to vector<1x16x128xf32>
    tpu.vector_store %arg18[%c1_39, %c0_40, %c0_41], %89 {strides = array<i32>} : memref<2x16x128xf32, #tpu.memory_space<vmem>>, vector<1x16x128xf32>,
    %90 = tpu.concatenate %49, %83 in 0 : vector<16x128xf32>, vector<16x128xf32> -> vector<32x128xf32>
    %91 = arith.truncf %90 : vector<32x128xf32> to vector<32x128xbf16>
    %c0_42 = arith.constant 0 : index
    %c0_43 = arith.constant 0 : index
    %92 = vector.load %arg12[%c0_42, %c0_43] : memref<128x128xbf16, #tpu.memory_space<vmem>>, vector<128x128xbf16>
    %cst_44 = arith.constant dense<0.000000e+00> : vector<32x128xf32>
    %93 = tpu.matmul %91, %92, %cst_44 {dimension_numbers = #tpu.dot_dimension_numbers<[1], [0], [0], [1], [0, 0, 1, 1], [], []>} : vector<32x128xbf16>, vector<128x128xbf16>, vector<32x128xf32> -> vector<32x128xf32>
    %c0_45 = arith.constant 0 : index
    %c0_46 = arith.constant 0 : index
    %94 = vector.load %arg13[%c0_45, %c0_46] : memref<1x128xf32, #tpu.memory_space<vmem>>, vector<1x128xf32>
    %95 = vector.broadcast %94 : vector<1x128xf32> to vector<32x128xf32>
    %96 = arith.addf %93, %95 : vector<32x128xf32>
    %97 = vector.extract_strided_slice %96 {offsets = [0, 0], sizes = [16, 128], strides = [1, 1]} : vector<32x128xf32> to vector<16x128xf32>
    %c0_47 = arith.constant 0 : index
    %c0_48 = arith.constant 0 : index
    %c0_49 = arith.constant 0 : index
    %98 = vector.load %arg17[%c0_47, %c0_48, %c0_49] : memref<2x16x128xf32, #tpu.memory_space<vmem>>, vector<1x16x128xf32>
    %99 = vector.shape_cast %98 : vector<1x16x128xf32> to vector<16x128xf32>
    %100 = vector.shape_cast %97 : vector<16x128xf32> to vector<1x16x128xf32>
    tpu.vector_store %arg17[%c0_47, %c0_48, %c0_49], %100 {strides = array<i32>} : memref<2x16x128xf32, #tpu.memory_space<vmem>>, vector<1x16x128xf32>,
    %101 = vector.extract_strided_slice %96 {offsets = [16, 0], sizes = [16, 128], strides = [1, 1]} : vector<32x128xf32> to vector<16x128xf32>
    %c1_50 = arith.constant 1 : index
    %c0_51 = arith.constant 0 : index
    %c0_52 = arith.constant 0 : index
    %102 = vector.load %arg17[%c1_50, %c0_51, %c0_52] : memref<2x16x128xf32, #tpu.memory_space<vmem>>, vector<1x16x128xf32>
    %103 = vector.shape_cast %102 : vector<1x16x128xf32> to vector<16x128xf32>
    %104 = vector.shape_cast %101 : vector<16x128xf32> to vector<1x16x128xf32>
    tpu.vector_store %arg17[%c1_50, %c0_51, %c0_52], %104 {strides = array<i32>} : memref<2x16x128xf32, #tpu.memory_space<vmem>>, vector<1x16x128xf32>,
    %105 = arith.truncf %83 : vector<16x128xf32> to vector<16x128xbf16>
    %c0_53 = arith.constant 0 : index
    %c0_54 = arith.constant 0 : index
    %106 = vector.load %arg14[%c0_53, %c0_54] : memref<128x128xbf16, #tpu.memory_space<vmem>>, vector<128x128xbf16>
    %cst_55 = arith.constant dense<0.000000e+00> : vector<16x128xf32>
    %107 = tpu.matmul %105, %106, %cst_55 {dimension_numbers = #tpu.dot_dimension_numbers<[1], [0], [0], [1], [0, 0, 1, 1], [], []>} : vector<16x128xbf16>, vector<128x128xbf16>, vector<16x128xf32> -> vector<16x128xf32>
    %c0_56 = arith.constant 0 : index
    %c0_57 = arith.constant 0 : index
    %108 = vector.load %arg15[%c0_56, %c0_57] : memref<1x128xf32, #tpu.memory_space<vmem>>, vector<1x128xf32>
    %109 = vector.broadcast %108 : vector<1x128xf32> to vector<16x128xf32>
    %110 = arith.addf %107, %109 : vector<16x128xf32>
    %c0_58 = arith.constant 0 : index
    %c0_59 = arith.constant 0 : index
    %c0_60 = arith.constant 0 : index
    %111 = vector.load %arg16[%c0_58, %c0_59, %c0_60] : memref<1x16x128xf32, #tpu.memory_space<vmem>>, vector<1x16x128xf32>
    %112 = vector.shape_cast %111 : vector<1x16x128xf32> to vector<16x128xf32>
    %113 = vector.shape_cast %110 : vector<16x128xf32> to vector<1x16x128xf32>
    tpu.vector_store %arg16[%c0_58, %c0_59, %c0_60], %113 {strides = array<i32>} : memref<1x16x128xf32, #tpu.memory_space<vmem>>, vector<1x16x128xf32>,
    %114 = tpu.iota {dimensions = array<i32: 1>} : vector<16x128xi32>
    %cst_61 = arith.constant dense<0xFF800000> : vector<16xf32>
    %115 = vector.multi_reduction <maximumf>, %110, %cst_61 [1] : vector<16x128xf32> to vector<16xf32>
    %116 = vector.shape_cast %115 : vector<16xf32> to vector<16x1xf32>
    %117 = vector.broadcast %116 : vector<16x1xf32> to vector<16x128xf32>
    %118 = arith.cmpf oeq, %110, %117 : vector<16x128xf32>
    %c128_i32 = arith.constant 128 : i32
    %119 = vector.broadcast %c128_i32 : i32 to vector<16x128xi32>
    %120 = arith.select %118, %114, %119 : vector<16x128xi1>, vector<16x128xi32>
    %cst_62 = arith.constant dense<2147483647> : vector<16xi32>
    %121 = vector.multi_reduction <minsi>, %120, %cst_62 [1] : vector<16x128xi32> to vector<16xi32>
    %122 = vector.shape_cast %121 : vector<16xi32> to vector<16x1xi32>
    %123 = vector.broadcast %122 : vector<16x1xi32> to vector<16x128xi32>
    %124 = arith.cmpi eq, %114, %123 : vector<16x128xi32>
    %125 = arith.extui %124 : vector<16x128xi1> to vector<16x128xi32>
    %126 = arith.sitofp %125 : vector<16x128xi32> to vector<16x128xf32>
    %127 = arith.truncf %126 : vector<16x128xf32> to vector<16x128xbf16>
    %c0_63 = arith.constant 0 : index
    %c0_64 = arith.constant 0 : index
    %128 = vector.load %arg5[%c0_63, %c0_64] : memref<128x128xbf16, #tpu.memory_space<vmem>>, vector<128x128xbf16>
    %cst_65 = arith.constant dense<0.000000e+00> : vector<16x128xf32>
    %129 = tpu.matmul %127, %128, %cst_65 {dimension_numbers = #tpu.dot_dimension_numbers<[1], [0], [0], [1], [0, 0, 1, 1], [], []>} : vector<16x128xbf16>, vector<128x128xbf16>, vector<16x128xf32> -> vector<16x128xf32>
    %130 = arith.truncf %129 : vector<16x128xf32> to vector<16x128xbf16>
    %c0_66 = arith.constant 0 : index
    %c0_67 = arith.constant 0 : index
    %131 = vector.load %arg19[%c0_66, %c0_67] : memref<16x128xbf16, #tpu.memory_space<vmem>>, vector<16x128xbf16>
    tpu.vector_store %arg19[%c0_66, %c0_67], %130 {strides = array<i32>} : memref<16x128xbf16, #tpu.memory_space<vmem>>, vector<16x128xbf16>,
    return
  }
  func.func @transform_0(%arg0: i32, %arg1: memref<4xi32, #tpu.memory_space<smem>>) -> (i32, i32, i32) {
    %c0_i32 = arith.constant 0 : i32
    %c0_i32_0 = arith.constant 0 : i32
    %c0_i32_1 = arith.constant 0 : i32
    return %arg0, %c0_i32, %c0_i32_0 : i32, i32, i32
  }
  func.func @transform_1(%arg0: i32, %arg1: memref<4xi32, #tpu.memory_space<smem>>) -> (i32, i32, i32) {
    %c0_i32 = arith.constant 0 : i32
    %c0_i32_0 = arith.constant 0 : i32
    %c0_i32_1 = arith.constant 0 : i32
    %c0_i32_2 = arith.constant 0 : i32
    return %c0_i32, %c0_i32_0, %c0_i32_1 : i32, i32, i32
  }
  func.func @transform_2(%arg0: i32, %arg1: memref<4xi32, #tpu.memory_space<smem>>) -> (i32, i32, i32) {
    %c0_i32 = arith.constant 0 : i32
    %c0_i32_0 = arith.constant 0 : i32
    %c0_i32_1 = arith.constant 0 : i32
    %c0_i32_2 = arith.constant 0 : i32
    return %c0_i32, %c0_i32_0, %c0_i32_1 : i32, i32, i32
  }
  func.func @transform_3(%arg0: i32, %arg1: memref<4xi32, #tpu.memory_space<smem>>) -> (i32, i32) {
    %c0_i32 = arith.constant 0 : i32
    %c0_i32_0 = arith.constant 0 : i32
    %c0_i32_1 = arith.constant 0 : i32
    return %c0_i32, %c0_i32_0 : i32, i32
  }
  func.func @transform_4(%arg0: i32, %arg1: memref<4xi32, #tpu.memory_space<smem>>) -> (i32, i32) {
    %c0_i32 = arith.constant 0 : i32
    %c0_i32_0 = arith.constant 0 : i32
    %c0_i32_1 = arith.constant 0 : i32
    return %c0_i32, %c0_i32_0 : i32, i32
  }
  func.func @transform_5(%arg0: i32, %arg1: memref<4xi32, #tpu.memory_space<smem>>) -> (i32, i32) {
    %c0_i32 = arith.constant 0 : i32
    %c0_i32_0 = arith.constant 0 : i32
    %c0_i32_1 = arith.constant 0 : i32
    return %c0_i32, %c0_i32_0 : i32, i32
  }
  func.func @transform_6(%arg0: i32, %arg1: memref<4xi32, #tpu.memory_space<smem>>) -> (i32, i32) {
    %c0_i32 = arith.constant 0 : i32
    %c0_i32_0 = arith.constant 0 : i32
    %c0_i32_1 = arith.constant 0 : i32
    return %c0_i32, %c0_i32_0 : i32, i32
  }
  func.func @transform_7(%arg0: i32, %arg1: memref<4xi32, #tpu.memory_space<smem>>) -> (i32, i32) {
    %c0_i32 = arith.constant 0 : i32
    %c0_i32_0 = arith.constant 0 : i32
    %c0_i32_1 = arith.constant 0 : i32
    return %c0_i32, %c0_i32_0 : i32, i32
  }
  func.func @transform_8(%arg0: i32, %arg1: memref<4xi32, #tpu.memory_space<smem>>) -> (i32, i32) {
    %c0_i32 = arith.constant 0 : i32
    %c0_i32_0 = arith.constant 0 : i32
    %c0_i32_1 = arith.constant 0 : i32
    return %c0_i32, %c0_i32_0 : i32, i32
  }
  func.func @transform_9(%arg0: i32, %arg1: memref<4xi32, #tpu.memory_space<smem>>) -> (i32, i32) {
    %c0_i32 = arith.constant 0 : i32
    %c0_i32_0 = arith.constant 0 : i32
    %c0_i32_1 = arith.constant 0 : i32
    return %c0_i32, %c0_i32_0 : i32, i32
  }
  func.func @transform_10(%arg0: i32, %arg1: memref<4xi32, #tpu.memory_space<smem>>) -> (i32, i32) {
    %c0_i32 = arith.constant 0 : i32
    %c0_i32_0 = arith.constant 0 : i32
    %c0_i32_1 = arith.constant 0 : i32
    return %c0_i32, %c0_i32_0 : i32, i32
  }
  func.func @transform_11(%arg0: i32, %arg1: memref<4xi32, #tpu.memory_space<smem>>) -> (i32, i32) {
    %c0_i32 = arith.constant 0 : i32
    %c0_i32_0 = arith.constant 0 : i32
    %c0_i32_1 = arith.constant 0 : i32
    return %c0_i32, %c0_i32_0 : i32, i32
  }
  func.func @transform_12(%arg0: i32, %arg1: memref<4xi32, #tpu.memory_space<smem>>) -> (i32, i32) {
    %c0_i32 = arith.constant 0 : i32
    %c0_i32_0 = arith.constant 0 : i32
    %c0_i32_1 = arith.constant 0 : i32
    return %c0_i32, %c0_i32_0 : i32, i32
  }
  func.func @transform_13(%arg0: i32, %arg1: memref<4xi32, #tpu.memory_space<smem>>) -> (i32, i32) {
    %c0_i32 = arith.constant 0 : i32
    %c0_i32_0 = arith.constant 0 : i32
    %c0_i32_1 = arith.constant 0 : i32
    return %c0_i32, %c0_i32_0 : i32, i32
  }
  func.func @transform_14(%arg0: i32, %arg1: memref<4xi32, #tpu.memory_space<smem>>) -> (i32, i32, i32) {
    %c0_i32 = arith.constant 0 : i32
    %c0_i32_0 = arith.constant 0 : i32
    %c0_i32_1 = arith.constant 0 : i32
    return %arg0, %c0_i32, %c0_i32_0 : i32, i32, i32
  }
}

</mosaic_0001>

<bundles_post_ra>
// kernel: _seq2seq_jit.3
= control target key start
LH: loop header
LB: loop body
LE: loop exit
PB: predicated region body
PF: predicated region fallthrough
CT: control target
= control target key end

     0   :  { %s1023_s1 = inlined_call_operand.vmem [shape: bf16[128,512], index: 1, kind: input, shape index: {}]   ;;  %s1024_s0 = inlined_call_operand.vmem [shape: bf16[96,128], index: 0, kind: input, shape index: {}]   ;;  %s1025_s2 = inlined_call_operand.vmem [shape: f32[1,512], index: 2, kind: input, shape index: {}]   ;;  %s1026_s3 = inlined_call_operand.vmem [shape: bf16[96,512], index: 3, kind: output, shape index: {}]  }
   0x1   :  { %v610_v0 = vld [vmem:[%s1023_s1 + $0xe0] sm:$0xf]  ;;  %v660_v1 = vld [vmem:[%s1023_s1 + $0xec] sm:$0xf0]  ;;  %v658_v2 = vld [vmem:[%s1023_s1 + $0xe4] sm:$0xf] }
   0x2   :  { %v611_v3 = vor.u32 %v660_v1, %v610_v0  ;;  %v612_v4 = vld [vmem:[%s1023_s1 + $0xf0] sm:$0xf0]  ;;  %v618_v5 = vld [vmem:[%s1023_s1 + $0xe8] sm:$0xf]  ;;  %v661_v6 = vld [vmem:[%s1023_s1 + $0xf4] sm:$0xf0] }
   0x3   :  { %v615_v7 = vor.u32 %v658_v2, %v612_v4  ;;  %v619_v8 = vor.u32 %v661_v6, %v618_v5  ;;  %v659_v9 = vld [vmem:[%s1023_s1 + $0xec] sm:$0xf]  ;;  %v620_v10 = vld [vmem:[%s1023_s1 + $0xf8] sm:$0xf0]  ;;  %v594_v11 = vld [vmem:[%s1023_s1 + $0xc0] sm:$0xf] }
   0x4   :  { %264 = vmatpush.bf16.msra.mxu0 %v611_v3  ;;  %v623_v12 = vor.u32 %v659_v9, %v620_v10  ;;  %v656_v13 = vld [vmem:[%s1023_s1 + $0xcc] sm:$0xf0]  ;;  %v654_v14 = vld [vmem:[%s1023_s1 + $0xc4] sm:$0xf]  ;;  %v596_v15 = vld [vmem:[%s1023_s1 + $0xd0] sm:$0xf0] }
   0x5   :  { %303 = vmatpush.bf16.msra.mxu1 %v615_v7  ;;  %342 = vmatpush.bf16.msra.mxu2 %v619_v8  ;;  %v595_v16 = vor.u32 %v656_v13, %v594_v11  ;;  %v599_v17 = vor.u32 %v654_v14, %v596_v15  ;;  %v602_v18 = vld [vmem:[%s1023_s1 + $0xc8] sm:$0xf]  ;;  %v657_v19 = vld [vmem:[%s1023_s1 + $0xd4] sm:$0xf0]  ;;  %v655_v20 = vld [vmem:[%s1023_s1 + $0xcc] sm:$0xf] }
   0x6   :  { %381 = vmatpush.bf16.msra.mxu3 %v623_v12  ;;  %v603_v21 = vor.u32 %v657_v19, %v602_v18  ;;  %v604_v22 = vld [vmem:[%s1023_s1 + $0xd8] sm:$0xf0]  ;;  %v578_v23 = vld [vmem:[%s1023_s1 + $0xa0] sm:$0xf]  ;;  %v652_v24 = vld [vmem:[%s1023_s1 + $0xac] sm:$0xf0] }
   0x7   :  { %v607_v25 = vor.u32 %v655_v20, %v604_v22  ;;  %v650_v26 = vld [vmem:[%s1023_s1 + $0xa4] sm:$0xf]  ;;  %v580_v27 = vld [vmem:[%s1023_s1 + $0xb0] sm:$0xf0]  ;;  %v586_v28 = vld [vmem:[%s1023_s1 + $0xa8] sm:$0xf]  ;;  %v579_v29 = vor.u32 %v652_v24, %v578_v23 }
   0x8   :  { %265 = vmatpush.bf16.msra.mxu0 %v595_v16  ;;  %v653_v30 = vld [vmem:[%s1023_s1 + $0xb4] sm:$0xf0]  ;;  %v651_v31 = vld [vmem:[%s1023_s1 + $0xac] sm:$0xf]  ;;  %v588_v32 = vld [vmem:[%s1023_s1 + $0xb8] sm:$0xf0]  ;;  %v583_v33 = vor.u32 %v650_v26, %v580_v27 }
   0x9   :  { %304 = vmatpush.bf16.msra.mxu1 %v599_v17  ;;  %343 = vmatpush.bf16.msra.mxu2 %v603_v21  ;;  %v587_v34 = vor.u32 %v653_v30, %v586_v28  ;;  %v562_v35 = vld [vmem:[%s1023_s1 + $0x80] sm:$0xf]  ;;  %v648_v36 = vld [vmem:[%s1023_s1 + $0x8c] sm:$0xf0]  ;;  %v646_v37 = vld [vmem:[%s1023_s1 + $0x84] sm:$0xf]  ;;  %v591_v38 = vor.u32 %v651_v31, %v588_v32 }
   0xa   :  { %382 = vmatpush.bf16.msra.mxu3 %v607_v25  ;;  %v564_v39 = vld [vmem:[%s1023_s1 + $0x90] sm:$0xf0]  ;;  %v570_v40 = vld [vmem:[%s1023_s1 + $0x88] sm:$0xf]  ;;  %v649_v41 = vld [vmem:[%s1023_s1 + $0x94] sm:$0xf0]  ;;  %v563_v44 = vor.u32 %v648_v36, %v562_v35 }
   0xb   :  { %v647_v42 = vld [vmem:[%s1023_s1 + $0x8c] sm:$0xf]  ;;  %v572_v43 = vld [vmem:[%s1023_s1 + $0x98] sm:$0xf0]  ;;  %v567_v45 = vor.u32 %v646_v37, %v564_v39  ;;  %v571_v46 = vor.u32 %v649_v41, %v570_v40  ;;  %v546_v47 = vld [vmem:[%s1023_s1 + $0x60] sm:$0xf] }
   0xc   :  { %266 = vmatpush.bf16.msra.mxu0 %v579_v29  ;;  %v644_v48 = vld [vmem:[%s1023_s1 + $0x6c] sm:$0xf0]  ;;  %v642_v49 = vld [vmem:[%s1023_s1 + $0x64] sm:$0xf]  ;;  %v575_v50 = vor.u32 %v647_v42, %v572_v43  ;;  %v548_v51 = vld [vmem:[%s1023_s1 + $0x70] sm:$0xf0] }
   0xd   :  { %305 = vmatpush.bf16.msra.mxu1 %v583_v33  ;;  %344 = vmatpush.bf16.msra.mxu2 %v587_v34  ;;  %v554_v52 = vld [vmem:[%s1023_s1 + $0x68] sm:$0xf]  ;;  %v645_v53 = vld [vmem:[%s1023_s1 + $0x74] sm:$0xf0]  ;;  %v643_v54 = vld [vmem:[%s1023_s1 + $0x6c] sm:$0xf]  ;;  %v547_v56 = vor.u32 %v644_v48, %v546_v47  ;;  %v551_v57 = vor.u32 %v642_v49, %v548_v51 }
   0xe   :  { %383 = vmatpush.bf16.msra.mxu3 %v591_v38  ;;  %v556_v55 = vld [vmem:[%s1023_s1 + $0x78] sm:$0xf0]  ;;  %v555_v58 = vor.u32 %v645_v53, %v554_v52  ;;  %v530_v59 = vld [vmem:[%s1023_s1 + $0x40] sm:$0xf]  ;;  %v640_v60 = vld [vmem:[%s1023_s1 + $0x4c] sm:$0xf0] }
   0xf   :  { %v638_v61 = vld [vmem:[%s1023_s1 + $0x44] sm:$0xf]  ;;  %v559_v62 = vor.u32 %v643_v54, %v556_v55  ;;  %v532_v63 = vld [vmem:[%s1023_s1 + $0x50] sm:$0xf0]  ;;  %v538_v0 = vld [vmem:[%s1023_s1 + $0x48] sm:$0xf]  ;;  %v531_v4 = vor.u32 %v640_v60, %v530_v59 }
  0x10   :  { %267 = vmatpush.bf16.msra.mxu0 %v563_v44  ;;  %v641_v1 = vld [vmem:[%s1023_s1 + $0x54] sm:$0xf0]  ;;  %v639_v2 = vld [vmem:[%s1023_s1 + $0x4c] sm:$0xf]  ;;  %v540_v3 = vld [vmem:[%s1023_s1 + $0x58] sm:$0xf0]  ;;  %v535_v5 = vor.u32 %v638_v61, %v532_v63 }
  0x11   :  { %306 = vmatpush.bf16.msra.mxu1 %v567_v45  ;;  %345 = vmatpush.bf16.msra.mxu2 %v571_v46  ;;  %v539_v6 = vor.u32 %v641_v1, %v538_v0  ;;  %v514_v7 = vld [vmem:[%s1023_s1 + $0x20] sm:$0xf]  ;;  %v636_v8 = vld [vmem:[%s1023_s1 + $0x2c] sm:$0xf0]  ;;  %v634_v9 = vld [vmem:[%s1023_s1 + $0x24] sm:$0xf]  ;;  %v543_v10 = vor.u32 %v639_v2, %v540_v3 }
  0x12   :  { %384 = vmatpush.bf16.msra.mxu3 %v575_v50  ;;  %v516_v11 = vld [vmem:[%s1023_s1 + $0x30] sm:$0xf0]  ;;  %v522_v12 = vld [vmem:[%s1023_s1 + $0x28] sm:$0xf]  ;;  %v637_v13 = vld [vmem:[%s1023_s1 + $0x34] sm:$0xf0]  ;;  %v515_v16 = vor.u32 %v636_v8, %v514_v7 }
  0x13   :  { %v635_v14 = vld [vmem:[%s1023_s1 + $0x2c] sm:$0xf]  ;;  %v524_v15 = vld [vmem:[%s1023_s1 + $0x38] sm:$0xf0]  ;;  %v519_v17 = vor.u32 %v634_v9, %v516_v11  ;;  %v523_v18 = vor.u32 %v637_v13, %v522_v12  ;;  %v498_v19 = vld [vmem:[%s1023_s1] sm:$0xf] }
  0x14   :  { %268 = vmatpush.bf16.msra.mxu0 %v547_v56  ;;  %v632_v20 = vld [vmem:[%s1023_s1 + $0xc] sm:$0xf0]  ;;  %v630_v21 = vld [vmem:[%s1023_s1 + $0x4] sm:$0xf]  ;;  %v527_v22 = vor.u32 %v635_v14, %v524_v15  ;;  %v500_v23 = vld [vmem:[%s1023_s1 + $0x10] sm:$0xf0] }
  0x15   :  { %307 = vmatpush.bf16.msra.mxu1 %v551_v57  ;;  %346 = vmatpush.bf16.msra.mxu2 %v555_v58  ;;  %v506_v24 = vld [vmem:[%s1023_s1 + $0x8] sm:$0xf]  ;;  %v633_v25 = vld [vmem:[%s1023_s1 + $0x14] sm:$0xf0]  ;;  %v631_v26 = vld [vmem:[%s1023_s1 + $0xc] sm:$0xf]  ;;  %v499_v28 = vor.u32 %v632_v20, %v498_v19  ;;  %v503_v29 = vor.u32 %v630_v21, %v500_v23 }
  0x16   :  { %385 = vmatpush.bf16.msra.mxu3 %v559_v62  ;;  %v508_v27 = vld [vmem:[%s1023_s1 + $0x18] sm:$0xf0]  ;;  %v507_v30 = vor.u32 %v633_v25, %v506_v24  ;;  %v624_v32 = vld [vmem:[%s1024_s0] sm:$0xff]  ;;  %v625_v33 = vld [vmem:[%s1024_s0 + $0x8] sm:$0xff] }
  0x17   :  { %v511_v31 = vor.u32 %v631_v26, %v508_v27  ;;  %v626_v34 = vld [vmem:[%s1024_s0 + $0x10] sm:$0xff]  ;;  %v627_v35 = vld [vmem:[%s1024_s0 + $0x18] sm:$0xff]  ;;  %v628_v36 = vld [vmem:[%s1024_s0 + $0x20] sm:$0xff] }
  0x18   :  { %269 = vmatpush.bf16.msra.mxu0 %v531_v4  ;;  %v629_v37 = vld [vmem:[%s1024_s0 + $0x28] sm:$0xff]  ;;  %v58_v38 = vld [vmem:[%s1025_s2] sm:$0xf] }
  0x19   :  { %308 = vmatpush.bf16.msra.mxu1 %v535_v5  ;;  %347 = vmatpush.bf16.msra.mxu2 %v539_v6  ;;  %v895_v39 = vperm.slane %v58_v38, 0  ;;  %v897_v40 = vperm.slane %v58_v38, 1  ;;  %v901_v46 = vperm.slane %v58_v38, 2  ;;  %v903_v47 = vperm.slane %v58_v38, 3 }
  0x1a   :  { %386 = vmatpush.bf16.msra.mxu3 %v543_v10 }
  0x1c   :  { %270 = vmatpush.bf16.msra.mxu0 %v515_v16 }
  0x1d   :  { %309 = vmatpush.bf16.msra.mxu1 %v519_v17  ;;  %348 = vmatpush.bf16.msra.mxu2 %v523_v18 }
  0x1e   :  { %387 = vmatpush.bf16.msra.mxu3 %v527_v22 }
  0x20   :  { %271 = vmatpush.bf16.msra.mxu0 %v499_v28 }
  0x21   :  { %310 = vmatpush.bf16.msra.mxu1 %v503_v29  ;;  %349 = vmatpush.bf16.msra.mxu2 %v507_v30 }
  0x22   :  { %388 = vmatpush.bf16.msra.mxu3 %v511_v31 }
  0x23   :  { %272 = vmatmul.bf16.vlgmr.msra.gmra.mxu0 %v624_v32 }
  0x24   :  { %311 = vmatmul.bf16.vlgmr.msra.gmra.mxu1 %v624_v32  ;;  %350 = vmatmul.bf16.vlgmr.msra.gmra.mxu2 %v624_v32 }
  0x25   :  { %389 = vmatmul.bf16.vlgmr.msra.gmra.mxu3 %v624_v32 }
  0x33   :  { %277 = vmatmul.bf16.gmra.mxu0 %v625_v33 }
  0x34   :  { %316 = vmatmul.bf16.gmra.mxu1 %v625_v33  ;;  %355 = vmatmul.bf16.gmra.mxu2 %v625_v33 }
  0x35   :  { %394 = vmatmul.bf16.gmra.mxu3 %v625_v33 }
  0x43   :  { %282 = vmatmul.bf16.gmra.mxu0 %v626_v34 }
  0x44   :  { %321 = vmatmul.bf16.gmra.mxu1 %v626_v34  ;;  %360 = vmatmul.bf16.gmra.mxu2 %v626_v34 }
  0x45   :  { %399 = vmatmul.bf16.gmra.mxu3 %v626_v34 }
  0x53   :  { %287 = vmatmul.bf16.gmra.mxu0 %v627_v35 }
  0x54   :  { %326 = vmatmul.bf16.gmra.mxu1 %v627_v35  ;;  %365 = vmatmul.bf16.gmra.mxu2 %v627_v35 }
  0x55   :  { %404 = vmatmul.bf16.gmra.mxu3 %v627_v35 }
  0x63   :  { %292 = vmatmul.bf16.gmra.mxu0 %v628_v36 }
  0x64   :  { %331 = vmatmul.bf16.gmra.mxu1 %v628_v36  ;;  %370 = vmatmul.bf16.gmra.mxu2 %v628_v36 }
  0x65   :  { %409 = vmatmul.bf16.gmra.mxu3 %v628_v36 }
  0x73   :  { %297 = vmatmul.bf16.gmra.mxu0 %v629_v37 }
  0x74   :  { %336 = vmatmul.bf16.gmra.mxu1 %v629_v37  ;;  %375 = vmatmul.bf16.gmra.mxu2 %v629_v37 }
  0x75   :  { %414 = vmatmul.bf16.gmra.mxu3 %v629_v37 }
  0xa0   :  { %v273_v41 = vpop.f32.mrf.mxu0 }
  0xa1   :  { %v274_v42 = vadd.f32 %v273_v41, %v895_v39  ;;  %v312_v43 = vpop.f32.mrf.mxu1 }
  0xa2   :  { %v313_v44 = vadd.f32 %v312_v43, %v897_v40 }
  0xa4   :  { %v420_v45 = vpack.c.bf16 %v313_v44, %v274_v42 }
  0xa6   :  { %444 = vst [vmem:[%s1026_s3] sm:$0xff] %v420_v45 }
  0xa7   :  { %v351_v48 = vpop.f32.mrf.mxu2 }
  0xa8   :  { %v352_v49 = vadd.f32 %v351_v48, %v901_v46  ;;  %v390_v50 = vpop.f32.mrf.mxu3  ;;  %v275_v51 = vpop.f32.mrf.mxu0 }
  0xa9   :  { %v391_v52 = vadd.f32 %v390_v50, %v903_v47  ;;  %v276_v53 = vadd.f32 %v275_v51, %v895_v39  ;;  %v314_v54 = vpop.f32.mrf.mxu1 }
  0xaa   :  { %v315_v55 = vadd.f32 %v314_v54, %v897_v40 }
  0xab   :  { %v421_v56 = vpack.c.bf16 %v391_v52, %v352_v49 }
  0xac   :  { %v422_v57 = vpack.c.bf16 %v315_v55, %v276_v53 }
  0xad   :  { %445 = vst [vmem:[%s1026_s3 + $0x8] sm:$0xff] %v421_v56 }
  0xae   :  { %446 = vst [vmem:[%s1026_s3 + $0x10] sm:$0xff] %v422_v57 }
  0xaf   :  { %v353_v58 = vpop.f32.mrf.mxu2 }
  0xb0   :  { %v354_v59 = vadd.f32 %v353_v58, %v901_v46  ;;  %v392_v60 = vpop.f32.mrf.mxu3  ;;  %v278_v61 = vpop.f32.mrf.mxu0 }
  0xb1   :  { %v393_v62 = vadd.f32 %v392_v60, %v903_v47  ;;  %v279_v63 = vadd.f32 %v278_v61, %v895_v39  ;;  %v317_v0 = vpop.f32.mrf.mxu1 }
  0xb2   :  { %v318_v1 = vadd.f32 %v317_v0, %v897_v40 }
  0xb3   :  { %v423_v2 = vpack.c.bf16 %v393_v62, %v354_v59 }
  0xb4   :  { %v424_v3 = vpack.c.bf16 %v318_v1, %v279_v63 }
  0xb5   :  { %447 = vst [vmem:[%s1026_s3 + $0x18] sm:$0xff] %v423_v2 }
  0xb6   :  { %448 = vst [vmem:[%s1026_s3 + $0x20] sm:$0xff] %v424_v3 }
  0xb7   :  { %v356_v4 = vpop.f32.mrf.mxu2 }
  0xb8   :  { %v357_v5 = vadd.f32 %v356_v4, %v901_v46  ;;  %v395_v6 = vpop.f32.mrf.mxu3  ;;  %v280_v7 = vpop.f32.mrf.mxu0 }
  0xb9   :  { %v396_v8 = vadd.f32 %v395_v6, %v903_v47  ;;  %v281_v9 = vadd.f32 %v280_v7, %v895_v39  ;;  %v319_v10 = vpop.f32.mrf.mxu1 }
  0xba   :  { %v320_v11 = vadd.f32 %v319_v10, %v897_v40 }
  0xbb   :  { %v425_v12 = vpack.c.bf16 %v396_v8, %v357_v5 }
  0xbc   :  { %v426_v13 = vpack.c.bf16 %v320_v11, %v281_v9 }
  0xbd   :  { %449 = vst [vmem:[%s1026_s3 + $0x28] sm:$0xff] %v425_v12 }
  0xbe   :  { %450 = vst [vmem:[%s1026_s3 + $0x30] sm:$0xff] %v426_v13 }
  0xbf   :  { %v358_v14 = vpop.f32.mrf.mxu2 }
  0xc0   :  { %v359_v15 = vadd.f32 %v358_v14, %v901_v46  ;;  %v397_v16 = vpop.f32.mrf.mxu3  ;;  %v283_v17 = vpop.f32.mrf.mxu0 }
  0xc1   :  { %v398_v18 = vadd.f32 %v397_v16, %v903_v47  ;;  %v284_v19 = vadd.f32 %v283_v17, %v895_v39  ;;  %v322_v20 = vpop.f32.mrf.mxu1 }
  0xc2   :  { %v323_v21 = vadd.f32 %v322_v20, %v897_v40 }
  0xc3   :  { %v427_v22 = vpack.c.bf16 %v398_v18, %v359_v15 }
  0xc4   :  { %v428_v23 = vpack.c.bf16 %v323_v21, %v284_v19 }
  0xc5   :  { %451 = vst [vmem:[%s1026_s3 + $0x38] sm:$0xff] %v427_v22 }
  0xc6   :  { %452 = vst [vmem:[%s1026_s3 + $0x40] sm:$0xff] %v428_v23 }
  0xc7   :  { %v361_v24 = vpop.f32.mrf.mxu2 }
  0xc8   :  { %v362_v25 = vadd.f32 %v361_v24, %v901_v46  ;;  %v400_v26 = vpop.f32.mrf.mxu3  ;;  %v285_v27 = vpop.f32.mrf.mxu0 }
  0xc9   :  { %v401_v28 = vadd.f32 %v400_v26, %v903_v47  ;;  %v286_v29 = vadd.f32 %v285_v27, %v895_v39  ;;  %v324_v30 = vpop.f32.mrf.mxu1 }
  0xca   :  { %v325_v31 = vadd.f32 %v324_v30, %v897_v40 }
  0xcb   :  { %v429_v32 = vpack.c.bf16 %v401_v28, %v362_v25 }
  0xcc   :  { %v430_v33 = vpack.c.bf16 %v325_v31, %v286_v29 }
  0xcd   :  { %453 = vst [vmem:[%s1026_s3 + $0x48] sm:$0xff] %v429_v32 }
  0xce   :  { %454 = vst [vmem:[%s1026_s3 + $0x50] sm:$0xff] %v430_v33 }
  0xcf   :  { %v363_v34 = vpop.f32.mrf.mxu2 }
  0xd0   :  { %v364_v35 = vadd.f32 %v363_v34, %v901_v46  ;;  %v402_v36 = vpop.f32.mrf.mxu3  ;;  %v288_v37 = vpop.f32.mrf.mxu0 }
  0xd1   :  { %v403_v38 = vadd.f32 %v402_v36, %v903_v47  ;;  %v289_v41 = vadd.f32 %v288_v37, %v895_v39  ;;  %v327_v42 = vpop.f32.mrf.mxu1 }
  0xd2   :  { %v328_v43 = vadd.f32 %v327_v42, %v897_v40 }
  0xd3   :  { %v431_v44 = vpack.c.bf16 %v403_v38, %v364_v35 }
  0xd4   :  { %v432_v45 = vpack.c.bf16 %v328_v43, %v289_v41 }
  0xd5   :  { %455 = vst [vmem:[%s1026_s3 + $0x58] sm:$0xff] %v431_v44 }
  0xd6   :  { %456 = vst [vmem:[%s1026_s3 + $0x60] sm:$0xff] %v432_v45 }
  0xd7   :  { %v366_v48 = vpop.f32.mrf.mxu2 }
  0xd8   :  { %v367_v49 = vadd.f32 %v366_v48, %v901_v46  ;;  %v405_v50 = vpop.f32.mrf.mxu3  ;;  %v290_v51 = vpop.f32.mrf.mxu0 }
  0xd9   :  { %v406_v52 = vadd.f32 %v405_v50, %v903_v47  ;;  %v291_v53 = vadd.f32 %v290_v51, %v895_v39  ;;  %v329_v54 = vpop.f32.mrf.mxu1 }
  0xda   :  { %v330_v55 = vadd.f32 %v329_v54, %v897_v40 }
  0xdb   :  { %v433_v56 = vpack.c.bf16 %v406_v52, %v367_v49 }
  0xdc   :  { %v434_v57 = vpack.c.bf16 %v330_v55, %v291_v53 }
  0xdd   :  { %457 = vst [vmem:[%s1026_s3 + $0x68] sm:$0xff] %v433_v56 }
  0xde   :  { %458 = vst [vmem:[%s1026_s3 + $0x70] sm:$0xff] %v434_v57 }
  0xdf   :  { %v368_v58 = vpop.f32.mrf.mxu2 }
  0xe0   :  { %v369_v59 = vadd.f32 %v368_v58, %v901_v46  ;;  %v407_v60 = vpop.f32.mrf.mxu3  ;;  %v293_v61 = vpop.f32.mrf.mxu0 }
  0xe1   :  { %v408_v62 = vadd.f32 %v407_v60, %v903_v47  ;;  %v294_v63 = vadd.f32 %v293_v61, %v895_v39  ;;  %v332_v0 = vpop.f32.mrf.mxu1 }
  0xe2   :  { %v333_v1 = vadd.f32 %v332_v0, %v897_v40 }
  0xe3   :  { %v435_v2 = vpack.c.bf16 %v408_v62, %v369_v59 }
  0xe4   :  { %v436_v3 = vpack.c.bf16 %v333_v1, %v294_v63 }
  0xe5   :  { %459 = vst [vmem:[%s1026_s3 + $0x78] sm:$0xff] %v435_v2 }
  0xe6   :  { %460 = vst [vmem:[%s1026_s3 + $0x80] sm:$0xff] %v436_v3 }
  0xe7   :  { %v371_v4 = vpop.f32.mrf.mxu2 }
  0xe8   :  { %v372_v5 = vadd.f32 %v371_v4, %v901_v46  ;;  %v410_v6 = vpop.f32.mrf.mxu3  ;;  %v295_v7 = vpop.f32.mrf.mxu0 }
  0xe9   :  { %v411_v8 = vadd.f32 %v410_v6, %v903_v47  ;;  %v296_v9 = vadd.f32 %v295_v7, %v895_v39  ;;  %v334_v10 = vpop.f32.mrf.mxu1 }
  0xea   :  { %v335_v11 = vadd.f32 %v334_v10, %v897_v40 }
  0xeb   :  { %v437_v12 = vpack.c.bf16 %v411_v8, %v372_v5 }
  0xec   :  { %v438_v13 = vpack.c.bf16 %v335_v11, %v296_v9 }
  0xed   :  { %461 = vst [vmem:[%s1026_s3 + $0x88] sm:$0xff] %v437_v12 }
  0xee   :  { %462 = vst [vmem:[%s1026_s3 + $0x90] sm:$0xff] %v438_v13 }
  0xef   :  { %v373_v14 = vpop.f32.mrf.mxu2 }
  0xf0   :  { %v374_v15 = vadd.f32 %v373_v14, %v901_v46  ;;  %v412_v16 = vpop.f32.mrf.mxu3  ;;  %v298_v17 = vpop.f32.mrf.mxu0 }
  0xf1   :  { %v413_v18 = vadd.f32 %v412_v16, %v903_v47  ;;  %v299_v19 = vadd.f32 %v298_v17, %v895_v39  ;;  %v337_v20 = vpop.f32.mrf.mxu1 }
  0xf2   :  { %v338_v21 = vadd.f32 %v337_v20, %v897_v40 }
  0xf3   :  { %v439_v22 = vpack.c.bf16 %v413_v18, %v374_v15 }
  0xf4   :  { %v440_v23 = vpack.c.bf16 %v338_v21, %v299_v19 }
  0xf5   :  { %463 = vst [vmem:[%s1026_s3 + $0x98] sm:$0xff] %v439_v22 }
  0xf6   :  { %464 = vst [vmem:[%s1026_s3 + $0xa0] sm:$0xff] %v440_v23 }
  0xf7   :  { %v376_v24 = vpop.f32.mrf.mxu2 }
  0xf8   :  { %v377_v25 = vadd.f32 %v376_v24, %v901_v46  ;;  %v415_v26 = vpop.f32.mrf.mxu3  ;;  %v300_v27 = vpop.f32.mrf.mxu0 }
  0xf9   :  { %v416_v28 = vadd.f32 %v415_v26, %v903_v47  ;;  %v301_v29 = vadd.f32 %v300_v27, %v895_v39  ;;  %v339_v30 = vpop.f32.mrf.mxu1 }
  0xfa   :  { %v340_v31 = vadd.f32 %v339_v30, %v897_v40 }
  0xfb   :  { %v441_v32 = vpack.c.bf16 %v416_v28, %v377_v25 }
  0xfc   :  { %v442_v33 = vpack.c.bf16 %v340_v31, %v301_v29 }
  0xfd   :  { %465 = vst [vmem:[%s1026_s3 + $0xa8] sm:$0xff] %v441_v32 }
  0xfe   :  { %466 = vst [vmem:[%s1026_s3 + $0xb0] sm:$0xff] %v442_v33 }
  0xff   :  { %v378_v34 = vpop.f32.mrf.mxu2 }
 0x100   :  { %v379_v35 = vadd.f32 %v378_v34, %v901_v46  ;;  %v417_v36 = vpop.f32.mrf.mxu3 }
 0x101   :  { %v418_v37 = vadd.f32 %v417_v36, %v903_v47 }
 0x103   :  { %v443_v39 = vpack.c.bf16 %v418_v37, %v379_v35 }
 0x105   :  { %467 = vst [vmem:[%s1026_s3 + $0xb8] sm:$0xff] %v443_v39 }

// kernel: _seq2seq_jit.4
= control target key start
LH: loop header
LB: loop body
LE: loop exit
PB: predicated region body
PF: predicated region fallthrough
CT: control target
= control target key end

     0   :  { %12 = vsyncpa [#allocation3], 0  ;;  %s3783_s21 = smov 0   ;;  %s5901_s0 = inlined_call_operand.vmem [shape: bf16[8,16,512], index: 0, kind: input, shape index: {}]   ;;  %s5902_s1 = inlined_call_operand.vmem [shape: bf16[128,512], index: 1, kind: input, shape index: {}]   ;;  %s5903_s2 = inlined_call_operand.vmem [shape: bf16[128,512], index: 2, kind: input, shape index: {}]   ;;  %s5904_s3 = inlined_call_operand.hbm [shape: bf16[128,512], index: 3, kind: input, shape index: {}]   ;;  %s5905_s4 = inlined_call_operand.vmem [shape: f32[1,512], index: 4, kind: input, shape index: {}]   ;;  %s5906_s5 = inlined_call_operand.vmem [shape: f32[2,16,128], index: 5, kind: output, shape index: {0}]   ;;  %s5907_s6 = inlined_call_operand.vmem [shape: f32[2,16,128], index: 6, kind: output, shape index: {1}]  }
   0x1 LB: > { %s192_s24 = sshll.u32 %s5904_s3, 4  ;;  %s2862_s25 = sadd.s32 4294967295, %s3742_s21   ;;  %s3742_s21 = sphi %s3783_s21, %s18_s21   ;;  %s193_s24 = int_to_ptr.hbm [resolvable:$true] %s192_s24 }
   0x2   : > { %p2863_p0 = scmp.ge.s32.totalorder %s3742_s21, 1  ;;  %p175_p1 = scmp.lt.s32.totalorder %s3742_s21, 3 }
   0x3   : > { %p2864_p2 = scmp.ne.s32.totalorder %s2862_s25, 0  ;;  %p3432_p3 = scmp.eq.s32.totalorder %s2862_s25, 0 }
   0x4   : > { %p176_p4 = pnand %p2863_p0, %p175_p1  ;;  %s3744_s26 = smov [#allocation2]  }
   0x5   : > { %s194_s27 = sshll.u32 %s3744_s26, 4  ;;  %s3745_s28 = smov 256   ;;  %s195_s27 = int_to_ptr.vmem [resolvable:$true] %s194_s27 }
   0x6   : > { %p3428_p5 = pneg %p176_p4  ;;  %s3746_s29 = smov 16  }
   0x7   : > { %223 = sbr.rel (%p176_p4) target bundleno = 1094 (0x446), region = 40 }
   0x8   : > { %p3429_p6 = pnand %p3432_p3, %p3428_p5 }
   0xa   : > { %3431 = dma.hbm_to_vmem [thread:$0]  (!%p3429_p6), %s193_s24, 4096, %s195_s27, [#allocation3], %s3745_s28, %s3745_s28, %s3746_s29  }
   0xc   : > { %3737 = dma.done.wait (%p3432_p3), [#allocation3], 4096  }
   0xd   : > { %3739 = vsyncadd (%p3432_p3), [#allocation3], 4294963200  ;;  %s3794_s30 = sshll.u32 %s2862_s25, 2 }
   0xe   : > { %p251_p7 = scmp.lt.s32.totalorder %s3794_s30, 7 }
   0xf   : > { %260 = sbr.rel (%p2864_p2) target bundleno = 29 (0x1d), region = 48 }
  0x10   : > { %s252_s7 = scalar_select %p251_p7, %s3794_s30, 7 }
  0x12   : > { %s3327_s8 = sshll.u32 %s252_s7, 5 }
  0x13   : > { %s3801_s11 = scalar_lea.vmem %s5901_s0, %s3327_s8 }
  0x14   : > { %v3747_v0 = vmov 0.0  }
  0x15   : > { %261 = vst [vmem:[%s5906_s5] sm:$0xff] %v3747_v0 }
  0x16   : > { %262 = vst [vmem:[%s5906_s5 + $0x8] sm:$0xff] %v3747_v0 }
  0x17   : > { %263 = vst [vmem:[%s5906_s5 + $0x10] sm:$0xff] %v3747_v0 }
  0x18   : > { %264 = vst [vmem:[%s5906_s5 + $0x18] sm:$0xff] %v3747_v0 }
  0x19   : > { %265 = vst [vmem:[%s5907_s6] sm:$0xff] %v3747_v0 }
  0x1a   : > { %266 = vst [vmem:[%s5907_s6 + $0x8] sm:$0xff] %v3747_v0 }
  0x1b   : > { %267 = vst [vmem:[%s5907_s6 + $0x10] sm:$0xff] %v3747_v0 }
  0x1c   : > { %268 = vst [vmem:[%s5907_s6 + $0x18] sm:$0xff] %v3747_v0 }
  0x1d PF: > { %v2991_v1 = vld [vmem:[%s5902_s1 + $0xe0] sm:$0xf]  ;;  %v3358_v2 = vld [vmem:[%s5902_s1 + $0xec] sm:$0xf0]  ;;  %v3356_v3 = vld [vmem:[%s5902_s1 + $0xe4] sm:$0xf] }
  0x1e   : > { %v3837_v4 = vor.u32 %v3358_v2, %v2991_v1  ;;  %v2993_v5 = vld [vmem:[%s5902_s1 + $0xf0] sm:$0xf0]  ;;  %v3357_v6 = vld [vmem:[%s5902_s1 + $0xec] sm:$0xf]  ;;  %v3001_v7 = vld [vmem:[%s5902_s1 + $0xf8] sm:$0xf0] }
  0x1f   : > { %v3848_v8 = vor.u32 %v3356_v3, %v2993_v5  ;;  %v3850_v9 = vor.u32 %v3357_v6, %v3001_v7  ;;  %v2975_v10 = vld [vmem:[%s5902_s1 + $0xc0] sm:$0xf]  ;;  %v3354_v11 = vld [vmem:[%s5902_s1 + $0xcc] sm:$0xf0]  ;;  %v3352_v12 = vld [vmem:[%s5902_s1 + $0xc4] sm:$0xf] }
  0x20   : > { %495 = vmatpush.bf16.msra.mxu0 %v3837_v4  ;;  %v3862_v13 = vor.u32 %v3354_v11, %v2975_v10  ;;  %v2977_v14 = vld [vmem:[%s5902_s1 + $0xd0] sm:$0xf0]  ;;  %v3353_v15 = vld [vmem:[%s5902_s1 + $0xcc] sm:$0xf]  ;;  %v2985_v16 = vld [vmem:[%s5902_s1 + $0xd8] sm:$0xf0] }
  0x21   : > { %6087 = vst [vmem:[#allocation5_spill] sm:$0xff] %v3850_v9  ;;  %509 = vmatpush.bf16.msra.mxu1 %v3848_v8  ;;  %537 = vmatpush.bf16.msra.mxu3 %v3850_v9  ;;  %v3875_v17 = vor.u32 %v3352_v12, %v2977_v14  ;;  %v3877_v18 = vor.u32 %v3353_v15, %v2985_v16  ;;  %v2999_v19 = vld [vmem:[%s5902_s1 + $0xe8] sm:$0xf]  ;;  %v3359_v20 = vld [vmem:[%s5902_s1 + $0xf4] sm:$0xf0]  ;;  %v269_v15 = vld [vmem:[%s5906_s5] sm:$0xff] }
  0x22   : > { %6088 = vst [vmem:[#allocation6_spill] sm:$0xff] %v3862_v13  ;;  %v2959_v21 = vld [vmem:[%s5902_s1 + $0xa0] sm:$0xf]  ;;  %v3888_v22 = vor.u32 %v3359_v20, %v2999_v19  ;;  %v3350_v23 = vld [vmem:[%s5902_s1 + $0xac] sm:$0xf0]  ;;  %v270_v16 = vld [vmem:[%s5906_s5 + $0x8] sm:$0xff] }
  0x23   : > { %6089 = vst [vmem:[#allocation7_spill] sm:$0xff] %v3875_v17  ;;  %v3348_v24 = vld [vmem:[%s5902_s1 + $0xa4] sm:$0xf]  ;;  %v2961_v25 = vld [vmem:[%s5902_s1 + $0xb0] sm:$0xf0]  ;;  %v3910_v29 = vor.u32 %v3350_v23, %v2959_v21  ;;  %v4061_v23 = vpack.c.bf16 %v269_v15, %v269_v15  ;;  %p284_p8 = scmp.lt.s32.totalorder %s3794_s30, 6 }
  0x24   : > { %6090 = vst [vmem:[#allocation8_spill] sm:$0xff] %v3877_v18  ;;  %v3349_v26 = vld [vmem:[%s5902_s1 + $0xac] sm:$0xf]  ;;  %v2969_v27 = vld [vmem:[%s5902_s1 + $0xb8] sm:$0xf0]  ;;  %496 = vmatpush.bf16.msra.mxu0 %v3862_v13  ;;  %523 = vmatpush.bf16.msra.mxu2 %v3888_v22  ;;  %v3923_v33 = vor.u32 %v3348_v24, %v2961_v25  ;;  %v4063_v24 = vpack.c.bf16 %v270_v16, %v270_v16  ;;  %s1352_s8 = sadd.s32 1, %s3794_s30 }
  0x25   : > { %v2983_v28 = vld [vmem:[%s5902_s1 + $0xc8] sm:$0xf]  ;;  %6091 = vst [vmem:[#allocation9_spill] sm:$0xff] %v3910_v29  ;;  %v3355_v30 = vld [vmem:[%s5902_s1 + $0xd4] sm:$0xf0]  ;;  %510 = vmatpush.bf16.msra.mxu1 %v3875_v17  ;;  %538 = vmatpush.bf16.msra.mxu3 %v3877_v18  ;;  %v3925_v34 = vor.u32 %v3349_v26, %v2969_v27  ;;  %p4951_p9 = scmp.lt.s32.totalorder %s1352_s8, 6 }
  0x26   : > { %v2943_v31 = vld [vmem:[%s5902_s1 + $0x80] sm:$0xf]  ;;  %v3346_v32 = vld [vmem:[%s5902_s1 + $0x8c] sm:$0xf0]  ;;  %6092 = vst [vmem:[#allocation10_spill] sm:$0xff] %v3923_v33  ;;  %v3927_v35 = vor.u32 %v3355_v30, %v2983_v28  ;;  %s1836_s12 = sadd.s32 2, %s3794_s30 }
  0x27   : > { %v3344_v36 = vld [vmem:[%s5902_s1 + $0x84] sm:$0xf]  ;;  %v2945_v37 = vld [vmem:[%s5902_s1 + $0x90] sm:$0xf0]  ;;  %v3345_v38 = vld [vmem:[%s5902_s1 + $0x8c] sm:$0xf]  ;;  %v3949_v42 = vor.u32 %v3346_v32, %v2943_v31 }
  0x28   : > { %6093 = vst [vmem:[#allocation11_spill] sm:$0xff] %v3927_v35  ;;  %v2953_v39 = vld [vmem:[%s5902_s1 + $0x98] sm:$0xf0]  ;;  %v2967_v40 = vld [vmem:[%s5902_s1 + $0xa8] sm:$0xf]  ;;  %497 = vmatpush.bf16.msra.mxu0 %v3910_v29  ;;  %524 = vmatpush.bf16.msra.mxu2 %v3927_v35  ;;  %v3961_v46 = vor.u32 %v3344_v36, %v2945_v37  ;;  %p5344_p10 = scmp.lt.s32.totalorder %s1836_s12, 6 }
  0x29   : > { %v3351_v41 = vld [vmem:[%s5902_s1 + $0xb4] sm:$0xf0]  ;;  %v2927_v44 = vld [vmem:[%s5902_s1 + $0x60] sm:$0xf]  ;;  %v3342_v45 = vld [vmem:[%s5902_s1 + $0x6c] sm:$0xf0]  ;;  %511 = vmatpush.bf16.msra.mxu1 %v3923_v33  ;;  %539 = vmatpush.bf16.msra.mxu3 %v3925_v34  ;;  %v3963_v47 = vor.u32 %v3345_v38, %v2953_v39 }
  0x2a   : > { %v3951_v43 = vor.u32 %v3351_v41, %v2967_v40  ;;  %v3340_v48 = vld [vmem:[%s5902_s1 + $0x64] sm:$0xf]  ;;  %v2951_v49 = vld [vmem:[%s5902_s1 + $0x88] sm:$0xf]  ;;  %v3347_v50 = vld [vmem:[%s5902_s1 + $0x94] sm:$0xf0]  ;;  %v3985_v54 = vor.u32 %v3342_v45, %v2927_v44  ;;  %v331_v44 = vunpack.c.l.b16 %v4061_v23  ;;  %v332_v45 = vunpack.c.l.b16 %v4063_v24 }
  0x2b   : > { %v2929_v51 = vld [vmem:[%s5902_s1 + $0x70] sm:$0xf0]  ;;  %v3341_v52 = vld [vmem:[%s5902_s1 + $0x6c] sm:$0xf]  ;;  %v2937_v53 = vld [vmem:[%s5902_s1 + $0x78] sm:$0xf0]  ;;  %v3987_v55 = vor.u32 %v3347_v50, %v2951_v49 }
  0x2c   : > { %6094 = vst [vmem:[#allocation12_spill] sm:$0xff] %v3951_v43  ;;  %498 = vmatpush.bf16.msra.mxu0 %v3949_v42  ;;  %525 = vmatpush.bf16.msra.mxu2 %v3951_v43  ;;  %v2911_v56 = vld [vmem:[%s5902_s1 + $0x40] sm:$0xf]  ;;  %v3338_v57 = vld [vmem:[%s5902_s1 + $0x4c] sm:$0xf0]  ;;  %v3997_v58 = vor.u32 %v3340_v48, %v2929_v51  ;;  %v3999_v59 = vor.u32 %v3341_v52, %v2937_v53 }
  0x2d   : > { %512 = vmatpush.bf16.msra.mxu1 %v3961_v46  ;;  %540 = vmatpush.bf16.msra.mxu3 %v3963_v47  ;;  %v3336_v60 = vld [vmem:[%s5902_s1 + $0x44] sm:$0xf]  ;;  %v2935_v61 = vld [vmem:[%s5902_s1 + $0x68] sm:$0xf]  ;;  %v3343_v62 = vld [vmem:[%s5902_s1 + $0x74] sm:$0xf0]  ;;  %v4024_v3 = vor.u32 %v3338_v57, %v2911_v56 }
  0x2e   : > { %6095 = vst [vmem:[#allocation13_spill] sm:$0xff] %v3999_v59  ;;  %v2913_v63 = vld [vmem:[%s5902_s1 + $0x50] sm:$0xf0]  ;;  %v3337_v0 = vld [vmem:[%s5902_s1 + $0x4c] sm:$0xf]  ;;  %v4026_v5 = vor.u32 %v3343_v62, %v2935_v61 }
  0x2f   : > { %v2921_v1 = vld [vmem:[%s5902_s1 + $0x58] sm:$0xf0]  ;;  %v2895_v2 = vld [vmem:[%s5902_s1 + $0x20] sm:$0xf]  ;;  %6096 = vst [vmem:[#allocation14_spill] sm:$0xff] %v4024_v3  ;;  %v4039_v11 = vor.u32 %v3336_v60, %v2913_v63 }
  0x30   : > { %499 = vmatpush.bf16.msra.mxu0 %v3985_v54  ;;  %526 = vmatpush.bf16.msra.mxu2 %v3987_v55  ;;  %v3334_v6 = vld [vmem:[%s5902_s1 + $0x2c] sm:$0xf0]  ;;  %v3332_v7 = vld [vmem:[%s5902_s1 + $0x24] sm:$0xf]  ;;  %v2919_v10 = vld [vmem:[%s5902_s1 + $0x48] sm:$0xf]  ;;  %v4041_v12 = vor.u32 %v3337_v0, %v2921_v1 }
  0x31   : > { %513 = vmatpush.bf16.msra.mxu1 %v3997_v58  ;;  %541 = vmatpush.bf16.msra.mxu3 %v3999_v59  ;;  %6097 = vst [vmem:[#allocation15_spill] sm:$0xff] %v4039_v11  ;;  %v3339_v14 = vld [vmem:[%s5902_s1 + $0x54] sm:$0xf0]  ;;  %v2897_v19 = vld [vmem:[%s5902_s1 + $0x30] sm:$0xf0]  ;;  %v4067_v25 = vor.u32 %v3334_v6, %v2895_v2  ;;  %v333_v6 = vpack.c.b16 %v332_v45, %v331_v44 }
  0x32   : > { %6098 = vst [vmem:[#allocation16_spill] sm:$0xff] %v4041_v12  ;;  %v3333_v20 = vld [vmem:[%s5902_s1 + $0x2c] sm:$0xf]  ;;  %v2905_v21 = vld [vmem:[%s5902_s1 + $0x38] sm:$0xf0]  ;;  %v4069_v26 = vor.u32 %v3339_v14, %v2919_v10  ;;  %v4082_v31 = vor.u32 %v3332_v7, %v2897_v19 }
  0x33   : > { %6099 = vst [vmem:[#allocation17_spill] sm:$0xff] %v4061_v23  ;;  %v2879_v27 = vld [vmem:[%s5902_s1] sm:$0xf]  ;;  %v3330_v28 = vld [vmem:[%s5902_s1 + $0xc] sm:$0xf0]  ;;  %v4084_v32 = vor.u32 %v3333_v20, %v2905_v21 }
  0x34   : > { %500 = vmatpush.bf16.msra.mxu0 %v4024_v3  ;;  %527 = vmatpush.bf16.msra.mxu2 %v4026_v5  ;;  %6100 = vst [vmem:[#allocation18_spill] sm:$0xff] %v4067_v25  ;;  %v3328_v30 = vld [vmem:[%s5902_s1 + $0x4] sm:$0xf]  ;;  %v2881_v36 = vld [vmem:[%s5902_s1 + $0x10] sm:$0xf0]  ;;  %v4105_v51 = vor.u32 %v3330_v28, %v2879_v27 }
  0x35   : > { %6101 = vst [vmem:[#allocation19_spill] sm:$0xff] %v4069_v26  ;;  %514 = vmatpush.bf16.msra.mxu1 %v4039_v11  ;;  %542 = vmatpush.bf16.msra.mxu3 %v4041_v12  ;;  %v2903_v37 = vld [vmem:[%s5902_s1 + $0x28] sm:$0xf]  ;;  %v3335_v38 = vld [vmem:[%s5902_s1 + $0x34] sm:$0xf0]  ;;  %v4111_v57 = vor.u32 %v3328_v30, %v2881_v36 }
  0x36   : > { %6102 = vst [vmem:[#allocation20_spill] sm:$0xff] %v4082_v31  ;;  %v3329_v39 = vld [vmem:[%s5902_s1 + $0xc] sm:$0xf]  ;;  %v2889_v40 = vld [vmem:[%s5902_s1 + $0x18] sm:$0xf0]  ;;  %v4107_v52 = vor.u32 %v3335_v38, %v2903_v37 }
  0x37   : > { %6103 = vst [vmem:[#allocation21_spill] sm:$0xff] %v4084_v32  ;;  %v3125_v41 = vld [vmem:[#allocation2 + $0xe0] sm:$0xf]  ;;  %v3422_v48 = vld [vmem:[#allocation2 + $0xec] sm:$0xf0]  ;;  %v4113_v60 = vor.u32 %v3329_v39, %v2889_v40 }
  0x38   : > { %v3420_v49 = vld [vmem:[#allocation2 + $0xe4] sm:$0xf]  ;;  %v3127_v50 = vld [vmem:[#allocation2 + $0xf0] sm:$0xf0]  ;;  %501 = vmatpush.bf16.msra.mxu0 %v4067_v25  ;;  %528 = vmatpush.bf16.msra.mxu2 %v4069_v26  ;;  %6104 = vst [vmem:[#allocation22_spill] sm:$0xff] %v4105_v51  ;;  %v4121_v63 = vor.u32 %v3422_v48, %v3125_v41 }
  0x39   : > { %6105 = vst [vmem:[#allocation23_spill] sm:$0xff] %v4107_v52  ;;  %v3421_v53 = vld [vmem:[#allocation2 + $0xec] sm:$0xf]  ;;  %v3135_v56 = vld [vmem:[#allocation2 + $0xf8] sm:$0xf0]  ;;  %515 = vmatpush.bf16.msra.mxu1 %v4082_v31  ;;  %543 = vmatpush.bf16.msra.mxu3 %v4084_v32  ;;  %v4123_v0 = vor.u32 %v3420_v49, %v3127_v50 }
  0x3a   : > { %6106 = vst [vmem:[#allocation24_spill] sm:$0xff] %v4111_v57  ;;  %v2887_v61 = vld [vmem:[%s5902_s1 + $0x8] sm:$0xf]  ;;  %v3331_v62 = vld [vmem:[%s5902_s1 + $0x14] sm:$0xf0]  ;;  %v4125_v7 = vor.u32 %v3421_v53, %v3135_v56 }
  0x3b   : > { %6107 = vst [vmem:[#allocation25_spill] sm:$0xff] %v4113_v60  ;;  %v3133_v1 = vld [vmem:[#allocation2 + $0xe8] sm:$0xf]  ;;  %v3423_v2 = vld [vmem:[#allocation2 + $0xf4] sm:$0xf0]  ;;  %v4131_v21 = vor.u32 %v3331_v62, %v2887_v61 }
  0x3c   : > { %6108 = vst [vmem:[#allocation26_spill] sm:$0xff] %v4121_v63  ;;  %v3109_v10 = vld [vmem:[#allocation2 + $0xc0] sm:$0xf]  ;;  %v3418_v14 = vld [vmem:[#allocation2 + $0xcc] sm:$0xf0]  ;;  %502 = vmatpush.bf16.msra.mxu0 %v4105_v51  ;;  %529 = vmatpush.bf16.msra.mxu2 %v4107_v52  ;;  %v4135_v27 = vor.u32 %v3423_v2, %v3133_v1 }
  0x3d   : > { %6109 = vst [vmem:[#allocation27_spill] sm:$0xff] %v4123_v0  ;;  %v3416_v15 = vld [vmem:[#allocation2 + $0xc4] sm:$0xf]  ;;  %v3111_v16 = vld [vmem:[#allocation2 + $0xd0] sm:$0xf0]  ;;  %516 = vmatpush.bf16.msra.mxu1 %v4111_v57  ;;  %544 = vmatpush.bf16.msra.mxu3 %v4113_v60  ;;  %v4137_v28 = vor.u32 %v3418_v14, %v3109_v10 }
  0x3e   : > { %6110 = vst [vmem:[#allocation28_spill] sm:$0xff] %v4125_v7  ;;  %v3417_v19 = vld [vmem:[#allocation2 + $0xcc] sm:$0xf]  ;;  %v3119_v20 = vld [vmem:[#allocation2 + $0xd8] sm:$0xf0]  ;;  %v4140_v37 = vor.u32 %v3416_v15, %v3111_v16 }
  0x3f   : > { %6111 = vst [vmem:[#allocation29_spill] sm:$0xff] %v4131_v21  ;;  %v3117_v30 = vld [vmem:[#allocation2 + $0xc8] sm:$0xf]  ;;  %v3419_v36 = vld [vmem:[#allocation2 + $0xd4] sm:$0xf0]  ;;  %503 = vmatmul.bf16.vlgmr.msra.gmra.mxu0 %v333_v6  ;;  %v4142_v38 = vor.u32 %v3417_v19, %v3119_v20 }
  0x40   : > { %917 = vmatpush.bf16.msrb.mxu0 %v4121_v63  ;;  %6112 = vst [vmem:[#allocation30_spill] sm:$0xff] %v4135_v27  ;;  %v3093_v39 = vld [vmem:[#allocation2 + $0xa0] sm:$0xf]  ;;  %v3414_v40 = vld [vmem:[#allocation2 + $0xac] sm:$0xf0]  ;;  %517 = vmatmul.bf16.vlgmr.msra.gmra.mxu1 %v333_v6  ;;  %v4147_v49 = vor.u32 %v3419_v36, %v3117_v30 }
  0x41   : > { %931 = vmatpush.bf16.msrb.mxu1 %v4123_v0  ;;  %6113 = vst [vmem:[#allocation31_spill] sm:$0xff] %v4137_v28  ;;  %959 = vmatpush.bf16.msrb.mxu3 %v4125_v7  ;;  %v3412_v41 = vld [vmem:[#allocation2 + $0xa4] sm:$0xf]  ;;  %v3095_v44 = vld [vmem:[#allocation2 + $0xb0] sm:$0xf0]  ;;  %v4149_v50 = vor.u32 %v3414_v40, %v3093_v39 }
  0x42   : > { %6114 = vst [vmem:[#allocation32_spill] sm:$0xff] %v4140_v37  ;;  %545 = vmatmul.bf16.vlgmr.msra.gmra.mxu3 %v333_v6  ;;  %v3413_v45 = vld [vmem:[#allocation2 + $0xac] sm:$0xf]  ;;  %v3103_v48 = vld [vmem:[#allocation2 + $0xb8] sm:$0xf0]  ;;  %530 = vmatpush.bf16.msra.mxu2 %v4131_v21  ;;  %v4153_v61 = vor.u32 %v3412_v41, %v3095_v44 }
  0x43   : > { %6115 = vst [vmem:[#allocation33_spill] sm:$0xff] %v4142_v38  ;;  %v3101_v53 = vld [vmem:[#allocation2 + $0xa8] sm:$0xf]  ;;  %v3415_v56 = vld [vmem:[#allocation2 + $0xb4] sm:$0xf0]  ;;  %v4155_v62 = vor.u32 %v3413_v45, %v3103_v48 }
  0x44   : > { %918 = vmatpush.bf16.msrb.mxu0 %v4137_v28  ;;  %6116 = vst [vmem:[#allocation34_spill] sm:$0xff] %v4147_v49  ;;  %v3077_v1 = vld [vmem:[#allocation2 + $0x80] sm:$0xf]  ;;  %v3410_v2 = vld [vmem:[#allocation2 + $0x8c] sm:$0xf0]  ;;  %v4159_v19 = vor.u32 %v3415_v56, %v3101_v53 }
  0x45   : > { %6117 = vst [vmem:[#allocation35_spill] sm:$0xff] %v4149_v50  ;;  %932 = vmatpush.bf16.msrb.mxu1 %v4140_v37  ;;  %960 = vmatpush.bf16.msrb.mxu3 %v4142_v38  ;;  %v3408_v10 = vld [vmem:[#allocation2 + $0x84] sm:$0xf]  ;;  %v3079_v14 = vld [vmem:[#allocation2 + $0x90] sm:$0xf0]  ;;  %v4161_v20 = vor.u32 %v3410_v2, %v3077_v1 }
  0x46   : > { %945 = vmatpush.bf16.msrb.mxu2 %v4135_v27  ;;  %6118 = vst [vmem:[#allocation36_spill] sm:$0xff] %v4153_v61  ;;  %v3409_v15 = vld [vmem:[#allocation2 + $0x8c] sm:$0xf]  ;;  %v3087_v16 = vld [vmem:[#allocation2 + $0x98] sm:$0xf0]  ;;  %v4165_v30 = vor.u32 %v3408_v10, %v3079_v14 }
  0x47   : > { %6119 = vst [vmem:[#allocation37_spill] sm:$0xff] %v4155_v62  ;;  %531 = vmatmul.bf16.vlgmr.msra.gmra.mxu2 %v333_v6  ;;  %v3085_v36 = vld [vmem:[#allocation2 + $0x88] sm:$0xf]  ;;  %v3411_v39 = vld [vmem:[#allocation2 + $0x94] sm:$0xf0]  ;;  %v4167_v6 = vor.u32 %v3409_v15, %v3087_v16 }
  0x48   : > { %919 = vmatpush.bf16.msrb.mxu0 %v4149_v50  ;;  %6120 = vst [vmem:[#allocation38_spill] sm:$0xff] %v4159_v19  ;;  %v4171_v40 = vor.u32 %v3411_v39, %v3085_v36  ;;  %v3061_v41 = vld [vmem:[#allocation2 + $0x60] sm:$0xf]  ;;  %v3406_v44 = vld [vmem:[#allocation2 + $0x6c] sm:$0xf0] }
  0x49   : > { %6121 = vst [vmem:[#allocation39_spill] sm:$0xff] %v4161_v20  ;;  %933 = vmatpush.bf16.msrb.mxu1 %v4153_v61  ;;  %961 = vmatpush.bf16.msrb.mxu3 %v4155_v62  ;;  %v3404_v45 = vld [vmem:[#allocation2 + $0x64] sm:$0xf]  ;;  %v4176_v48 = vor.u32 %v3406_v44, %v3061_v41  ;;  %v3063_v53 = vld [vmem:[#allocation2 + $0x70] sm:$0xf0] }
  0x4a   : > { %946 = vmatpush.bf16.msrb.mxu2 %v4147_v49  ;;  %6122 = vst [vmem:[#allocation40_spill] sm:$0xff] %v4165_v30  ;;  %v3069_v56 = vld [vmem:[#allocation2 + $0x68] sm:$0xf]  ;;  %v3407_v1 = vld [vmem:[#allocation2 + $0x74] sm:$0xf0]  ;;  %v4178_v2 = vor.u32 %v3404_v45, %v3063_v53 }
  0x4b   : > { %6123 = vst [vmem:[#allocation41_spill] sm:$0xff] %v4167_v6  ;;  %v4180_v10 = vor.u32 %v3407_v1, %v3069_v56  ;;  %v3405_v14 = vld [vmem:[#allocation2 + $0x6c] sm:$0xf]  ;;  %v3071_v15 = vld [vmem:[#allocation2 + $0x78] sm:$0xf0] }
  0x4c   : > { %920 = vmatpush.bf16.msrb.mxu0 %v4161_v20  ;;  %6124 = vst [vmem:[#allocation42_spill] sm:$0xff] %v4171_v40  ;;  %v4183_v16 = vor.u32 %v3405_v14, %v3071_v15  ;;  %v3045_v36 = vld [vmem:[#allocation2 + $0x40] sm:$0xf]  ;;  %v3402_v39 = vld [vmem:[#allocation2 + $0x4c] sm:$0xf0] }
  0x4d   : > { %934 = vmatpush.bf16.msrb.mxu1 %v4165_v30  ;;  %962 = vmatpush.bf16.msrb.mxu3 %v4167_v6  ;;  %6125 = vst [vmem:[#allocation43_spill] sm:$0xff] %v4176_v48  ;;  %v3400_v41 = vld [vmem:[#allocation2 + $0x44] sm:$0xf]  ;;  %v4188_v44 = vor.u32 %v3402_v39, %v3045_v36  ;;  %v3047_v45 = vld [vmem:[#allocation2 + $0x50] sm:$0xf0] }
  0x4e   : > { %947 = vmatpush.bf16.msrb.mxu2 %v4159_v19  ;;  %6126 = vst [vmem:[#allocation44_spill] sm:$0xff] %v4178_v2  ;;  %v3053_v53 = vld [vmem:[#allocation2 + $0x48] sm:$0xf]  ;;  %v3403_v56 = vld [vmem:[#allocation2 + $0x54] sm:$0xf0]  ;;  %v4190_v1 = vor.u32 %v3400_v41, %v3047_v45  ;;  %v287_v30 = vld [vmem:[%s3801_s11 + $0x10] sm:$0xff] }
  0x4f   : > { %6127 = vst [vmem:[#allocation45_spill] sm:$0xff] %v4180_v10  ;;  %v4192_v6 = vor.u32 %v3403_v56, %v3053_v53  ;;  %v3401_v14 = vld [vmem:[#allocation2 + $0x4c] sm:$0xf]  ;;  %v3055_v15 = vld [vmem:[#allocation2 + $0x58] sm:$0xf0] }
  0x50   : > { %921 = vmatpush.bf16.msrb.mxu0 %v4176_v48  ;;  %6128 = vst [vmem:[#allocation46_spill] sm:$0xff] %v4183_v16  ;;  %v3029_v36 = vld [vmem:[#allocation2 + $0x20] sm:$0xf]  ;;  %v3398_v39 = vld [vmem:[#allocation2 + $0x2c] sm:$0xf0]  ;;  %v4465_v19 = vld [vmem:[%s3801_s11 + $0x18] sm:$0xff] }
  0x51   : > { %935 = vmatpush.bf16.msrb.mxu1 %v4178_v2  ;;  %963 = vmatpush.bf16.msrb.mxu3 %v4183_v16  ;;  %6129 = vst [vmem:[#allocation47_spill] sm:$0xff] %v4188_v44  ;;  %v4195_v2 = vor.u32 %v3401_v14, %v3055_v15  ;;  %v3396_v16 = vld [vmem:[#allocation2 + $0x24] sm:$0xf]  ;;  %v3031_v41 = vld [vmem:[#allocation2 + $0x30] sm:$0xf0] }
  0x52   : > { %948 = vmatpush.bf16.msrb.mxu2 %v4171_v40  ;;  %6130 = vst [vmem:[#allocation48_spill] sm:$0xff] %v4190_v1  ;;  %v3037_v45 = vld [vmem:[#allocation2 + $0x28] sm:$0xf]  ;;  %v3399_v53 = vld [vmem:[#allocation2 + $0x34] sm:$0xf0]  ;;  %v4202_v56 = vor.u32 %v3396_v16, %v3031_v41 }
  0x53   : > { %6131 = vst [vmem:[#allocation49_spill] sm:$0xff] %v4192_v6  ;;  %v4204_v48 = vor.u32 %v3399_v53, %v3037_v45  ;;  %v3397_v14 = vld [vmem:[#allocation2 + $0x2c] sm:$0xf]  ;;  %v3039_v15 = vld [vmem:[#allocation2 + $0x38] sm:$0xf0] }
  0x54   : > { %922 = vmatpush.bf16.msrb.mxu0 %v4188_v44  ;;  %6132 = vst [vmem:[#allocation50_spill] sm:$0xff] %v4195_v2  ;;  %v3015_v16 = vld [vmem:[#allocation2 + $0x10] sm:$0xf0]  ;;  %v3021_v41 = vld [vmem:[#allocation2 + $0x8] sm:$0xf] }
  0x55   : > { %936 = vmatpush.bf16.msrb.mxu1 %v4190_v1  ;;  %964 = vmatpush.bf16.msrb.mxu3 %v4195_v2  ;;  %6134 = vst [vmem:[#allocation52_spill] sm:$0xff] %v4202_v56  ;;  %v4207_v1 = vor.u32 %v3397_v14, %v3039_v15  ;;  %v3013_v2 = vld [vmem:[#allocation2] sm:$0xf]  ;;  %v3395_v45 = vld [vmem:[#allocation2 + $0x14] sm:$0xf0] }
  0x56   : > { %949 = vmatpush.bf16.msrb.mxu2 %v4180_v10  ;;  %v4200_v10 = vor.u32 %v3398_v39, %v3029_v36  ;;  %6135 = vst [vmem:[#allocation53_spill] sm:$0xff] %v4204_v48  ;;  %v3394_v36 = vld [vmem:[#allocation2 + $0xc] sm:$0xf0]  ;;  %v3392_v39 = vld [vmem:[#allocation2 + $0x4] sm:$0xf]  ;;  %v4216_v44 = vor.u32 %v3395_v45, %v3021_v41 }
  0x57   : > { %6136 = vst [vmem:[#allocation54_spill] sm:$0xff] %v4207_v1  ;;  %v4214_v53 = vor.u32 %v3392_v39, %v3015_v16  ;;  %v3393_v14 = vld [vmem:[#allocation2 + $0xc] sm:$0xf]  ;;  %v3023_v15 = vld [vmem:[#allocation2 + $0x18] sm:$0xf0] }
  0x58   : > { %6133 = vst [vmem:[#allocation51_spill] sm:$0xff] %v4200_v10  ;;  %923 = vmatpush.bf16.msrb.mxu0 %v4200_v10  ;;  %v3255_v16 = vld [vmem:[%s5903_s2 + $0xf0] sm:$0xf0]  ;;  %v3261_v41 = vld [vmem:[%s5903_s2 + $0xe8] sm:$0xf] }
  0x59   : > { %937 = vmatpush.bf16.msrb.mxu1 %v4202_v56  ;;  %965 = vmatpush.bf16.msrb.mxu3 %v4207_v1  ;;  %6138 = vst [vmem:[#allocation56_spill] sm:$0xff] %v4214_v53  ;;  %v4219_v56 = vor.u32 %v3393_v14, %v3023_v15  ;;  %v3391_v45 = vld [vmem:[%s5903_s2 + $0xf4] sm:$0xf0]  ;;  %v4366_v10 = vld [vmem:[%s3801_s11 + $0x8] sm:$0xff]  ;;  %v3141_v61 = vld [vmem:[%s5903_s2] sm:$0xf] }
  0x5a   : > { %950 = vmatpush.bf16.msrb.mxu2 %v4192_v6  ;;  %v4212_v6 = vor.u32 %v3394_v36, %v3013_v2  ;;  %6139 = vst [vmem:[#allocation57_spill] sm:$0xff] %v4216_v44  ;;  %v3390_v2 = vld [vmem:[%s5903_s2 + $0xec] sm:$0xf0]  ;;  %v3388_v36 = vld [vmem:[%s5903_s2 + $0xe4] sm:$0xf]  ;;  %v4246_v15 = vor.u32 %v3391_v45, %v3261_v41 }
  0x5b   : > { %6140 = vst [vmem:[#allocation58_spill] sm:$0xff] %v4219_v56  ;;  %v4244_v14 = vor.u32 %v3388_v36, %v3255_v16  ;;  %v3386_v36 = vld [vmem:[%s5903_s2 + $0xcc] sm:$0xf0]  ;;  %v3384_v16 = vld [vmem:[%s5903_s2 + $0xc4] sm:$0xf] }
  0x5c   : > { %6137 = vst [vmem:[#allocation55_spill] sm:$0xff] %v4212_v6  ;;  %924 = vmatpush.bf16.msrb.mxu0 %v4212_v6  ;;  %v3239_v41 = vld [vmem:[%s5903_s2 + $0xd0] sm:$0xf0]  ;;  %s1341_s24 = scalar_select %p284_p8, 1, 0 }
  0x5d   : > { %938 = vmatpush.bf16.msrb.mxu1 %v4214_v53  ;;  %966 = vmatpush.bf16.msrb.mxu3 %v4219_v56  ;;  %6142 = vst [vmem:[#allocation60_spill] sm:$0xff] %v4244_v14  ;;  %v3385_v56 = vld [vmem:[%s5903_s2 + $0xcc] sm:$0xf]  ;;  %s1825_s10 = scalar_select %p4951_p9, 1, 0 }
  0x5e   : > { %951 = vmatpush.bf16.msrb.mxu2 %v4204_v48  ;;  %v3253_v48 = vld [vmem:[%s5903_s2 + $0xe0] sm:$0xf]  ;;  %6143 = vst [vmem:[#allocation61_spill] sm:$0xff] %v4246_v15  ;;  %s2309_s14 = scalar_select %p5344_p10, 1, 0 }
  0x5f   : > { %v4232_v39 = vor.u32 %v3390_v2, %v3253_v48  ;;  %v3389_v48 = vld [vmem:[%s5903_s2 + $0xec] sm:$0xf]  ;;  %v3263_v2 = vld [vmem:[%s5903_s2 + $0xf8] sm:$0xf0] }
  0x60   : > { %v4258_v53 = vor.u32 %v3389_v48, %v3263_v2  ;;  %v4273_v48 = vor.u32 %v3384_v16, %v3239_v41  ;;  %v3245_v2 = vld [vmem:[%s5903_s2 + $0xc8] sm:$0xf]  ;;  %v3221_v16 = vld [vmem:[%s5903_s2 + $0xa0] sm:$0xf]  ;;  %v3382_v41 = vld [vmem:[%s5903_s2 + $0xac] sm:$0xf0] }
  0x61   : > { %6141 = vst [vmem:[#allocation59_spill] sm:$0xff] %v4232_v39  ;;  %1139 = vmatpush.bf16.msra.mxu0 %v4232_v39  ;;  %1153 = vmatpush.bf16.msra.mxu1 %v4244_v14  ;;  %v3387_v39 = vld [vmem:[%s5903_s2 + $0xd4] sm:$0xf0] }
  0x62   : > { %952 = vmatpush.bf16.msrb.mxu2 %v4216_v44  ;;  %v3237_v44 = vld [vmem:[%s5903_s2 + $0xc0] sm:$0xf]  ;;  %6144 = vst [vmem:[#allocation62_spill] sm:$0xff] %v4258_v53  ;;  %1181 = vmatpush.bf16.msra.mxu3 %v4258_v53  ;;  %v4285_v14 = vor.u32 %v3387_v39, %v3245_v2  ;;  %v3380_v39 = vld [vmem:[%s5903_s2 + $0xa4] sm:$0xf] }
  0x63   : > { %v4271_v45 = vor.u32 %v3386_v36, %v3237_v44  ;;  %6146 = vst [vmem:[#allocation64_spill] sm:$0xff] %v4273_v48  ;;  %v3247_v44 = vld [vmem:[%s5903_s2 + $0xd8] sm:$0xf0]  ;;  %v3223_v2 = vld [vmem:[%s5903_s2 + $0xb0] sm:$0xf0] }
  0x64   : > { %6147 = vst [vmem:[#allocation65_spill] sm:$0xff] %v4285_v14  ;;  %v4290_v36 = vor.u32 %v3385_v56, %v3247_v44  ;;  %v4304_v56 = vor.u32 %v3382_v41, %v3221_v16  ;;  %v3229_v44 = vld [vmem:[%s5903_s2 + $0xa8] sm:$0xf]  ;;  %v4316_v53 = vor.u32 %v3380_v39, %v3223_v2  ;;  %v3381_v16 = vld [vmem:[%s5903_s2 + $0xac] sm:$0xf] }
  0x65   : > { %6145 = vst [vmem:[#allocation63_spill] sm:$0xff] %v4271_v45  ;;  %1140 = vmatpush.bf16.msra.mxu0 %v4271_v45  ;;  %1154 = vmatpush.bf16.msra.mxu1 %v4273_v48  ;;  %v3383_v45 = vld [vmem:[%s5903_s2 + $0xb4] sm:$0xf0]  ;;  %v3231_v41 = vld [vmem:[%s5903_s2 + $0xb8] sm:$0xf0] }
  0x66   : > { %1167 = vmatpush.bf16.msra.mxu2 %v4246_v15  ;;  %6148 = vst [vmem:[#allocation66_spill] sm:$0xff] %v4290_v36  ;;  %1182 = vmatpush.bf16.msra.mxu3 %v4290_v36  ;;  %v4318_v48 = vor.u32 %v3383_v45, %v3229_v44  ;;  %v4327_v15 = vor.u32 %v3381_v16, %v3231_v41  ;;  %v3205_v39 = vld [vmem:[%s5903_s2 + $0x80] sm:$0xf]  ;;  %v3378_v45 = vld [vmem:[%s5903_s2 + $0x8c] sm:$0xf0] }
  0x67   : > { %6149 = vst [vmem:[#allocation67_spill] sm:$0xff] %v4304_v56  ;;  %v3376_v2 = vld [vmem:[%s5903_s2 + $0x84] sm:$0xf]  ;;  %v4341_v44 = vor.u32 %v3378_v45, %v3205_v39  ;;  %v3207_v16 = vld [vmem:[%s5903_s2 + $0x90] sm:$0xf0] }
  0x68   : > { %6150 = vst [vmem:[#allocation68_spill] sm:$0xff] %v4316_v53  ;;  %v3213_v41 = vld [vmem:[%s5903_s2 + $0x88] sm:$0xf]  ;;  %v3377_v39 = vld [vmem:[%s5903_s2 + $0x8c] sm:$0xf] }
  0x69   : > { %6151 = vst [vmem:[#allocation69_spill] sm:$0xff] %v4318_v48  ;;  %1141 = vmatpush.bf16.msra.mxu0 %v4304_v56  ;;  %1155 = vmatpush.bf16.msra.mxu1 %v4316_v53  ;;  %v3379_v56 = vld [vmem:[%s5903_s2 + $0x94] sm:$0xf0]  ;;  %v4353_v53 = vor.u32 %v3376_v2, %v3207_v16  ;;  %v3215_v45 = vld [vmem:[%s5903_s2 + $0x98] sm:$0xf0] }
  0x6a   : > { %1168 = vmatpush.bf16.msra.mxu2 %v4285_v14  ;;  %v285_v14 = vld [vmem:[%s3801_s11] sm:$0xff]  ;;  %6152 = vst [vmem:[#allocation70_spill] sm:$0xff] %v4327_v15  ;;  %1183 = vmatpush.bf16.msra.mxu3 %v4327_v15  ;;  %v4363_v1 = vor.u32 %v3377_v39, %v3215_v45  ;;  %v3374_v2 = vld [vmem:[%s5903_s2 + $0x6c] sm:$0xf0]  ;;  %v3191_v39 = vld [vmem:[%s5903_s2 + $0x70] sm:$0xf0] }
  0x6b   : > { %6153 = vst [vmem:[#allocation71_spill] sm:$0xff] %v4341_v44  ;;  %v289_v36 = vunpack.c.l.bf16 %v285_v14  ;;  %v290_v6 = vunpack.c.h.bf16 %v285_v14  ;;  %v3372_v16 = vld [vmem:[%s5903_s2 + $0x64] sm:$0xf]  ;;  %v3197_v45 = vld [vmem:[%s5903_s2 + $0x68] sm:$0xf] }
  0x6c   : > { %6154 = vst [vmem:[#allocation72_spill] sm:$0xff] %v4353_v53 }
  0x6d   : > { %6156 = vst [vmem:[#allocation74_spill] sm:$0xff] %v4363_v1  ;;  %1142 = vmatpush.bf16.msra.mxu0 %v4341_v44  ;;  %1156 = vmatpush.bf16.msra.mxu1 %v4353_v53  ;;  %v3375_v44 = vld [vmem:[%s5903_s2 + $0x74] sm:$0xf0]  ;;  %v3199_v53 = vld [vmem:[%s5903_s2 + $0x78] sm:$0xf0] }
  0x6e   : > { %1169 = vmatpush.bf16.msra.mxu2 %v4318_v48  ;;  %v4355_v48 = vor.u32 %v3379_v56, %v3213_v41  ;;  %v3189_v56 = vld [vmem:[%s5903_s2 + $0x60] sm:$0xf]  ;;  %1184 = vmatpush.bf16.msra.mxu3 %v4363_v1 }
  0x6f   : > { %v4380_v41 = vor.u32 %v3374_v2, %v3189_v56  ;;  %v4395_v56 = vor.u32 %v3375_v44, %v3197_v45  ;;  %v3373_v2 = vld [vmem:[%s5903_s2 + $0x6c] sm:$0xf]  ;;  %v2873_v44 = vld [vmem:[%s5906_s5 + $0x18] sm:$0xff]  ;;  %v292_v45 = vunpack.c.h.bf16 %v4366_v10  ;;  %v3157_v1 = vld [vmem:[%s5903_s2 + $0x20] sm:$0xf] }
  0x70   : > { %6155 = vst [vmem:[#allocation73_spill] sm:$0xff] %v4355_v48  ;;  %v4403_v62 = vor.u32 %v3373_v2, %v3199_v53  ;;  %v293_v2 = vunpack.c.l.bf16 %v287_v30 }
  0x71   : > { %6157 = vst [vmem:[#allocation75_spill] sm:$0xff] %v4380_v41  ;;  %1143 = vmatpush.bf16.msra.mxu0 %v4380_v41 }
  0x72   : > { %1170 = vmatpush.bf16.msra.mxu2 %v4355_v48  ;;  %v4393_v48 = vor.u32 %v3372_v16, %v3191_v39  ;;  %6159 = vst [vmem:[#allocation77_spill] sm:$0xff] %v4395_v56  ;;  %v4414_v39 = vpack.c.bf16 %v2873_v44, %v2873_v44  ;;  %v3175_v44 = vld [vmem:[%s5903_s2 + $0x50] sm:$0xf0]  ;;  %1185 = vmatpush.bf16.msra.mxu3 %v4403_v62 }
  0x73   : > { %6160 = vst [vmem:[#allocation78_spill] sm:$0xff] %v4403_v62  ;;  %v294_v62 = vunpack.c.h.bf16 %v287_v30  ;;  %v3366_v30 = vld [vmem:[%s5903_s2 + $0x2c] sm:$0xf0] }
  0x74   : > { %6158 = vst [vmem:[#allocation76_spill] sm:$0xff] %v4393_v48  ;;  %1157 = vmatpush.bf16.msra.mxu1 %v4393_v48  ;;  %v754_v41 = vunpack.c.l.b16 %v4414_v39 }
  0x75   : > { %6162 = vst [vmem:[#allocation80_spill] sm:$0xff] %v4414_v39 }
  0x76   : > { %1171 = vmatpush.bf16.msra.mxu2 %v4395_v56 }
  0xbc   : > { %v504_v14 = vpop.f32.mrf.mxu0 }
  0xbd   : > { %v551_v15 = vadd.f32 %v504_v14, %v289_v36  ;;  %v518_v40 = vpop.f32.mrf.mxu1  ;;  %v2872_v36 = vld [vmem:[%s5906_s5 + $0x10] sm:$0xff] }
  0xbe   : > { %v552_v20 = vadd.f32 %v518_v40, %v290_v6  ;;  %v4412_v14 = vpack.c.bf16 %v2872_v36, %v2872_v36  ;;  %v3173_v6 = vld [vmem:[%s5903_s2 + $0x40] sm:$0xf]  ;;  %v3370_v40 = vld [vmem:[%s5903_s2 + $0x4c] sm:$0xf0]  ;;  %v3368_v36 = vld [vmem:[%s5903_s2 + $0x44] sm:$0xf] }
  0xbf   : > { %v3005_v16 = vmul.f32 -1.442695, %v551_v15  ;;  %v4425_v15 = vor.u32 %v3370_v40, %v3173_v6  ;;  %v4436_v48 = vor.u32 %v3368_v36, %v3175_v44  ;;  %v3181_v6 = vld [vmem:[%s5903_s2 + $0x48] sm:$0xf]  ;;  %v3371_v40 = vld [vmem:[%s5903_s2 + $0x54] sm:$0xf0] }
  0xc0   : > { %6161 = vst [vmem:[#allocation79_spill] sm:$0xff] %v4412_v14  ;;  %v3007_v53 = vmul.f32 -1.442695, %v552_v20  ;;  %v753_v20 = vunpack.c.l.b16 %v4412_v14  ;;  %v4447_v14 = vor.u32 %v3371_v40, %v3181_v6  ;;  %v3183_v36 = vld [vmem:[%s5903_s2 + $0x58] sm:$0xf0] }
  0xc1   : > { %6163 = vst [vmem:[#allocation81_spill] sm:$0xff] %v4425_v15  ;;  %3446 = vpow2.f32 %v3005_v16  ;;  %v3369_v16 = vld [vmem:[%s5903_s2 + $0x4c] sm:$0xf]  ;;  %1144 = vmatpush.bf16.msra.mxu0 %v4425_v15  ;;  %1158 = vmatpush.bf16.msra.mxu1 %v4436_v48 }
  0xc2   : > { %6164 = vst [vmem:[#allocation82_spill] sm:$0xff] %v4436_v48  ;;  %3448 = vpow2.f32 %v3007_v53  ;;  %v755_v39 = vpack.c.b16 %v754_v41, %v753_v20  ;;  %v4453_v56 = vor.u32 %v3369_v16, %v3183_v36  ;;  %v3364_v53 = vld [vmem:[%s5903_s2 + $0x24] sm:$0xf]  ;;  %1172 = vmatpush.bf16.msra.mxu2 %v4447_v14  ;;  %v4469_v41 = vor.u32 %v3366_v30, %v3157_v1  ;;  %v3159_v20 = vld [vmem:[%s5903_s2 + $0x30] sm:$0xf0] }
  0xc3   : > { %6165 = vst [vmem:[#allocation83_spill] sm:$0xff] %v4447_v14  ;;  %v3165_v16 = vld [vmem:[%s5903_s2 + $0x28] sm:$0xf]  ;;  %v3365_v1 = vld [vmem:[%s5903_s2 + $0x2c] sm:$0xf] }
  0xc4   : > { %6166 = vst [vmem:[#allocation84_spill] sm:$0xff] %v4453_v56  ;;  %v506_v40 = vpop.f32.mrf.mxu0  ;;  %925 = vmatmul.bf16.vlgmr.msrb.gmra.mxu0 %v755_v39  ;;  %939 = vmatmul.bf16.vlgmr.msrb.gmra.mxu1 %v755_v39  ;;  %v3167_v30 = vld [vmem:[%s5903_s2 + $0x38] sm:$0xf0] }
  0xc5   : > { %v546_v44 = vpop.f32.mrf.mxu3  ;;  %6167 = vst [vmem:[#allocation85_spill] sm:$0xff] %v4469_v41  ;;  %v555_v36 = vadd.f32 %v506_v40, %v293_v2  ;;  %v520_v15 = vpop.f32.mrf.mxu1  ;;  %1186 = vmatpush.bf16.msra.mxu3 %v4453_v56  ;;  %953 = vmatmul.bf16.vlgmr.msrb.gmra.mxu2 %v755_v39 }
  0xc6   : > { %v554_v6 = vadd.f32 %v546_v44, %v292_v45  ;;  %v4477_v45 = vor.u32 %v3364_v53, %v3159_v20  ;;  %v3367_v44 = vld [vmem:[%s5903_s2 + $0x34] sm:$0xf0]  ;;  %v556_v48 = vadd.f32 %v520_v15, %v294_v62  ;;  %v4491_v53 = vor.u32 %v3365_v1, %v3167_v30  ;;  %1145 = vmatpush.bf16.msra.mxu0 %v4469_v41  ;;  %v3362_v62 = vld [vmem:[%s5903_s2 + $0xc] sm:$0xf0] }
  0xc7   : > { %v4489_v2 = vor.u32 %v3367_v44, %v3165_v16  ;;  %v3447_v40 = vpop.eup %3446  ;;  %v3006_v20 = vmul.f32 -1.442695, %v555_v36  ;;  %967 = vmatmul.bf16.vlgmr.msrb.gmra.mxu3 %v755_v39  ;;  %v296_v44 = vunpack.c.h.bf16 %v4465_v19  ;;  %v4507_v36 = vor.u32 %v3362_v62, %v3141_v61  ;;  %v3149_v61 = vld [vmem:[%s5903_s2 + $0x8] sm:$0xf]  ;;  %v3361_v62 = vld [vmem:[%s5903_s2 + $0xc] sm:$0xf] }
  0xc8   : > { %6168 = vst [vmem:[#allocation86_spill] sm:$0xff] %v4477_v45  ;;  %v3009_v14 = vmul.f32 -1.442695, %v554_v6  ;;  %v3449_v15 = vpop.eup %3448  ;;  %v4500_v6 = vadd.f32 1.0, %v3447_v40  ;;  %v3008_v16 = vmul.f32 -1.442695, %v556_v48  ;;  %1159 = vmatpush.bf16.msra.mxu1 %v4477_v45  ;;  %v291_v1 = vunpack.c.l.bf16 %v4366_v10 }
  0xc9   : > { %6169 = vst [vmem:[#allocation87_spill] sm:$0xff] %v4489_v2  ;;  %1173 = vmatpush.bf16.msra.mxu2 %v4489_v2  ;;  %v4505_v39 = vadd.f32 1.0, %v3449_v15  ;;  %1187 = vmatpush.bf16.msra.mxu3 %v4491_v53  ;;  %v3143_v48 = vld [vmem:[%s5903_s2 + $0x10] sm:$0xf0]  ;;  %v3151_v10 = vld [vmem:[%s5903_s2 + $0x18] sm:$0xf0] }
  0xca   : > { %6170 = vst [vmem:[#allocation88_spill] sm:$0xff] %v4491_v53  ;;  %3450 = vpow2.f32 %v3009_v14  ;;  %v3360_v14 = vld [vmem:[%s5903_s2 + $0x4] sm:$0xf]  ;;  %v532_v30 = vpop.f32.mrf.mxu2  ;;  %1146 = vmatpush.bf16.msra.mxu0 %v4507_v36  ;;  %v4537_v41 = vor.u32 %v3361_v62, %v3151_v10  ;;  %v295_v62 = vunpack.c.l.bf16 %v4465_v19  ;;  %vm572_vm2 = vweird.f32 %v4500_v6 }
  0xcb   : > { %3452 = vpow2.f32 %v3006_v20  ;;  %6171 = vst [vmem:[#allocation89_spill] sm:$0xff] %v4507_v36  ;;  %v3363_v20 = vld [vmem:[%s5903_s2 + $0x14] sm:$0xf0]  ;;  %v4533_v36 = vor.u32 %v3360_v14, %v3143_v48  ;;  %v553_v23 = vadd.f32 %v532_v30, %v291_v1  ;;  %v576_v30 = vand.u32 2147483647, %v4500_v6 }
  0xcc   : > { %3454 = vrcp.f32 %v4500_v6  ;;  %v4535_v45 = vor.u32 %v3363_v20, %v3149_v61  ;;  %6174 = vst [vmem:[#allocation92_spill] sm:$0xff] %v4537_v41  ;;  %v616_v61 = vand.u32 2147483648, %v4505_v39  ;;  %v578_v20 = vand.u32 2147483648, %v4500_v6 }
  0xcd   : > { %3456 = vrcp.f32 %v4505_v39  ;;  %v548_v40 = vpop.f32.mrf.mxu3  ;;  %6172 = vst [vmem:[#allocation90_spill] sm:$0xff] %v4533_v36  ;;  %1160 = vmatpush.bf16.msra.mxu1 %v4533_v36  ;;  %1188 = vmatpush.bf16.msra.mxu3 %v4537_v41  ;;  %vm610_vm3 = vweird.f32 %v4505_v39  ;;  %vm4570_vm4 = vcmp.eq.f32.partialorder %v576_v30, 8.507059e+37 }
  0xce   : > { %3458 = vpow2.f32 %v3008_v16  ;;  %v558_v15 = vadd.f32 %v548_v40, %v296_v44  ;;  %1373 = vmatpush.bf16.msrb.mxu0 %v3837_v4  ;;  %6173 = vst [vmem:[#allocation91_spill] sm:$0xff] %v4535_v45  ;;  %1174 = vmatpush.bf16.msra.mxu2 %v4535_v45 }
  0xd0   : > { %v3451_v53 = vpop.eup %3450  ;;  %v3010_v2 = vmul.f32 -1.442695, %v558_v15 }
  0xd1   : > { %v3453_v56 = vpop.eup %3452  ;;  %v4539_v50 = vadd.f32 1.0, %v3451_v53  ;;  %1387 = vmatpush.bf16.msrb.mxu1 %v3848_v8  ;;  %1415 = vmatpush.bf16.msrb.mxu3 %v3850_v9 }
  0xd2   : > { %v3455_v16 = vpop.eup %3454  ;;  %v4542_v44 = vadd.f32 1.0, %v3453_v56  ;;  %3460 = vpow2.f32 %v3010_v2  ;;  %1401 = vmatpush.bf16.msrb.mxu2 %v3888_v22  ;;  %1374 = vmatpush.bf16.msrb.mxu0 %v3862_v13  ;;  %v534_v10 = vpop.f32.mrf.mxu2 }
  0xd3   : > { %v3457_v14 = vpop.eup %3456  ;;  %v568_v48 = vmul.f32 %v3455_v16, %v4500_v6  ;;  %3462 = vrcp.f32 %v4539_v50  ;;  %vm573_vm0 = vweird.f32 %v3455_v16  ;;  %v579_v6 = vor.u32 1.1754944e-38, %v578_v20 }
  0xd4   : > { %v3459_v53 = vpop.eup %3458  ;;  %v606_v1 = vmul.f32 %v3457_v14, %v4505_v39  ;;  %3464 = vrcp.f32 %v4542_v44  ;;  %vm611_vm1 = vweird.f32 %v3457_v14  ;;  %vm574_vm5 = vmor %vm572_vm2, %vm573_vm0  ;;  %vm587_vm9 = vweird.f32 %v4542_v44 }
  0xd5   : > { %v569_v56 = vsub.f32 1.0, %v568_v48  ;;  %v4554_v2 = vadd.f32 1.0, %v3459_v53  ;;  %3466 = vtanh.f32 %v553_v23  ;;  %1388 = vmatpush.bf16.msrb.mxu1 %v3875_v17  ;;  %v614_v23 = vand.u32 2147483647, %v4505_v39  ;;  %1416 = vmatpush.bf16.msrb.mxu3 %v3877_v18  ;;  %vm4578_vm6 = vmor %vm610_vm3, %vm611_vm1 }
  0xd6   : > { %v607_v40 = vsub.f32 1.0, %v606_v1  ;;  %1402 = vmatpush.bf16.msrb.mxu2 %v3927_v35  ;;  %1375 = vmatpush.bf16.msrb.mxu0 %v3910_v29  ;;  %v617_v17 = vor.u32 1.1754944e-38, %v616_v61  ;;  %v557_v18 = vadd.f32 %v534_v10, %v295_v62  ;;  %v4588_v61 = vld [vmem:[%s5907_s6] sm:$0xff]  ;;  %vm650_vm1 = vweird.f32 %v4539_v50 }
  0xd7   : > { %3468 = vrcp.f32 %v4554_v2  ;;  %v570_v15 = vmul.f32 %v3455_v16, %v569_v56  ;;  %vm615_vm7 = vcmp.eq.f32.partialorder %v614_v23, 8.507059e+37  ;;  %v591_v56 = vand.u32 2147483647, %v4542_v44 }
  0xd8   : > { %v3461_v48 = vpop.eup %3460  ;;  %v608_v53 = vmul.f32 %v3457_v14, %v607_v40  ;;  %vm625_vm13 = vweird.f32 %v4554_v2 }
  0xd9   : > { %v4567_v19 = vpop.eup %3462  ;;  %v571_v1 = vadd.f32 %v3455_v16, %v570_v15  ;;  %v4574_v35 = vadd.f32 1.0, %v3461_v48  ;;  %1389 = vmatpush.bf16.msrb.mxu1 %v3923_v33  ;;  %1417 = vmatpush.bf16.msrb.mxu3 %v3925_v34  ;;  %vm592_vm12 = vcmp.eq.f32.partialorder %v591_v56, 8.507059e+37 }
  0xda   : > { %v3465_v40 = vpop.eup %3464  ;;  %v609_v13 = vadd.f32 %v3457_v14, %v608_v53  ;;  %v646_v39 = vmul.f32 %v4567_v19, %v4539_v50  ;;  %1403 = vmatpush.bf16.msrb.mxu2 %v3951_v43  ;;  %1376 = vmatpush.bf16.msrb.mxu0 %v3949_v42  ;;  %v593_v53 = vand.u32 2147483648, %v4542_v44  ;;  %vm651_vm0 = vweird.f32 %v4567_v19 }
  0xdb   : > { %v3467_v9 = vpop.eup %3466  ;;  %v583_v30 = vmul.f32 %v3465_v40, %v4542_v44  ;;  %v575_v15 = vsel %vm574_vm5, %v3455_v16, %v571_v1  ;;  %3470 = vrcp.f32 %v4574_v35  ;;  %vm588_vm8 = vweird.f32 %v3465_v40  ;;  %vm4641_vm2 = vmor %vm650_vm1, %vm651_vm0 }
  0xdc   : > { %v580_v20 = vsel %vm4570_vm4, %v579_v6, %v575_v15  ;;  %v613_v62 = vsel %vm4578_vm6, %v3457_v14, %v609_v13  ;;  %v647_v6 = vsub.f32 1.0, %v646_v39  ;;  %3472 = vtanh.f32 %v557_v18  ;;  %vm589_vm11 = vmor %vm587_vm9, %vm588_vm8 }
  0xdd   : > { %v3469_v10 = vpop.eup %3468  ;;  %v584_v48 = vsub.f32 1.0, %v583_v30  ;;  %v618_v16 = vsel %vm615_vm7, %v617_v17, %v613_v62  ;;  %v677_v33 = vmul.f32 %v3467_v9, %v580_v20  ;;  %1390 = vmatpush.bf16.msrb.mxu1 %v3961_v46  ;;  %1418 = vmatpush.bf16.msrb.mxu3 %v3963_v47  ;;  %v631_v9 = vand.u32 2147483648, %v4554_v2 }
  0xde   : > { %v621_v1 = vmul.f32 %v3469_v10, %v4554_v2  ;;  %v675_v43 = vmul.f32 %v618_v16, %v4588_v61  ;;  %1404 = vmatpush.bf16.msrb.mxu2 %v3987_v55  ;;  %1377 = vmatpush.bf16.msrb.mxu0 %v3985_v54  ;;  %v594_v23 = vor.u32 1.1754944e-38, %v593_v53  ;;  %v629_v39 = vand.u32 2147483647, %v4554_v2 }
  0xdf   : > { %v585_v29 = vmul.f32 %v3465_v40, %v584_v48  ;;  %vm626_vm10 = vweird.f32 %v3469_v10  ;;  %v648_v44 = vmul.f32 %v4567_v19, %v647_v6  ;;  %vm665_vm4 = vweird.f32 %v4574_v35 }
  0xe0   : > { %v622_v13 = vsub.f32 1.0, %v621_v1  ;;  %v4612_v30 = vadd.f32 %v677_v33, %v675_v43  ;;  %vm627_vm14 = vmor %vm625_vm13, %vm626_vm10  ;;  %v632_v43 = vor.u32 1.1754944e-38, %v631_v9  ;;  %vm630_vm15 = vcmp.eq.f32.partialorder %v629_v39, 8.507059e+37 }
  0xe1   : > { %v4608_v17 = vpop.eup %3470  ;;  %v586_v14 = vadd.f32 %v3465_v40, %v585_v29  ;;  %1391 = vmatpush.bf16.msrb.mxu1 %v3997_v58  ;;  %1419 = vmatpush.bf16.msrb.mxu3 %v3999_v59  ;;  %v649_v6 = vadd.f32 %v4567_v19, %v648_v44  ;;  %v656_v29 = vand.u32 2147483648, %v4539_v50 }
  0xe2   : > { %v623_v18 = vmul.f32 %v3469_v10, %v622_v13  ;;  %v661_v15 = vmul.f32 %v4608_v17, %v4574_v35  ;;  %1405 = vmatpush.bf16.msrb.mxu2 %v4026_v5  ;;  %1378 = vmatpush.bf16.msrb.mxu0 %v4024_v3  ;;  %v3473_v33 = vpop.eup %3472  ;;  %3474 = vtanh.f32 %v4612_v30  ;;  %vm666_vm3 = vweird.f32 %v4608_v17 }
  0xe3   : > { %v590_v20 = vsel %vm589_vm11, %v3465_v40, %v586_v14  ;;  %v4627_v40 = vld [vmem:[%s5907_s6 + $0x8] sm:$0xff]  ;;  %vm667_vm6 = vmor %vm665_vm4, %vm666_vm3 }
  0xe4   : > { %v662_v62 = vsub.f32 1.0, %v661_v15  ;;  %v595_v48 = vsel %vm592_vm12, %v594_v23, %v590_v20  ;;  %v624_v16 = vadd.f32 %v3469_v10, %v623_v18  ;;  %v653_v23 = vsel %vm4641_vm2, %v4567_v19, %v649_v6 }
  0xe5   : > { %v678_v2 = vmul.f32 %v3473_v33, %v595_v48  ;;  %1392 = vmatpush.bf16.msrb.mxu1 %v4039_v11  ;;  %1420 = vmatpush.bf16.msrb.mxu3 %v4041_v12  ;;  %v671_v15 = vand.u32 2147483648, %v4574_v35  ;;  %v669_v19 = vand.u32 2147483647, %v4574_v35 }
  0xe6   : > { %v628_v53 = vsel %vm627_vm14, %v3469_v10, %v624_v16  ;;  %v663_v1 = vmul.f32 %v4608_v17, %v662_v62  ;;  %1406 = vmatpush.bf16.msrb.mxu2 %v4069_v26  ;;  %1379 = vmatpush.bf16.msrb.mxu0 %v4067_v25  ;;  %v654_v10 = vand.u32 2147483647, %v4539_v50  ;;  %v657_v50 = vor.u32 1.1754944e-38, %v656_v29 }
  0xe7   : > { %v633_v56 = vsel %vm630_vm15, %v632_v43, %v628_v53  ;;  %v672_v48 = vor.u32 1.1754944e-38, %v671_v15  ;;  %vm670_vm7 = vcmp.eq.f32.partialorder %v669_v19, 8.507059e+37  ;;  %v6190_v19 = vld [vmem:[#allocation39_spill] sm:$0xff] }
  0xe8   : > { %v676_v13 = vmul.f32 %v633_v56, %v4627_v40  ;;  %v664_v39 = vadd.f32 %v4608_v17, %v663_v1  ;;  %v3475_v18 = vpop.eup %3474  ;;  %vm655_vm5 = vcmp.eq.f32.partialorder %v654_v10, 8.507059e+37 }
  0xe9   : > { %1393 = vmatpush.bf16.msrb.mxu1 %v4082_v31  ;;  %1421 = vmatpush.bf16.msrb.mxu3 %v4084_v32  ;;  %v658_v44 = vsel %vm655_vm5, %v657_v50, %v653_v23  ;;  %v6186_v23 = vld [vmem:[#allocation35_spill] sm:$0xff]  ;;  %v6189_v50 = vld [vmem:[#allocation37_spill] sm:$0xff] }
  0xea   : > { %v4645_v14 = vadd.f32 %v678_v2, %v676_v13  ;;  %1407 = vmatpush.bf16.msrb.mxu2 %v4107_v52  ;;  %1380 = vmatpush.bf16.msrb.mxu0 %v4105_v51  ;;  %v668_v20 = vsel %vm667_vm6, %v4608_v17, %v664_v39  ;;  %v683_v62 = vmul.f32 %v3475_v18, %v658_v44  ;;  %v1342_v17 = vstv %s1341_s24  ;;  %v6184_v13 = vld [vmem:[#allocation17_spill] sm:$0xff]  ;;  %v6187_v39 = vld [vmem:[#allocation36_spill] sm:$0xff]  ;;  %v6188_v18 = vld [vmem:[#allocation38_spill] sm:$0xff] }
  0xeb   : > { %v673_v33 = vsel %vm670_vm7, %v672_v48, %v668_v20  ;;  %vm4669_vm8 = vcmp.eq.s32.totalorder %v1342_v17, 1  ;;  %v6191_v44 = vld [vmem:[#allocation40_spill] sm:$0xff]  ;;  %v6192_v20 = vld [vmem:[#allocation42_spill] sm:$0xff]  ;;  %v6194_v48 = vld [vmem:[#allocation43_spill] sm:$0xff] }
  0xec   : > { %3476 = vtanh.f32 %v4645_v14  ;;  %v685_v53 = vpack.c.bf16 %v683_v62, %v683_v62  ;;  %v6193_v62 = vld [vmem:[#allocation41_spill] sm:$0xff]  ;;  %v6203_v17 = vld [vmem:[#allocation52_spill] sm:$0xff] }
  0xed   : > { %1394 = vmatpush.bf16.msrb.mxu1 %v4111_v57  ;;  %1422 = vmatpush.bf16.msrb.mxu3 %v4113_v60 }
  0xee   : > { %1408 = vmatpush.bf16.msrb.mxu2 %v4131_v21  ;;  %v975_v35 = vunpack.c.l.b16 %v685_v53  ;;  %v4685_v10 = vsel %vm4669_vm8, %v685_v53, %v6184_v13  ;;  %v6198_v53 = vld [vmem:[#allocation47_spill] sm:$0xff]  ;;  %v6204_v13 = vld [vmem:[#allocation53_spill] sm:$0xff] }
  0xef   : > { %6185 = vst [vmem:[#allocation17_spill] sm:$0xff] %v4685_v10 }
  0xf2   : > { %v3477_v16 = vpop.eup %3476 }
  0xf3   : > { %v684_v43 = vmul.f32 %v3477_v16, %v673_v33  ;;  %v6195_v16 = vld [vmem:[#allocation44_spill] sm:$0xff]  ;;  %v6196_v33 = vld [vmem:[#allocation45_spill] sm:$0xff] }
  0xf5   : > { %v686_v2 = vpack.c.bf16 %v684_v43, %v684_v43  ;;  %v6197_v43 = vld [vmem:[#allocation46_spill] sm:$0xff] }
  0xf7   : > { %v976_v1 = vunpack.c.l.b16 %v686_v2  ;;  %v4678_v29 = vsel %vm4669_vm8, %v686_v2, %v4063_v24  ;;  %v1369_v24 = vunpack.c.l.b16 %v4685_v10  ;;  %v6199_v2 = vld [vmem:[#allocation48_spill] sm:$0xff] }
  0xf8   : > { %6183 = vst [vmem:[#allocation93_spill] sm:$0xff] %v4678_v29  ;;  %v1370_v9 = vunpack.c.l.b16 %v4678_v29 }
  0xf9   : > { %v977_v56 = vpack.c.b16 %v976_v1, %v975_v35  ;;  %v6200_v35 = vld [vmem:[#allocation49_spill] sm:$0xff]  ;;  %v6201_v1 = vld [vmem:[#allocation50_spill] sm:$0xff] }
  0xfa   : > { %v1371_v15 = vpack.c.b16 %v1370_v9, %v1369_v24  ;;  %v6205_v9 = vld [vmem:[#allocation54_spill] sm:$0xff]  ;;  %v6206_v24 = vld [vmem:[#allocation55_spill] sm:$0xff] }
  0xfb   : > { %1147 = vmatmul.bf16.vlgmr.msra.gmra.mxu0 %v977_v56  ;;  %1161 = vmatmul.bf16.vlgmr.msra.gmra.mxu1 %v977_v56 }
  0xfc   : > { %1175 = vmatmul.bf16.vlgmr.msra.gmra.mxu2 %v977_v56  ;;  %1189 = vmatmul.bf16.vlgmr.msra.gmra.mxu3 %v977_v56  ;;  %v6202_v56 = vld [vmem:[#allocation51_spill] sm:$0xff] }
  0xfd   : > { %1571 = vmatpush.bf16.msra.mxu0 %v4121_v63  ;;  %1585 = vmatpush.bf16.msra.mxu1 %v4123_v0 }
  0xfe   : > { %1599 = vmatpush.bf16.msra.mxu2 %v4135_v27  ;;  %1613 = vmatpush.bf16.msra.mxu3 %v4125_v7 }
 0x101   : > { %1572 = vmatpush.bf16.msra.mxu0 %v4137_v28  ;;  %1586 = vmatpush.bf16.msra.mxu1 %v4140_v37 }
 0x102   : > { %1600 = vmatpush.bf16.msra.mxu2 %v4147_v49  ;;  %1614 = vmatpush.bf16.msra.mxu3 %v4142_v38 }
 0x105   : > { %1573 = vmatpush.bf16.msra.mxu0 %v6186_v23  ;;  %1587 = vmatpush.bf16.msra.mxu1 %v6187_v39 }
 0x106   : > { %1601 = vmatpush.bf16.msra.mxu2 %v6188_v18  ;;  %1615 = vmatpush.bf16.msra.mxu3 %v6189_v50 }
 0x109   : > { %1574 = vmatpush.bf16.msra.mxu0 %v6190_v19  ;;  %1588 = vmatpush.bf16.msra.mxu1 %v6191_v44 }
 0x10a   : > { %1602 = vmatpush.bf16.msra.mxu2 %v6192_v20  ;;  %1616 = vmatpush.bf16.msra.mxu3 %v6193_v62 }
 0x10b   : > { %1381 = vmatmul.bf16.vlgmr.msrb.gmra.mxu0 %v1371_v15  ;;  %1395 = vmatmul.bf16.vlgmr.msrb.gmra.mxu1 %v1371_v15 }
 0x10c   : > { %1409 = vmatmul.bf16.vlgmr.msrb.gmra.mxu2 %v1371_v15  ;;  %1423 = vmatmul.bf16.vlgmr.msrb.gmra.mxu3 %v1371_v15  ;;  %v6207_v15 = vld [vmem:[#allocation56_spill] sm:$0xff] }
 0x10d   : > { %1575 = vmatpush.bf16.msra.mxu0 %v6194_v48  ;;  %1589 = vmatpush.bf16.msra.mxu1 %v6195_v16 }
 0x10e   : > { %1603 = vmatpush.bf16.msra.mxu2 %v6196_v33  ;;  %1617 = vmatpush.bf16.msra.mxu3 %v6197_v43  ;;  %v6208_v43 = vld [vmem:[#allocation57_spill] sm:$0xff] }
 0x111   : > { %1576 = vmatpush.bf16.msra.mxu0 %v6198_v53  ;;  %1590 = vmatpush.bf16.msra.mxu1 %v6199_v2  ;;  %v6209_v53 = vld [vmem:[#allocation58_spill] sm:$0xff]  ;;  %v6210_v2 = vld [vmem:[#allocation59_spill] sm:$0xff] }
 0x112   : > { %1604 = vmatpush.bf16.msra.mxu2 %v6200_v35  ;;  %1618 = vmatpush.bf16.msra.mxu3 %v6201_v1  ;;  %v6211_v35 = vld [vmem:[#allocation60_spill] sm:$0xff]  ;;  %v6212_v1 = vld [vmem:[#allocation61_spill] sm:$0xff] }
 0x115   : > { %1577 = vmatpush.bf16.msra.mxu0 %v6202_v56  ;;  %1591 = vmatpush.bf16.msra.mxu1 %v6203_v17  ;;  %v6213_v56 = vld [vmem:[#allocation62_spill] sm:$0xff]  ;;  %v6214_v17 = vld [vmem:[#allocation63_spill] sm:$0xff] }
 0x116   : > { %1605 = vmatpush.bf16.msra.mxu2 %v6204_v13  ;;  %1619 = vmatpush.bf16.msra.mxu3 %v6205_v9  ;;  %v6215_v13 = vld [vmem:[#allocation64_spill] sm:$0xff]  ;;  %v6216_v9 = vld [vmem:[#allocation65_spill] sm:$0xff] }
 0x119   : > { %1578 = vmatpush.bf16.msra.mxu0 %v6206_v24  ;;  %1592 = vmatpush.bf16.msra.mxu1 %v6207_v15  ;;  %v6217_v24 = vld [vmem:[#allocation66_spill] sm:$0xff]  ;;  %v6218_v15 = vld [vmem:[#allocation67_spill] sm:$0xff] }
 0x11a   : > { %1606 = vmatpush.bf16.msra.mxu2 %v6208_v43  ;;  %1620 = vmatpush.bf16.msra.mxu3 %v6209_v53  ;;  %v6219_v43 = vld [vmem:[#allocation68_spill] sm:$0xff]  ;;  %v6220_v53 = vld [vmem:[#allocation69_spill] sm:$0xff] }
 0x11d   : > { %1633 = vmatpush.bf16.msrb.mxu0 %v6210_v2  ;;  %1647 = vmatpush.bf16.msrb.mxu1 %v6211_v35  ;;  %v6221_v2 = vld [vmem:[#allocation70_spill] sm:$0xff]  ;;  %v6222_v35 = vld [vmem:[#allocation71_spill] sm:$0xff] }
 0x11e   : > { %1661 = vmatpush.bf16.msrb.mxu2 %v6212_v1  ;;  %1675 = vmatpush.bf16.msrb.mxu3 %v6213_v56  ;;  %v6223_v1 = vld [vmem:[#allocation72_spill] sm:$0xff]  ;;  %v6224_v56 = vld [vmem:[#allocation73_spill] sm:$0xff] }
 0x121   : > { %1634 = vmatpush.bf16.msrb.mxu0 %v6214_v17  ;;  %1648 = vmatpush.bf16.msrb.mxu1 %v6215_v13  ;;  %v6225_v17 = vld [vmem:[#allocation74_spill] sm:$0xff]  ;;  %v6226_v13 = vld [vmem:[#allocation75_spill] sm:$0xff] }
 0x122   : > { %1662 = vmatpush.bf16.msrb.mxu2 %v6216_v9  ;;  %1676 = vmatpush.bf16.msrb.mxu3 %v6217_v24  ;;  %v6227_v9 = vld [vmem:[#allocation76_spill] sm:$0xff]  ;;  %v6228_v24 = vld [vmem:[#allocation77_spill] sm:$0xff] }
 0x125   : > { %1635 = vmatpush.bf16.msrb.mxu0 %v6218_v15  ;;  %1649 = vmatpush.bf16.msrb.mxu1 %v6219_v43  ;;  %v6229_v15 = vld [vmem:[#allocation78_spill] sm:$0xff]  ;;  %v6230_v43 = vld [vmem:[#allocation81_spill] sm:$0xff] }
 0x126   : > { %1663 = vmatpush.bf16.msrb.mxu2 %v6220_v53  ;;  %1677 = vmatpush.bf16.msrb.mxu3 %v6221_v2  ;;  %v6231_v53 = vld [vmem:[#allocation82_spill] sm:$0xff]  ;;  %v6232_v2 = vld [vmem:[#allocation83_spill] sm:$0xff] }
 0x129   : > { %1636 = vmatpush.bf16.msrb.mxu0 %v6222_v35  ;;  %1650 = vmatpush.bf16.msrb.mxu1 %v6223_v1  ;;  %v6233_v35 = vld [vmem:[#allocation84_spill] sm:$0xff]  ;;  %v6234_v1 = vld [vmem:[#allocation85_spill] sm:$0xff] }
 0x12a   : > { %1664 = vmatpush.bf16.msrb.mxu2 %v6224_v56  ;;  %1678 = vmatpush.bf16.msrb.mxu3 %v6225_v17  ;;  %v6235_v56 = vld [vmem:[#allocation86_spill] sm:$0xff]  ;;  %v6236_v17 = vld [vmem:[#allocation87_spill] sm:$0xff] }
 0x12d   : > { %1637 = vmatpush.bf16.msrb.mxu0 %v6226_v13  ;;  %1651 = vmatpush.bf16.msrb.mxu1 %v6227_v9  ;;  %v6237_v13 = vld [vmem:[#allocation88_spill] sm:$0xff]  ;;  %v6238_v9 = vld [vmem:[#allocation89_spill] sm:$0xff] }
 0x12e   : > { %1665 = vmatpush.bf16.msrb.mxu2 %v6228_v24  ;;  %1679 = vmatpush.bf16.msrb.mxu3 %v6229_v15 }
 0x131   : > { %1638 = vmatpush.bf16.msrb.mxu0 %v6230_v43  ;;  %1652 = vmatpush.bf16.msrb.mxu1 %v6231_v53 }
 0x132   : > { %1666 = vmatpush.bf16.msrb.mxu2 %v6232_v2  ;;  %1680 = vmatpush.bf16.msrb.mxu3 %v6233_v35 }
 0x135   : > { %1639 = vmatpush.bf16.msrb.mxu0 %v6234_v1  ;;  %1653 = vmatpush.bf16.msrb.mxu1 %v6235_v56 }
 0x136   : > { %1667 = vmatpush.bf16.msrb.mxu2 %v6236_v17  ;;  %1681 = vmatpush.bf16.msrb.mxu3 %v6237_v13  ;;  %v1195_v17 = vld [vmem:[%s5905_s4] sm:$0xf] }
 0x137   : > { %v4748_v24 = vperm.slane %v1195_v17, 0  ;;  %v4754_v44 = vperm.slane %v1195_v17, 3 }
 0x139   : > { %1640 = vmatpush.bf16.msrb.mxu0 %v6238_v9  ;;  %1654 = vmatpush.bf16.msrb.mxu1 %v4533_v36  ;;  %6239 = vst [vmem:[#allocation94_spill] sm:$0xff] %v4748_v24  ;;  %v4750_v9 = vperm.slane %v1195_v17, 1 }
 0x13a   : > { %1668 = vmatpush.bf16.msrb.mxu2 %v4535_v45  ;;  %1682 = vmatpush.bf16.msrb.mxu3 %v4537_v41  ;;  %6241 = vst [vmem:[#allocation96_spill] sm:$0xff] %v4754_v44 }
 0x13b   : > { %6240 = vst [vmem:[#allocation95_spill] sm:$0xff] %v4750_v9 }
 0x141   : > { %v926_v53 = vpop.f32.mrf.mxu0  ;;  %v940_v2 = vpop.f32.mrf.mxu1 }
 0x148   : > { %v954_v35 = vpop.f32.mrf.mxu2 }
 0x149   : > { %v928_v15 = vpop.f32.mrf.mxu0  ;;  %v942_v1 = vpop.f32.mrf.mxu1 }
 0x14a   : > { %v968_v43 = vpop.f32.mrf.mxu3 }
 0x150   : > { %v956_v13 = vpop.f32.mrf.mxu2 }
 0x152   : > { %v970_v56 = vpop.f32.mrf.mxu3 }
 0x178   : > { %v1148_v36 = vpop.f32.mrf.mxu0  ;;  %v1162_v45 = vpop.f32.mrf.mxu1 }
 0x179   : > { %v1149_v33 = vadd.f32 %v1148_v36, %v926_v53  ;;  %v1163_v41 = vadd.f32 %v1162_v45, %v940_v2 }
 0x17b   : > { %v1205_v16 = vadd.f32 %v4748_v24, %v1149_v33  ;;  %v1206_v48 = vadd.f32 %v4750_v9, %v1163_v41  ;;  %v4759_v33 = vperm.slane %v1195_v17, 2  ;;  %v4773_v17 = vld [vmem:[%s3801_s11 + $0x30] sm:$0xff] }
 0x17d   : > { %v3267_v62 = vmul.f32 -1.442695, %v1205_v16  ;;  %v3269_v20 = vmul.f32 -1.442695, %v1206_v48  ;;  %6242 = vst [vmem:[#allocation97_spill] sm:$0xff] %v4759_v33 }
 0x17f   : > { %3478 = vpow2.f32 %v3267_v62  ;;  %v1190_v19 = vpop.f32.mrf.mxu3  ;;  %v1176_v23 = vpop.f32.mrf.mxu2 }
 0x180   : > { %3480 = vpow2.f32 %v3269_v20  ;;  %v1191_v50 = vadd.f32 %v1190_v19, %v968_v43  ;;  %v1150_v18 = vpop.f32.mrf.mxu0  ;;  %v1164_v39 = vpop.f32.mrf.mxu1  ;;  %v1177_v43 = vadd.f32 %v1176_v23, %v954_v35  ;;  %v4779_v35 = vsel %vm4669_vm8, %v4612_v30, %v4588_v61 }
 0x181   : > { %v1151_v38 = vadd.f32 %v1150_v18, %v928_v15  ;;  %v1165_v49 = vadd.f32 %v1164_v39, %v942_v1  ;;  %v3273_v39 = vld [vmem:[%s3801_s11 + $0x20] sm:$0xff] }
 0x182   : > { %v1208_v45 = vadd.f32 %v4754_v44, %v1191_v50  ;;  %v4769_v50 = vld [vmem:[%s3801_s11 + $0x28] sm:$0xff]  ;;  %v1207_v2 = vadd.f32 %v4759_v33, %v1177_v43 }
 0x183   : > { %v1209_v36 = vadd.f32 %v4748_v24, %v1151_v38  ;;  %v1210_v41 = vadd.f32 %v4750_v9, %v1165_v49  ;;  %v1359_v49 = vunpack.c.l.bf16 %v3273_v39 }
 0x184   : > { %v3271_v16 = vmul.f32 -1.442695, %v1208_v45 }
 0x185   : > { %v3479_v48 = vpop.eup %3478  ;;  %v3268_v62 = vmul.f32 -1.442695, %v1209_v36  ;;  %v3270_v18 = vmul.f32 -1.442695, %v1210_v41  ;;  %v1360_v36 = vunpack.c.h.bf16 %v3273_v39 }
 0x186   : > { %v3481_v20 = vpop.eup %3480  ;;  %v4761_v19 = vadd.f32 1.0, %v3479_v48  ;;  %3482 = vpow2.f32 %v3271_v16 }
 0x187   : > { %v4764_v53 = vadd.f32 1.0, %v3481_v20  ;;  %3484 = vpow2.f32 %v3268_v62  ;;  %v1192_v38 = vpop.f32.mrf.mxu3  ;;  %v1178_v23 = vpop.f32.mrf.mxu2 }
 0x188   : > { %3486 = vrcp.f32 %v4761_v19  ;;  %v1382_v1 = vpop.f32.mrf.mxu0  ;;  %v1193_v45 = vadd.f32 %v1192_v38, %v970_v56  ;;  %v1396_v43 = vpop.f32.mrf.mxu1  ;;  %vm1226_vm9 = vweird.f32 %v4761_v19  ;;  %v1179_v30 = vadd.f32 %v1178_v23, %v956_v13 }
 0x189   : > { %3488 = vrcp.f32 %v4764_v53  ;;  %v1429_v20 = vadd.f32 %v1382_v1, %v1359_v49  ;;  %v1230_v38 = vand.u32 2147483647, %v4761_v19  ;;  %v1270_v9 = vand.u32 2147483648, %v4764_v53 }
 0x18a   : > { %3490 = vpow2.f32 %v3270_v18  ;;  %vm1264_vm10 = vweird.f32 %v4764_v53  ;;  %v1268_v16 = vand.u32 2147483647, %v4764_v53  ;;  %v1211_v37 = vadd.f32 %v4759_v33, %v1179_v30 }
 0x18b   : > { %3492 = vtanh.f32 %v1207_v2  ;;  %v1212_v2 = vadd.f32 %v4754_v44, %v1193_v45  ;;  %v3277_v23 = vmul.f32 -1.442695, %v1429_v20  ;;  %vm4803_vm12 = vcmp.eq.f32.partialorder %v1230_v38, 8.507059e+37  ;;  %v4809_v45 = vld [vmem:[%s3801_s11 + $0x38] sm:$0xff] }
 0x18c   : > { %v3483_v15 = vpop.eup %3482  ;;  %v1271_v20 = vor.u32 1.1754944e-38, %v1270_v9  ;;  %vm4819_vm15 = vcmp.eq.f32.partialorder %v1268_v16, 8.507059e+37 }
 0x18d   : > { %v3485_v48 = vpop.eup %3484  ;;  %v4783_v62 = vadd.f32 1.0, %v3483_v15  ;;  %v1232_v15 = vand.u32 2147483648, %v4761_v19  ;;  %v3272_v44 = vmul.f32 -1.442695, %v1212_v2 }
 0x18e   : > { %v3487_v24 = vpop.eup %3486  ;;  %v4788_v61 = vadd.f32 1.0, %v3485_v48  ;;  %v1430_v48 = vadd.f32 %v1396_v43, %v1360_v36 }
 0x18f   : > { %v3489_v56 = vpop.eup %3488  ;;  %v1222_v39 = vmul.f32 %v3487_v24, %v4761_v19  ;;  %3494 = vrcp.f32 %v4783_v62  ;;  %vm1227_vm11 = vweird.f32 %v3487_v24  ;;  %v1310_v30 = vand.u32 2147483648, %v4783_v62 }
 0x190   : > { %v3491_v49 = vpop.eup %3490  ;;  %v1260_v1 = vmul.f32 %v3489_v56, %v4764_v53  ;;  %3496 = vrcp.f32 %v4788_v61  ;;  %vm1265_vm13 = vweird.f32 %v3489_v56  ;;  %vm4815_vm14 = vmor %vm1226_vm9, %vm1227_vm11  ;;  %v1245_v16 = vand.u32 2147483647, %v4788_v61  ;;  %v1384_v33 = vpop.f32.mrf.mxu0 }
 0x191   : > { %v1223_v41 = vsub.f32 1.0, %v1222_v39  ;;  %v4798_v13 = vadd.f32 1.0, %v3491_v49  ;;  %v3493_v36 = vpop.eup %3492  ;;  %v1233_v39 = vor.u32 1.1754944e-38, %v1232_v15  ;;  %vm4826_vm0 = vmor %vm1264_vm10, %vm1265_vm13  ;;  %v1308_v53 = vand.u32 2147483647, %v4783_v62 }
 0x192   : > { %v1261_v18 = vsub.f32 1.0, %v1260_v1  ;;  %vm1241_vm2 = vweird.f32 %v4788_v61  ;;  %vm4853_vm3 = vcmp.eq.f32.partialorder %v1245_v16, 8.507059e+37  ;;  %v6253_v16 = vunpack.c.h.bf16 %v4769_v50 }
 0x193   : > { %v1224_v28 = vmul.f32 %v3487_v24, %v1223_v41  ;;  %3498 = vrcp.f32 %v4798_v13  ;;  %v3279_v41 = vmul.f32 -1.442695, %v1430_v48  ;;  %v1285_v15 = vand.u32 2147483648, %v4798_v13 }
 0x194   : > { %v1262_v43 = vmul.f32 %v3489_v56, %v1261_v18  ;;  %3500 = vpow2.f32 %v3277_v23  ;;  %v1424_v23 = vpop.f32.mrf.mxu3  ;;  %vm1279_vm1 = vweird.f32 %v4798_v13  ;;  %v1283_v10 = vand.u32 2147483647, %v4798_v13 }
 0x195   : > { %v4811_v49 = vpop.eup %3494  ;;  %v1225_v1 = vadd.f32 %v3487_v24, %v1224_v28  ;;  %3502 = vtanh.f32 %v1211_v37  ;;  %v1286_v9 = vor.u32 1.1754944e-38, %v1285_v15  ;;  %v1410_v15 = vpop.f32.mrf.mxu2  ;;  %v1432_v29 = vadd.f32 %v1424_v23, %v6253_v16 }
 0x196   : > { %v1263_v38 = vadd.f32 %v3489_v56, %v1262_v43  ;;  %v3497_v18 = vpop.eup %3496  ;;  %3504 = vpow2.f32 %v3272_v44  ;;  %v1300_v2 = vmul.f32 %v4811_v49, %v4783_v62  ;;  %v4846_v44 = vld [vmem:[%s5907_s6 + $0x10] sm:$0xff]  ;;  %vm4868_vm7 = vcmp.eq.f32.partialorder %v1283_v10, 8.507059e+37  ;;  %v4883_v10 = vld [vmem:[%s5907_s6 + $0x18] sm:$0xff] }
 0x197   : > { %v1229_v19 = vsel %vm4815_vm14, %v3487_v24, %v1225_v1  ;;  %v1237_v48 = vmul.f32 %v3497_v18, %v4788_v61  ;;  %3506 = vpow2.f32 %v3279_v41  ;;  %v1247_v41 = vand.u32 2147483648, %v4788_v61 }
 0x198   : > { %v1267_v37 = vsel %vm4826_vm0, %v3489_v56, %v1263_v38  ;;  %v1234_v24 = vsel %vm4803_vm12, %v1233_v39, %v1229_v19  ;;  %v1301_v63 = vsub.f32 1.0, %v1300_v2  ;;  %vm1242_vm4 = vweird.f32 %v3497_v18  ;;  %v1398_v2 = vpop.f32.mrf.mxu1 }
 0x199   : > { %v3499_v43 = vpop.eup %3498  ;;  %v1272_v56 = vsel %vm4819_vm15, %v1271_v20, %v1267_v37  ;;  %v1238_v1 = vsub.f32 1.0, %v1237_v48  ;;  %v1331_v37 = vmul.f32 %v3493_v36, %v1234_v24  ;;  %vm1243_vm6 = vmor %vm1241_vm2, %vm1242_vm4  ;;  %v6256_v36 = vunpack.c.l.bf16 %v4773_v17 }
 0x19a   : > { %v1275_v38 = vmul.f32 %v3499_v43, %v4798_v13  ;;  %v3501_v28 = vpop.eup %3500  ;;  %v1329_v19 = vmul.f32 %v4846_v44, %v1272_v56  ;;  %vm1280_vm5 = vweird.f32 %v3499_v43  ;;  %vm1304_vm10 = vweird.f32 %v4783_v62 }
 0x19b   : > { %v3503_v0 = vpop.eup %3502  ;;  %v1239_v39 = vmul.f32 %v3497_v18, %v1238_v1  ;;  %v4860_v48 = vadd.f32 1.0, %v3501_v28  ;;  %v1248_v1 = vor.u32 1.1754944e-38, %v1247_v41  ;;  %v1433_v23 = vadd.f32 %v1384_v33, %v6256_v36  ;;  %vm1281_vm9 = vmor %vm1279_vm1, %vm1280_vm5 }
 0x19c   : > { %v1276_v7 = vsub.f32 1.0, %v1275_v38  ;;  %v3505_v20 = vpop.eup %3504  ;;  %v4891_v33 = vadd.f32 %v1331_v37, %v1329_v19  ;;  %vm4898_vm11 = vcmp.eq.f32.partialorder %v1308_v53, 8.507059e+37  ;;  %vm1305_vm12 = vweird.f32 %v4811_v49 }
 0x19d   : > { %v1240_v21 = vadd.f32 %v3497_v18, %v1239_v39  ;;  %v4864_v57 = vadd.f32 1.0, %v3505_v20  ;;  %v3507_v38 = vpop.eup %3506  ;;  %3508 = vrcp.f32 %v4860_v48  ;;  %v3278_v27 = vmul.f32 -1.442695, %v1433_v23  ;;  %vm4923_vm15 = vmor %vm1304_vm10, %vm1305_vm12 }
 0x19e   : > { %v1277_v60 = vmul.f32 %v3499_v43, %v1276_v7  ;;  %v6257_v7 = vunpack.c.l.bf16 %v4769_v50  ;;  %v4887_v41 = vadd.f32 1.0, %v3507_v38  ;;  %v1302_v50 = vmul.f32 %v4811_v49, %v1301_v63 }
 0x19f   : > { %v1244_v24 = vsel %vm1243_vm6, %v3497_v18, %v1240_v21  ;;  %3510 = vrcp.f32 %v4864_v57  ;;  %v3281_v21 = vmul.f32 -1.442695, %v1432_v29  ;;  %vm1450_vm13 = vweird.f32 %v4860_v48 }
 0x1a0   : > { %v1278_v28 = vadd.f32 %v3499_v43, %v1277_v60  ;;  %v1431_v39 = vadd.f32 %v1410_v15, %v6257_v7  ;;  %v1249_v61 = vsel %vm4853_vm3, %v1248_v1, %v1244_v24  ;;  %v6258_v60 = vunpack.c.h.bf16 %v4773_v17  ;;  %v1426_v15 = vpop.f32.mrf.mxu3 }
 0x1a1   : > { %v1332_v20 = vmul.f32 %v3503_v0, %v1249_v61  ;;  %3512 = vrcp.f32 %v4887_v41  ;;  %v1311_v17 = vor.u32 1.1754944e-38, %v1310_v30  ;;  %v1303_v53 = vadd.f32 %v4811_v49, %v1302_v50 }
 0x1a2   : > { %v1434_v18 = vadd.f32 %v1398_v2, %v6258_v60  ;;  %v1282_v13 = vsel %vm1281_vm9, %v3499_v43, %v1278_v28  ;;  %3514 = vtanh.f32 %v1431_v39  ;;  %v6261_v43 = vunpack.c.h.bf16 %v4809_v45 }
 0x1a3   : > { %v1287_v16 = vsel %vm4868_vm7, %v1286_v9, %v1282_v13  ;;  %v3509_v63 = vpop.eup %3508  ;;  %3516 = vpow2.f32 %v3281_v21  ;;  %v1456_v1 = vand.u32 2147483648, %v4860_v48  ;;  %vm1319_vm14 = vweird.f32 %v4864_v57 }
 0x1a4   : > { %v1330_v19 = vmul.f32 %v4883_v10, %v1287_v16  ;;  %v3280_v0 = vmul.f32 -1.442695, %v1434_v18  ;;  %v1436_v37 = vadd.f32 %v1426_v15, %v6261_v43  ;;  %3518 = vtanh.f32 %v4891_v33 }
 0x1a5   : > { %v4906_v9 = vpop.eup %3510  ;;  %v1446_v30 = vmul.f32 %v3509_v63, %v4860_v48  ;;  %3520 = vpow2.f32 %v3278_v27  ;;  %v1454_v36 = vand.u32 2147483647, %v4860_v48  ;;  %v1323_v39 = vand.u32 2147483647, %v4864_v57 }
 0x1a6   : > { %v4910_v2 = vadd.f32 %v1332_v20, %v1330_v19  ;;  %v1315_v38 = vmul.f32 %v4906_v9, %v4864_v57  ;;  %v3282_v23 = vmul.f32 -1.442695, %v1436_v37  ;;  %vm1451_vm0 = vweird.f32 %v3509_v63  ;;  %v6269_v37 = vld [vmem:[#allocation79_spill] sm:$0xff] }
 0x1a7   : > { %v1447_v56 = vsub.f32 1.0, %v1446_v30  ;;  %v3513_v24 = vpop.eup %3512  ;;  %3522 = vpow2.f32 %v3280_v0  ;;  %v1307_v18 = vsel %vm4923_vm15, %v4811_v49, %v1303_v53  ;;  %v1325_v13 = vand.u32 2147483648, %v4864_v57  ;;  %vm4944_vm2 = vmor %vm1450_vm13, %vm1451_vm0 }
 0x1a8   : > { %v1316_v7 = vsub.f32 1.0, %v1315_v38  ;;  %v3515_v61 = vpop.eup %3514  ;;  %3524 = vtanh.f32 %v4910_v2  ;;  %v1484_v21 = vmul.f32 %v3513_v24, %v4887_v41  ;;  %v1457_v20 = vor.u32 1.1754944e-38, %v1456_v1 }
 0x1a9   : > { %v1448_v60 = vmul.f32 %v3509_v63, %v1447_v56  ;;  %v3517_v62 = vpop.eup %3516  ;;  %3526 = vpow2.f32 %v3282_v23  ;;  %vm1320_vm1 = vweird.f32 %v4906_v9  ;;  %v1494_v49 = vand.u32 2147483648, %v4887_v41 }
 0x1aa   : > { %v1317_v50 = vmul.f32 %v4906_v9, %v1316_v7  ;;  %v3519_v15 = vpop.eup %3518  ;;  %v1485_v16 = vsub.f32 1.0, %v1484_v21  ;;  %v4937_v19 = vadd.f32 1.0, %v3517_v62  ;;  %v1492_v53 = vand.u32 2147483647, %v4887_v41  ;;  %vm4962_vm4 = vmor %vm1319_vm14, %vm1320_vm1  ;;  %v1412_v62 = vpop.f32.mrf.mxu2 }
 0x1ab   : > { %v1449_v27 = vadd.f32 %v3509_v63, %v1448_v60  ;;  %v3521_v0 = vpop.eup %3520  ;;  %v1312_v30 = vsel %vm4898_vm11, %v1311_v17, %v1307_v18  ;;  %vm1489_vm3 = vweird.f32 %v3513_v24  ;;  %vm1488_vm5 = vweird.f32 %v4887_v41 }
 0x1ac   : > { %v1318_v43 = vadd.f32 %v4906_v9, %v1317_v50  ;;  %v1486_v38 = vmul.f32 %v3513_v24, %v1485_v16  ;;  %3528 = vrcp.f32 %v4937_v19  ;;  %vm1455_vm6 = vcmp.eq.f32.partialorder %v1454_v36, 8.507059e+37  ;;  %vm1490_vm7 = vmor %vm1488_vm5, %vm1489_vm3 }
 0x1ad   : > { %v1453_v1 = vsel %vm4944_vm2, %v3509_v63, %v1449_v27  ;;  %v3523_v48 = vpop.eup %3522  ;;  %v4967_v29 = vadd.f32 1.0, %v3521_v0  ;;  %v1337_v17 = vmul.f32 %v3519_v15, %v1312_v30  ;;  %v1326_v60 = vor.u32 1.1754944e-38, %v1325_v13 }
 0x1ae   : > { %v3525_v23 = vpop.eup %3524  ;;  %v1458_v63 = vsel %vm1455_vm6, %v1457_v20, %v1453_v1  ;;  %v1487_v28 = vadd.f32 %v3513_v24, %v1486_v38  ;;  %v4969_v7 = vadd.f32 1.0, %v3523_v48  ;;  %v1322_v57 = vsel %vm4962_vm4, %v4906_v9, %v1318_v43  ;;  %v6270_v48 = vld [vmem:[#allocation80_spill] sm:$0xff] }
 0x1af   : > { %v3527_v21 = vpop.eup %3526  ;;  %v1495_v18 = vor.u32 1.1754944e-38, %v1494_v49  ;;  %3530 = vrcp.f32 %v4967_v29  ;;  %v1365_v41 = vunpack.c.l.bf16 %v4809_v45  ;;  %vm1324_vm9 = vcmp.eq.f32.partialorder %v1323_v39, 8.507059e+37 }
 0x1b0   : > { %v1491_v36 = vsel %vm1490_vm7, %v3513_v24, %v1487_v28  ;;  %vm1493_vm10 = vcmp.eq.f32.partialorder %v1492_v53, 8.507059e+37  ;;  %3532 = vrcp.f32 %v4969_v7  ;;  %v1555_v20 = vmul.f32 %v3515_v61, %v1458_v63 }
 0x1b1   : > { %v1496_v50 = vsel %vm1493_vm10, %v1495_v18, %v1491_v36  ;;  %v1327_v9 = vsel %vm1324_vm9, %v1326_v60, %v1322_v57  ;;  %v1339_v15 = vpack.c.bf16 %v1337_v17, %v1337_v17  ;;  %v4983_v27 = vadd.f32 1.0, %v3527_v21 }
 0x1b2   : > { %v4980_v13 = vpop.eup %3528  ;;  %v1553_v16 = vmul.f32 %v1496_v50, %v4779_v35  ;;  %v1338_v0 = vmul.f32 %v3525_v23, %v1327_v9  ;;  %v1435_v45 = vadd.f32 %v1412_v62, %v1365_v41  ;;  %v4985_v43 = vstv %s1825_s10 }
 0x1b3   : > { %v1524_v24 = vmul.f32 %v4980_v13, %v4937_v19  ;;  %3534 = vrcp.f32 %v4983_v27  ;;  %v4993_v53 = vsel %vm4669_vm8, %v1339_v15, %v6269_v37  ;;  %vm1827_vm11 = vcmp.eq.s32.totalorder %v4985_v43, 1 }
 0x1b4   : > { %v1557_v49 = vadd.f32 %v1555_v20, %v1553_v16  ;;  %v1340_v61 = vpack.c.bf16 %v1338_v0, %v1338_v0  ;;  %3536 = vtanh.f32 %v1435_v45  ;;  %v1567_v63 = vunpack.c.l.b16 %v4993_v53 }
 0x1b5   : > { %v3531_v39 = vpop.eup %3530  ;;  %v1525_v17 = vsub.f32 1.0, %v1524_v24  ;;  %v1469_v21 = vand.u32 2147483647, %v4967_v29  ;;  %v1471_v60 = vand.u32 2147483648, %v4967_v29  ;;  %v1509_v36 = vand.u32 2147483648, %v4969_v7 }
 0x1b6   : > { %v3533_v30 = vpop.eup %3532  ;;  %v1461_v38 = vmul.f32 %v3531_v39, %v4967_v29  ;;  %v5001_v56 = vsel %vm4669_vm8, %v1340_v61, %v6270_v48  ;;  %v5010_v18 = vsel %vm1827_vm11, %v1557_v49, %v4779_v35  ;;  %vm1466_vm12 = vweird.f32 %v3531_v39 }
 0x1b7   : > { %v1499_v1 = vmul.f32 %v3533_v30, %v4969_v7  ;;  %v1568_v28 = vunpack.c.l.b16 %v5001_v56  ;;  %vm1504_vm13 = vweird.f32 %v3533_v30  ;;  %v1507_v9 = vand.u32 2147483647, %v4969_v7 }
 0x1b8   : > { %v1462_v23 = vsub.f32 1.0, %v1461_v38  ;;  %v1526_v16 = vmul.f32 %v4980_v13, %v1525_v17  ;;  %v1347_v35 = vsel %vm4669_vm8, %v4645_v14, %v4627_v40  ;;  %vm1465_vm14 = vweird.f32 %v4967_v29 }
 0x1b9   : > { %v1500_v57 = vsub.f32 1.0, %v1499_v1  ;;  %v5012_v41 = vpop.eup %3534  ;;  %v1569_v50 = vpack.c.b16 %v1568_v28, %v1567_v63  ;;  %vm1503_vm15 = vweird.f32 %v4969_v7  ;;  %vm1467_vm0 = vmor %vm1465_vm14, %vm1466_vm12  ;;  %v1472_v24 = vor.u32 1.1754944e-38, %v1471_v60  ;;  %v6271_v7 = vld [vmem:[#allocation5_spill] sm:$0xff]  ;;  %v6272_v28 = vld [vmem:[#allocation6_spill] sm:$0xff] }
 0x1ba   : > { %v1463_v62 = vmul.f32 %v3531_v39, %v1462_v23  ;;  %v1539_v15 = vmul.f32 %v5012_v41, %v4983_v27  ;;  %v3537_v45 = vpop.eup %3536  ;;  %vm1529_vm1 = vweird.f32 %v4980_v13  ;;  %vm1505_vm2 = vmor %vm1503_vm15, %vm1504_vm13  ;;  %v1510_v38 = vor.u32 1.1754944e-38, %v1509_v36  ;;  %v6276_v60 = vld [vmem:[#allocation11_spill] sm:$0xff]  ;;  %v6277_v36 = vld [vmem:[#allocation8_spill] sm:$0xff] }
 0x1bb   : > { %v1501_v20 = vmul.f32 %v3533_v30, %v1500_v57  ;;  %1579 = vmatmul.bf16.vlgmr.msra.gmra.mxu0 %v1569_v50  ;;  %1593 = vmatmul.bf16.vlgmr.msra.gmra.mxu1 %v1569_v50  ;;  %vm1470_vm3 = vcmp.eq.f32.partialorder %v1469_v21, 8.507059e+37  ;;  %3538 = vtanh.f32 %v1557_v49  ;;  %vm1508_vm4 = vcmp.eq.f32.partialorder %v1507_v9, 8.507059e+37  ;;  %v6273_v49 = vld [vmem:[#allocation7_spill] sm:$0xff]  ;;  %v6286_v57 = vld [vmem:[#allocation26_spill] sm:$0xff] }
 0x1bc   : > { %v1464_v0 = vadd.f32 %v3531_v39, %v1463_v62  ;;  %v1540_v37 = vsub.f32 1.0, %v1539_v15  ;;  %1607 = vmatmul.bf16.vlgmr.msra.gmra.mxu2 %v1569_v50  ;;  %1621 = vmatmul.bf16.vlgmr.msra.gmra.mxu3 %v1569_v50  ;;  %v1527_v23 = vadd.f32 %v4980_v13, %v1526_v16  ;;  %vm1528_vm5 = vweird.f32 %v4937_v19  ;;  %v6278_v16 = vld [vmem:[#allocation9_spill] sm:$0xff] }
 0x1bd   : > { %v1502_v61 = vadd.f32 %v3533_v30, %v1501_v20  ;;  %1857 = vmatpush.bf16.msra.mxu0 %v3837_v4  ;;  %1871 = vmatpush.bf16.msra.mxu1 %v3848_v8  ;;  %vm5040_vm6 = vmor %vm1528_vm5, %vm1529_vm1  ;;  %vm1544_vm7 = vweird.f32 %v5012_v41  ;;  %v1549_v9 = vand.u32 2147483648, %v4983_v27  ;;  %vm1543_vm9 = vweird.f32 %v4983_v27 }
 0x1be   : > { %v1468_v40 = vsel %vm1467_vm0, %v3531_v39, %v1464_v0  ;;  %1885 = vmatpush.bf16.msra.mxu2 %v3888_v22  ;;  %1899 = vmatpush.bf16.msra.mxu3 %v6271_v7  ;;  %v1541_v17 = vmul.f32 %v5012_v41, %v1540_v37  ;;  %v1534_v39 = vand.u32 2147483648, %v4937_v19  ;;  %v1531_v62 = vsel %vm5040_vm6, %v4980_v13, %v1527_v23  ;;  %v6279_v0 = vld [vmem:[#allocation10_spill] sm:$0xff]  ;;  %vm1545_vm12 = vmor %vm1543_vm9, %vm1544_vm7  ;;  %v6282_v23 = vld [vmem:[#allocation29_spill] sm:$0xff] }
 0x1bf   : > { %v1473_v14 = vsel %vm1470_vm3, %v1472_v24, %v1468_v40  ;;  %v1506_v29 = vsel %vm1505_vm2, %v3533_v30, %v1502_v61  ;;  %v1532_v30 = vand.u32 2147483647, %v4937_v19  ;;  %v1547_v13 = vand.u32 2147483647, %v4983_v27 }
 0x1c0   : > { %v1511_v1 = vsel %vm1508_vm4, %v1510_v38, %v1506_v29  ;;  %v1556_v48 = vmul.f32 %v3537_v45, %v1473_v14  ;;  %v1542_v50 = vadd.f32 %v5012_v41, %v1541_v17  ;;  %v1535_v20 = vor.u32 1.1754944e-38, %v1534_v39  ;;  %v6280_v45 = vld [vmem:[#allocation12_spill] sm:$0xff]  ;;  %v6283_v39 = vld [vmem:[#allocation25_spill] sm:$0xff] }
 0x1c1   : > { %v1554_v63 = vmul.f32 %v1511_v1, %v1347_v35  ;;  %1858 = vmatpush.bf16.msra.mxu0 %v6272_v28  ;;  %1872 = vmatpush.bf16.msra.mxu1 %v6273_v49  ;;  %v3539_v19 = vpop.eup %3538  ;;  %vm1533_vm10 = vcmp.eq.f32.partialorder %v1532_v30, 8.507059e+37  ;;  %vm1548_vm13 = vcmp.eq.f32.partialorder %v1547_v13, 8.507059e+37  ;;  %v6281_v17 = vld [vmem:[#allocation24_spill] sm:$0xff] }
 0x1c2   : > { %1886 = vmatpush.bf16.msra.mxu2 %v6276_v60  ;;  %1900 = vmatpush.bf16.msra.mxu3 %v6277_v36  ;;  %v1536_v24 = vsel %vm1533_vm10, %v1535_v20, %v1531_v62  ;;  %v1546_v61 = vsel %vm1545_vm12, %v5012_v41, %v1542_v50  ;;  %v6288_v62 = vld [vmem:[#allocation17_spill] sm:$0xff]  ;;  %v6291_v20 = vld [vmem:[#allocation28_spill] sm:$0xff] }
 0x1c3   : > { %v1558_v21 = vadd.f32 %v1556_v48, %v1554_v63  ;;  %v1561_v37 = vmul.f32 %v3539_v19, %v1536_v24  ;;  %v6284_v63 = vld [vmem:[#allocation93_spill] sm:$0xff]  ;;  %v6290_v19 = vld [vmem:[#allocation30_spill] sm:$0xff]  ;;  %v6292_v24 = vld [vmem:[#allocation31_spill] sm:$0xff] }
 0x1c5   : > { %3540 = vtanh.f32 %v1558_v21  ;;  %v5054_v15 = vsel %vm1827_vm11, %v1558_v21, %v1347_v35  ;;  %1859 = vmatpush.bf16.msra.mxu0 %v6278_v16  ;;  %1873 = vmatpush.bf16.msra.mxu1 %v6279_v0  ;;  %v1550_v35 = vor.u32 1.1754944e-38, %v1549_v9  ;;  %v1563_v14 = vpack.c.bf16 %v1561_v37, %v1561_v37  ;;  %v6287_v21 = vld [vmem:[#allocation27_spill] sm:$0xff]  ;;  %v6294_v37 = vld [vmem:[#allocation34_spill] sm:$0xff] }
 0x1c6   : > { %1887 = vmatpush.bf16.msra.mxu2 %v6280_v45  ;;  %1901 = vmatpush.bf16.msra.mxu3 %v3925_v34 }
 0x1c7   : > { %v1551_v27 = vsel %vm1548_vm13, %v1550_v35, %v1546_v61  ;;  %v1629_v41 = vunpack.c.l.b16 %v1563_v14  ;;  %v5093_v50 = vsel %vm1827_vm11, %v1563_v14, %v6288_v62  ;;  %v6293_v61 = vld [vmem:[#allocation32_spill] sm:$0xff]  ;;  %v6295_v35 = vld [vmem:[#allocation33_spill] sm:$0xff]  ;;  %v6298_v14 = vld [vmem:[#allocation38_spill] sm:$0xff] }
 0x1c8   : > { %6289 = vst [vmem:[#allocation80_spill] sm:$0xff] %v5093_v50  ;;  %v1853_v13 = vunpack.c.l.b16 %v5093_v50  ;;  %v6304_v62 = vld [vmem:[#allocation43_spill] sm:$0xff] }
 0x1c9   : > { %1860 = vmatpush.bf16.msra.mxu0 %v3949_v42  ;;  %1874 = vmatpush.bf16.msra.mxu1 %v3961_v46 }
 0x1ca   : > { %1888 = vmatpush.bf16.msra.mxu2 %v3987_v55  ;;  %1902 = vmatpush.bf16.msra.mxu3 %v3963_v47 }
 0x1cb   : > { %v3541_v38 = vpop.eup %3540 }
 0x1cc   : > { %v1562_v40 = vmul.f32 %v3541_v38, %v1551_v27  ;;  %v6296_v27 = vld [vmem:[#allocation35_spill] sm:$0xff] }
 0x1cd   : > { %1861 = vmatpush.bf16.msra.mxu0 %v3985_v54  ;;  %1875 = vmatpush.bf16.msra.mxu1 %v3997_v58 }
 0x1ce   : > { %v1564_v29 = vpack.c.bf16 %v1562_v40, %v1562_v40  ;;  %1889 = vmatpush.bf16.msra.mxu2 %v4026_v5  ;;  %1903 = vmatpush.bf16.msra.mxu3 %v3999_v59  ;;  %v6297_v40 = vld [vmem:[#allocation36_spill] sm:$0xff] }
 0x1d0   : > { %v1630_v1 = vunpack.c.l.b16 %v1564_v29  ;;  %v5086_v30 = vsel %vm1827_vm11, %v1564_v29, %v6284_v63  ;;  %v6299_v29 = vld [vmem:[#allocation37_spill] sm:$0xff] }
 0x1d1   : > { %1862 = vmatpush.bf16.msra.mxu0 %v4024_v3  ;;  %1876 = vmatpush.bf16.msra.mxu1 %v4039_v11  ;;  %6285 = vst [vmem:[#allocation79_spill] sm:$0xff] %v5086_v30  ;;  %v1854_v9 = vunpack.c.l.b16 %v5086_v30  ;;  %v6303_v63 = vld [vmem:[#allocation41_spill] sm:$0xff] }
 0x1d2   : > { %v1631_v48 = vpack.c.b16 %v1630_v1, %v1629_v41  ;;  %1890 = vmatpush.bf16.msra.mxu2 %v4069_v26  ;;  %1904 = vmatpush.bf16.msra.mxu3 %v4041_v12  ;;  %v6300_v41 = vld [vmem:[#allocation39_spill] sm:$0xff]  ;;  %v6301_v1 = vld [vmem:[#allocation40_spill] sm:$0xff] }
 0x1d3   : > { %v1855_v38 = vpack.c.b16 %v1854_v9, %v1853_v13  ;;  %v6305_v9 = vld [vmem:[#allocation44_spill] sm:$0xff]  ;;  %v6306_v13 = vld [vmem:[#allocation45_spill] sm:$0xff] }
 0x1d4   : > { %1641 = vmatmul.bf16.vlgmr.msrb.gmra.mxu0 %v1631_v48  ;;  %1655 = vmatmul.bf16.vlgmr.msrb.gmra.mxu1 %v1631_v48 }
 0x1d5   : > { %1669 = vmatmul.bf16.vlgmr.msrb.gmra.mxu2 %v1631_v48  ;;  %1683 = vmatmul.bf16.vlgmr.msrb.gmra.mxu3 %v1631_v48  ;;  %v6302_v48 = vld [vmem:[#allocation42_spill] sm:$0xff] }
 0x1d6   : > { %1863 = vmatpush.bf16.msra.mxu0 %v4067_v25  ;;  %1877 = vmatpush.bf16.msra.mxu1 %v4082_v31 }
 0x1d7   : > { %1891 = vmatpush.bf16.msra.mxu2 %v4107_v52  ;;  %1905 = vmatpush.bf16.msra.mxu3 %v4084_v32 }
 0x1da   : > { %1864 = vmatpush.bf16.msra.mxu0 %v4105_v51  ;;  %1878 = vmatpush.bf16.msra.mxu1 %v6281_v17  ;;  %v6354_v51 = vld [vmem:[#allocation96_spill] sm:$0xff] }
 0x1db   : > { %1892 = vmatpush.bf16.msra.mxu2 %v6282_v23  ;;  %1906 = vmatpush.bf16.msra.mxu3 %v6283_v39 }
 0x1de   : > { %2055 = vmatpush.bf16.msrb.mxu0 %v6286_v57  ;;  %2069 = vmatpush.bf16.msrb.mxu1 %v6287_v21 }
 0x1df   : > { %2083 = vmatpush.bf16.msrb.mxu2 %v6290_v19  ;;  %2097 = vmatpush.bf16.msrb.mxu3 %v6291_v20  ;;  %v6352_v20 = vld [vmem:[#allocation94_spill] sm:$0xff]  ;;  %v6353_v19 = vld [vmem:[#allocation95_spill] sm:$0xff] }
 0x1e2   : > { %2056 = vmatpush.bf16.msrb.mxu0 %v6292_v24  ;;  %2070 = vmatpush.bf16.msrb.mxu1 %v6293_v61 }
 0x1e3   : > { %2084 = vmatpush.bf16.msrb.mxu2 %v6294_v37  ;;  %2098 = vmatpush.bf16.msrb.mxu3 %v6295_v35 }
 0x1e4   : > { %1865 = vmatmul.bf16.vlgmr.msra.gmra.mxu0 %v1855_v38  ;;  %1879 = vmatmul.bf16.vlgmr.msra.gmra.mxu1 %v1855_v38 }
 0x1e5   : > { %1893 = vmatmul.bf16.vlgmr.msra.gmra.mxu2 %v1855_v38  ;;  %1907 = vmatmul.bf16.vlgmr.msra.gmra.mxu3 %v1855_v38  ;;  %v6307_v38 = vld [vmem:[#allocation46_spill] sm:$0xff] }
 0x1e6   : > { %2057 = vmatpush.bf16.msrb.mxu0 %v6296_v27  ;;  %2071 = vmatpush.bf16.msrb.mxu1 %v6297_v40  ;;  %v6308_v40 = vld [vmem:[#allocation47_spill] sm:$0xff] }
 0x1e7   : > { %2085 = vmatpush.bf16.msrb.mxu2 %v6298_v14  ;;  %2099 = vmatpush.bf16.msrb.mxu3 %v6299_v29  ;;  %v6309_v14 = vld [vmem:[#allocation48_spill] sm:$0xff]  ;;  %v6310_v29 = vld [vmem:[#allocation49_spill] sm:$0xff] }
 0x1ea   : > { %2058 = vmatpush.bf16.msrb.mxu0 %v6300_v41  ;;  %2072 = vmatpush.bf16.msrb.mxu1 %v6301_v1  ;;  %v6311_v41 = vld [vmem:[#allocation50_spill] sm:$0xff]  ;;  %v6312_v1 = vld [vmem:[#allocation51_spill] sm:$0xff] }
 0x1eb   : > { %2086 = vmatpush.bf16.msrb.mxu2 %v6302_v48  ;;  %2100 = vmatpush.bf16.msrb.mxu3 %v6303_v63  ;;  %v6313_v48 = vld [vmem:[#allocation52_spill] sm:$0xff]  ;;  %v6314_v63 = vld [vmem:[#allocation53_spill] sm:$0xff] }
 0x1ee   : > { %2059 = vmatpush.bf16.msrb.mxu0 %v6304_v62  ;;  %2073 = vmatpush.bf16.msrb.mxu1 %v6305_v9  ;;  %v6315_v62 = vld [vmem:[#allocation54_spill] sm:$0xff]  ;;  %v6316_v9 = vld [vmem:[#allocation55_spill] sm:$0xff] }
 0x1ef   : > { %2087 = vmatpush.bf16.msrb.mxu2 %v6306_v13  ;;  %2101 = vmatpush.bf16.msrb.mxu3 %v6307_v38  ;;  %v6317_v13 = vld [vmem:[#allocation56_spill] sm:$0xff]  ;;  %v6318_v38 = vld [vmem:[#allocation57_spill] sm:$0xff] }
 0x1f2   : > { %2060 = vmatpush.bf16.msrb.mxu0 %v6308_v40  ;;  %2074 = vmatpush.bf16.msrb.mxu1 %v6309_v14  ;;  %v6319_v40 = vld [vmem:[#allocation58_spill] sm:$0xff]  ;;  %v6320_v14 = vld [vmem:[#allocation59_spill] sm:$0xff] }
 0x1f3   : > { %2088 = vmatpush.bf16.msrb.mxu2 %v6310_v29  ;;  %2102 = vmatpush.bf16.msrb.mxu3 %v6311_v41  ;;  %v6321_v29 = vld [vmem:[#allocation60_spill] sm:$0xff]  ;;  %v6322_v41 = vld [vmem:[#allocation61_spill] sm:$0xff] }
 0x1f6   : > { %2061 = vmatpush.bf16.msrb.mxu0 %v6312_v1  ;;  %2075 = vmatpush.bf16.msrb.mxu1 %v6313_v48  ;;  %v6323_v1 = vld [vmem:[#allocation62_spill] sm:$0xff]  ;;  %v6324_v48 = vld [vmem:[#allocation63_spill] sm:$0xff] }
 0x1f7   : > { %2089 = vmatpush.bf16.msrb.mxu2 %v6314_v63  ;;  %2103 = vmatpush.bf16.msrb.mxu3 %v6315_v62  ;;  %v6325_v63 = vld [vmem:[#allocation64_spill] sm:$0xff]  ;;  %v6326_v62 = vld [vmem:[#allocation65_spill] sm:$0xff] }
 0x1fa   : > { %2062 = vmatpush.bf16.msrb.mxu0 %v6316_v9  ;;  %2076 = vmatpush.bf16.msrb.mxu1 %v6317_v13  ;;  %v6327_v9 = vld [vmem:[#allocation66_spill] sm:$0xff]  ;;  %v6328_v13 = vld [vmem:[#allocation67_spill] sm:$0xff] }
 0x1fb   : > { %2090 = vmatpush.bf16.msrb.mxu2 %v6318_v38  ;;  %2104 = vmatpush.bf16.msrb.mxu3 %v6319_v40  ;;  %v6329_v38 = vld [vmem:[#allocation68_spill] sm:$0xff]  ;;  %v6330_v40 = vld [vmem:[#allocation69_spill] sm:$0xff] }
 0x1fe   : > { %2117 = vmatpush.bf16.msra.mxu0 %v6320_v14  ;;  %2131 = vmatpush.bf16.msra.mxu1 %v6321_v29  ;;  %v6331_v14 = vld [vmem:[#allocation70_spill] sm:$0xff]  ;;  %v6332_v29 = vld [vmem:[#allocation71_spill] sm:$0xff] }
 0x1ff   : > { %2145 = vmatpush.bf16.msra.mxu2 %v6322_v41  ;;  %2159 = vmatpush.bf16.msra.mxu3 %v6323_v1  ;;  %v6333_v41 = vld [vmem:[#allocation72_spill] sm:$0xff]  ;;  %v6334_v1 = vld [vmem:[#allocation73_spill] sm:$0xff] }
 0x202   : > { %2118 = vmatpush.bf16.msra.mxu0 %v6324_v48  ;;  %2132 = vmatpush.bf16.msra.mxu1 %v6325_v63  ;;  %v6335_v48 = vld [vmem:[#allocation74_spill] sm:$0xff]  ;;  %v6336_v63 = vld [vmem:[#allocation75_spill] sm:$0xff] }
 0x203   : > { %2146 = vmatpush.bf16.msra.mxu2 %v6326_v62  ;;  %2160 = vmatpush.bf16.msra.mxu3 %v6327_v9  ;;  %v6337_v62 = vld [vmem:[#allocation76_spill] sm:$0xff]  ;;  %v6338_v9 = vld [vmem:[#allocation77_spill] sm:$0xff] }
 0x206   : > { %2119 = vmatpush.bf16.msra.mxu0 %v6328_v13  ;;  %2133 = vmatpush.bf16.msra.mxu1 %v6329_v38  ;;  %v6339_v13 = vld [vmem:[#allocation78_spill] sm:$0xff]  ;;  %v6340_v38 = vld [vmem:[#allocation81_spill] sm:$0xff] }
 0x207   : > { %2147 = vmatpush.bf16.msra.mxu2 %v6330_v40  ;;  %2161 = vmatpush.bf16.msra.mxu3 %v6331_v14  ;;  %v6341_v40 = vld [vmem:[#allocation82_spill] sm:$0xff]  ;;  %v6342_v14 = vld [vmem:[#allocation83_spill] sm:$0xff] }
 0x20a   : > { %2120 = vmatpush.bf16.msra.mxu0 %v6332_v29  ;;  %2134 = vmatpush.bf16.msra.mxu1 %v6333_v41  ;;  %v6343_v29 = vld [vmem:[#allocation84_spill] sm:$0xff]  ;;  %v6344_v41 = vld [vmem:[#allocation85_spill] sm:$0xff] }
 0x20b   : > { %2148 = vmatpush.bf16.msra.mxu2 %v6334_v1  ;;  %2162 = vmatpush.bf16.msra.mxu3 %v6335_v48  ;;  %v6345_v1 = vld [vmem:[#allocation86_spill] sm:$0xff]  ;;  %v6346_v48 = vld [vmem:[#allocation87_spill] sm:$0xff] }
 0x20e   : > { %2121 = vmatpush.bf16.msra.mxu0 %v6336_v63  ;;  %2135 = vmatpush.bf16.msra.mxu1 %v6337_v62  ;;  %v6347_v63 = vld [vmem:[#allocation88_spill] sm:$0xff]  ;;  %v6348_v62 = vld [vmem:[#allocation89_spill] sm:$0xff] }
 0x20f   : > { %2149 = vmatpush.bf16.msra.mxu2 %v6338_v9  ;;  %2163 = vmatpush.bf16.msra.mxu3 %v6339_v13  ;;  %v6349_v9 = vld [vmem:[#allocation90_spill] sm:$0xff]  ;;  %v6350_v13 = vld [vmem:[#allocation91_spill] sm:$0xff] }
 0x212   : > { %2122 = vmatpush.bf16.msra.mxu0 %v6340_v38  ;;  %2136 = vmatpush.bf16.msra.mxu1 %v6341_v40  ;;  %v6351_v38 = vld [vmem:[#allocation92_spill] sm:$0xff] }
 0x213   : > { %2150 = vmatpush.bf16.msra.mxu2 %v6342_v14  ;;  %2164 = vmatpush.bf16.msra.mxu3 %v6343_v29 }
 0x216   : > { %2123 = vmatpush.bf16.msra.mxu0 %v6344_v41  ;;  %2137 = vmatpush.bf16.msra.mxu1 %v6345_v1 }
 0x217   : > { %2151 = vmatpush.bf16.msra.mxu2 %v6346_v48  ;;  %2165 = vmatpush.bf16.msra.mxu3 %v6347_v63 }
 0x21a   : > { %2124 = vmatpush.bf16.msra.mxu0 %v6348_v62  ;;  %2138 = vmatpush.bf16.msra.mxu1 %v6349_v9 }
 0x21b   : > { %2152 = vmatpush.bf16.msra.mxu2 %v6350_v13  ;;  %2166 = vmatpush.bf16.msra.mxu3 %v6351_v38 }
 0x238   : > { %v1580_v40 = vpop.f32.mrf.mxu0  ;;  %v1594_v14 = vpop.f32.mrf.mxu1 }
 0x23f   : > { %v1622_v27 = vpop.f32.mrf.mxu3  ;;  %v1608_v29 = vpop.f32.mrf.mxu2 }
 0x240   : > { %v1582_v35 = vpop.f32.mrf.mxu0  ;;  %v1596_v41 = vpop.f32.mrf.mxu1 }
 0x247   : > { %v1624_v37 = vpop.f32.mrf.mxu3  ;;  %v1610_v1 = vpop.f32.mrf.mxu2 }
 0x251   : > { %v1642_v61 = vpop.f32.mrf.mxu0  ;;  %v1656_v48 = vpop.f32.mrf.mxu1 }
 0x252   : > { %v1643_v24 = vadd.f32 %v1642_v61, %v1580_v40  ;;  %v1657_v63 = vadd.f32 %v1656_v48, %v1594_v14 }
 0x254   : > { %v1689_v62 = vadd.f32 %v1643_v24, %v6352_v20  ;;  %v1690_v9 = vadd.f32 %v1657_v63, %v6353_v19 }
 0x256   : > { %v3283_v50 = vmul.f32 -1.442695, %v1689_v62  ;;  %v3285_v13 = vmul.f32 -1.442695, %v1690_v9  ;;  %v3289_v9 = vld [vmem:[%s3801_s11 + $0x40] sm:$0xff] }
 0x258   : > { %3542 = vpow2.f32 %v3283_v50  ;;  %v1684_v38 = vpop.f32.mrf.mxu3  ;;  %v1670_v39 = vpop.f32.mrf.mxu2 }
 0x259   : > { %3544 = vpow2.f32 %v3285_v13  ;;  %v1685_v21 = vadd.f32 %v1684_v38, %v1622_v27  ;;  %v1644_v57 = vpop.f32.mrf.mxu0  ;;  %v1658_v30 = vpop.f32.mrf.mxu1  ;;  %v1671_v27 = vadd.f32 %v1670_v39, %v1608_v29  ;;  %v5182_v39 = vsel %vm4669_vm8, %v4891_v33, %v4846_v44 }
 0x25a   : > { %v1645_v23 = vadd.f32 %v1644_v57, %v1582_v35  ;;  %v1659_v17 = vadd.f32 %v1658_v30, %v1596_v41  ;;  %v6355_v30 = vld [vmem:[#allocation97_spill] sm:$0xff]  ;;  %v5176_v41 = vld [vmem:[%s3801_s11 + $0x50] sm:$0xff]  ;;  %v5188_v29 = vsel %vm4669_vm8, %v4910_v2, %v4883_v10 }
 0x25b   : > { %v1692_v32 = vadd.f32 %v1685_v21, %v6354_v51  ;;  %v1691_v21 = vadd.f32 %v1671_v27, %v6355_v30 }
 0x25c   : > { %v1693_v61 = vadd.f32 %v1645_v23, %v6352_v20  ;;  %v1694_v24 = vadd.f32 %v1659_v17, %v6353_v19  ;;  %v1843_v23 = vunpack.c.l.bf16 %v3289_v9 }
 0x25d   : > { %v3287_v40 = vmul.f32 -1.442695, %v1692_v32  ;;  %v5172_v32 = vld [vmem:[%s3801_s11 + $0x48] sm:$0xff] }
 0x25e   : > { %v3543_v14 = vpop.eup %3542  ;;  %v3284_v48 = vmul.f32 -1.442695, %v1693_v61  ;;  %v3286_v62 = vmul.f32 -1.442695, %v1694_v24  ;;  %v1844_v24 = vunpack.c.h.bf16 %v3289_v9 }
 0x25f   : > { %v3545_v50 = vpop.eup %3544  ;;  %v5164_v63 = vadd.f32 1.0, %v3543_v14  ;;  %3546 = vpow2.f32 %v3287_v40 }
 0x260   : > { %v5167_v57 = vadd.f32 1.0, %v3545_v50  ;;  %3548 = vpow2.f32 %v3284_v48  ;;  %v1686_v17 = vpop.f32.mrf.mxu3  ;;  %v1672_v13 = vpop.f32.mrf.mxu2 }
 0x261   : > { %3550 = vrcp.f32 %v5164_v63  ;;  %v1866_v35 = vpop.f32.mrf.mxu0  ;;  %v1687_v61 = vadd.f32 %v1686_v17, %v1624_v37  ;;  %v1880_v44 = vpop.f32.mrf.mxu1  ;;  %vm1710_vm8 = vweird.f32 %v5164_v63  ;;  %v1673_v2 = vadd.f32 %v1672_v13, %v1610_v1 }
 0x262   : > { %3552 = vrcp.f32 %v5167_v57  ;;  %v1913_v27 = vadd.f32 %v1866_v35, %v1843_v23  ;;  %v1714_v17 = vand.u32 2147483647, %v5164_v63  ;;  %vm1748_vm14 = vweird.f32 %v5167_v57 }
 0x263   : > { %3554 = vpow2.f32 %v3286_v62  ;;  %v1754_v62 = vand.u32 2147483648, %v5167_v57  ;;  %v1752_v14 = vand.u32 2147483647, %v5167_v57  ;;  %v1695_v19 = vadd.f32 %v1673_v2, %v6355_v30 }
 0x264   : > { %3556 = vtanh.f32 %v1691_v21  ;;  %v1696_v21 = vadd.f32 %v1687_v61, %v6354_v51  ;;  %v3293_v13 = vmul.f32 -1.442695, %v1913_v27  ;;  %vm5212_vm0 = vcmp.eq.f32.partialorder %v1714_v17, 8.507059e+37  ;;  %v5218_v61 = vld [vmem:[%s3801_s11 + $0x58] sm:$0xff] }
 0x265   : > { %v3547_v38 = vpop.eup %3546  ;;  %v1755_v27 = vor.u32 1.1754944e-38, %v1754_v62  ;;  %vm5228_vm3 = vcmp.eq.f32.partialorder %v1752_v14, 8.507059e+37 }
 0x266   : > { %v3549_v48 = vpop.eup %3548  ;;  %v5192_v50 = vadd.f32 1.0, %v3547_v38  ;;  %v1716_v38 = vand.u32 2147483648, %v5164_v63  ;;  %v3288_v51 = vmul.f32 -1.442695, %v1696_v21 }
 0x267   : > { %v3551_v6 = vpop.eup %3550  ;;  %v5197_v10 = vadd.f32 1.0, %v3549_v48  ;;  %v1914_v48 = vadd.f32 %v1880_v44, %v1844_v24 }
 0x268   : > { %v3553_v37 = vpop.eup %3552  ;;  %v1706_v9 = vmul.f32 %v3551_v6, %v5164_v63  ;;  %3558 = vrcp.f32 %v5192_v50  ;;  %vm1711_vm15 = vweird.f32 %v3551_v6  ;;  %v1794_v2 = vand.u32 2147483648, %v5192_v50  ;;  %v1894_v30 = vpop.f32.mrf.mxu2 }
 0x269   : > { %v3555_v23 = vpop.eup %3554  ;;  %v1744_v35 = vmul.f32 %v3553_v37, %v5167_v57  ;;  %3560 = vrcp.f32 %v5197_v10  ;;  %vm1749_vm1 = vweird.f32 %v3553_v37  ;;  %vm5224_vm2 = vmor %vm1710_vm8, %vm1711_vm15  ;;  %v1729_v14 = vand.u32 2147483647, %v5197_v10 }
 0x26a   : > { %v1707_v33 = vsub.f32 1.0, %v1706_v9  ;;  %v5207_v1 = vadd.f32 1.0, %v3555_v23  ;;  %v3557_v24 = vpop.eup %3556  ;;  %v1717_v9 = vor.u32 1.1754944e-38, %v1716_v38  ;;  %vm5235_vm4 = vmor %vm1748_vm14, %vm1749_vm1  ;;  %v1792_v57 = vand.u32 2147483647, %v5192_v50 }
 0x26b   : > { %v1745_v40 = vsub.f32 1.0, %v1744_v35  ;;  %vm1725_vm6 = vweird.f32 %v5197_v10  ;;  %vm5257_vm7 = vcmp.eq.f32.partialorder %v1729_v14, 8.507059e+37  ;;  %v1731_v31 = vand.u32 2147483648, %v5197_v10 }
 0x26c   : > { %v1708_v20 = vmul.f32 %v3551_v6, %v1707_v33  ;;  %3562 = vrcp.f32 %v5207_v1  ;;  %v3295_v33 = vmul.f32 -1.442695, %v1914_v48  ;;  %v1769_v38 = vand.u32 2147483648, %v5207_v1 }
 0x26d   : > { %v1746_v44 = vmul.f32 %v3553_v37, %v1745_v40  ;;  %3564 = vpow2.f32 %v3293_v13  ;;  %v1908_v13 = vpop.f32.mrf.mxu3  ;;  %vm1763_vm5 = vweird.f32 %v5207_v1  ;;  %v1767_v25 = vand.u32 2147483647, %v5207_v1 }
 0x26e   : > { %v5220_v23 = vpop.eup %3558  ;;  %v1709_v35 = vadd.f32 %v3551_v6, %v1708_v20  ;;  %3566 = vtanh.f32 %v1695_v19  ;;  %v1770_v20 = vor.u32 1.1754944e-38, %v1769_v38  ;;  %v6366_v14 = vunpack.c.h.bf16 %v5172_v32 }
 0x26f   : > { %v1747_v17 = vadd.f32 %v3553_v37, %v1746_v44  ;;  %v3561_v62 = vpop.eup %3560  ;;  %3568 = vpow2.f32 %v3288_v51  ;;  %v1784_v21 = vmul.f32 %v5220_v23, %v5192_v50  ;;  %vm1788_vm13 = vweird.f32 %v5192_v50 }
 0x270   : > { %v1713_v63 = vsel %vm5224_vm2, %v3551_v6, %v1709_v35  ;;  %v1721_v48 = vmul.f32 %v3561_v62, %v5197_v10  ;;  %3570 = vpow2.f32 %v3295_v33  ;;  %vm1726_vm9 = vweird.f32 %v3561_v62 }
 0x271   : > { %v1751_v19 = vsel %vm5235_vm4, %v3553_v37, %v1747_v17  ;;  %v1718_v51 = vsel %vm5212_vm0, %v1717_v9, %v1713_v63  ;;  %v1785_v12 = vsub.f32 1.0, %v1784_v21  ;;  %v1916_v26 = vadd.f32 %v1908_v13, %v6366_v14  ;;  %v1882_v21 = vpop.f32.mrf.mxu1  ;;  %vm1727_vm12 = vmor %vm1725_vm6, %vm1726_vm9 }
 0x272   : > { %v3563_v44 = vpop.eup %3562  ;;  %v1756_v6 = vsel %vm5228_vm3, %v1755_v27, %v1751_v19  ;;  %v1722_v37 = vsub.f32 1.0, %v1721_v48  ;;  %v1868_v27 = vpop.f32.mrf.mxu0  ;;  %v1815_v48 = vmul.f32 %v3557_v24, %v1718_v51  ;;  %v6367_v24 = vunpack.c.l.bf16 %v5172_v32 }
 0x273   : > { %v1759_v35 = vmul.f32 %v3563_v44, %v5207_v1  ;;  %v3565_v17 = vpop.eup %3564  ;;  %v1813_v19 = vmul.f32 %v1756_v6, %v5182_v39  ;;  %vm1764_vm10 = vweird.f32 %v3563_v44  ;;  %v6368_v6 = vunpack.c.l.bf16 %v5176_v41 }
 0x274   : > { %v3567_v33 = vpop.eup %3566  ;;  %v1723_v9 = vmul.f32 %v3561_v62, %v1722_v37  ;;  %v5264_v38 = vadd.f32 1.0, %v3565_v17  ;;  %v1732_v37 = vor.u32 1.1754944e-38, %v1731_v31  ;;  %v1915_v51 = vadd.f32 %v1894_v30, %v6367_v24  ;;  %vm1765_vm8 = vmor %vm1763_vm5, %vm1764_vm10 }
 0x275   : > { %v1760_v52 = vsub.f32 1.0, %v1759_v35  ;;  %v3569_v63 = vpop.eup %3568  ;;  %v1917_v17 = vadd.f32 %v1868_v27, %v6368_v6  ;;  %v1786_v13 = vmul.f32 %v5220_v23, %v1785_v12  ;;  %v3297_v10 = vmul.f32 -1.442695, %v1916_v26 }
 0x276   : > { %v1724_v3 = vadd.f32 %v3561_v62, %v1723_v9  ;;  %v5268_v59 = vadd.f32 1.0, %v3569_v63  ;;  %v3571_v35 = vpop.eup %3570  ;;  %3572 = vrcp.f32 %v5264_v38  ;;  %v6369_v30 = vunpack.c.h.bf16 %v5176_v41 }
 0x277   : > { %v1761_v11 = vmul.f32 %v3563_v44, %v1760_v52  ;;  %v5285_v32 = vadd.f32 1.0, %v3571_v35  ;;  %v1817_v12 = vadd.f32 %v1815_v48, %v1813_v19  ;;  %vm1768_vm14 = vcmp.eq.f32.partialorder %v1767_v25, 8.507059e+37 }
 0x278   : > { %v1728_v52 = vsel %vm1727_vm12, %v3561_v62, %v1724_v3  ;;  %3574 = vrcp.f32 %v5268_v59  ;;  %v1918_v27 = vadd.f32 %v1882_v21, %v6369_v30  ;;  %v1795_v62 = vor.u32 1.1754944e-38, %v1794_v2 }
 0x279   : > { %v1762_v9 = vadd.f32 %v3563_v44, %v1761_v11  ;;  %v1733_v31 = vsel %vm5257_vm7, %v1732_v37, %v1728_v52  ;;  %v1910_v11 = vpop.f32.mrf.mxu3  ;;  %3576 = vrcp.f32 %v5285_v32  ;;  %v3294_v1 = vmul.f32 -1.442695, %v1917_v17 }
 0x27a   : > { %v1816_v3 = vmul.f32 %v3567_v33, %v1733_v31  ;;  %v1787_v24 = vadd.f32 %v5220_v23, %v1786_v13  ;;  %vm1789_vm15 = vweird.f32 %v5220_v23  ;;  %vm5292_vm0 = vcmp.eq.f32.partialorder %v1792_v57, 8.507059e+37 }
 0x27b   : > { %v1766_v63 = vsel %vm1765_vm8, %v3563_v44, %v1762_v9  ;;  %3578 = vtanh.f32 %v1915_v51  ;;  %v1940_v25 = vand.u32 2147483648, %v5264_v38  ;;  %v3296_v44 = vmul.f32 -1.442695, %v1918_v27  ;;  %vm5314_vm3 = vmor %vm1788_vm13, %vm1789_vm15 }
 0x27c   : > { %v1771_v14 = vsel %vm1768_vm14, %v1770_v20, %v1766_v63  ;;  %v3573_v41 = vpop.eup %3572  ;;  %3580 = vpow2.f32 %v3297_v10  ;;  %v6372_v2 = vunpack.c.h.bf16 %v5218_v61  ;;  %vm1934_vm1 = vweird.f32 %v5264_v38 }
 0x27d   : > { %v1814_v26 = vmul.f32 %v1771_v14, %v5188_v29  ;;  %3582 = vtanh.f32 %v1817_v12  ;;  %v1930_v57 = vmul.f32 %v3573_v41, %v5264_v38  ;;  %vm1803_vm2 = vweird.f32 %v5268_v59 }
 0x27e   : > { %v1920_v20 = vadd.f32 %v1910_v11, %v6372_v2  ;;  %v5300_v33 = vpop.eup %3574  ;;  %v1938_v21 = vand.u32 2147483647, %v5264_v38  ;;  %3584 = vpow2.f32 %v3294_v1  ;;  %v1807_v35 = vand.u32 2147483647, %v5268_v59 }
 0x27f   : > { %v1818_v19 = vadd.f32 %v1816_v3, %v1814_v26  ;;  %v1799_v48 = vmul.f32 %v5300_v33, %v5268_v59  ;;  %v1809_v37 = vand.u32 2147483648, %v5268_v59  ;;  %v1931_v51 = vsub.f32 1.0, %v1930_v57  ;;  %v3577_v17 = vpop.eup %3576 }
 0x280   : > { %v3298_v6 = vmul.f32 -1.442695, %v1920_v20  ;;  %vm1935_vm4 = vweird.f32 %v3573_v41  ;;  %v1941_v9 = vor.u32 1.1754944e-38, %v1940_v25  ;;  %3586 = vpow2.f32 %v3296_v44 }
 0x281   : > { %v1800_v52 = vsub.f32 1.0, %v1799_v48  ;;  %v3579_v31 = vpop.eup %3578  ;;  %3588 = vtanh.f32 %v1818_v19  ;;  %v1968_v10 = vmul.f32 %v3577_v17, %v5285_v32  ;;  %v1932_v30 = vmul.f32 %v3573_v41, %v1931_v51  ;;  %vm5337_vm6 = vmor %vm1934_vm1, %vm1935_vm4 }
 0x282   : > { %v1791_v27 = vsel %vm5314_vm3, %v5220_v23, %v1787_v24  ;;  %v3581_v63 = vpop.eup %3580  ;;  %vm1804_vm5 = vweird.f32 %v5300_v33  ;;  %v1978_v3 = vand.u32 2147483648, %v5285_v32  ;;  %3590 = vpow2.f32 %v3298_v6 }
 0x283   : > { %v1801_v50 = vmul.f32 %v5300_v33, %v1800_v52  ;;  %v3583_v11 = vpop.eup %3582  ;;  %v1969_v14 = vsub.f32 1.0, %v1968_v10  ;;  %v1933_v1 = vadd.f32 %v3573_v41, %v1932_v30  ;;  %v5326_v26 = vadd.f32 1.0, %v3581_v63  ;;  %vm5360_vm9 = vmor %vm1803_vm2, %vm1804_vm5 }
 0x284   : > { %v5331_v25 = vsel %vm1827_vm11, %v1817_v12, %v5182_v39  ;;  %v3585_v23 = vpop.eup %3584  ;;  %v1976_v2 = vand.u32 2147483647, %v5285_v32  ;;  %v1796_v20 = vsel %vm5292_vm0, %v1795_v62, %v1791_v27  ;;  %v5351_v39 = vsel %vm1827_vm11, %v1818_v19, %v5188_v29 }
 0x285   : > { %v1802_v24 = vadd.f32 %v5300_v33, %v1801_v50  ;;  %v1970_v12 = vmul.f32 %v3577_v17, %v1969_v14  ;;  %vm1973_vm7 = vweird.f32 %v3577_v17  ;;  %v1937_v38 = vsel %vm5337_vm6, %v3573_v41, %v1933_v1 }
 0x286   : > { %3592 = vrcp.f32 %v5326_v26  ;;  %v3587_v57 = vpop.eup %3586  ;;  %vm1972_vm10 = vweird.f32 %v5285_v32  ;;  %vm1939_vm12 = vcmp.eq.f32.partialorder %v1938_v21, 8.507059e+37  ;;  %v5365_v29 = vadd.f32 1.0, %v3585_v23 }
 0x287   : > { %v1821_v40 = vmul.f32 %v3583_v11, %v1796_v20  ;;  %v3589_v19 = vpop.eup %3588  ;;  %v1942_v41 = vsel %vm1939_vm12, %v1941_v9, %v1937_v38  ;;  %v1971_v48 = vadd.f32 %v3577_v17, %v1970_v12  ;;  %v5367_v51 = vadd.f32 1.0, %v3587_v57  ;;  %vm1974_vm13 = vmor %vm1972_vm10, %vm1973_vm7  ;;  %v1896_v9 = vpop.f32.mrf.mxu2 }
 0x288   : > { %v1806_v59 = vsel %vm5360_vm9, %v5300_v33, %v1802_v24  ;;  %v3591_v6 = vpop.eup %3590  ;;  %v1810_v13 = vor.u32 1.1754944e-38, %v1809_v37  ;;  %v1979_v52 = vor.u32 1.1754944e-38, %v1978_v3  ;;  %3594 = vrcp.f32 %v5365_v29 }
 0x289   : > { %v1849_v32 = vunpack.c.l.bf16 %v5218_v61  ;;  %vm1808_vm8 = vcmp.eq.f32.partialorder %v1807_v35, 8.507059e+37  ;;  %v1975_v21 = vsel %vm1974_vm13, %v3577_v17, %v1971_v48  ;;  %vm1977_vm14 = vcmp.eq.f32.partialorder %v1976_v2, 8.507059e+37 }
 0x28a   : > { %3596 = vrcp.f32 %v5367_v51  ;;  %v1980_v10 = vsel %vm1977_vm14, %v1979_v52, %v1975_v21  ;;  %v2039_v30 = vmul.f32 %v3579_v31, %v1942_v41  ;;  %v1811_v33 = vsel %vm1808_vm8, %v1810_v13, %v1806_v59 }
 0x28b   : > { %v1823_v27 = vpack.c.bf16 %v1821_v40, %v1821_v40  ;;  %v2037_v63 = vmul.f32 %v1980_v10, %v5010_v18  ;;  %v5381_v50 = vadd.f32 1.0, %v3591_v6  ;;  %v1822_v3 = vmul.f32 %v3589_v19, %v1811_v33 }
 0x28c   : > { %v5378_v37 = vpop.eup %3592  ;;  %v1919_v61 = vadd.f32 %v1896_v9, %v1849_v32  ;;  %v5383_v11 = vstv %s2309_s14  ;;  %v1953_v62 = vand.u32 2147483647, %v5365_v29  ;;  %v1955_v40 = vand.u32 2147483648, %v5365_v29 }
 0x28d   : > { %v2008_v35 = vmul.f32 %v5378_v37, %v5326_v26  ;;  %3598 = vrcp.f32 %v5381_v50  ;;  %v2041_v14 = vadd.f32 %v2039_v30, %v2037_v63  ;;  %v1824_v31 = vpack.c.bf16 %v1822_v3, %v1822_v3 }
 0x28e   : > { %v3595_v17 = vpop.eup %3594  ;;  %v5391_v1 = vsel %vm1827_vm11, %v1823_v27, %v4993_v53  ;;  %vm2311_vm15 = vcmp.eq.s32.totalorder %v5383_v11, 1  ;;  %3600 = vtanh.f32 %v1919_v61  ;;  %v1993_v43 = vand.u32 2147483648, %v5367_v51 }
 0x28f   : > { %v1945_v24 = vmul.f32 %v3595_v17, %v5365_v29  ;;  %v5399_v2 = vsel %vm1827_vm11, %v1824_v31, %v5001_v56  ;;  %v2009_v20 = vsub.f32 1.0, %v2008_v35  ;;  %v2051_v38 = vunpack.c.l.b16 %v5391_v1 }
 0x290   : > { %v3597_v23 = vpop.eup %3596  ;;  %v2052_v53 = vunpack.c.l.b16 %v5399_v2  ;;  %v5408_v19 = vsel %vm2311_vm15, %v2041_v14, %v5010_v18  ;;  %vm1950_vm11 = vweird.f32 %v3595_v17  ;;  %v1991_v6 = vand.u32 2147483647, %v5367_v51 }
 0x291   : > { %v1983_v44 = vmul.f32 %v3597_v23, %v5367_v51  ;;  %v1946_v12 = vsub.f32 1.0, %v1945_v24  ;;  %vm1988_vm0 = vweird.f32 %v3597_v23  ;;  %v2010_v52 = vmul.f32 %v5378_v37, %v2009_v20  ;;  %v6383_v20 = vld [vmem:[#allocation14_spill] sm:$0xff] }
 0x292   : > { %v2053_v48 = vpack.c.b16 %v2052_v53, %v2051_v38  ;;  %vm1949_vm1 = vweird.f32 %v5365_v29  ;;  %vm1987_vm2 = vweird.f32 %v5367_v51  ;;  %v1956_v21 = vor.u32 1.1754944e-38, %v1955_v40  ;;  %v6390_v38 = vld [vmem:[#allocation21_spill] sm:$0xff]  ;;  %v6391_v53 = vld [vmem:[#allocation22_spill] sm:$0xff] }
 0x293   : > { %v1984_v57 = vsub.f32 1.0, %v1983_v44  ;;  %v5410_v41 = vpop.eup %3598  ;;  %v1947_v56 = vmul.f32 %v3595_v17, %v1946_v12  ;;  %vm1951_vm3 = vmor %vm1949_vm1, %vm1950_vm11  ;;  %vm2013_vm4 = vweird.f32 %v5378_v37  ;;  %v1994_v30 = vor.u32 1.1754944e-38, %v1993_v43  ;;  %v6386_v12 = vld [vmem:[#allocation16_spill] sm:$0xff]  ;;  %v6394_v40 = vld [vmem:[#allocation25_spill] sm:$0xff] }
 0x294   : > { %v2023_v13 = vmul.f32 %v5410_v41, %v5381_v50  ;;  %2063 = vmatmul.bf16.vlgmr.msrb.gmra.mxu0 %v2053_v48  ;;  %2077 = vmatmul.bf16.vlgmr.msrb.gmra.mxu1 %v2053_v48  ;;  %v3601_v18 = vpop.eup %3600  ;;  %vm1989_vm5 = vmor %vm1987_vm2, %vm1988_vm0  ;;  %vm1954_vm6 = vcmp.eq.f32.partialorder %v1953_v62, 8.507059e+37  ;;  %3602 = vtanh.f32 %v2041_v14  ;;  %vm1992_vm7 = vcmp.eq.f32.partialorder %v1991_v6, 8.507059e+37  ;;  %v6393_v62 = vld [vmem:[#allocation29_spill] sm:$0xff] }
 0x295   : > { %v1985_v59 = vmul.f32 %v3597_v23, %v1984_v57  ;;  %v1948_v32 = vadd.f32 %v3595_v17, %v1947_v56  ;;  %2091 = vmatmul.bf16.vlgmr.msrb.gmra.mxu2 %v2053_v48  ;;  %2105 = vmatmul.bf16.vlgmr.msrb.gmra.mxu3 %v2053_v48  ;;  %v2011_v61 = vadd.f32 %v5378_v37, %v2010_v52  ;;  %v2018_v35 = vand.u32 2147483648, %v5326_v26  ;;  %v6392_v57 = vld [vmem:[#allocation24_spill] sm:$0xff]  ;;  %v6396_v56 = vld [vmem:[#allocation26_spill] sm:$0xff]  ;;  %v6397_v48 = vld [vmem:[#allocation27_spill] sm:$0xff] }
 0x296   : > { %v2024_v10 = vsub.f32 1.0, %v2023_v13  ;;  %2341 = vmatpush.bf16.msrb.mxu0 %v3837_v4  ;;  %2355 = vmatpush.bf16.msrb.mxu1 %v3848_v8  ;;  %vm2012_vm9 = vweird.f32 %v5326_v26  ;;  %v2016_v8 = vand.u32 2147483647, %v5326_v26  ;;  %vm2028_vm12 = vweird.f32 %v5410_v41  ;;  %v6399_v13 = vld [vmem:[#allocation30_spill] sm:$0xff]  ;;  %v6400_v52 = vld [vmem:[#allocation28_spill] sm:$0xff] }
 0x297   : > { %v1986_v9 = vadd.f32 %v3597_v23, %v1985_v59  ;;  %v1952_v33 = vsel %vm1951_vm3, %v3595_v17, %v1948_v32  ;;  %2369 = vmatpush.bf16.msrb.mxu2 %v3888_v22  ;;  %2383 = vmatpush.bf16.msrb.mxu3 %v6271_v7  ;;  %vm5435_vm10 = vmor %vm2012_vm9, %vm2013_vm4  ;;  %v2019_v17 = vor.u32 1.1754944e-38, %v2018_v35  ;;  %v2033_v14 = vand.u32 2147483648, %v5381_v50  ;;  %v6398_v59 = vld [vmem:[#allocation80_spill] sm:$0xff]  ;;  %v6411_v35 = vld [vmem:[#allocation42_spill] sm:$0xff] }
 0x298   : > { %v1957_v29 = vsel %vm1954_vm6, %v1956_v21, %v1952_v33  ;;  %v2025_v3 = vmul.f32 %v5410_v41, %v2024_v10  ;;  %vm2027_vm13 = vweird.f32 %v5381_v50  ;;  %vm2017_vm8 = vcmp.eq.f32.partialorder %v2016_v8, 8.507059e+37  ;;  %v6401_v21 = vld [vmem:[#allocation31_spill] sm:$0xff]  ;;  %v6403_v10 = vld [vmem:[#allocation34_spill] sm:$0xff]  ;;  %v6414_v22 = vld [vmem:[#allocation44_spill] sm:$0xff] }
 0x299   : > { %v1990_v51 = vsel %vm1989_vm5, %v3597_v23, %v1986_v9  ;;  %v2040_v63 = vmul.f32 %v3601_v18, %v1957_v29  ;;  %vm2029_vm14 = vmor %vm2027_vm13, %vm2028_vm12  ;;  %v6402_v9 = vld [vmem:[#allocation32_spill] sm:$0xff]  ;;  %v6405_v29 = vld [vmem:[#allocation35_spill] sm:$0xff] }
 0x29a   : > { %v1995_v27 = vsel %vm1992_vm7, %v1994_v30, %v1990_v51  ;;  %2342 = vmatpush.bf16.msrb.mxu0 %v6272_v28  ;;  %2356 = vmatpush.bf16.msrb.mxu1 %v6273_v49  ;;  %v2015_v28 = vsel %vm5435_vm10, %v5378_v37, %v2011_v61  ;;  %v2026_v49 = vadd.f32 %v5410_v41, %v2025_v3  ;;  %v3603_v26 = vpop.eup %3602  ;;  %v6404_v30 = vld [vmem:[#allocation33_spill] sm:$0xff]  ;;  %v6406_v51 = vld [vmem:[#allocation36_spill] sm:$0xff]  ;;  %v6409_v3 = vld [vmem:[#allocation39_spill] sm:$0xff] }
 0x29b   : > { %v2038_v4 = vmul.f32 %v1995_v27, %v5054_v15  ;;  %2370 = vmatpush.bf16.msrb.mxu2 %v6276_v60  ;;  %2384 = vmatpush.bf16.msrb.mxu3 %v6277_v36  ;;  %v2031_v60 = vand.u32 2147483647, %v5381_v50  ;;  %v2020_v36 = vsel %vm2017_vm8, %v2019_v17, %v2015_v28  ;;  %v6407_v27 = vld [vmem:[#allocation38_spill] sm:$0xff]  ;;  %v6410_v61 = vld [vmem:[#allocation40_spill] sm:$0xff]  ;;  %v6413_v8 = vld [vmem:[#allocation43_spill] sm:$0xff] }
 0x29c   : > { %v2030_v37 = vsel %vm2029_vm14, %v5410_v41, %v2026_v49  ;;  %v2045_v23 = vmul.f32 %v3603_v26, %v2020_v36  ;;  %v6395_v41 = vld [vmem:[#allocation79_spill] sm:$0xff]  ;;  %v6416_v28 = vld [vmem:[#allocation46_spill] sm:$0xff]  ;;  %v6418_v26 = vld [vmem:[#allocation48_spill] sm:$0xff] }
 0x29d   : > { %v2042_v7 = vadd.f32 %v2040_v63, %v2038_v4  ;;  %vm2032_vm11 = vcmp.eq.f32.partialorder %v2031_v60, 8.507059e+37  ;;  %v6408_v63 = vld [vmem:[#allocation37_spill] sm:$0xff]  ;;  %v6417_v49 = vld [vmem:[#allocation47_spill] sm:$0xff]  ;;  %v6422_v36 = vld [vmem:[#allocation52_spill] sm:$0xff] }
 0x29e   : > { %2343 = vmatpush.bf16.msrb.mxu0 %v6278_v16  ;;  %2357 = vmatpush.bf16.msrb.mxu1 %v6279_v0  ;;  %v6412_v4 = vld [vmem:[#allocation41_spill] sm:$0xff]  ;;  %v6421_v60 = vld [vmem:[#allocation51_spill] sm:$0xff] }
 0x29f   : > { %3604 = vtanh.f32 %v2042_v7  ;;  %v5450_v31 = vsel %vm2311_vm15, %v2042_v7, %v5054_v15  ;;  %2371 = vmatpush.bf16.msrb.mxu2 %v6280_v45  ;;  %2385 = vmatpush.bf16.msrb.mxu3 %v3925_v34  ;;  %v2034_v15 = vor.u32 1.1754944e-38, %v2033_v14  ;;  %v2047_v45 = vpack.c.bf16 %v2045_v23, %v2045_v23  ;;  %v6382_v34 = vld [vmem:[#allocation13_spill] sm:$0xff]  ;;  %v6420_v14 = vld [vmem:[#allocation50_spill] sm:$0xff] }
 0x2a0   : > { %v6415_v7 = vld [vmem:[#allocation45_spill] sm:$0xff]  ;;  %v6424_v23 = vld [vmem:[#allocation54_spill] sm:$0xff] }
 0x2a1   : > { %v2035_v0 = vsel %vm2032_vm11, %v2034_v15, %v2030_v37  ;;  %v5489_v6 = vsel %vm2311_vm15, %v2047_v45, %v6398_v59  ;;  %v6419_v17 = vld [vmem:[#allocation49_spill] sm:$0xff]  ;;  %v6425_v15 = vld [vmem:[#allocation55_spill] sm:$0xff]  ;;  %v6450_v59 = vld [vmem:[#allocation82_spill] sm:$0xff] }
 0x2a2   : > { %2344 = vmatpush.bf16.msrb.mxu0 %v3949_v42  ;;  %2358 = vmatpush.bf16.msrb.mxu1 %v3961_v46  ;;  %v2113_v42 = vunpack.c.l.b16 %v2047_v45  ;;  %v2337_v18 = vunpack.c.l.b16 %v5489_v6  ;;  %v6423_v37 = vld [vmem:[#allocation53_spill] sm:$0xff]  ;;  %v6429_v45 = vld [vmem:[#allocation59_spill] sm:$0xff] }
 0x2a3   : > { %2372 = vmatpush.bf16.msrb.mxu2 %v3987_v55  ;;  %2386 = vmatpush.bf16.msrb.mxu3 %v3963_v47  ;;  %v6384_v55 = vld [vmem:[#allocation15_spill] sm:$0xff] }
 0x2a4   : > { %v6385_v47 = vld [vmem:[#allocation19_spill] sm:$0xff] }
 0x2a5   : > { %v3605_v16 = vpop.eup %3604 }
 0x2a6   : > { %v2046_v50 = vmul.f32 %v3605_v16, %v2035_v0  ;;  %2345 = vmatpush.bf16.msrb.mxu0 %v3985_v54  ;;  %2359 = vmatpush.bf16.msrb.mxu1 %v3997_v58  ;;  %v6387_v54 = vld [vmem:[#allocation18_spill] sm:$0xff]  ;;  %v6388_v58 = vld [vmem:[#allocation20_spill] sm:$0xff]  ;;  %v6427_v0 = vld [vmem:[#allocation57_spill] sm:$0xff] }
 0x2a7   : > { %2373 = vmatpush.bf16.msrb.mxu2 %v4026_v5  ;;  %2387 = vmatpush.bf16.msrb.mxu3 %v6382_v34  ;;  %v6389_v5 = vld [vmem:[#allocation23_spill] sm:$0xff]  ;;  %v6426_v16 = vld [vmem:[#allocation56_spill] sm:$0xff]  ;;  %v6431_v34 = vld [vmem:[#allocation61_spill] sm:$0xff] }
 0x2a8   : > { %v2048_v24 = vpack.c.bf16 %v2046_v50, %v2046_v50  ;;  %v6428_v50 = vld [vmem:[#allocation58_spill] sm:$0xff] }
 0x2aa   : > { %v2114_v46 = vunpack.c.l.b16 %v2048_v24  ;;  %2346 = vmatpush.bf16.msrb.mxu0 %v6383_v20  ;;  %2360 = vmatpush.bf16.msrb.mxu1 %v6384_v55  ;;  %v5482_v43 = vsel %vm2311_vm15, %v2048_v24, %v6395_v41  ;;  %v6430_v24 = vld [vmem:[#allocation60_spill] sm:$0xff]  ;;  %v6435_v20 = vld [vmem:[#allocation65_spill] sm:$0xff]  ;;  %v6436_v55 = vld [vmem:[#allocation66_spill] sm:$0xff] }
 0x2ab   : > { %2374 = vmatpush.bf16.msrb.mxu2 %v6385_v47  ;;  %2388 = vmatpush.bf16.msrb.mxu3 %v6386_v12  ;;  %v2338_v32 = vunpack.c.l.b16 %v5482_v43  ;;  %v6437_v47 = vld [vmem:[#allocation67_spill] sm:$0xff]  ;;  %v6438_v12 = vld [vmem:[#allocation68_spill] sm:$0xff]  ;;  %v6447_v41 = vld [vmem:[#allocation77_spill] sm:$0xff] }
 0x2ac   : > { %v2115_v44 = vpack.c.b16 %v2114_v46, %v2113_v42  ;;  %v6432_v42 = vld [vmem:[#allocation62_spill] sm:$0xff]  ;;  %v6433_v46 = vld [vmem:[#allocation63_spill] sm:$0xff] }
 0x2ad   : > { %v2339_v33 = vpack.c.b16 %v2338_v32, %v2337_v18  ;;  %v6453_v32 = vld [vmem:[#allocation85_spill] sm:$0xff]  ;;  %v6454_v18 = vld [vmem:[#allocation86_spill] sm:$0xff] }
 0x2ae   : > { %2125 = vmatmul.bf16.vlgmr.msra.gmra.mxu0 %v2115_v44  ;;  %2139 = vmatmul.bf16.vlgmr.msra.gmra.mxu1 %v2115_v44 }
 0x2af   : > { %2153 = vmatmul.bf16.vlgmr.msra.gmra.mxu2 %v2115_v44  ;;  %2167 = vmatmul.bf16.vlgmr.msra.gmra.mxu3 %v2115_v44  ;;  %v6434_v44 = vld [vmem:[#allocation64_spill] sm:$0xff] }
 0x2b0   : > { %2347 = vmatpush.bf16.msrb.mxu0 %v6387_v54  ;;  %2361 = vmatpush.bf16.msrb.mxu1 %v6388_v58  ;;  %v6439_v54 = vld [vmem:[#allocation69_spill] sm:$0xff]  ;;  %v6440_v58 = vld [vmem:[#allocation70_spill] sm:$0xff] }
 0x2b1   : > { %2375 = vmatpush.bf16.msrb.mxu2 %v6389_v5  ;;  %2389 = vmatpush.bf16.msrb.mxu3 %v6390_v38  ;;  %v6441_v5 = vld [vmem:[#allocation71_spill] sm:$0xff]  ;;  %v6442_v38 = vld [vmem:[#allocation72_spill] sm:$0xff] }
 0x2b4   : > { %2348 = vmatpush.bf16.msrb.mxu0 %v6391_v53  ;;  %2362 = vmatpush.bf16.msrb.mxu1 %v6392_v57  ;;  %v6443_v53 = vld [vmem:[#allocation73_spill] sm:$0xff]  ;;  %v6444_v57 = vld [vmem:[#allocation74_spill] sm:$0xff] }
 0x2b5   : > { %2376 = vmatpush.bf16.msrb.mxu2 %v6393_v62  ;;  %2390 = vmatpush.bf16.msrb.mxu3 %v6394_v40  ;;  %v6445_v62 = vld [vmem:[#allocation75_spill] sm:$0xff]  ;;  %v6446_v40 = vld [vmem:[#allocation76_spill] sm:$0xff] }
 0x2b8   : > { %2539 = vmatpush.bf16.msra.mxu0 %v6396_v56  ;;  %2553 = vmatpush.bf16.msra.mxu1 %v6397_v48  ;;  %v6448_v56 = vld [vmem:[#allocation78_spill] sm:$0xff]  ;;  %v6449_v48 = vld [vmem:[#allocation81_spill] sm:$0xff] }
 0x2b9   : > { %2567 = vmatpush.bf16.msra.mxu2 %v6399_v13  ;;  %2581 = vmatpush.bf16.msra.mxu3 %v6400_v52  ;;  %v6451_v13 = vld [vmem:[#allocation83_spill] sm:$0xff]  ;;  %v6452_v52 = vld [vmem:[#allocation84_spill] sm:$0xff] }
 0x2bc   : > { %2540 = vmatpush.bf16.msra.mxu0 %v6401_v21  ;;  %2554 = vmatpush.bf16.msra.mxu1 %v6402_v9  ;;  %v6455_v21 = vld [vmem:[#allocation87_spill] sm:$0xff]  ;;  %v6456_v9 = vld [vmem:[#allocation88_spill] sm:$0xff] }
 0x2bd   : > { %2568 = vmatpush.bf16.msra.mxu2 %v6403_v10  ;;  %2582 = vmatpush.bf16.msra.mxu3 %v6404_v30  ;;  %v6457_v10 = vld [vmem:[#allocation89_spill] sm:$0xff]  ;;  %v6458_v30 = vld [vmem:[#allocation90_spill] sm:$0xff] }
 0x2be   : > { %2349 = vmatmul.bf16.vlgmr.msrb.gmra.mxu0 %v2339_v33  ;;  %2363 = vmatmul.bf16.vlgmr.msrb.gmra.mxu1 %v2339_v33 }
 0x2bf   : > { %2377 = vmatmul.bf16.vlgmr.msrb.gmra.mxu2 %v2339_v33  ;;  %2391 = vmatmul.bf16.vlgmr.msrb.gmra.mxu3 %v2339_v33  ;;  %v6459_v33 = vld [vmem:[#allocation91_spill] sm:$0xff] }
 0x2c0   : > { %2541 = vmatpush.bf16.msra.mxu0 %v6405_v29  ;;  %2555 = vmatpush.bf16.msra.mxu1 %v6406_v51  ;;  %v6460_v29 = vld [vmem:[#allocation92_spill] sm:$0xff] }
 0x2c1   : > { %2569 = vmatpush.bf16.msra.mxu2 %v6407_v27  ;;  %2583 = vmatpush.bf16.msra.mxu3 %v6408_v63 }
 0x2c4   : > { %2542 = vmatpush.bf16.msra.mxu0 %v6409_v3  ;;  %2556 = vmatpush.bf16.msra.mxu1 %v6410_v61 }
 0x2c5   : > { %2570 = vmatpush.bf16.msra.mxu2 %v6411_v35  ;;  %2584 = vmatpush.bf16.msra.mxu3 %v6412_v4 }
 0x2c8   : > { %2543 = vmatpush.bf16.msra.mxu0 %v6413_v8  ;;  %2557 = vmatpush.bf16.msra.mxu1 %v6414_v22 }
 0x2c9   : > { %2571 = vmatpush.bf16.msra.mxu2 %v6415_v7  ;;  %2585 = vmatpush.bf16.msra.mxu3 %v6416_v28 }
 0x2cc   : > { %2544 = vmatpush.bf16.msra.mxu0 %v6417_v49  ;;  %2558 = vmatpush.bf16.msra.mxu1 %v6418_v26  ;;  %v6461_v26 = vld [vmem:[#allocation94_spill] sm:$0xff] }
 0x2cd   : > { %2572 = vmatpush.bf16.msra.mxu2 %v6419_v17  ;;  %2586 = vmatpush.bf16.msra.mxu3 %v6420_v14  ;;  %v6462_v14 = vld [vmem:[#allocation95_spill] sm:$0xff] }
 0x2d0   : > { %2545 = vmatpush.bf16.msra.mxu0 %v6421_v60  ;;  %2559 = vmatpush.bf16.msra.mxu1 %v6422_v36 }
 0x2d1   : > { %2573 = vmatpush.bf16.msra.mxu2 %v6423_v37  ;;  %2587 = vmatpush.bf16.msra.mxu3 %v6424_v23 }
 0x2d4   : > { %2546 = vmatpush.bf16.msra.mxu0 %v6425_v15  ;;  %2560 = vmatpush.bf16.msra.mxu1 %v6426_v16 }
 0x2d5   : > { %2574 = vmatpush.bf16.msra.mxu2 %v6427_v0  ;;  %2588 = vmatpush.bf16.msra.mxu3 %v6428_v50 }
 0x2d8   : > { %2601 = vmatpush.bf16.msrb.mxu0 %v6429_v45  ;;  %2615 = vmatpush.bf16.msrb.mxu1 %v6430_v24 }
 0x2d9   : > { %2629 = vmatpush.bf16.msrb.mxu2 %v6431_v34  ;;  %2643 = vmatpush.bf16.msrb.mxu3 %v6432_v42  ;;  %v6463_v34 = vld [vmem:[#allocation96_spill] sm:$0xff] }
 0x2dc   : > { %2602 = vmatpush.bf16.msrb.mxu0 %v6433_v46  ;;  %2616 = vmatpush.bf16.msrb.mxu1 %v6434_v44 }
 0x2dd   : > { %2630 = vmatpush.bf16.msrb.mxu2 %v6435_v20  ;;  %2644 = vmatpush.bf16.msrb.mxu3 %v6436_v55 }
 0x2e0   : > { %2603 = vmatpush.bf16.msrb.mxu0 %v6437_v47  ;;  %2617 = vmatpush.bf16.msrb.mxu1 %v6438_v12 }
 0x2e1   : > { %2631 = vmatpush.bf16.msrb.mxu2 %v6439_v54  ;;  %2645 = vmatpush.bf16.msrb.mxu3 %v6440_v58 }
 0x2e4   : > { %2604 = vmatpush.bf16.msrb.mxu0 %v6441_v5  ;;  %2618 = vmatpush.bf16.msrb.mxu1 %v6442_v38  ;;  %v3305_v38 = vld [vmem:[%s3801_s11 + $0x60] sm:$0xff] }
 0x2e5   : > { %2632 = vmatpush.bf16.msrb.mxu2 %v6443_v53  ;;  %2646 = vmatpush.bf16.msrb.mxu3 %v6444_v57  ;;  %v5567_v57 = vld [vmem:[%s3801_s11 + $0x68] sm:$0xff] }
 0x2e8   : > { %2605 = vmatpush.bf16.msrb.mxu0 %v6445_v62  ;;  %2619 = vmatpush.bf16.msrb.mxu1 %v6446_v40  ;;  %v6464_v62 = vld [vmem:[#allocation97_spill] sm:$0xff] }
 0x2e9   : > { %2633 = vmatpush.bf16.msrb.mxu2 %v6447_v41  ;;  %2647 = vmatpush.bf16.msrb.mxu3 %v6448_v56  ;;  %v2327_v56 = vunpack.c.l.bf16 %v3305_v38 }
 0x2ec   : > { %2606 = vmatpush.bf16.msrb.mxu0 %v6449_v48  ;;  %2620 = vmatpush.bf16.msrb.mxu1 %v6450_v59  ;;  %v5572_v48 = vld [vmem:[%s3801_s11 + $0x70] sm:$0xff] }
 0x2ed   : > { %2634 = vmatpush.bf16.msrb.mxu2 %v6451_v13  ;;  %2648 = vmatpush.bf16.msrb.mxu3 %v6452_v52  ;;  %v2328_v52 = vunpack.c.h.bf16 %v3305_v38 }
 0x2f0   : > { %2607 = vmatpush.bf16.msrb.mxu0 %v6453_v32  ;;  %2621 = vmatpush.bf16.msrb.mxu1 %v6454_v18  ;;  %v2329_v32 = vunpack.c.l.bf16 %v5567_v57  ;;  %v2330_v18 = vunpack.c.h.bf16 %v5567_v57 }
 0x2f1   : > { %2635 = vmatpush.bf16.msrb.mxu2 %v6455_v21  ;;  %2649 = vmatpush.bf16.msrb.mxu3 %v6456_v9 }
 0x2f4   : > { %2608 = vmatpush.bf16.msrb.mxu0 %v6457_v10  ;;  %2622 = vmatpush.bf16.msrb.mxu1 %v6458_v30  ;;  %v2331_v30 = vunpack.c.l.bf16 %v5572_v48 }
 0x2f5   : > { %2636 = vmatpush.bf16.msrb.mxu2 %v6459_v33  ;;  %2650 = vmatpush.bf16.msrb.mxu3 %v6460_v29  ;;  %v2332_v33 = vunpack.c.h.bf16 %v5572_v48 }
 0x311   : > { %v2064_v51 = vpop.f32.mrf.mxu0  ;;  %v2078_v27 = vpop.f32.mrf.mxu1 }
 0x318   : > { %v2106_v63 = vpop.f32.mrf.mxu3  ;;  %v2092_v3 = vpop.f32.mrf.mxu2 }
 0x319   : > { %v2066_v61 = vpop.f32.mrf.mxu0  ;;  %v2080_v35 = vpop.f32.mrf.mxu1 }
 0x320   : > { %v2108_v4 = vpop.f32.mrf.mxu3  ;;  %v2094_v8 = vpop.f32.mrf.mxu2 }
 0x32b   : > { %v2126_v22 = vpop.f32.mrf.mxu0  ;;  %v2140_v7 = vpop.f32.mrf.mxu1 }
 0x32c   : > { %v2127_v28 = vadd.f32 %v2126_v22, %v2064_v51  ;;  %v2141_v49 = vadd.f32 %v2140_v7, %v2078_v27 }
 0x32e   : > { %v2173_v17 = vadd.f32 %v2127_v28, %v6461_v26  ;;  %v2174_v60 = vadd.f32 %v2141_v49, %v6462_v14 }
 0x330   : > { %v3299_v36 = vmul.f32 -1.442695, %v2173_v17  ;;  %v3301_v37 = vmul.f32 -1.442695, %v2174_v60 }
 0x332   : > { %3606 = vpow2.f32 %v3299_v36  ;;  %v2168_v23 = vpop.f32.mrf.mxu3  ;;  %v2154_v50 = vpop.f32.mrf.mxu2 }
 0x333   : > { %3608 = vpow2.f32 %v3301_v37  ;;  %v2169_v15 = vadd.f32 %v2168_v23, %v2106_v63  ;;  %v2128_v16 = vpop.f32.mrf.mxu0  ;;  %v2142_v0 = vpop.f32.mrf.mxu1  ;;  %v2155_v47 = vadd.f32 %v2154_v50, %v2092_v3 }
 0x334   : > { %v2129_v45 = vadd.f32 %v2128_v16, %v2066_v61  ;;  %v2143_v24 = vadd.f32 %v2142_v0, %v2080_v35  ;;  %v5600_v0 = vld [vmem:[%s3801_s11 + $0x78] sm:$0xff]  ;;  %s2320_s11 = sadd.s32 3, %s3794_s30 }
 0x335   : > { %v2176_v42 = vadd.f32 %v2169_v15, %v6463_v34  ;;  %v2175_v40 = vadd.f32 %v2155_v47, %v6464_v62  ;;  %p5637_p11 = scmp.lt.s32.totalorder %s2320_s11, 6 }
 0x336   : > { %v2177_v46 = vadd.f32 %v2129_v45, %v6461_v26  ;;  %v2178_v44 = vadd.f32 %v2143_v24, %v6462_v14 }
 0x337   : > { %v3303_v20 = vmul.f32 -1.442695, %v2176_v42  ;;  %s2793_s15 = scalar_select %p5637_p11, 1, 0 }
 0x338   : > { %v3607_v55 = vpop.eup %3606  ;;  %v3300_v12 = vmul.f32 -1.442695, %v2177_v46  ;;  %v3302_v5 = vmul.f32 -1.442695, %v2178_v44 }
 0x339   : > { %v3609_v54 = vpop.eup %3608  ;;  %v5560_v58 = vadd.f32 1.0, %v3607_v55  ;;  %3610 = vpow2.f32 %v3303_v20 }
 0x33a   : > { %v5563_v53 = vadd.f32 1.0, %v3609_v54  ;;  %3612 = vpow2.f32 %v3300_v12  ;;  %v2170_v41 = vpop.f32.mrf.mxu3  ;;  %v2156_v13 = vpop.f32.mrf.mxu2  ;;  %v2333_v12 = vunpack.c.l.bf16 %v5600_v0 }
 0x33b   : > { %3614 = vrcp.f32 %v5560_v58  ;;  %v2350_v59 = vpop.f32.mrf.mxu0  ;;  %v2198_v9 = vand.u32 2147483647, %v5560_v58  ;;  %v2171_v10 = vadd.f32 %v2170_v41, %v2108_v4  ;;  %vm2194_vm0 = vweird.f32 %v5560_v58  ;;  %v2364_v63 = vpop.f32.mrf.mxu1 }
 0x33c   : > { %3616 = vrcp.f32 %v5563_v53  ;;  %v2397_v27 = vadd.f32 %v2350_v59, %v2327_v56  ;;  %v2238_v61 = vand.u32 2147483648, %v5563_v53  ;;  %v2200_v35 = vand.u32 2147483648, %v5560_v58 }
 0x33d   : > { %3618 = vpow2.f32 %v3302_v5  ;;  %v2157_v4 = vadd.f32 %v2156_v13, %v2094_v8  ;;  %vm2232_vm1 = vweird.f32 %v5563_v53  ;;  %v2236_v49 = vand.u32 2147483647, %v5563_v53 }
 0x33e   : > { %3620 = vtanh.f32 %v2175_v40  ;;  %vm5591_vm2 = vcmp.eq.f32.partialorder %v2198_v9, 8.507059e+37  ;;  %v2180_v37 = vadd.f32 %v2171_v10, %v6463_v34  ;;  %v2398_v23 = vadd.f32 %v2364_v63, %v2328_v52 }
 0x33f   : > { %v3611_v21 = vpop.eup %3610  ;;  %v3309_v16 = vmul.f32 -1.442695, %v2397_v27  ;;  %v2239_v45 = vor.u32 1.1754944e-38, %v2238_v61  ;;  %v2201_v24 = vor.u32 1.1754944e-38, %v2200_v35  ;;  %v2179_v42 = vadd.f32 %v2157_v4, %v6464_v62 }
 0x340   : > { %v3613_v29 = vpop.eup %3612  ;;  %v5580_v51 = vadd.f32 1.0, %v3611_v21  ;;  %vm5603_vm4 = vcmp.eq.f32.partialorder %v2236_v49, 8.507059e+37  ;;  %v3311_v47 = vmul.f32 -1.442695, %v2398_v23  ;;  %v3304_v40 = vmul.f32 -1.442695, %v2180_v37 }
 0x341   : > { %v3615_v3 = vpop.eup %3614  ;;  %v5584_v22 = vadd.f32 1.0, %v3613_v29  ;;  %v2334_v59 = vunpack.c.h.bf16 %v5600_v0 }
 0x342   : > { %v3617_v7 = vpop.eup %3616  ;;  %v2190_v28 = vmul.f32 %v3615_v3, %v5560_v58  ;;  %3622 = vrcp.f32 %v5580_v51  ;;  %vm2195_vm3 = vweird.f32 %v3615_v3  ;;  %v2278_v38 = vand.u32 2147483648, %v5580_v51 }
 0x343   : > { %v3619_v17 = vpop.eup %3618  ;;  %v2228_v60 = vmul.f32 %v3617_v7, %v5563_v53  ;;  %3624 = vrcp.f32 %v5584_v22  ;;  %vm2233_vm5 = vweird.f32 %v3617_v7  ;;  %vm2196_vm6 = vmor %vm2194_vm0, %vm2195_vm3  ;;  %v2213_v56 = vand.u32 2147483647, %v5584_v22 }
 0x344   : > { %v2191_v8 = vsub.f32 1.0, %v2190_v28  ;;  %v5597_v15 = vadd.f32 1.0, %v3619_v17  ;;  %v3621_v46 = vpop.eup %3620  ;;  %vm2234_vm7 = vmor %vm2232_vm1, %vm2233_vm5  ;;  %v2276_v9 = vand.u32 2147483647, %v5580_v51  ;;  %vm2209_vm9 = vweird.f32 %v5584_v22  ;;  %v2392_v28 = vpop.f32.mrf.mxu3 }
 0x345   : > { %v2229_v50 = vsub.f32 1.0, %v2228_v60  ;;  %v5628_v63 = vor.u32 1.1754944e-38, %v2278_v38  ;;  %vm5633_vm12 = vcmp.eq.f32.partialorder %v2213_v56, 8.507059e+37  ;;  %v2215_v36 = vand.u32 2147483648, %v5584_v22 }
 0x346   : > { %v2192_v44 = vmul.f32 %v3615_v3, %v2191_v8  ;;  %3626 = vrcp.f32 %v5597_v15  ;;  %vm2247_vm10 = vweird.f32 %v5597_v15  ;;  %v2251_v37 = vand.u32 2147483647, %v5597_v15 }
 0x347   : > { %v2230_v55 = vmul.f32 %v3617_v7, %v2229_v50  ;;  %3628 = vpow2.f32 %v3309_v16  ;;  %vm2272_vm1 = vweird.f32 %v5580_v51  ;;  %vm5687_vm3 = vcmp.eq.f32.partialorder %v2276_v9, 8.507059e+37 }
 0x348   : > { %v5609_v54 = vpop.eup %3622  ;;  %v2193_v5 = vadd.f32 %v3615_v3, %v2192_v44  ;;  %3630 = vtanh.f32 %v2179_v42  ;;  %vm5659_vm0 = vcmp.eq.f32.partialorder %v2251_v37, 8.507059e+37 }
 0x349   : > { %v2231_v41 = vadd.f32 %v3617_v7, %v2230_v55  ;;  %v3625_v13 = vpop.eup %3624  ;;  %v2268_v21 = vmul.f32 %v5609_v54, %v5580_v51  ;;  %3632 = vpow2.f32 %v3304_v40  ;;  %vm2273_vm14 = vweird.f32 %v5609_v54 }
 0x34a   : > { %v2197_v52 = vsel %vm2196_vm6, %v3615_v3, %v2193_v5  ;;  %v2205_v29 = vmul.f32 %v3625_v13, %v5584_v22  ;;  %v2253_v3 = vand.u32 2147483648, %v5597_v15  ;;  %3634 = vpow2.f32 %v3311_v47  ;;  %v2352_v5 = vpop.f32.mrf.mxu0 }
 0x34b   : > { %v2202_v58 = vsel %vm5591_vm2, %v2201_v24, %v2197_v52  ;;  %v2235_v10 = vsel %vm2234_vm7, %v3617_v7, %v2231_v41  ;;  %v2378_v7 = vpop.f32.mrf.mxu2  ;;  %v2269_v60 = vsub.f32 1.0, %v2268_v21  ;;  %vm2210_vm13 = vweird.f32 %v3625_v13 }
 0x34c   : > { %v3627_v27 = vpop.eup %3626  ;;  %v2240_v53 = vsel %vm5603_vm4, %v2239_v45, %v2235_v10  ;;  %v2206_v61 = vsub.f32 1.0, %v2205_v29  ;;  %v2299_v17 = vmul.f32 %v3621_v46, %v2202_v58  ;;  %v2254_v24 = vor.u32 1.1754944e-38, %v2253_v3  ;;  %vm2211_vm11 = vmor %vm2209_vm9, %vm2210_vm13 }
 0x34d   : > { %v2243_v35 = vmul.f32 %v3627_v27, %v5597_v15  ;;  %v3629_v49 = vpop.eup %3628  ;;  %v2297_v8 = vmul.f32 %v2240_v53, %v5331_v25  ;;  %v2399_v44 = vadd.f32 %v2378_v7, %v2329_v32  ;;  %v2400_v46 = vadd.f32 %v2392_v28, %v2330_v18  ;;  %v2366_v53 = vpop.f32.mrf.mxu1  ;;  %vm5713_vm9 = vmor %vm2272_vm1, %vm2273_vm14 }
 0x34e   : > { %v3631_v23 = vpop.eup %3630  ;;  %v2207_v50 = vmul.f32 %v3625_v13, %v2206_v61  ;;  %v5644_v42 = vadd.f32 1.0, %v3629_v49  ;;  %vm2248_vm8 = vweird.f32 %v3627_v27  ;;  %v2270_v40 = vmul.f32 %v5609_v54, %v2269_v60 }
 0x34f   : > { %v2244_v16 = vsub.f32 1.0, %v2243_v35  ;;  %v3633_v45 = vpop.eup %3632  ;;  %v2216_v32 = vor.u32 1.1754944e-38, %v2215_v36  ;;  %v2301_v18 = vadd.f32 %v2299_v17, %v2297_v8  ;;  %vm2249_vm2 = vmor %vm2247_vm10, %vm2248_vm8  ;;  %v3313_v21 = vmul.f32 -1.442695, %v2400_v46  ;;  %v2394_v17 = vpop.f32.mrf.mxu3 }
 0x350   : > { %v2208_v55 = vadd.f32 %v3625_v13, %v2207_v50  ;;  %v5650_v47 = vadd.f32 1.0, %v3633_v45  ;;  %v3635_v38 = vpop.eup %3634  ;;  %3636 = vrcp.f32 %v5644_v42  ;;  %v2401_v58 = vadd.f32 %v2352_v5, %v2331_v30 }
 0x351   : > { %v2245_v20 = vmul.f32 %v3627_v27, %v2244_v16  ;;  %v5671_v52 = vadd.f32 1.0, %v3635_v38  ;;  %v5675_v29 = vstv %s2793_s15  ;;  %v2422_v15 = vand.u32 2147483647, %v5644_v42 }
 0x352   : > { %v2212_v41 = vsel %vm2211_vm11, %v3625_v13, %v2208_v55  ;;  %3638 = vrcp.f32 %v5650_v47  ;;  %v2424_v61 = vand.u32 2147483648, %v5644_v42  ;;  %v2271_v35 = vadd.f32 %v5609_v54, %v2270_v40 }
 0x353   : > { %v2246_v56 = vadd.f32 %v3627_v27, %v2245_v20  ;;  %v2217_v22 = vsel %vm5633_vm12, %v2216_v32, %v2212_v41  ;;  %3640 = vtanh.f32 %v2399_v44  ;;  %vm2418_vm4 = vweird.f32 %v5644_v42 }
 0x354   : > { %v2300_v13 = vmul.f32 %v3631_v23, %v2217_v22  ;;  %3642 = vrcp.f32 %v5671_v52  ;;  %v3310_v28 = vmul.f32 -1.442695, %v2401_v58  ;;  %v2402_v49 = vadd.f32 %v2366_v53, %v2332_v33 }
 0x355   : > { %v2250_v10 = vsel %vm2249_vm2, %v3627_v27, %v2246_v56  ;;  %3644 = vtanh.f32 %v2301_v18  ;;  %v2293_v27 = vand.u32 2147483648, %v5650_v47  ;;  %vm2287_vm5 = vweird.f32 %v5650_v47 }
 0x356   : > { %v2255_v3 = vsel %vm5659_vm0, %v2254_v24, %v2250_v10  ;;  %v3637_v4 = vpop.eup %3636  ;;  %3646 = vpow2.f32 %v3313_v21  ;;  %v2291_v37 = vand.u32 2147483647, %v5650_v47  ;;  %vm5698_vm6 = vcmp.eq.f32.partialorder %v2422_v15, 8.507059e+37  ;;  %v2380_v10 = vpop.f32.mrf.mxu2 }
 0x357   : > { %v2298_v30 = vmul.f32 %v2255_v3, %v5351_v39  ;;  %v2414_v23 = vmul.f32 %v3637_v4, %v5644_v42  ;;  %v2425_v16 = vor.u32 1.1754944e-38, %v2424_v61  ;;  %3648 = vpow2.f32 %v3310_v28 }
 0x358   : > { %v3639_v60 = vpop.eup %3638  ;;  %v2294_v48 = vor.u32 1.1754944e-38, %v2293_v27  ;;  %v3312_v45 = vmul.f32 -1.442695, %v2402_v49  ;;  %v2404_v24 = vadd.f32 %v2394_v17, %v2334_v59  ;;  %vm2419_vm7 = vweird.f32 %v3637_v4 }
 0x359   : > { %v2302_v36 = vadd.f32 %v2300_v13, %v2298_v30  ;;  %v2283_v9 = vmul.f32 %v3639_v60, %v5650_v47  ;;  %v3641_v50 = vpop.eup %3640  ;;  %v2415_v33 = vsub.f32 1.0, %v2414_v23  ;;  %v5707_v20 = vsel %vm2311_vm15, %v2301_v18, %v5331_v25  ;;  %vm2420_vm13 = vmor %vm2418_vm4, %vm2419_vm7 }
 0x35a   : > { %v3643_v44 = vpop.eup %3642  ;;  %vm2288_vm10 = vweird.f32 %v3639_v60  ;;  %v3314_v57 = vmul.f32 -1.442695, %v2404_v24  ;;  %v2275_v25 = vsel %vm5713_vm9, %v5609_v54, %v2271_v35  ;;  %v2462_v41 = vand.u32 2147483648, %v5671_v52 }
 0x35b   : > { %3650 = vtanh.f32 %v2302_v36  ;;  %v2284_v46 = vsub.f32 1.0, %v2283_v9  ;;  %v3645_v55 = vpop.eup %3644  ;;  %v2452_v59 = vmul.f32 %v3643_v44, %v5671_v52  ;;  %v2416_v38 = vmul.f32 %v3637_v4, %v2415_v33  ;;  %vm5736_vm8 = vmor %vm2287_vm5, %vm2288_vm10 }
 0x35c   : > { %3652 = vpow2.f32 %v3312_v45  ;;  %v3647_v40 = vpop.eup %3646  ;;  %v5724_v51 = vsel %vm2311_vm15, %v2302_v36, %v5351_v39  ;;  %vm2457_vm12 = vweird.f32 %v3643_v44  ;;  %v2460_v54 = vand.u32 2147483647, %v5671_v52 }
 0x35d   : > { %v2285_v32 = vmul.f32 %v3639_v60, %v2284_v46  ;;  %v2453_v18 = vsub.f32 1.0, %v2452_v59  ;;  %v2417_v56 = vadd.f32 %v3637_v4, %v2416_v38  ;;  %v5727_v22 = vadd.f32 1.0, %v3647_v40  ;;  %v3649_v21 = vpop.eup %3648 }
 0x35e   : > { %3654 = vpow2.f32 %v3314_v57  ;;  %v2280_v42 = vsel %vm5687_vm3, %v5628_v63, %v2275_v25  ;;  %v5746_v61 = vadd.f32 1.0, %v3649_v21  ;;  %vm2292_vm14 = vcmp.eq.f32.partialorder %v2291_v37, 8.507059e+37 }
 0x35f   : > { %v2286_v58 = vadd.f32 %v3639_v60, %v2285_v32  ;;  %v2454_v13 = vmul.f32 %v3643_v44, %v2453_v18  ;;  %v2421_v53 = vsel %vm2420_vm13, %v3637_v4, %v2417_v56  ;;  %3656 = vrcp.f32 %v5727_v22 }
 0x360   : > { %v2426_v15 = vsel %vm5698_vm6, %v2425_v16, %v2421_v53  ;;  %v2305_v35 = vmul.f32 %v3645_v55, %v2280_v42  ;;  %vm2456_vm11 = vweird.f32 %v5671_v52  ;;  %v2403_v4 = vadd.f32 %v2380_v10, %v2333_v12 }
 0x361   : > { %v3651_v3 = vpop.eup %3650  ;;  %v2290_v47 = vsel %vm5736_vm8, %v3639_v60, %v2286_v58  ;;  %v2455_v27 = vadd.f32 %v3643_v44, %v2454_v13  ;;  %vm2458_vm0 = vmor %vm2456_vm11, %vm2457_vm12  ;;  %v2463_v63 = vor.u32 1.1754944e-38, %v2462_v41  ;;  %3658 = vrcp.f32 %v5746_v61 }
 0x362   : > { %v3653_v30 = vpop.eup %3652  ;;  %v2295_v28 = vsel %vm2292_vm14, %v2294_v48, %v2290_v47  ;;  %vm2461_vm1 = vcmp.eq.f32.partialorder %v2460_v54, 8.507059e+37  ;;  %v2523_v17 = vmul.f32 %v3641_v50, %v2426_v15  ;;  %v2307_v52 = vpack.c.bf16 %v2305_v35, %v2305_v35 }
 0x363   : > { %v5755_v7 = vadd.f32 1.0, %v3653_v30  ;;  %v2459_v49 = vsel %vm2458_vm0, %v3643_v44, %v2455_v27  ;;  %v2306_v60 = vmul.f32 %v3651_v3, %v2295_v28  ;;  %v2502_v12 = vand.u32 2147483648, %v5727_v22 }
 0x364   : > { %v3655_v36 = vpop.eup %3654  ;;  %v2464_v37 = vsel %vm2461_vm1, %v2463_v63, %v2459_v49  ;;  %vm2795_vm2 = vcmp.eq.s32.totalorder %v5675_v29, 1  ;;  %vm2496_vm3 = vweird.f32 %v5727_v22  ;;  %v5769_v45 = vsel %vm2311_vm15, %v2307_v52, %v5391_v1 }
 0x365   : > { %3660 = vrcp.f32 %v5755_v7  ;;  %v3657_v23 = vpop.eup %3656  ;;  %v2521_v0 = vmul.f32 %v2464_v37, %v5408_v19  ;;  %v5762_v8 = vadd.f32 1.0, %v3655_v36  ;;  %v2308_v50 = vpack.c.bf16 %v2306_v60, %v2306_v60 }
 0x366   : > { %v2492_v9 = vmul.f32 %v3657_v23, %v5727_v22  ;;  %3662 = vtanh.f32 %v2403_v4  ;;  %v2503_v44 = vor.u32 1.1754944e-38, %v2502_v12  ;;  %vm2497_vm4 = vweird.f32 %v3657_v23 }
 0x367   : > { %v2525_v16 = vadd.f32 %v2523_v17, %v2521_v0  ;;  %v3659_v48 = vpop.eup %3658  ;;  %3664 = vrcp.f32 %v5762_v8  ;;  %vm2433_vm5 = vweird.f32 %v5746_v61  ;;  %v5782_v1 = vsel %vm2311_vm15, %v2308_v50, %v5399_v2  ;;  %vm5792_vm6 = vmor %vm2496_vm3, %vm2497_vm4 }
 0x368   : > { %v2493_v33 = vsub.f32 1.0, %v2492_v9  ;;  %v2429_v46 = vmul.f32 %v3659_v48, %v5746_v61  ;;  %v2535_v38 = vunpack.c.l.b16 %v5769_v45  ;;  %v2536_v40 = vunpack.c.l.b16 %v5782_v1 }
 0x369   : > { %3666 = vtanh.f32 %v2525_v16  ;;  %v2798_v24 = vsel %vm2795_vm2, %v2525_v16, %v5408_v19  ;;  %v2437_v32 = vand.u32 2147483647, %v5746_v61  ;;  %v2439_v57 = vand.u32 2147483648, %v5746_v61 }
 0x36a   : > { %2812 = vst [vmem:[%s5907_s6] sm:$0xff] %v2798_v24  ;;  %v2494_v5 = vmul.f32 %v3657_v23, %v2493_v33  ;;  %v2430_v59 = vsub.f32 1.0, %v2429_v46  ;;  %v2500_v18 = vand.u32 2147483647, %v5727_v22  ;;  %vm2434_vm15 = vweird.f32 %v3659_v48 }
 0x36b   : > { %v3661_v55 = vpop.eup %3660  ;;  %v2537_v21 = vpack.c.b16 %v2536_v40, %v2535_v38  ;;  %v2477_v54 = vand.u32 2147483648, %v5755_v7  ;;  %v2475_v10 = vand.u32 2147483647, %v5755_v7  ;;  %vm2471_vm10 = vweird.f32 %v5755_v7  ;;  %vm2435_vm12 = vmor %vm2433_vm5, %vm2434_vm15 }
 0x36c   : > { %v2467_v19 = vmul.f32 %v3661_v55, %v5755_v7  ;;  %v2495_v25 = vadd.f32 %v3657_v23, %v2494_v5  ;;  %v3663_v41 = vpop.eup %3662  ;;  %v2431_v56 = vmul.f32 %v3659_v48, %v2430_v59  ;;  %vm2472_vm7 = vweird.f32 %v3661_v55 }
 0x36d   : > { %v3665_v58 = vpop.eup %3664  ;;  %2547 = vmatmul.bf16.vlgmr.msra.gmra.mxu0 %v2537_v21  ;;  %2561 = vmatmul.bf16.vlgmr.msra.gmra.mxu1 %v2537_v21  ;;  %vm2501_vm9 = vcmp.eq.f32.partialorder %v2500_v18, 8.507059e+37  ;;  %vm2438_vm13 = vcmp.eq.f32.partialorder %v2437_v32, 8.507059e+37  ;;  %v2440_v3 = vor.u32 1.1754944e-38, %v2439_v57  ;;  %vm2473_vm8 = vmor %vm2471_vm10, %vm2472_vm7  ;;  %v2478_v4 = vor.u32 1.1754944e-38, %v2477_v54 }
 0x36e   : > { %v2468_v2 = vsub.f32 1.0, %v2467_v19  ;;  %v2499_v39 = vsel %vm5792_vm6, %v3657_v23, %v2495_v25  ;;  %v2432_v22 = vadd.f32 %v3659_v48, %v2431_v56  ;;  %v2507_v42 = vmul.f32 %v3665_v58, %v5762_v8  ;;  %2575 = vmatmul.bf16.vlgmr.msra.gmra.mxu2 %v2537_v21  ;;  %2589 = vmatmul.bf16.vlgmr.msra.gmra.mxu3 %v2537_v21 }
 0x36f   : > { %v3667_v13 = vpop.eup %3666  ;;  %v2504_v15 = vsel %vm2501_vm9, %v2503_v44, %v2499_v39  ;;  %vm2476_vm14 = vcmp.eq.f32.partialorder %v2475_v10, 8.507059e+37  ;;  %vm2512_vm11 = vweird.f32 %v3665_v58  ;;  %v2517_v12 = vand.u32 2147483648, %v5762_v8 }
 0x370   : > { %v2469_v53 = vmul.f32 %v3661_v55, %v2468_v2  ;;  %v2436_v47 = vsel %vm2435_vm12, %v3659_v48, %v2432_v22  ;;  %v2508_v30 = vsub.f32 1.0, %v2507_v42  ;;  %v2529_v27 = vmul.f32 %v3667_v13, %v2504_v15 }
 0x371   : > { %v2441_v63 = vsel %vm2438_vm13, %v2440_v3, %v2436_v47  ;;  %vm2511_vm0 = vweird.f32 %v5762_v8  ;;  %v2518_v16 = vor.u32 1.1754944e-38, %v2517_v12 }
 0x372   : > { %v2470_v35 = vadd.f32 %v3661_v55, %v2469_v53  ;;  %v2524_v7 = vmul.f32 %v3663_v41, %v2441_v63  ;;  %v2531_v49 = vpack.c.bf16 %v2529_v27, %v2529_v27  ;;  %v2509_v61 = vmul.f32 %v3665_v58, %v2508_v30  ;;  %vm2513_vm1 = vmor %vm2511_vm0, %vm2512_vm11 }
 0x374   : > { %v2474_v28 = vsel %vm2473_vm8, %v3661_v55, %v2470_v35  ;;  %v2796_v36 = vsel %vm2795_vm2, %v2531_v49, %v5489_v6  ;;  %v2510_v23 = vadd.f32 %v3665_v58, %v2509_v61  ;;  %v2515_v6 = vand.u32 2147483647, %v5762_v8 }
 0x375   : > { %v2479_v17 = vsel %vm2476_vm14, %v2478_v4, %v2474_v28  ;;  %v2804_v37 = vunpack.c.l.bf16 %v2796_v36  ;;  %v2597_v44 = vunpack.c.l.b16 %v2531_v49 }
 0x376   : > { %v2522_v60 = vmul.f32 %v2479_v17, %v5450_v31  ;;  %v2514_v9 = vsel %vm2513_vm1, %v3665_v58, %v2510_v23  ;;  %vm2516_vm3 = vcmp.eq.f32.partialorder %v2515_v6, 8.507059e+37 }
 0x377   : > { %2806 = vst [vmem:[%s5906_s5] sm:$0xff] %v2804_v37  ;;  %v2519_v48 = vsel %vm2516_vm3, %v2518_v16, %v2514_v9 }
 0x378   : > { %v2526_v52 = vadd.f32 %v2524_v7, %v2522_v60 }
 0x37a   : > { %3668 = vtanh.f32 %v2526_v52  ;;  %v2799_v0 = vsel %vm2795_vm2, %v2526_v52, %v5450_v31 }
 0x37b   : > { %2813 = vst [vmem:[%s5907_s6 + $0x8] sm:$0xff] %v2799_v0 }
 0x380   : > { %v3669_v50 = vpop.eup %3668 }
 0x381   : > { %v2530_v33 = vmul.f32 %v3669_v50, %v2519_v48 }
 0x383   : > { %v2532_v24 = vpack.c.bf16 %v2530_v33, %v2530_v33 }
 0x385   : > { %v2598_v31 = vunpack.c.l.b16 %v2532_v24  ;;  %v2797_v46 = vsel %vm2795_vm2, %v2532_v24, %v5482_v43 }
 0x386   : > { %v2805_v55 = vunpack.c.l.bf16 %v2797_v46 }
 0x387   : > { %v2599_v5 = vpack.c.b16 %v2598_v31, %v2597_v44 }
 0x388   : > { %2807 = vst [vmem:[%s5906_s5 + $0x8] sm:$0xff] %v2805_v55 }
 0x389   : > { %2609 = vmatmul.bf16.vlgmr.msrb.gmra.mxu0 %v2599_v5  ;;  %2623 = vmatmul.bf16.vlgmr.msrb.gmra.mxu1 %v2599_v5 }
 0x38a   : > { %2637 = vmatmul.bf16.vlgmr.msrb.gmra.mxu2 %v2599_v5  ;;  %2651 = vmatmul.bf16.vlgmr.msrb.gmra.mxu3 %v2599_v5 }
 0x3ea   : > { %v2548_v8 = vpop.f32.mrf.mxu0  ;;  %v2562_v59 = vpop.f32.mrf.mxu1 }
 0x3f1   : > { %v2590_v19 = vpop.f32.mrf.mxu3  ;;  %v2576_v32 = vpop.f32.mrf.mxu2 }
 0x3f2   : > { %v2550_v38 = vpop.f32.mrf.mxu0  ;;  %v2564_v40 = vpop.f32.mrf.mxu1 }
 0x3f9   : > { %v2592_v57 = vpop.f32.mrf.mxu3  ;;  %v2578_v43 = vpop.f32.mrf.mxu2 }
 0x406   : > { %v2610_v25 = vpop.f32.mrf.mxu0  ;;  %v2624_v18 = vpop.f32.mrf.mxu1 }
 0x407   : > { %v2611_v41 = vadd.f32 %v2610_v25, %v2548_v8  ;;  %v2625_v11 = vadd.f32 %v2624_v18, %v2562_v59 }
 0x409   : > { %v2657_v2 = vadd.f32 %v2611_v41, %v6461_v26  ;;  %v2658_v56 = vadd.f32 %v2625_v11, %v6462_v14 }
 0x40b   : > { %v3315_v21 = vmul.f32 -1.442695, %v2657_v2  ;;  %v3317_v58 = vmul.f32 -1.442695, %v2658_v56 }
 0x40d   : > { %3670 = vpow2.f32 %v3315_v21  ;;  %v2652_v54 = vpop.f32.mrf.mxu3  ;;  %v2638_v3 = vpop.f32.mrf.mxu2 }
 0x40e   : > { %3672 = vpow2.f32 %v3317_v58  ;;  %v2653_v10 = vadd.f32 %v2652_v54, %v2590_v19  ;;  %v2612_v39 = vpop.f32.mrf.mxu0  ;;  %v2626_v13 = vpop.f32.mrf.mxu1  ;;  %v2639_v49 = vadd.f32 %v2638_v3, %v2576_v32 }
 0x40f   : > { %v2613_v53 = vadd.f32 %v2612_v39, %v2550_v38  ;;  %v2627_v22 = vadd.f32 %v2626_v13, %v2564_v40 }
 0x410   : > { %v2660_v42 = vadd.f32 %v2653_v10, %v6463_v34  ;;  %v2659_v60 = vadd.f32 %v2639_v49, %v6464_v62 }
 0x411   : > { %v2661_v15 = vadd.f32 %v2613_v53, %v6461_v26  ;;  %v2662_v47 = vadd.f32 %v2627_v22, %v6462_v14 }
 0x412   : > { %v3319_v35 = vmul.f32 -1.442695, %v2660_v42 }
 0x413   : > { %v3671_v30 = vpop.eup %3670  ;;  %v3316_v27 = vmul.f32 -1.442695, %v2661_v15  ;;  %v3318_v28 = vmul.f32 -1.442695, %v2662_v47 }
 0x414   : > { %v3673_v4 = vpop.eup %3672  ;;  %v2671_v63 = vadd.f32 1.0, %v3671_v30  ;;  %3674 = vpow2.f32 %v3319_v35 }
 0x415   : > { %v2709_v7 = vadd.f32 1.0, %v3673_v4  ;;  %3676 = vpow2.f32 %v3316_v27  ;;  %v2654_v17 = vpop.f32.mrf.mxu3  ;;  %v2640_v14 = vpop.f32.mrf.mxu2 }
 0x416   : > { %3678 = vrcp.f32 %v2671_v63  ;;  %v2655_v37 = vadd.f32 %v2654_v17, %v2592_v57  ;;  %v2641_v16 = vadd.f32 %v2640_v14, %v2578_v43  ;;  %v2682_v31 = vand.u32 2147483647, %v2671_v63 }
 0x417   : > { %3680 = vrcp.f32 %v2709_v7  ;;  %v2722_v44 = vand.u32 2147483648, %v2709_v7  ;;  %v2684_v46 = vand.u32 2147483648, %v2671_v63  ;;  %v2720_v5 = vand.u32 2147483647, %v2709_v7 }
 0x418   : > { %3682 = vpow2.f32 %v3318_v28  ;;  %v2664_v33 = vadd.f32 %v2655_v37, %v6463_v34  ;;  %vm2678_vm6 = vweird.f32 %v2671_v63  ;;  %vm2716_vm15 = vweird.f32 %v2709_v7 }
 0x419   : > { %v2663_v38 = vadd.f32 %v2641_v16, %v6464_v62  ;;  %vm2683_vm9 = vcmp.eq.f32.partialorder %v2682_v31, 8.507059e+37  ;;  %v2685_v32 = vor.u32 1.1754944e-38, %v2684_v46  ;;  %v2723_v43 = vor.u32 1.1754944e-38, %v2722_v44 }
 0x41a   : > { %v3675_v61 = vpop.eup %3674  ;;  %v3320_v40 = vmul.f32 -1.442695, %v2664_v33  ;;  %vm2721_vm12 = vcmp.eq.f32.partialorder %v2720_v5, 8.507059e+37 }
 0x41b   : > { %v3677_v26 = vpop.eup %3676  ;;  %v5834_v36 = vadd.f32 1.0, %v3675_v61 }
 0x41c   : > { %v3679_v52 = vpop.eup %3678  ;;  %v5836_v23 = vadd.f32 1.0, %v3677_v26 }
 0x41d   : > { %v3681_v0 = vpop.eup %3680  ;;  %v2674_v12 = vmul.f32 %v3679_v52, %v2671_v63  ;;  %3684 = vrcp.f32 %v5834_v36  ;;  %vm2679_vm4 = vweird.f32 %v3679_v52  ;;  %vm2756_vm13 = vweird.f32 %v5834_v36 }
 0x41e   : > { %v3683_v6 = vpop.eup %3682  ;;  %v2712_v9 = vmul.f32 %v3681_v0, %v2709_v7  ;;  %3686 = vtanh.f32 %v2659_v60  ;;  %vm2717_vm5 = vweird.f32 %v3681_v0  ;;  %vm2680_vm7 = vmor %vm2678_vm6, %vm2679_vm4  ;;  %v2762_v22 = vand.u32 2147483648, %v5834_v36 }
 0x41f   : > { %v2675_v50 = vsub.f32 1.0, %v2674_v12  ;;  %3688 = vrcp.f32 %v5836_v23  ;;  %v5840_v48 = vadd.f32 1.0, %v3683_v6  ;;  %vm2718_vm10 = vmor %vm2716_vm15, %vm2717_vm5  ;;  %v2697_v42 = vand.u32 2147483647, %v5836_v23 }
 0x420   : > { %v2713_v24 = vsub.f32 1.0, %v2712_v9  ;;  %v2699_v3 = vand.u32 2147483648, %v5836_v23  ;;  %v2760_v61 = vand.u32 2147483647, %v5834_v36  ;;  %vm2693_vm1 = vweird.f32 %v5836_v23 }
 0x421   : > { %v2676_v55 = vmul.f32 %v3679_v52, %v2675_v50  ;;  %3690 = vrcp.f32 %v5840_v48  ;;  %v2737_v4 = vand.u32 2147483648, %v5840_v48  ;;  %v2735_v63 = vand.u32 2147483647, %v5840_v48 }
 0x422   : > { %v2714_v8 = vmul.f32 %v3681_v0, %v2713_v24  ;;  %3692 = vpow2.f32 %v3320_v40  ;;  %vm2731_vm3 = vweird.f32 %v5840_v48  ;;  %vm2698_vm5 = vcmp.eq.f32.partialorder %v2697_v42, 8.507059e+37 }
 0x423   : > { %v5844_v59 = vpop.eup %3684  ;;  %v2677_v19 = vadd.f32 %v3679_v52, %v2676_v55  ;;  %3694 = vtanh.f32 %v2663_v38  ;;  %v2763_v12 = vor.u32 1.1754944e-38, %v2762_v22  ;;  %vm2736_vm15 = vcmp.eq.f32.partialorder %v2735_v63, 8.507059e+37 }
 0x424   : > { %v3687_v34 = vpop.eup %3686  ;;  %v2715_v57 = vadd.f32 %v3681_v0, %v2714_v8  ;;  %v2752_v25 = vmul.f32 %v5844_v59, %v5834_v36  ;;  %vm2757_vm8 = vweird.f32 %v5844_v59 }
 0x425   : > { %v3689_v18 = vpop.eup %3688  ;;  %v2681_v41 = vsel %vm2680_vm7, %v3679_v52, %v2677_v19  ;;  %vm5869_vm0 = vmor %vm2756_vm13, %vm2757_vm8  ;;  %v2738_v52 = vor.u32 1.1754944e-38, %v2737_v4  ;;  %vm2761_vm7 = vcmp.eq.f32.partialorder %v2760_v61, 8.507059e+37 }
 0x426   : > { %v2686_v11 = vsel %vm2683_vm9, %v2685_v32, %v2681_v41  ;;  %v2719_v2 = vsel %vm2718_vm10, %v3681_v0, %v2715_v57  ;;  %v2753_v56 = vsub.f32 1.0, %v2752_v25  ;;  %v2689_v62 = vmul.f32 %v3689_v18, %v5836_v23 }
 0x427   : > { %v3691_v21 = vpop.eup %3690  ;;  %v2724_v58 = vsel %vm2721_vm12, %v2723_v43, %v2719_v2  ;;  %v2783_v54 = vmul.f32 %v3687_v34, %v2686_v11  ;;  %vm2694_vm14 = vweird.f32 %v3689_v18 }
 0x428   : > { %v2781_v10 = vmul.f32 %v2724_v58, %v5707_v20  ;;  %v2754_v39 = vmul.f32 %v5844_v59, %v2753_v56  ;;  %v2690_v13 = vsub.f32 1.0, %v2689_v62  ;;  %v2727_v53 = vmul.f32 %v3691_v21, %v5840_v48  ;;  %v3693_v30 = vpop.eup %3692  ;;  %vm2695_vm4 = vmor %vm2693_vm1, %vm2694_vm14 }
 0x429   : > { %vm2732_vm11 = vweird.f32 %v3691_v21  ;;  %v3695_v49 = vpop.eup %3694  ;;  %v2750_v26 = vadd.f32 1.0, %v3693_v30 }
 0x42a   : > { %v2785_v15 = vadd.f32 %v2783_v54, %v2781_v10  ;;  %v2728_v47 = vsub.f32 1.0, %v2727_v53  ;;  %v2691_v35 = vmul.f32 %v3689_v18, %v2690_v13  ;;  %v2755_v27 = vadd.f32 %v5844_v59, %v2754_v39  ;;  %vm2733_vm6 = vmor %vm2731_vm3, %vm2732_vm11 }
 0x42b   : > { %v2777_v19 = vand.u32 2147483648, %v2750_v26  ;;  %vm2771_vm10 = vweird.f32 %v2750_v26 }
 0x42c   : > { %3696 = vtanh.f32 %v2785_v15  ;;  %v2802_v28 = vsel %vm2795_vm2, %v2785_v15, %v5707_v20  ;;  %v2729_v7 = vmul.f32 %v3691_v21, %v2728_v47  ;;  %v2692_v60 = vadd.f32 %v3689_v18, %v2691_v35 }
 0x42d   : > { %3323 = vst [vmem:[%s5907_s6 + $0x10] sm:$0xff] %v2802_v28  ;;  %v2700_v20 = vor.u32 1.1754944e-38, %v2699_v3  ;;  %v2759_v37 = vsel %vm5869_vm0, %v5844_v59, %v2755_v27  ;;  %3698 = vrcp.f32 %v2750_v26 }
 0x42e   : > { %v2730_v14 = vadd.f32 %v3691_v21, %v2729_v7  ;;  %v2696_v0 = vsel %vm2695_vm4, %v3689_v18, %v2692_v60  ;;  %v2764_v50 = vsel %vm2761_vm7, %v2763_v12, %v2759_v37 }
 0x42f   : > { %v2701_v36 = vsel %vm2698_vm5, %v2700_v20, %v2696_v0 }
 0x430   : > { %v2734_v6 = vsel %vm2733_vm6, %v3691_v21, %v2730_v14  ;;  %v2784_v9 = vmul.f32 %v3695_v49, %v2701_v36 }
 0x431   : > { %v2739_v23 = vsel %vm2736_vm15, %v2738_v52, %v2734_v6 }
 0x432   : > { %v3697_v16 = vpop.eup %3696  ;;  %v2782_v48 = vmul.f32 %v2739_v23, %v5724_v51 }
 0x433   : > { %v2789_v33 = vmul.f32 %v3697_v16, %v2764_v50  ;;  %v3699_v44 = vpop.eup %3698 }
 0x434   : > { %v2786_v24 = vadd.f32 %v2784_v9, %v2782_v48  ;;  %v2767_v55 = vmul.f32 %v3699_v44, %v2750_v26  ;;  %vm2772_vm9 = vweird.f32 %v3699_v44 }
 0x435   : > { %v2791_v31 = vpack.c.bf16 %v2789_v33, %v2789_v33  ;;  %vm2773_vm12 = vmor %vm2771_vm10, %vm2772_vm9 }
 0x436   : > { %v2803_v46 = vsel %vm2795_vm2, %v2786_v24, %v5724_v51  ;;  %3700 = vtanh.f32 %v2786_v24  ;;  %v2768_v59 = vsub.f32 1.0, %v2767_v55  ;;  %v2775_v51 = vand.u32 2147483647, %v2750_v26 }
 0x437   : > { %v2800_v5 = vsel %vm2795_vm2, %v2791_v31, %v5769_v45  ;;  %3324 = vst [vmem:[%s5907_s6 + $0x18] sm:$0xff] %v2803_v46  ;;  %v2778_v45 = vor.u32 1.1754944e-38, %v2777_v19 }
 0x438   : > { %v2808_v8 = vunpack.c.l.bf16 %v2800_v5  ;;  %v2769_v38 = vmul.f32 %v3699_v44, %v2768_v59  ;;  %vm2776_vm13 = vcmp.eq.f32.partialorder %v2775_v51, 8.507059e+37 }
 0x43a   : > { %3321 = vst [vmem:[%s5906_s5 + $0x10] sm:$0xff] %v2808_v8  ;;  %v2770_v40 = vadd.f32 %v3699_v44, %v2769_v38 }
 0x43c   : > { %v3701_v34 = vpop.eup %3700  ;;  %v2774_v32 = vsel %vm2773_vm12, %v3699_v44, %v2770_v40 }
 0x43d   : > { %v2779_v57 = vsel %vm2776_vm13, %v2778_v45, %v2774_v32 }
 0x43e   : > { %v2790_v25 = vmul.f32 %v3701_v34, %v2779_v57 }
 0x440   : > { %v2792_v18 = vpack.c.bf16 %v2790_v25, %v2790_v25 }
 0x442   : > { %v2801_v43 = vsel %vm2795_vm2, %v2792_v18, %v5782_v1 }
 0x443   : > { %v2809_v41 = vunpack.c.l.bf16 %v2801_v43 }
 0x445   : > { %3322 = vst [vmem:[%s5906_s5 + $0x18] sm:$0xff] %v2809_v41 }
 0x446 PF: > { %s18_s21 = sadd.s32 1, %s3742_s21  }
 0x447   : > { %p15_p12 = scmp.ge.s32.totalorder %s18_s21, 4  }
 0x449   :  { %17 = sbr.rel (!%p15_p12) target bundleno = 1 (0x1), region = 88 }
 0x44e   :  { %2833 = vsyncpa [#allocation3], 1 }
 0x44f   :  { %2835 = vsyncpa [#allocation3 + $0x1], 1 }

// kernel: _seq2seq_jit.5
= control target key start
LH: loop header
LB: loop body
LE: loop exit
PB: predicated region body
PF: predicated region fallthrough
CT: control target
= control target key end

     0   :  { %s3509_s21 = smov [#allocation6]   ;;  %s4385_s0 = inlined_call_operand.vmem [shape: s32[4], index: 0, kind: input, shape index: {}]   ;;  %s4386_s1 = inlined_call_operand.vmem [shape: bf16[4,16,128], index: 1, kind: input, shape index: {}]   ;;  %s4387_s2 = inlined_call_operand.vmem [shape: f32[2,16,128], index: 2, kind: input, shape index: {}]   ;;  %s4388_s3 = inlined_call_operand.vmem [shape: f32[2,16,128], index: 3, kind: input, shape index: {}]   ;;  %s4389_s4 = inlined_call_operand.vmem [shape: bf16[128,128], index: 4, kind: input, shape index: {}]   ;;  %s4390_s5 = inlined_call_operand.vmem [shape: bf16[128,512], index: 5, kind: input, shape index: {}]   ;;  %s4391_s6 = inlined_call_operand.vmem [shape: bf16[128,512], index: 6, kind: input, shape index: {}]   ;;  %s4392_s7 = inlined_call_operand.hbm [shape: f32[1,512], index: 7, kind: input, shape index: {}]   ;;  %s4393_s8 = inlined_call_operand.hbm [shape: bf16[128,512], index: 8, kind: input, shape index: {}]   ;;  %s4394_s9 = inlined_call_operand.hbm [shape: bf16[128,512], index: 9, kind: input, shape index: {}]   ;;  %s4395_s10 = inlined_call_operand.hbm [shape: f32[1,512], index: 10, kind: input, shape index: {}]   ;;  %s4396_s11 = inlined_call_operand.vmem [shape: bf16[128,128], index: 11, kind: input, shape index: {}]   ;;  %s4397_s12 = inlined_call_operand.vmem [shape: f32[1,128], index: 12, kind: input, shape index: {}]   ;;  %s4398_s13 = inlined_call_operand.hbm [shape: bf16[128,128], index: 13, kind: input, shape index: {}]   ;;  %s4399_s14 = inlined_call_operand.hbm [shape: f32[1,128], index: 14, kind: input, shape index: {}]   ;;  %s4400_s15 = inlined_call_operand.vmem [shape: f32[4,16,128], index: 15, kind: output, shape index: {}]  }
   0x1   :  { %4402 = sst [smem:[#allocation23_spill]] %s4392_s7  ;;  %s21_s20 = sshll.u32 %s4385_s0, 4  ;;  %s22_s20 = int_to_ptr.vmem [resolvable:$true] %s21_s20 }
   0x2   :  { %4403 = sst [smem:[#allocation24_spill]] %s4393_s8 }
   0x3   :  { %4404 = sst [smem:[#allocation25_spill]] %s4395_s10 }
   0x4   :  { %24 = dma.vmem_to_smem %s22_s20, 16, %s3509_s21, [#allocation5] }
   0x5   :  { %3487 = dma.done.wait [#allocation5], 16 }
   0x6   :  { %3488 = vsyncadd [#allocation5], 4294967280 }
   0x7   :  { %27 = sfence }
   0x8   :  { %28 = vsyncpa [#allocation8], 0 }
   0x9   :  { %29 = vsyncpa [#allocation10], 0 }
   0xa   :  { %30 = vsyncpa [#allocation13], 0 }
   0xb   :  { %31 = vsyncpa [#allocation16], 0  ;;  %s3604_s22 = smov 0  }
   0xc LB: > { %4405 = sst [smem:[#allocation22_spill]] %s3507_s22  ;;  %s3613_s25 = sadd.s32 4294967295, %s3507_s22   ;;  %s3507_s22 = sphi %s3604_s22, %s37_s22  }
   0xd   : > { %s4406_s8 = sld [smem:[#allocation24_spill]]  ;;  %p2338_p0 = scmp.ge.s32.totalorder %s3507_s22, 1 }
   0xe   : > { %p367_p1 = scmp.lt.s32.totalorder %s3507_s22, 5  ;;  %p2339_p2 = scmp.ne.s32.totalorder %s3613_s25, 0 }
   0xf   : > { %p3193_p3 = scmp.eq.s32.totalorder %s3613_s25, 0  ;;  %s3510_s27 = smov [#allocation9]  }
  0x10   : > { %p3619_p4 = pnand %p2338_p0, %p367_p1  ;;  %s407_s28 = sshll.u32 %s3510_s27, 4  ;;  %s408_s28 = int_to_ptr.vmem [resolvable:$true] %s407_s28 }
  0x11   : > { %s4408_s10 = sld [smem:[#allocation25_spill]]  ;;  %s3511_s18 = smov [#allocation12]  }
  0x12   : > { %p3174_p5 = pneg %p3619_p4  ;;  %s436_s19 = sshll.u32 %s3511_s18, 4  ;;  %s437_s19 = int_to_ptr.vmem [resolvable:$true] %s436_s19 }
  0x13   : > { %s405_s0 = sshll.u32 %s4406_s8, 4  ;;  %s4410_s7 = sld [smem:[#allocation23_spill]]  ;;  %s406_s0 = int_to_ptr.hbm [resolvable:$true] %s405_s0 }
  0x14   : > { %p3630_p6 = pnand %p3193_p3, %p3174_p5  ;;  %s3512_s24 = smov 256  }
  0x15   : > { %s3513_s27 = smov 16   ;;  %s3514_s29 = smov [#allocation7]  }
  0x16   : > { %3180 = dma.hbm_to_vmem [thread:$0]  (!%p3630_p6), %s406_s0, 4096, %s408_s28, [#allocation10], %s3512_s24, %s3512_s24, %s3513_s27  }
  0x17   : > { %s434_s16 = sshll.u32 %s4408_s10, 4  ;;  %s396_s30 = sshll.u32 %s3514_s29, 4  ;;  %s435_s16 = int_to_ptr.hbm [resolvable:$true] %s434_s16  ;;  %s397_s30 = int_to_ptr.vmem [resolvable:$true] %s396_s30 }
  0x18   : > { %3186 = dma.hbm_to_vmem [thread:$0]  (!%p3630_p6), %s435_s16, 64, %s437_s19, [#allocation13]  }
  0x19   : > { %s394_s23 = sshll.u32 %s4410_s7, 4  ;;  %s419_s18 = sshll.u32 %s4394_s9, 4  ;;  %s395_s23 = int_to_ptr.hbm [resolvable:$true] %s394_s23  ;;  %s420_s18 = int_to_ptr.hbm [resolvable:$true] %s419_s18 }
  0x1a   : > { %3177 = dma.hbm_to_vmem [thread:$0]  (!%p3630_p6), %s395_s23, 64, %s397_s30, [#allocation8]  }
  0x1b   : > { %s451_s7 = sshll.u32 %s4398_s13, 4  ;;  %s3515_s22 = smov [#allocation11]   ;;  %s452_s7 = int_to_ptr.hbm [resolvable:$true] %s451_s7 }
  0x1c   : > { %s421_s0 = sshll.u32 %s3515_s22, 4  ;;  %s3516_s28 = smov [#allocation14]   ;;  %s422_s0 = int_to_ptr.vmem [resolvable:$true] %s421_s0 }
  0x1d   : > { %3183 = dma.hbm_to_vmem [thread:$0]  (!%p3630_p6), %s420_s18, 4096, %s422_s0, [#allocation10], %s3512_s24, %s3512_s24, %s3513_s27  }
  0x1e   : > { %s453_s16 = sshll.u32 %s3516_s28, 4  ;;  %s3517_s8 = smov 64   ;;  %s454_s16 = int_to_ptr.vmem [resolvable:$true] %s453_s16 }
  0x1f   : > { %s3518_s10 = smov 4   ;;  %s466_s29 = sshll.u32 %s4399_s14, 4  ;;  %s467_s29 = int_to_ptr.hbm [resolvable:$true] %s466_s29 }
  0x20   : > { %3189 = dma.hbm_to_vmem [thread:$0]  (!%p3630_p6), %s452_s7, 1024, %s454_s16, [#allocation13], %s3517_s8, %s3517_s8, %s3518_s10  }
  0x21   : > { %s3519_s30 = smov [#allocation15]   ;;  %489 = sbr.rel (%p3619_p4) target bundleno = 1177 (0x499), region = 76 }
  0x22   : > { %s468_s20 = sshll.u32 %s3519_s30, 4  ;;  %s469_s20 = int_to_ptr.vmem [resolvable:$true] %s468_s20 }
  0x23   : > { %3192 = dma.hbm_to_vmem [thread:$0]  (!%p3630_p6), %s467_s29, 16, %s469_s20, [#allocation16]  }
  0x26   : > { %3490 = dma.done.wait (%p3193_p3), [#allocation8], 64  }
  0x27   : > { %3492 = vsyncadd (%p3193_p3), [#allocation8], 4294967232 }
  0x28   : > { %3494 = dma.done.wait (%p3193_p3), [#allocation10], 8192  }
  0x29   : > { %3496 = vsyncadd (%p3193_p3), [#allocation10], 4294959104 }
  0x2a   : > { %3498 = dma.done.wait (%p3193_p3), [#allocation13], 1088  }
  0x2b   : > { %3500 = vsyncadd (%p3193_p3), [#allocation13], 4294966208 }
  0x2c   : > { %3502 = dma.done.wait (%p3193_p3), [#allocation16], 16  }
  0x2d   : > { %3504 = vsyncadd (%p3193_p3), [#allocation16], 4294967280  ;;  %p561_p7 = scmp.lt.s32.totalorder %s3613_s25, 3 }
  0x2e   : > { %574 = sbr.rel (%p2339_p2) target bundleno = 61 (0x3d), region = 104 }
  0x2f   : > { %s562_s7 = scalar_select %p561_p7, %s3613_s25, 3 }
  0x31   : > { %s2990_s22 = sshll.u32 %s562_s7, 3  ;;  %s2991_s26 = sshll.u32 %s562_s7, 4 }
  0x32   : > { %s565_s27 = scalar_lea.vmem %s4386_s1, %s2990_s22  ;;  %s3684_s0 = scalar_lea.vmem %s4400_s15, %s2991_s26 }
  0x33   : > { %v575_v0 = vld [vmem:[%s4387_s2] sm:$0xff]  ;;  %v576_v1 = vld [vmem:[%s4387_s2 + $0x8] sm:$0xff]  ;;  %v577_v2 = vld [vmem:[%s4387_s2 + $0x10] sm:$0xff] }
  0x34   : > { %579 = vst [vmem:[#allocation2 + $0x10] sm:$0xff] %v575_v0  ;;  %v578_v3 = vld [vmem:[%s4387_s2 + $0x18] sm:$0xff]  ;;  %v583_v4 = vld [vmem:[%s4388_s3] sm:$0xff]  ;;  %v584_v5 = vld [vmem:[%s4388_s3 + $0x8] sm:$0xff] }
  0x35   : > { %580 = vst [vmem:[#allocation2] sm:$0xff] %v576_v1  ;;  %v585_v6 = vld [vmem:[%s4388_s3 + $0x10] sm:$0xff]  ;;  %v586_v7 = vld [vmem:[%s4388_s3 + $0x18] sm:$0xff]  ;;  %v591_v8 = vld [vmem:[%s565_s27] sm:$0xff]  }
  0x36   : > { %581 = vst [vmem:[#allocation2 + $0x18] sm:$0xff] %v577_v2 }
  0x37   : > { %582 = vst [vmem:[#allocation2 + $0x8] sm:$0xff] %v578_v3 }
  0x38   : > { %587 = vst [vmem:[#allocation3] sm:$0xff] %v583_v4 }
  0x39   : > { %588 = vst [vmem:[#allocation3 + $0x18] sm:$0xff] %v584_v5 }
  0x3a   : > { %589 = vst [vmem:[#allocation3 + $0x8] sm:$0xff] %v585_v6 }
  0x3b   : > { %590 = vst [vmem:[#allocation3 + $0x10] sm:$0xff] %v586_v7 }
  0x3c   : > { %593 = vst [vmem:[#allocation4] sm:$0xff] %v591_v8  }
  0x3d PF: > { %p2358_p8 = scmp.le.s32.totalorder %s3613_s25, 0 }
  0x3e   : > { %s2359_s28 = sadd.s32 (!%p2358_p8), 4294967295, %s3613_s25 }
  0x3f   : > { %598 = sbr.rel (%p2358_p8) target bundleno = 78 (0x4e), region = 108  ;;  %s600_s16 = sld [smem:[#allocation6 + %s2359_s28]] (!%p2358_p8) }
  0x44   : > { %v602_v9 = vld [vmem:[%s565_s27] sm:$0xf]  ;;  %v603_v11 = vld [vmem:[%s565_s27 + $0x4] sm:$0xf] }
  0x45   : > { %p601_p9 = scmp.eq.s32.totalorder %s600_s16, 1  ;;  %v604_v10 = vld [vmem:[#allocation4] sm:$0xf]  ;;  %v605_v12 = vld [vmem:[#allocation4 + $0x4] sm:$0xf] }
  0x47   : > { %s606_s8 = scalar_select %p601_p9, 1, 0 }
  0x49   : > { %v607_v13 = vstv %s606_s8 }
  0x4a   : > { %vm608_vm0 = vcmp.eq.s32.totalorder %v607_v13, 1 }
  0x4b   : > { %v609_v14 = vsel %vm608_vm0, %v602_v9, %v604_v10  ;;  %v610_v15 = vsel %vm608_vm0, %v603_v11, %v605_v12 }
  0x4c   : > { %611 = vst [vmem:[#allocation4] sm:$0xf] %v609_v14 }
  0x4d   : > { %612 = vst [vmem:[#allocation4 + $0x4] sm:$0xf] %v610_v15 }
  0x4e PF: > { %v2474_v16 = vld [vmem:[%s4391_s6 + $0xe0] sm:$0xf]  ;;  %v3055_v17 = vld [vmem:[%s4391_s6 + $0xec] sm:$0xf0]  ;;  %v3053_v18 = vld [vmem:[%s4391_s6 + $0xe4] sm:$0xf] }
  0x4f   : > { %v2475_v19 = vor.u32 %v3055_v17, %v2474_v16  ;;  %v2476_v20 = vld [vmem:[%s4391_s6 + $0xf0] sm:$0xf0]  ;;  %v2482_v21 = vld [vmem:[%s4391_s6 + $0xe8] sm:$0xf]  ;;  %v3056_v22 = vld [vmem:[%s4391_s6 + $0xf4] sm:$0xf0] }
  0x50   : > { %v2479_v23 = vor.u32 %v3053_v18, %v2476_v20  ;;  %v2483_v24 = vor.u32 %v3056_v22, %v2482_v21  ;;  %v2458_v25 = vld [vmem:[%s4391_s6 + $0xc0] sm:$0xf]  ;;  %v3051_v26 = vld [vmem:[%s4391_s6 + $0xcc] sm:$0xf0]  ;;  %v3049_v27 = vld [vmem:[%s4391_s6 + $0xc4] sm:$0xf] }
  0x51   : > { %851 = vmatpush.bf16.msra.mxu3 %v2475_v19  ;;  %v2459_v28 = vor.u32 %v3051_v26, %v2458_v25  ;;  %v2460_v29 = vld [vmem:[%s4391_s6 + $0xd0] sm:$0xf0]  ;;  %v2466_v30 = vld [vmem:[%s4391_s6 + $0xc8] sm:$0xf]  ;;  %v3052_v31 = vld [vmem:[%s4391_s6 + $0xd4] sm:$0xf0] }
  0x52   : > { %865 = vmatpush.bf16.msra.mxu1 %v2479_v23  ;;  %879 = vmatpush.bf16.msra.mxu2 %v2483_v24  ;;  %v2463_v32 = vor.u32 %v3049_v27, %v2460_v29  ;;  %v2467_v33 = vor.u32 %v3052_v31, %v2466_v30  ;;  %v2442_v34 = vld [vmem:[%s4391_s6 + $0xa0] sm:$0xf]  ;;  %v3047_v35 = vld [vmem:[%s4391_s6 + $0xac] sm:$0xf0]  ;;  %v3045_v36 = vld [vmem:[%s4391_s6 + $0xa4] sm:$0xf] }
  0x53   : > { %v2444_v37 = vld [vmem:[%s4391_s6 + $0xb0] sm:$0xf0]  ;;  %v2450_v38 = vld [vmem:[%s4391_s6 + $0xa8] sm:$0xf]  ;;  %v3048_v39 = vld [vmem:[%s4391_s6 + $0xb4] sm:$0xf0]  ;;  %v2443_v42 = vor.u32 %v3047_v35, %v2442_v34 }
  0x54   : > { %v2606_v40 = vld [vmem:[%s4390_s5 + $0xe0] sm:$0xf]  ;;  %v3023_v41 = vld [vmem:[%s4390_s5 + $0xec] sm:$0xf0]  ;;  %v2447_v46 = vor.u32 %v3045_v36, %v2444_v37  ;;  %v2451_v47 = vor.u32 %v3048_v39, %v2450_v38  ;;  %v3041_v48 = vld [vmem:[%s4391_s6 + $0x84] sm:$0xf] }
  0x55   : > { %852 = vmatpush.bf16.msra.mxu3 %v2459_v28  ;;  %v2607_v43 = vor.u32 %v3023_v41, %v2606_v40  ;;  %v2426_v44 = vld [vmem:[%s4391_s6 + $0x80] sm:$0xf]  ;;  %v3043_v45 = vld [vmem:[%s4391_s6 + $0x8c] sm:$0xf0]  ;;  %v2428_v49 = vld [vmem:[%s4391_s6 + $0x90] sm:$0xf0] }
  0x56   : > { %866 = vmatpush.bf16.msra.mxu1 %v2463_v32  ;;  %880 = vmatpush.bf16.msra.mxu2 %v2467_v33  ;;  %v2590_v50 = vld [vmem:[%s4390_s5 + $0xc0] sm:$0xf]  ;;  %v2434_v51 = vld [vmem:[%s4391_s6 + $0x88] sm:$0xf]  ;;  %v3044_v52 = vld [vmem:[%s4391_s6 + $0x94] sm:$0xf0]  ;;  %v2427_v55 = vor.u32 %v3043_v45, %v2426_v44  ;;  %v2431_v58 = vor.u32 %v3041_v48, %v2428_v49 }
  0x57   : > { %1073 = vmatpush.bf16.msra.mxu0 %v2607_v43  ;;  %v3019_v53 = vld [vmem:[%s4390_s5 + $0xcc] sm:$0xf0]  ;;  %v2574_v56 = vld [vmem:[%s4390_s5 + $0xa0] sm:$0xf]  ;;  %v2435_v59 = vor.u32 %v3044_v52, %v2434_v51  ;;  %v3037_v62 = vld [vmem:[%s4391_s6 + $0x64] sm:$0xf] }
  0x58   : > { %v2591_v54 = vor.u32 %v3019_v53, %v2590_v50  ;;  %v3015_v57 = vld [vmem:[%s4390_s5 + $0xac] sm:$0xf0]  ;;  %v2410_v60 = vld [vmem:[%s4391_s6 + $0x60] sm:$0xf]  ;;  %v2412_v63 = vld [vmem:[%s4391_s6 + $0x70] sm:$0xf0] }
  0x59   : > { %853 = vmatpush.bf16.msra.mxu3 %v2443_v42  ;;  %v3039_v61 = vld [vmem:[%s4391_s6 + $0x6c] sm:$0xf0]  ;;  %v2418_v0 = vld [vmem:[%s4391_s6 + $0x68] sm:$0xf]  ;;  %v3040_v1 = vld [vmem:[%s4391_s6 + $0x74] sm:$0xf0]  ;;  %v2575_v2 = vor.u32 %v3015_v57, %v2574_v56  ;;  %v2415_v6 = vor.u32 %v3037_v62, %v2412_v63 }
  0x5a   : > { %867 = vmatpush.bf16.msra.mxu1 %v2447_v46  ;;  %881 = vmatpush.bf16.msra.mxu2 %v2451_v47  ;;  %v2558_v3 = vld [vmem:[%s4390_s5 + $0x80] sm:$0xf]  ;;  %v3011_v4 = vld [vmem:[%s4390_s5 + $0x8c] sm:$0xf0]  ;;  %v2411_v5 = vor.u32 %v3039_v61, %v2410_v60  ;;  %v2419_v7 = vor.u32 %v3040_v1, %v2418_v0  ;;  %v3033_v10 = vld [vmem:[%s4391_s6 + $0x44] sm:$0xf] }
  0x5b   : > { %1074 = vmatpush.bf16.msra.mxu0 %v2591_v54  ;;  %v2394_v8 = vld [vmem:[%s4391_s6 + $0x40] sm:$0xf]  ;;  %v3035_v9 = vld [vmem:[%s4391_s6 + $0x4c] sm:$0xf0]  ;;  %v2396_v11 = vld [vmem:[%s4391_s6 + $0x50] sm:$0xf0]  ;;  %v2559_v14 = vor.u32 %v3011_v4, %v2558_v3 }
  0x5c   : > { %v2402_v12 = vld [vmem:[%s4391_s6 + $0x48] sm:$0xf]  ;;  %v3036_v13 = vld [vmem:[%s4391_s6 + $0x54] sm:$0xf0]  ;;  %v2542_v15 = vld [vmem:[%s4390_s5 + $0x60] sm:$0xf]  ;;  %v2395_v17 = vor.u32 %v3035_v9, %v2394_v8  ;;  %v2399_v18 = vor.u32 %v3033_v10, %v2396_v11 }
  0x5d   : > { %854 = vmatpush.bf16.msra.mxu3 %v2427_v55  ;;  %v3007_v16 = vld [vmem:[%s4390_s5 + $0x6c] sm:$0xf0]  ;;  %v2403_v19 = vor.u32 %v3036_v13, %v2402_v12  ;;  %v2378_v20 = vld [vmem:[%s4391_s6 + $0x20] sm:$0xf]  ;;  %v3029_v22 = vld [vmem:[%s4391_s6 + $0x24] sm:$0xf] }
  0x5e   : > { %868 = vmatpush.bf16.msra.mxu1 %v2431_v58  ;;  %882 = vmatpush.bf16.msra.mxu2 %v2435_v59  ;;  %v3031_v21 = vld [vmem:[%s4391_s6 + $0x2c] sm:$0xf0]  ;;  %v2380_v23 = vld [vmem:[%s4391_s6 + $0x30] sm:$0xf0]  ;;  %v2386_v24 = vld [vmem:[%s4391_s6 + $0x28] sm:$0xf]  ;;  %v2543_v26 = vor.u32 %v3007_v16, %v2542_v15 }
  0x5f   : > { %1075 = vmatpush.bf16.msra.mxu0 %v2575_v2  ;;  %v3032_v25 = vld [vmem:[%s4391_s6 + $0x34] sm:$0xf0]  ;;  %v2526_v27 = vld [vmem:[%s4390_s5 + $0x40] sm:$0xf]  ;;  %v3003_v28 = vld [vmem:[%s4390_s5 + $0x4c] sm:$0xf0]  ;;  %v2379_v29 = vor.u32 %v3031_v21, %v2378_v20  ;;  %v2383_v32 = vor.u32 %v3029_v22, %v2380_v23 }
  0x60   : > { %v2362_v30 = vld [vmem:[%s4391_s6] sm:$0xf]  ;;  %v3027_v31 = vld [vmem:[%s4391_s6 + $0xc] sm:$0xf0]  ;;  %v2387_v33 = vor.u32 %v3032_v25, %v2386_v24  ;;  %v3025_v34 = vld [vmem:[%s4391_s6 + $0x4] sm:$0xf]  ;;  %v2527_v40 = vor.u32 %v3003_v28, %v2526_v27 }
  0x61   : > { %855 = vmatpush.bf16.msra.mxu3 %v2411_v5  ;;  %v2364_v35 = vld [vmem:[%s4391_s6 + $0x10] sm:$0xf0]  ;;  %v2370_v36 = vld [vmem:[%s4391_s6 + $0x8] sm:$0xf]  ;;  %v3028_v37 = vld [vmem:[%s4391_s6 + $0x14] sm:$0xf0]  ;;  %v2363_v44 = vor.u32 %v3027_v31, %v2362_v30 }
  0x62   : > { %869 = vmatpush.bf16.msra.mxu1 %v2415_v6  ;;  %883 = vmatpush.bf16.msra.mxu2 %v2419_v7  ;;  %v3054_v38 = vld [vmem:[%s4391_s6 + $0xec] sm:$0xf]  ;;  %v2484_v39 = vld [vmem:[%s4391_s6 + $0xf8] sm:$0xf0]  ;;  %v3021_v41 = vld [vmem:[%s4390_s5 + $0xe4] sm:$0xf]  ;;  %v2367_v48 = vor.u32 %v3025_v34, %v2364_v35  ;;  %v2371_v49 = vor.u32 %v3028_v37, %v2370_v36 }
  0x63   : > { %1076 = vmatpush.bf16.msra.mxu0 %v2559_v14  ;;  %v2608_v42 = vld [vmem:[%s4390_s5 + $0xf0] sm:$0xf0]  ;;  %v2614_v43 = vld [vmem:[%s4390_s5 + $0xe8] sm:$0xf]  ;;  %v3024_v45 = vld [vmem:[%s4390_s5 + $0xf4] sm:$0xf0]  ;;  %v2487_v52 = vor.u32 %v3054_v38, %v2484_v39 }
  0x64   : > { %v2510_v46 = vld [vmem:[%s4390_s5 + $0x20] sm:$0xf]  ;;  %v2999_v47 = vld [vmem:[%s4390_s5 + $0x2c] sm:$0xf0]  ;;  %v2611_v53 = vor.u32 %v3021_v41, %v2608_v42  ;;  %v3050_v54 = vld [vmem:[%s4391_s6 + $0xcc] sm:$0xf]  ;;  %v2615_v56 = vor.u32 %v3024_v45, %v2614_v43 }
  0x65   : > { %856 = vmatpush.bf16.msra.mxu3 %v2395_v17  ;;  %v615_v50 = vld [vmem:[#allocation2 + $0x10] sm:$0xff]  ;;  %v616_v51 = vld [vmem:[#allocation2] sm:$0xff]  ;;  %v2468_v55 = vld [vmem:[%s4391_s6 + $0xd8] sm:$0xf0]  ;;  %v2511_v60 = vor.u32 %v2999_v47, %v2510_v46 }
  0x66   : > { %870 = vmatpush.bf16.msra.mxu1 %v2399_v18  ;;  %884 = vmatpush.bf16.msra.mxu2 %v2403_v19  ;;  %v3017_v57 = vld [vmem:[%s4390_s5 + $0xc4] sm:$0xf]  ;;  %v2592_v58 = vld [vmem:[%s4390_s5 + $0xd0] sm:$0xf0]  ;;  %v2598_v59 = vld [vmem:[%s4390_s5 + $0xc8] sm:$0xf]  ;;  %v3936_v62 = vpack.c.bf16 %v616_v51, %v615_v50  ;;  %v2471_v1 = vor.u32 %v3050_v54, %v2468_v55 }
  0x67   : > { %1077 = vmatpush.bf16.msra.mxu0 %v2543_v26  ;;  %v3020_v61 = vld [vmem:[%s4390_s5 + $0xd4] sm:$0xf0]  ;;  %v2494_v63 = vld [vmem:[%s4390_s5] sm:$0xf]  ;;  %v2995_v0 = vld [vmem:[%s4390_s5 + $0xc] sm:$0xf0]  ;;  %v2595_v2 = vor.u32 %v3017_v57, %v2592_v58 }
  0x68   : > { %v3046_v3 = vld [vmem:[%s4391_s6 + $0xac] sm:$0xf]  ;;  %v2599_v4 = vor.u32 %v3020_v61, %v2598_v59  ;;  %v2452_v5 = vld [vmem:[%s4391_s6 + $0xb8] sm:$0xf0]  ;;  %v3013_v6 = vld [vmem:[%s4390_s5 + $0xa4] sm:$0xf]  ;;  %v2495_v8 = vor.u32 %v2995_v0, %v2494_v63 }
  0x69   : > { %857 = vmatpush.bf16.msra.mxu3 %v2379_v29  ;;  %v2576_v7 = vld [vmem:[%s4390_s5 + $0xb0] sm:$0xf0]  ;;  %v2582_v9 = vld [vmem:[%s4390_s5 + $0xa8] sm:$0xf]  ;;  %v3016_v10 = vld [vmem:[%s4390_s5 + $0xb4] sm:$0xf0]  ;;  %v2455_v11 = vor.u32 %v3046_v3, %v2452_v5 }
  0x6a   : > { %871 = vmatpush.bf16.msra.mxu1 %v2383_v32  ;;  %885 = vmatpush.bf16.msra.mxu2 %v2387_v33  ;;  %v2579_v12 = vor.u32 %v3013_v6, %v2576_v7  ;;  %v3042_v13 = vld [vmem:[%s4391_s6 + $0x8c] sm:$0xf]  ;;  %v2436_v14 = vld [vmem:[%s4391_s6 + $0x98] sm:$0xf0]  ;;  %v2583_v15 = vor.u32 %v3016_v10, %v2582_v9  ;;  %v3009_v16 = vld [vmem:[%s4390_s5 + $0x84] sm:$0xf] }
  0x6b   : > { %1078 = vmatpush.bf16.msra.mxu0 %v2527_v40  ;;  %v2560_v17 = vld [vmem:[%s4390_s5 + $0x90] sm:$0xf0]  ;;  %v3977_v18 = vld [vmem:[#allocation4] sm:$0xff]  ;;  %v2566_v19 = vld [vmem:[%s4390_s5 + $0x88] sm:$0xf]  ;;  %v2439_v21 = vor.u32 %v3042_v13, %v2436_v14 }
  0x6c   : > { %v3012_v20 = vld [vmem:[%s4390_s5 + $0x94] sm:$0xf0]  ;;  %v2563_v22 = vor.u32 %v3009_v16, %v2560_v17  ;;  %v3038_v23 = vld [vmem:[%s4391_s6 + $0x6c] sm:$0xf]  ;;  %v2420_v25 = vld [vmem:[%s4391_s6 + $0x78] sm:$0xf0] }
  0x6d   : > { %858 = vmatpush.bf16.msra.mxu3 %v2363_v44  ;;  %v2567_v24 = vor.u32 %v3012_v20, %v2566_v19  ;;  %v3005_v26 = vld [vmem:[%s4390_s5 + $0x64] sm:$0xf]  ;;  %v2544_v27 = vld [vmem:[%s4390_s5 + $0x70] sm:$0xf0]  ;;  %v2550_v28 = vld [vmem:[%s4390_s5 + $0x68] sm:$0xf]  ;;  %v2423_v30 = vor.u32 %v3038_v23, %v2420_v25 }
  0x6e   : > { %872 = vmatpush.bf16.msra.mxu1 %v2367_v48  ;;  %886 = vmatpush.bf16.msra.mxu2 %v2371_v49  ;;  %v3008_v29 = vld [vmem:[%s4390_s5 + $0x74] sm:$0xf0]  ;;  %v2547_v31 = vor.u32 %v3005_v26, %v2544_v27  ;;  %v3034_v32 = vld [vmem:[%s4391_s6 + $0x4c] sm:$0xf]  ;;  %v2404_v34 = vld [vmem:[%s4391_s6 + $0x58] sm:$0xf0] }
  0x6f   : > { %1079 = vmatpush.bf16.msra.mxu0 %v2511_v60  ;;  %v2551_v33 = vor.u32 %v3008_v29, %v2550_v28  ;;  %v3001_v35 = vld [vmem:[%s4390_s5 + $0x44] sm:$0xf]  ;;  %v2528_v36 = vld [vmem:[%s4390_s5 + $0x50] sm:$0xf0]  ;;  %v2534_v37 = vld [vmem:[%s4390_s5 + $0x48] sm:$0xf]  ;;  %v2407_v39 = vor.u32 %v3034_v32, %v2404_v34 }
  0x70   : > { %859 = vmatmul.bf16.vlgmr.msra.gmra.mxu3 %v3936_v62  ;;  %v3004_v38 = vld [vmem:[%s4390_s5 + $0x54] sm:$0xf0]  ;;  %v2531_v40 = vor.u32 %v3001_v35, %v2528_v36  ;;  %v3030_v41 = vld [vmem:[%s4391_s6 + $0x2c] sm:$0xf]  ;;  %v2388_v43 = vld [vmem:[%s4391_s6 + $0x38] sm:$0xf0] }
  0x71   : > { %893 = vmatpush.bf16.msrb.mxu3 %v2487_v52  ;;  %873 = vmatmul.bf16.vlgmr.msra.gmra.mxu1 %v3936_v62  ;;  %v2535_v42 = vor.u32 %v3004_v38, %v2534_v37  ;;  %v2997_v44 = vld [vmem:[%s4390_s5 + $0x24] sm:$0xf]  ;;  %v2512_v45 = vld [vmem:[%s4390_s5 + $0x30] sm:$0xf0]  ;;  %v2518_v46 = vld [vmem:[%s4390_s5 + $0x28] sm:$0xf]  ;;  %v2391_v48 = vor.u32 %v3030_v41, %v2388_v43 }
  0x72   : > { %1087 = vmatpush.bf16.msrb.mxu1 %v2611_v53  ;;  %1101 = vmatpush.bf16.msrb.mxu2 %v2615_v56  ;;  %v3000_v47 = vld [vmem:[%s4390_s5 + $0x34] sm:$0xf0]  ;;  %v2515_v49 = vor.u32 %v2997_v44, %v2512_v45  ;;  %v3026_v50 = vld [vmem:[%s4391_s6 + $0xc] sm:$0xf]  ;;  %v2372_v51 = vld [vmem:[%s4391_s6 + $0x18] sm:$0xf0] }
  0x73   : > { %887 = vmatmul.bf16.vlgmr.msra.gmra.mxu2 %v3936_v62  ;;  %1080 = vmatpush.bf16.msra.mxu0 %v2495_v8  ;;  %v2519_v52 = vor.u32 %v3000_v47, %v2518_v46  ;;  %v2993_v53 = vld [vmem:[%s4390_s5 + $0x4] sm:$0xf]  ;;  %v2496_v54 = vld [vmem:[%s4390_s5 + $0x10] sm:$0xf0]  ;;  %v2502_v55 = vld [vmem:[%s4390_s5 + $0x8] sm:$0xf]  ;;  %v2375_v59 = vor.u32 %v3026_v50, %v2372_v51 }
  0x74   : > { %v2996_v56 = vld [vmem:[%s4390_s5 + $0x14] sm:$0xf0]  ;;  %v3022_v57 = vld [vmem:[%s4390_s5 + $0xec] sm:$0xf]  ;;  %v2616_v58 = vld [vmem:[%s4390_s5 + $0xf8] sm:$0xf0]  ;;  %v2499_v60 = vor.u32 %v2993_v53, %v2496_v54 }
  0x75   : > { %894 = vmatpush.bf16.msrb.mxu3 %v2471_v1  ;;  %v2503_v61 = vor.u32 %v2996_v56, %v2502_v55  ;;  %v2619_v63 = vor.u32 %v3022_v57, %v2616_v58  ;;  %v3018_v0 = vld [vmem:[%s4390_s5 + $0xcc] sm:$0xf]  ;;  %v2600_v1 = vld [vmem:[%s4390_s5 + $0xd8] sm:$0xf0]  ;;  %v4110_v23 = vld [vmem:[#allocation7] sm:$0xf] }
  0x76   : > { %1088 = vmatpush.bf16.msrb.mxu1 %v2595_v2  ;;  %1102 = vmatpush.bf16.msrb.mxu2 %v2599_v4  ;;  %v2603_v2 = vor.u32 %v3018_v0, %v2600_v1  ;;  %v3014_v3 = vld [vmem:[%s4390_s5 + $0xac] sm:$0xf]  ;;  %v2584_v4 = vld [vmem:[%s4390_s5 + $0xb8] sm:$0xf0]  ;;  %v1131_v26 = vperm.slane %v4110_v23, 0 }
  0x77   : > { %1081 = vmatmul.bf16.vlgmr.msra.gmra.mxu0 %v3977_v18  ;;  %v2587_v5 = vor.u32 %v3014_v3, %v2584_v4  ;;  %v3010_v6 = vld [vmem:[%s4390_s5 + $0x8c] sm:$0xf]  ;;  %v2568_v7 = vld [vmem:[%s4390_s5 + $0x98] sm:$0xf0]  ;;  %v3117_v43 = vld [vmem:[#allocation11 + $0xe4] sm:$0xf] }
  0x78   : > { %v2571_v8 = vor.u32 %v3010_v6, %v2568_v7  ;;  %v3006_v9 = vld [vmem:[%s4390_s5 + $0x6c] sm:$0xf]  ;;  %v2504_v19 = vld [vmem:[%s4390_s5 + $0x18] sm:$0xf0]  ;;  %v2742_v44 = vld [vmem:[#allocation11 + $0xf0] sm:$0xf0] }
  0x79   : > { %895 = vmatpush.bf16.msrb.mxu3 %v2455_v11  ;;  %v3002_v11 = vld [vmem:[%s4390_s5 + $0x4c] sm:$0xf]  ;;  %v3115_v28 = vld [vmem:[#allocation11 + $0xcc] sm:$0xf0]  ;;  %v2748_v45 = vld [vmem:[#allocation11 + $0xe8] sm:$0xf]  ;;  %v2745_v46 = vor.u32 %v3117_v43, %v2742_v44 }
  0x7a   : > { %1089 = vmatpush.bf16.msrb.mxu1 %v2579_v12  ;;  %1103 = vmatpush.bf16.msrb.mxu2 %v2583_v15  ;;  %v2536_v12 = vld [vmem:[%s4390_s5 + $0x58] sm:$0xf0]  ;;  %v2998_v14 = vld [vmem:[%s4390_s5 + $0x2c] sm:$0xf]  ;;  %v3120_v47 = vld [vmem:[#allocation11 + $0xf4] sm:$0xf0] }
  0x7b   : > { %v2539_v13 = vor.u32 %v3002_v11, %v2536_v12  ;;  %v2520_v15 = vld [vmem:[%s4390_s5 + $0x38] sm:$0xf0]  ;;  %v2994_v17 = vld [vmem:[%s4390_s5 + $0xc] sm:$0xf]  ;;  %v2749_v51 = vor.u32 %v3120_v47, %v2748_v45  ;;  %v2732_v0 = vld [vmem:[#allocation11 + $0xc8] sm:$0xf] }
  0x7c   : > { %v2523_v16 = vor.u32 %v2998_v14, %v2520_v15  ;;  %v2507_v20 = vor.u32 %v2994_v17, %v2504_v19  ;;  %v2724_v27 = vld [vmem:[#allocation11 + $0xc0] sm:$0xf]  ;;  %v3103_v55 = vld [vmem:[#allocation11 + $0x6c] sm:$0xf0]  ;;  %v3116_v1 = vld [vmem:[#allocation11 + $0xd4] sm:$0xf0] }
  0x7d   : > { %896 = vmatpush.bf16.msrb.mxu3 %v2439_v21  ;;  %v2740_v21 = vld [vmem:[#allocation11 + $0xe0] sm:$0xf]  ;;  %v3114_v3 = vld [vmem:[#allocation11 + $0xcc] sm:$0xf]  ;;  %v2734_v4 = vld [vmem:[#allocation11 + $0xd8] sm:$0xf0] }
  0x7e   : > { %1090 = vmatpush.bf16.msrb.mxu1 %v2563_v22  ;;  %1104 = vmatpush.bf16.msrb.mxu2 %v2567_v24  ;;  %v3119_v22 = vld [vmem:[#allocation11 + $0xec] sm:$0xf0]  ;;  %v2708_v34 = vld [vmem:[#allocation11 + $0xa0] sm:$0xf]  ;;  %v2737_v7 = vor.u32 %v3114_v3, %v2734_v4  ;;  %v2716_v11 = vld [vmem:[#allocation11 + $0xa8] sm:$0xf] }
  0x7f   : > { %v2741_v24 = vor.u32 %v3119_v22, %v2740_v21  ;;  %v2676_v54 = vld [vmem:[#allocation11 + $0x60] sm:$0xf]  ;;  %v3110_v14 = vld [vmem:[#allocation11 + $0xac] sm:$0xf]  ;;  %v2718_v15 = vld [vmem:[#allocation11 + $0xb8] sm:$0xf0] }
  0x80   : > { %v2677_v58 = vor.u32 %v3103_v55, %v2676_v54  ;;  %v2660_v6 = vld [vmem:[#allocation11 + $0x40] sm:$0xf]  ;;  %v2721_v19 = vor.u32 %v3110_v14, %v2718_v15  ;;  %v3095_v21 = vld [vmem:[#allocation11 + $0x2c] sm:$0xf0]  ;;  %v2678_v43 = vld [vmem:[#allocation11 + $0x70] sm:$0xf0] }
  0x81   : > { %897 = vmatpush.bf16.msrb.mxu3 %v2423_v30  ;;  %1498 = vmatpush.bf16.msrb.mxu0 %v2741_v24  ;;  %v2725_v30 = vor.u32 %v3115_v28, %v2724_v27  ;;  %v3105_v24 = vld [vmem:[#allocation11 + $0x84] sm:$0xf]  ;;  %v2684_v44 = vld [vmem:[#allocation11 + $0x68] sm:$0xf]  ;;  %v3104_v47 = vld [vmem:[#allocation11 + $0x74] sm:$0xf0] }
  0x82   : > { %1091 = vmatpush.bf16.msrb.mxu1 %v2547_v31  ;;  %1105 = vmatpush.bf16.msrb.mxu2 %v2551_v33  ;;  %v2868_v54 = vld [vmem:[#allocation9 + $0xe0] sm:$0xf]  ;;  %v3087_v55 = vld [vmem:[#allocation9 + $0xec] sm:$0xf0]  ;;  %v2652_v14 = vld [vmem:[#allocation11 + $0x28] sm:$0xf] }
  0x83   : > { %v2852_v3 = vld [vmem:[#allocation9 + $0xc0] sm:$0xf]  ;;  %v3096_v15 = vld [vmem:[#allocation11 + $0x34] sm:$0xf0] }
  0x85   : > { %898 = vmatpush.bf16.msrb.mxu3 %v2407_v39  ;;  %1499 = vmatpush.bf16.msrb.mxu0 %v2725_v30  ;;  %v2692_v39 = vld [vmem:[#allocation11 + $0x80] sm:$0xf]  ;;  %v3106_v30 = vld [vmem:[#allocation11 + $0x8c] sm:$0xf] }
  0x86   : > { %1092 = vmatpush.bf16.msrb.mxu1 %v2531_v40  ;;  %1106 = vmatpush.bf16.msrb.mxu2 %v2535_v42  ;;  %v3107_v40 = vld [vmem:[#allocation11 + $0x8c] sm:$0xf0] }
  0x87   : > { %v2693_v42 = vor.u32 %v3107_v40, %v2692_v39  ;;  %v3091_v39 = vld [vmem:[#allocation11 + $0xc] sm:$0xf0]  ;;  %v3101_v40 = vld [vmem:[#allocation11 + $0x64] sm:$0xf] }
  0x89   : > { %899 = vmatpush.bf16.msrb.mxu3 %v2391_v48  ;;  %v3118_v48 = vld [vmem:[#allocation11 + $0xec] sm:$0xf] }
  0x8a   : > { %1093 = vmatpush.bf16.msrb.mxu1 %v2515_v49  ;;  %1107 = vmatpush.bf16.msrb.mxu2 %v2519_v52  ;;  %v2750_v49 = vld [vmem:[#allocation11 + $0xf8] sm:$0xf0] }
  0x8b   : > { %v2753_v52 = vor.u32 %v3118_v48, %v2750_v49  ;;  %v2685_v48 = vor.u32 %v3104_v47, %v2684_v44  ;;  %v3102_v49 = vld [vmem:[#allocation11 + $0x6c] sm:$0xf]  ;;  %v2820_v44 = vld [vmem:[#allocation9 + $0x80] sm:$0xf] }
  0x8d   : > { %900 = vmatpush.bf16.msrb.mxu3 %v2375_v59  ;;  %v3113_v59 = vld [vmem:[#allocation11 + $0xc4] sm:$0xf] }
  0x8e   : > { %1094 = vmatpush.bf16.msrb.mxu1 %v2499_v60  ;;  %1108 = vmatpush.bf16.msrb.mxu2 %v2503_v61  ;;  %v2726_v60 = vld [vmem:[#allocation11 + $0xd0] sm:$0xf0] }
  0x90   : > { %901 = vmatmul.bf16.vlgmr.msrb.gmra.mxu3 %v3936_v62  ;;  %v2552_v62 = vld [vmem:[%s4390_s5 + $0x78] sm:$0xf0] }
  0x91   : > { %1115 = vmatpush.bf16.msra.mxu3 %v2619_v63  ;;  %1095 = vmatmul.bf16.vlgmr.msrb.gmra.mxu1 %v3977_v18  ;;  %v2555_v10 = vor.u32 %v3006_v9, %v2552_v62  ;;  %v2729_v63 = vor.u32 %v3113_v59, %v2726_v60  ;;  %v3109_v9 = vld [vmem:[#allocation11 + $0xa4] sm:$0xf]  ;;  %v2869_v59 = vor.u32 %v3087_v55, %v2868_v54  ;;  %v2662_v60 = vld [vmem:[#allocation11 + $0x50] sm:$0xf0]  ;;  %v2876_v55 = vld [vmem:[#allocation9 + $0xe8] sm:$0xf] }
  0x92   : > { %1109 = vmatmul.bf16.vlgmr.msrb.gmra.mxu2 %v3977_v18  ;;  %1512 = vmatpush.bf16.msra.mxu1 %v2745_v46  ;;  %v2681_v46 = vor.u32 %v3101_v40, %v2678_v43  ;;  %v2638_v43 = vld [vmem:[#allocation11 + $0x18] sm:$0xf0]  ;;  %v2870_v54 = vld [vmem:[#allocation9 + $0xf0] sm:$0xf0] }
  0x93   : > { %1526 = vmatpush.bf16.msra.mxu2 %v2749_v51 }
  0x95   : > { %1116 = vmatpush.bf16.msra.mxu3 %v2603_v2  ;;  %v2733_v2 = vor.u32 %v3116_v1, %v2732_v0  ;;  %v3098_v1 = vld [vmem:[#allocation11 + $0x4c] sm:$0xf] }
  0x96   : > { %1513 = vmatpush.bf16.msra.mxu1 %v2729_v63  ;;  %v3100_v63 = vld [vmem:[#allocation11 + $0x54] sm:$0xf0] }
  0x97   : > { %1527 = vmatpush.bf16.msra.mxu2 %v2733_v2  ;;  %v2670_v2 = vld [vmem:[#allocation11 + $0x58] sm:$0xf0] }
  0x99   : > { %1117 = vmatpush.bf16.msra.mxu3 %v2587_v5 }
  0x9d   : > { %1118 = vmatpush.bf16.msra.mxu3 %v2571_v8  ;;  %v3099_v8 = vld [vmem:[#allocation11 + $0x4c] sm:$0xf0] }
  0x9e   : > { %v2661_v62 = vor.u32 %v3099_v8, %v2660_v6 }
  0xa1   : > { %1119 = vmatpush.bf16.msra.mxu3 %v2555_v10  ;;  %v2710_v10 = vld [vmem:[#allocation11 + $0xb0] sm:$0xf0] }
  0xa2   : > { %v2713_v12 = vor.u32 %v3109_v9, %v2710_v10  ;;  %v2673_v10 = vor.u32 %v3098_v1, %v2670_v2 }
  0xa4   : > { %1514 = vmatpush.bf16.msra.mxu1 %v2713_v12  ;;  %v3093_v12 = vld [vmem:[#allocation11 + $0x24] sm:$0xf] }
  0xa5   : > { %1120 = vmatpush.bf16.msra.mxu3 %v2539_v13  ;;  %v3112_v13 = vld [vmem:[#allocation11 + $0xb4] sm:$0xf0] }
  0xa6   : > { %v2717_v17 = vor.u32 %v3112_v13, %v2716_v11  ;;  %v2646_v13 = vld [vmem:[#allocation11 + $0x30] sm:$0xf0] }
  0xa8   : > { %1528 = vmatpush.bf16.msra.mxu2 %v2717_v17  ;;  %v3094_v17 = vld [vmem:[#allocation11 + $0x2c] sm:$0xf] }
  0xa9   : > { %1121 = vmatpush.bf16.msra.mxu3 %v2523_v16  ;;  %v1132_v16 = vperm.slane %v4110_v23, 1 }
  0xad   : > { %1122 = vmatpush.bf16.msra.mxu3 %v2507_v20  ;;  %v2644_v20 = vld [vmem:[#allocation11 + $0x20] sm:$0xf] }
  0xae   : > { %v2645_v22 = vor.u32 %v3095_v21, %v2644_v20  ;;  %v2653_v21 = vor.u32 %v3096_v15, %v2652_v14 }
  0xb0   : > { %1123 = vmatmul.bf16.vlgmr.msra.gmra.mxu3 %v3977_v18  ;;  %v3111_v18 = vld [vmem:[#allocation11 + $0xac] sm:$0xf0] }
  0xb1   : > { %v2709_v36 = vor.u32 %v3111_v18, %v2708_v34  ;;  %1540 = vmatpush.bf16.msrb.mxu3 %v2753_v52  ;;  %v2702_v18 = vld [vmem:[#allocation11 + $0x98] sm:$0xf0] }
  0xb3   : > { %1500 = vmatpush.bf16.msrb.mxu0 %v2709_v36  ;;  %v2628_v36 = vld [vmem:[#allocation11] sm:$0xf] }
  0xb5   : > { %1541 = vmatpush.bf16.msrb.mxu3 %v2737_v7  ;;  %v3083_v7 = vld [vmem:[#allocation9 + $0xcc] sm:$0xf0] }
  0xb6   : > { %v2853_v11 = vor.u32 %v3083_v7, %v2852_v3  ;;  %v2854_v7 = vld [vmem:[#allocation9 + $0xd0] sm:$0xf0] }
  0xb7   : > { %1501 = vmatpush.bf16.msrb.mxu0 %v2693_v42  ;;  %v2629_v42 = vor.u32 %v3091_v39, %v2628_v36 }
  0xb9   : > { %1542 = vmatpush.bf16.msrb.mxu3 %v2721_v19 }
  0xbb   : > { %1502 = vmatpush.bf16.msrb.mxu0 %v2677_v58 }
  0xbf   : > { %1503 = vmatpush.bf16.msrb.mxu0 %v2661_v62 }
  0xc3   : > { %1504 = vmatpush.bf16.msrb.mxu0 %v2645_v22  ;;  %v2654_v22 = vld [vmem:[#allocation11 + $0x38] sm:$0xf0] }
  0xc7   : > { %1505 = vmatpush.bf16.msrb.mxu0 %v2629_v42 }
  0xcb   : > { %1714 = vmatpush.bf16.msra.mxu0 %v2869_v59 }
  0xcf   : > { %1715 = vmatpush.bf16.msra.mxu0 %v2853_v11 }
  0xee   : > { %v4113_v32 = vpop.f32.mrf.mxu1 }
  0xf3   : > { %v860_v25 = vpop.f32.mrf.mxu3 }
  0xf4   : > { %v1082_v29 = vpop.f32.mrf.mxu0 }
  0xf5   : > { %v1083_v31 = vadd.f32 %v1082_v29, %v860_v25  ;;  %v2694_v25 = vld [vmem:[#allocation11 + $0x90] sm:$0xf0]  ;;  %v3108_v29 = vld [vmem:[#allocation11 + $0x94] sm:$0xf0] }
  0xf6   : > { %v4115_v53 = vpop.f32.mrf.mxu1  ;;  %v4117_v57 = vpop.f32.mrf.mxu2  ;;  %v2697_v28 = vor.u32 %v3105_v24, %v2694_v25  ;;  %v2836_v24 = vld [vmem:[#allocation9 + $0xa0] sm:$0xf] }
  0xf7   : > { %v1139_v33 = vadd.f32 %v1131_v26, %v1083_v31 }
  0xf8   : > { %1515 = vmatpush.bf16.msra.mxu1 %v2697_v28  ;;  %v3079_v28 = vld [vmem:[#allocation9 + $0xac] sm:$0xf0] }
  0xf9   : > { %v2620_v35 = vmul.f32 -1.442695, %v1139_v33 }
  0xfb   : > { %3227 = vpow2.f32 %v2620_v35  ;;  %v862_v37 = vpop.f32.mrf.mxu3 }
  0xfc   : > { %v1084_v38 = vpop.f32.mrf.mxu0  ;;  %1516 = vmatpush.bf16.msra.mxu1 %v2681_v46 }
  0xfd   : > { %v1085_v41 = vadd.f32 %v1084_v38, %v862_v37  ;;  %v2705_v38 = vor.u32 %v3106_v30, %v2702_v18  ;;  %v2630_v18 = vld [vmem:[#allocation11 + $0x10] sm:$0xf0] }
  0xfe   : > { %v4123_v31 = vpop.f32.mrf.mxu2 }
  0xff   : > { %v1143_v50 = vadd.f32 %v1131_v26, %v1085_v41  ;;  %v2700_v26 = vld [vmem:[#allocation11 + $0x88] sm:$0xf]  ;;  %1543 = vmatpush.bf16.msrb.mxu3 %v2705_v38 }
 0x100   : > { %v2701_v34 = vor.u32 %v3108_v29, %v2700_v26 }
 0x101   : > { %v3228_v56 = vpop.eup %3227  ;;  %v2621_v61 = vmul.f32 -1.442695, %v1143_v50  ;;  %v2686_v50 = vld [vmem:[#allocation11 + $0x78] sm:$0xf0] }
 0x102   : > { %v4119_v5 = vadd.f32 1.0, %v3228_v56  ;;  %1529 = vmatpush.bf16.msra.mxu2 %v2701_v34  ;;  %v2689_v52 = vor.u32 %v3102_v49, %v2686_v50  ;;  %v3097_v56 = vld [vmem:[#allocation11 + $0x44] sm:$0xf]  ;;  %v3075_v49 = vld [vmem:[#allocation9 + $0x8c] sm:$0xf0] }
 0x103   : > { %3229 = vpow2.f32 %v2621_v61  ;;  %v2668_v61 = vld [vmem:[#allocation11 + $0x48] sm:$0xf]  ;;  %v2665_v4 = vor.u32 %v3097_v56, %v2662_v60  ;;  %v3089_v34 = vld [vmem:[#allocation11 + $0x4] sm:$0xf]  ;;  %v3088_v56 = vld [vmem:[#allocation9 + $0xf4] sm:$0xf0] }
 0x104   : > { %3231 = vrcp.f32 %v4119_v5  ;;  %1544 = vmatpush.bf16.msrb.mxu3 %v2689_v52  ;;  %v2669_v6 = vor.u32 %v3100_v63, %v2668_v61  ;;  %v1164_v26 = vand.u32 2147483647, %v4119_v5  ;;  %v1166_v36 = vand.u32 2147483648, %v4119_v5  ;;  %v3085_v50 = vld [vmem:[#allocation9 + $0xe4] sm:$0xf] }
 0x105   : > { %1517 = vmatpush.bf16.msra.mxu1 %v2665_v4  ;;  %v2633_v40 = vor.u32 %v3089_v34, %v2630_v18  ;;  %vm1160_vm2 = vweird.f32 %v4119_v5  ;;  %v2821_v52 = vor.u32 %v3075_v49, %v2820_v44  ;;  %v2877_v59 = vor.u32 %v3088_v56, %v2876_v55  ;;  %v3086_v60 = vld [vmem:[#allocation9 + $0xec] sm:$0xf]  ;;  %v2878_v61 = vld [vmem:[#allocation9 + $0xf8] sm:$0xf0]  ;;  %v2804_v63 = vld [vmem:[#allocation9 + $0x60] sm:$0xf] }
 0x106   : > { %1530 = vmatpush.bf16.msra.mxu2 %v2685_v48  ;;  %vm4154_vm1 = vcmp.eq.f32.partialorder %v1164_v26, 8.507059e+37  ;;  %v2881_v3 = vor.u32 %v3086_v60, %v2878_v61  ;;  %v3071_v4 = vld [vmem:[#allocation9 + $0x6c] sm:$0xf0]  ;;  %v1167_v15 = vor.u32 1.1754944e-38, %v1166_v36  ;;  %v620_v26 = vld [vmem:[#allocation2 + $0x8] sm:$0xff]  ;;  %v622_v49 = vld [vmem:[#allocation3] sm:$0xff] }
 0x107   : > { %v2805_v11 = vor.u32 %v3071_v4, %v2804_v63  ;;  %v3067_v18 = vld [vmem:[#allocation9 + $0x4c] sm:$0xf0]  ;;  %v3080_v44 = vld [vmem:[#allocation9 + $0xb4] sm:$0xf0]  ;;  %v3073_v56 = vld [vmem:[#allocation9 + $0x84] sm:$0xf] }
 0x108   : > { %1545 = vmatpush.bf16.msrb.mxu3 %v2673_v10  ;;  %v3063_v55 = vld [vmem:[#allocation9 + $0x2c] sm:$0xf0]  ;;  %v2822_v61 = vld [vmem:[#allocation9 + $0x90] sm:$0xf0]  ;;  %v2828_v63 = vld [vmem:[#allocation9 + $0x88] sm:$0xf] }
 0x109   : > { %v3230_v35 = vpop.eup %3229 }
 0x10a   : > { %v4128_v41 = vpop.eup %3231  ;;  %1531 = vmatpush.bf16.msra.mxu2 %v2669_v6  ;;  %v3081_v6 = vld [vmem:[#allocation9 + $0xc4] sm:$0xf] }
 0x10b   : > { %v1156_v51 = vmul.f32 %v4128_v41, %v4119_v5  ;;  %vm1161_vm3 = vweird.f32 %v4128_v41 }
 0x10c   : > { %vm4173_vm4 = vmor %vm1160_vm2, %vm1161_vm3 }
 0x10d   : > { %v1157_v8 = vsub.f32 1.0, %v1156_v51 }
 0x10e   : > { %v1096_v27 = vpop.f32.mrf.mxu1  ;;  %1532 = vmatpush.bf16.msra.mxu2 %v2653_v21 }
 0x10f   : > { %v1097_v33 = vadd.f32 %v1096_v27, %v4113_v32  ;;  %v4130_v32 = vadd.f32 1.0, %v3230_v35  ;;  %v2657_v27 = vor.u32 %v3094_v17, %v2654_v22  ;;  %v2636_v35 = vld [vmem:[#allocation11 + $0x8] sm:$0xf]  ;;  %v1158_v38 = vmul.f32 %v4128_v41, %v1157_v8  ;;  %v3082_v17 = vld [vmem:[#allocation9 + $0xcc] sm:$0xf] }
 0x111   : > { %v1140_v37 = vadd.f32 %v1132_v16, %v1097_v33  ;;  %v2837_v33 = vor.u32 %v3079_v28, %v2836_v24  ;;  %1546 = vmatpush.bf16.msrb.mxu3 %v2657_v27  ;;  %v1179_v47 = vand.u32 2147483647, %v4130_v32  ;;  %v4164_v1 = vadd.f32 %v4128_v41, %v1158_v38  ;;  %v2788_v27 = vld [vmem:[#allocation9 + $0x40] sm:$0xf] }
 0x112   : > { %v1181_v22 = vand.u32 2147483648, %v4130_v32  ;;  %v1134_v24 = vperm.slane %v4110_v23, 3  ;;  %v2789_v38 = vor.u32 %v3067_v18, %v2788_v27  ;;  %vm1175_vm7 = vweird.f32 %v4130_v32  ;;  %v2814_v18 = vld [vmem:[#allocation9 + $0x78] sm:$0xf0] }
 0x113   : > { %v2622_v45 = vmul.f32 -1.442695, %v1140_v37  ;;  %v3092_v37 = vld [vmem:[#allocation11 + $0x14] sm:$0xf0]  ;;  %v4148_v39 = vpop.f32.mrf.mxu3  ;;  %1716 = vmatpush.bf16.msra.mxu0 %v2837_v33  ;;  %v1163_v36 = vsel %vm4173_vm4, %v4128_v41, %v4164_v1  ;;  %vm4206_vm9 = vcmp.eq.f32.partialorder %v1179_v47, 8.507059e+37 }
 0x114   : > { %v2637_v42 = vor.u32 %v3092_v37, %v2636_v35  ;;  %v3077_v35 = vld [vmem:[#allocation9 + $0xa4] sm:$0xf] }
 0x115   : > { %3233 = vpow2.f32 %v2622_v45  ;;  %v1110_v9 = vpop.f32.mrf.mxu2 }
 0x116   : > { %v1098_v58 = vpop.f32.mrf.mxu1  ;;  %3235 = vrcp.f32 %v4130_v32  ;;  %v1111_v30 = vadd.f32 %v1110_v9, %v4117_v57  ;;  %v3090_v57 = vld [vmem:[#allocation11 + $0xc] sm:$0xf]  ;;  %1533 = vmatpush.bf16.msra.mxu2 %v2637_v42  ;;  %v2844_v42 = vld [vmem:[#allocation9 + $0xa8] sm:$0xf] }
 0x117   : > { %v1099_v0 = vadd.f32 %v1098_v58, %v4115_v53  ;;  %v2649_v53 = vor.u32 %v3093_v12, %v2646_v13  ;;  %v2641_v48 = vor.u32 %v3090_v57, %v2638_v43  ;;  %v2873_v58 = vor.u32 %v3085_v50, %v2870_v54  ;;  %1717 = vmatpush.bf16.msra.mxu0 %v2821_v52  ;;  %v2860_v13 = vld [vmem:[#allocation9 + $0xc8] sm:$0xf]  ;;  %v2772_v54 = vld [vmem:[#allocation9 + $0x20] sm:$0xf] }
 0x118   : > { %v2857_v12 = vor.u32 %v3081_v6, %v2854_v7  ;;  %v2773_v47 = vor.u32 %v3063_v55, %v2772_v54  ;;  %v3074_v6 = vld [vmem:[#allocation9 + $0x8c] sm:$0xf]  ;;  %v2830_v7 = vld [vmem:[#allocation9 + $0x98] sm:$0xf0] }
 0x119   : > { %v1144_v62 = vadd.f32 %v1132_v16, %v1099_v0  ;;  %v1133_v16 = vperm.slane %v4110_v23, 2  ;;  %1518 = vmatpush.bf16.msra.mxu1 %v2649_v53  ;;  %1547 = vmatpush.bf16.msrb.mxu3 %v2641_v48  ;;  %v3084_v53 = vld [vmem:[#allocation9 + $0xd4] sm:$0xf0]  ;;  %v2846_v48 = vld [vmem:[#allocation9 + $0xb8] sm:$0xf0]  ;;  %v3124_v23 = vld [vmem:[%s4396_s11 + $0x18] sm:$0xff] }
 0x11a   : > { %1742 = vmatpush.bf16.msrb.mxu2 %v2877_v59  ;;  %v2861_v5 = vor.u32 %v3084_v53, %v2860_v13  ;;  %v1168_v59 = vsel %vm4154_vm1, %v1167_v15, %v1163_v36  ;;  %v3069_v15 = vld [vmem:[#allocation9 + $0x64] sm:$0xf]  ;;  %v2798_v55 = vld [vmem:[#allocation9 + $0x58] sm:$0xf0] }
 0x11b   : > { %v3234_v19 = vpop.eup %3233  ;;  %v2623_v20 = vmul.f32 -1.442695, %v1144_v62  ;;  %v1141_v51 = vadd.f32 %v1133_v16, %v1111_v30  ;;  %1718 = vmatpush.bf16.msra.mxu0 %v2805_v11  ;;  %v4195_v43 = vpop.f32.mrf.mxu3  ;;  %v2833_v62 = vor.u32 %v3074_v6, %v2830_v7  ;;  %v2756_v11 = vld [vmem:[#allocation9] sm:$0xf] }
 0x11c   : > { %v4138_v25 = vadd.f32 1.0, %v3234_v19  ;;  %v4142_v29 = vpop.eup %3235  ;;  %v2862_v19 = vld [vmem:[#allocation9 + $0xd8] sm:$0xf0] }
 0x11d   : > { %3237 = vpow2.f32 %v2623_v20  ;;  %v4152_v45 = vmul.f32 %v4142_v29, %v4130_v32  ;;  %1519 = vmatpush.bf16.msra.mxu1 %v2633_v40  ;;  %v1112_v2 = vpop.f32.mrf.mxu2  ;;  %1756 = vmatpush.bf16.msra.mxu3 %v2881_v3  ;;  %v619_v20 = vld [vmem:[#allocation2 + $0x18] sm:$0xff]  ;;  %v2865_v33 = vor.u32 %v3082_v17, %v2862_v19  ;;  %v2838_v40 = vld [vmem:[#allocation9 + $0xb0] sm:$0xf0]  ;;  %vm1176_vm8 = vweird.f32 %v4142_v29 }
 0x11e   : > { %3239 = vrcp.f32 %v4138_v25  ;;  %v1113_v21 = vadd.f32 %v1112_v2, %v4123_v31  ;;  %v1204_v30 = vand.u32 2147483648, %v4138_v25  ;;  %v621_v34 = vpack.c.bf16 %v620_v26, %v619_v20  ;;  %1743 = vmatpush.bf16.msrb.mxu2 %v2861_v5  ;;  %v2806_v5 = vld [vmem:[#allocation9 + $0x70] sm:$0xf0]  ;;  %v3072_v26 = vld [vmem:[#allocation9 + $0x74] sm:$0xf0]  ;;  %vm4233_vm13 = vmor %vm1175_vm7, %vm1176_vm8 }
 0x11f   : > { %v1172_v9 = vsub.f32 1.0, %v4152_v45  ;;  %3241 = vtanh.f32 %v1141_v51  ;;  %v1202_v31 = vand.u32 2147483647, %v4138_v25  ;;  %vm1198_vm5 = vweird.f32 %v4138_v25  ;;  %v3078_v45 = vld [vmem:[#allocation9 + $0xac] sm:$0xf]  ;;  %1719 = vmatpush.bf16.msra.mxu0 %v2789_v38 }
 0x120   : > { %v2841_v41 = vor.u32 %v3077_v35, %v2838_v40  ;;  %v1145_v50 = vadd.f32 %v1133_v16, %v1113_v21  ;;  %1506 = vmatmul.bf16.vlgmr.msrb.gmra.mxu0 %v621_v34  ;;  %1520 = vmatmul.bf16.vlgmr.msra.gmra.mxu1 %v621_v34  ;;  %v2845_v51 = vor.u32 %v3080_v44, %v2844_v42  ;;  %v1205_v2 = vor.u32 1.1754944e-38, %v1204_v30  ;;  %v2812_v21 = vld [vmem:[#allocation9 + $0x68] sm:$0xf]  ;;  %v3128_v40 = vld [vmem:[%s4396_s11 + $0x38] sm:$0xff]  ;;  %v2790_v44 = vld [vmem:[#allocation9 + $0x50] sm:$0xf0] }
 0x121   : > { %1728 = vmatpush.bf16.msrb.mxu1 %v2873_v58  ;;  %v1173_v37 = vmul.f32 %v4142_v29, %v1172_v9  ;;  %1757 = vmatpush.bf16.msra.mxu3 %v2865_v33  ;;  %v2849_v52 = vor.u32 %v3078_v45, %v2846_v48  ;;  %v2825_v3 = vor.u32 %v3073_v56, %v2822_v61  ;;  %vm1203_vm11 = vcmp.eq.f32.partialorder %v1202_v31, 8.507059e+37  ;;  %v623_v42 = vld [vmem:[#allocation3 + $0x18] sm:$0xff]  ;;  %v2796_v45 = vld [vmem:[#allocation9 + $0x48] sm:$0xf]  ;;  %v3061_v56 = vld [vmem:[#allocation9 + $0x24] sm:$0xf] }
 0x122   : > { %1548 = vmatmul.bf16.vlgmr.msrb.gmra.mxu3 %v621_v34  ;;  %1534 = vmatmul.bf16.vlgmr.msra.gmra.mxu2 %v621_v34  ;;  %v2809_v30 = vor.u32 %v3069_v15, %v2806_v5  ;;  %v2813_v33 = vor.u32 %v3072_v26, %v2812_v21  ;;  %v3070_v34 = vld [vmem:[#allocation9 + $0x6c] sm:$0xf]  ;;  %v1182_v31 = vor.u32 1.1754944e-38, %v1181_v22  ;;  %v2774_v61 = vld [vmem:[#allocation9 + $0x30] sm:$0xf0] }
 0x123   : > { %v3238_v0 = vpop.eup %3237  ;;  %1744 = vmatpush.bf16.msrb.mxu2 %v2845_v51  ;;  %v1174_v53 = vadd.f32 %v4142_v29, %v1173_v37  ;;  %1720 = vmatpush.bf16.msra.mxu0 %v2773_v47  ;;  %v2817_v38 = vor.u32 %v3070_v34, %v2814_v18  ;;  %v3060_v15 = vld [vmem:[#allocation9 + $0x14] sm:$0xf0]  ;;  %v3058_v5 = vld [vmem:[#allocation9 + $0xc] sm:$0xf] }
 0x124   : > { %v4166_v8 = vpop.eup %3239  ;;  %v4177_v10 = vadd.f32 1.0, %v3238_v0  ;;  %v3076_v0 = vld [vmem:[#allocation9 + $0x94] sm:$0xf0] }
 0x125   : > { %v1194_v14 = vmul.f32 %v4166_v8, %v4138_v25  ;;  %1729 = vmatpush.bf16.msrb.mxu1 %v2857_v12  ;;  %vm1199_vm6 = vweird.f32 %v4166_v8  ;;  %v3242_v58 = vpop.eup %3241  ;;  %v2829_v4 = vor.u32 %v3076_v0, %v2828_v63  ;;  %1758 = vmatpush.bf16.msra.mxu3 %v2849_v52  ;;  %v3059_v12 = vld [vmem:[#allocation9 + $0xc] sm:$0xf0]  ;;  %v1178_v48 = vsel %vm4233_vm13, %v4142_v29, %v1174_v53  ;;  %v3127_v29 = vld [vmem:[%s4396_s11 + $0x30] sm:$0xff]  ;;  %v3064_v0 = vld [vmem:[#allocation9 + $0x34] sm:$0xf0] }
 0x126   : > { %3243 = vrcp.f32 %v4177_v10  ;;  %vm4216_vm10 = vmor %vm1198_vm5, %vm1199_vm6  ;;  %v1265_v19 = vmul.f32 %v3242_v58, %v1168_v59  ;;  %v1219_v20 = vand.u32 2147483648, %v4177_v10  ;;  %vm1213_vm14 = vweird.f32 %v4177_v10  ;;  %v2780_v63 = vld [vmem:[#allocation9 + $0x28] sm:$0xf] }
 0x127   : > { %v1195_v28 = vsub.f32 1.0, %v1194_v14  ;;  %v1217_v14 = vand.u32 2147483647, %v4177_v10  ;;  %3245 = vtanh.f32 %v1145_v50  ;;  %1745 = vmatpush.bf16.msrb.mxu2 %v2829_v4  ;;  %v1183_v46 = vsel %vm4206_vm9, %v1182_v31, %v1178_v48  ;;  %v2782_v4 = vld [vmem:[#allocation9 + $0x38] sm:$0xf0] }
 0x128   : > { %v1220_v22 = vor.u32 1.1754944e-38, %v1219_v20  ;;  %v2781_v16 = vor.u32 %v3064_v0, %v2780_v63  ;;  %v2764_v53 = vld [vmem:[#allocation9 + $0x8] sm:$0xf]  ;;  %v3122_v31 = vld [vmem:[%s4396_s11 + $0x8] sm:$0xff] }
 0x129   : > { %v1196_v57 = vmul.f32 %v4166_v8, %v1195_v28  ;;  %1730 = vmatpush.bf16.msrb.mxu1 %v2841_v41  ;;  %v2757_v28 = vor.u32 %v3059_v12, %v2756_v11  ;;  %1759 = vmatpush.bf16.msra.mxu3 %v2833_v62  ;;  %v3065_v41 = vld [vmem:[#allocation9 + $0x44] sm:$0xf]  ;;  %vm4258_vm0 = vcmp.eq.f32.partialorder %v1217_v14, 8.507059e+37  ;;  %v2765_v20 = vor.u32 %v3060_v15, %v2764_v53 }
 0x12a   : > { %v2793_v54 = vor.u32 %v3065_v41, %v2790_v44  ;;  %v3057_v12 = vld [vmem:[#allocation9 + $0x4] sm:$0xf] }
 0x12b   : > { %v1197_v60 = vadd.f32 %v4166_v8, %v1196_v57  ;;  %1721 = vmatpush.bf16.msra.mxu0 %v2757_v28  ;;  %1746 = vmatpush.bf16.msrb.mxu2 %v2813_v33 }
 0x12c   : > { %v4210_v1 = vpop.eup %3243 }
 0x12d   : > { %v1201_v9 = vsel %vm4216_vm10, %v4166_v8, %v1197_v60  ;;  %v1209_v25 = vmul.f32 %v4210_v1, %v4177_v10  ;;  %vm1214_vm12 = vweird.f32 %v4210_v1  ;;  %1731 = vmatpush.bf16.msrb.mxu1 %v2825_v3  ;;  %v3246_v50 = vpop.eup %3245  ;;  %1760 = vmatpush.bf16.msra.mxu3 %v2817_v38  ;;  %v3062_v3 = vld [vmem:[#allocation9 + $0x2c] sm:$0xf]  ;;  %v3121_v38 = vld [vmem:[%s4396_s11] sm:$0xff] }
 0x12e   : > { %v1206_v13 = vsel %vm1203_vm11, %v1205_v2, %v1201_v9  ;;  %vm4250_vm15 = vmor %vm1213_vm14, %vm1214_vm12  ;;  %v1266_v7 = vmul.f32 %v3246_v50, %v1183_v46  ;;  %v3126_v9 = vld [vmem:[%s4396_s11 + $0x28] sm:$0xff]  ;;  %v2785_v11 = vor.u32 %v3062_v3, %v2782_v4 }
 0x12f   : > { %v1263_v17 = vmul.f32 %v1206_v13, %v622_v49  ;;  %v1210_v8 = vsub.f32 1.0, %v1209_v25  ;;  %v3068_v49 = vld [vmem:[#allocation9 + $0x54] sm:$0xf0]  ;;  %1987 = vmatpush.bf16.msrb.mxu0 %v3128_v40  ;;  %v2758_v13 = vld [vmem:[#allocation9 + $0x10] sm:$0xf0] }
 0x130   : > { %v2797_v59 = vor.u32 %v3068_v49, %v2796_v45 }
 0x131   : > { %v4237_v35 = vadd.f32 %v1265_v19, %v1263_v17  ;;  %v1211_v36 = vmul.f32 %v4210_v1, %v1210_v8  ;;  %1732 = vmatpush.bf16.msrb.mxu1 %v2809_v30  ;;  %v2766_v17 = vld [vmem:[#allocation9 + $0x18] sm:$0xf0]  ;;  %v2761_v8 = vor.u32 %v3057_v12, %v2758_v13  ;;  %v3123_v30 = vld [vmem:[%s4396_s11 + $0x10] sm:$0xff]  ;;  %v3134_v13 = vld [vmem:[#allocation14 + $0x28] sm:$0xff] }
 0x132   : > { %1747 = vmatpush.bf16.msrb.mxu2 %v2797_v59  ;;  %v2769_v21 = vor.u32 %v3058_v5, %v2766_v17 }
 0x133   : > { %v1124_v37 = vpop.f32.mrf.mxu3  ;;  %1914 = vst [vmem:[#allocation3] sm:$0xff] %v4237_v35  ;;  %v1212_v10 = vadd.f32 %v4210_v1, %v1211_v36  ;;  %1988 = vmatpush.bf16.msrb.mxu0 %v3127_v29 }
 0x134   : > { %v1125_v57 = vadd.f32 %v1124_v37, %v4148_v39  ;;  %v3066_v39 = vld [vmem:[#allocation9 + $0x4c] sm:$0xf] }
 0x135   : > { %v1216_v58 = vsel %vm4250_vm15, %v4210_v1, %v1212_v10  ;;  %v2801_v60 = vor.u32 %v3066_v39, %v2798_v55  ;;  %1733 = vmatpush.bf16.msrb.mxu1 %v2793_v54  ;;  %v2777_v1 = vor.u32 %v3061_v56, %v2774_v61 }
 0x136   : > { %v1142_v52 = vadd.f32 %v1134_v24, %v1125_v57  ;;  %v1221_v2 = vsel %vm4258_vm0, %v1220_v22, %v1216_v58  ;;  %1748 = vmatpush.bf16.msrb.mxu2 %v2781_v16 }
 0x137   : > { %v1264_v6 = vmul.f32 %v1221_v2, %v623_v42  ;;  %1761 = vmatpush.bf16.msra.mxu3 %v2801_v60  ;;  %1989 = vmatpush.bf16.msrb.mxu0 %v3126_v9  ;;  %v4296_v2 = vld [vmem:[#allocation12] sm:$0xf]  ;;  %v3135_v9 = vld [vmem:[#allocation14 + $0x30] sm:$0xff] }
 0x138   : > { %v2624_v47 = vmul.f32 -1.442695, %v1142_v52  ;;  %v1772_v4 = vperm.slane %v4296_v2, 0  ;;  %v1775_v15 = vperm.slane %v4296_v2, 3 }
 0x139   : > { %v1268_v25 = vadd.f32 %v1266_v7, %v1264_v6  ;;  %1734 = vmatpush.bf16.msrb.mxu1 %v2777_v1  ;;  %v1773_v6 = vperm.slane %v4296_v2, 1 }
 0x13a   : > { %3247 = vpow2.f32 %v2624_v47  ;;  %1749 = vmatpush.bf16.msrb.mxu2 %v2765_v20  ;;  %v3136_v47 = vld [vmem:[#allocation14 + $0x38] sm:$0xff]  ;;  %v3133_v20 = vld [vmem:[#allocation14 + $0x20] sm:$0xff] }
 0x13b   : > { %v1126_v62 = vpop.f32.mrf.mxu3  ;;  %1915 = vst [vmem:[#allocation3 + $0x18] sm:$0xff] %v1268_v25  ;;  %1762 = vmatpush.bf16.msra.mxu3 %v2785_v11 }
 0x13c   : > { %v1127_v14 = vadd.f32 %v1126_v62, %v4195_v43  ;;  %v3125_v43 = vld [vmem:[%s4396_s11 + $0x20] sm:$0xff] }
 0x13d   : > { %1735 = vmatpush.bf16.msrb.mxu1 %v2761_v8  ;;  %1990 = vmatpush.bf16.msrb.mxu0 %v3125_v43 }
 0x13e   : > { %v1146_v19 = vadd.f32 %v1134_v24, %v1127_v14 }
 0x13f   : > { %1763 = vmatpush.bf16.msra.mxu3 %v2769_v21 }
 0x140   : > { %v3248_v26 = vpop.eup %3247  ;;  %v2625_v27 = vmul.f32 -1.442695, %v1146_v19 }
 0x141   : > { %v1231_v28 = vadd.f32 1.0, %v3248_v26  ;;  %1991 = vmatpush.bf16.msrb.mxu0 %v3124_v23  ;;  %2078 = vmatpush.bf16.msra.mxu1 %v3136_v47 }
 0x142   : > { %3249 = vpow2.f32 %v2625_v27 }
 0x143   : > { %3251 = vrcp.f32 %v1231_v28  ;;  %v1244_v41 = vand.u32 2147483648, %v1231_v28  ;;  %vm1238_vm2 = vweird.f32 %v1231_v28  ;;  %v1242_v45 = vand.u32 2147483647, %v1231_v28 }
 0x145   : > { %1992 = vmatpush.bf16.msrb.mxu0 %v3123_v30  ;;  %v1245_v49 = vor.u32 1.1754944e-38, %v1244_v41  ;;  %vm1243_vm6 = vcmp.eq.f32.partialorder %v1242_v45, 8.507059e+37  ;;  %2079 = vmatpush.bf16.msra.mxu1 %v3135_v9  ;;  %v3132_v30 = vld [vmem:[#allocation14 + $0x18] sm:$0xff]  ;;  %v3130_v45 = vld [vmem:[#allocation14 + $0x8] sm:$0xff] }
 0x148   : > { %v3250_v24 = vpop.eup %3249 }
 0x149   : > { %v3252_v33 = vpop.eup %3251  ;;  %v1232_v34 = vadd.f32 1.0, %v3250_v24  ;;  %1993 = vmatpush.bf16.msrb.mxu0 %v3122_v31  ;;  %2080 = vmatpush.bf16.msra.mxu1 %v3134_v13 }
 0x14a   : > { %v1234_v18 = vmul.f32 %v3252_v33, %v1231_v28  ;;  %vm1239_vm1 = vweird.f32 %v3252_v33 }
 0x14b   : > { %3253 = vrcp.f32 %v1232_v34  ;;  %vm1240_vm3 = vmor %vm1238_vm2, %vm1239_vm1  ;;  %v1259_v32 = vand.u32 2147483648, %v1232_v34  ;;  %v1257_v10 = vand.u32 2147483647, %v1232_v34  ;;  %vm1253_vm5 = vweird.f32 %v1232_v34 }
 0x14c   : > { %v1235_v36 = vsub.f32 1.0, %v1234_v18  ;;  %3255 = vtanh.f32 %v4237_v35 }
 0x14d   : > { %1994 = vmatpush.bf16.msrb.mxu0 %v3121_v38  ;;  %3257 = vtanh.f32 %v1268_v25  ;;  %v1260_v50 = vor.u32 1.1754944e-38, %v1259_v32  ;;  %vm1258_vm8 = vcmp.eq.f32.partialorder %v1257_v10, 8.507059e+37  ;;  %2081 = vmatpush.bf16.msra.mxu1 %v3133_v20 }
 0x14e   : > { %v1236_v37 = vmul.f32 %v3252_v33, %v1235_v36 }
 0x150   : > { %v1237_v57 = vadd.f32 %v3252_v33, %v1236_v37 }
 0x151   : > { %v3254_v40 = vpop.eup %3253  ;;  %2082 = vmatpush.bf16.msra.mxu1 %v3132_v30 }
 0x152   : > { %v1249_v42 = vmul.f32 %v3254_v40, %v1232_v34  ;;  %vm1254_vm4 = vweird.f32 %v3254_v40  ;;  %v1241_v48 = vsel %vm1240_vm3, %v3252_v33, %v1237_v57  ;;  %v3256_v52 = vpop.eup %3255 }
 0x153   : > { %vm1255_vm7 = vmor %vm1253_vm5, %vm1254_vm4  ;;  %v1246_v51 = vsel %vm1243_vm6, %v1245_v49, %v1241_v48  ;;  %v3258_v54 = vpop.eup %3257 }
 0x154   : > { %v1250_v44 = vsub.f32 1.0, %v1249_v42  ;;  %v1271_v29 = vmul.f32 %v3256_v52, %v1246_v51  ;;  %v4311_v42 = vld [vmem:[%s4397_s12] ss:$0 sm:$0xff] }
 0x156   : > { %v1251_v22 = vmul.f32 %v3254_v40, %v1250_v44  ;;  %v3131_v44 = vld [vmem:[#allocation14 + $0x10] sm:$0xff] }
 0x157   : > { %2083 = vmatpush.bf16.msra.mxu1 %v3131_v44 }
 0x158   : > { %v1252_v39 = vadd.f32 %v3254_v40, %v1251_v22 }
 0x15a   : > { %v1256_v35 = vsel %vm1255_vm7, %v3254_v40, %v1252_v39  ;;  %v1774_v40 = vperm.slane %v4296_v2, 2 }
 0x15b   : > { %v1261_v55 = vsel %vm1258_vm8, %v1260_v50, %v1256_v35  ;;  %2084 = vmatpush.bf16.msra.mxu1 %v3130_v45 }
 0x15c   : > { %v1272_v56 = vmul.f32 %v3258_v54, %v1261_v55  ;;  %v3129_v54 = vld [vmem:[#allocation14] sm:$0xff] }
 0x15e   : > { %v1273_v58 = vpack.c.bf16 %v1272_v56, %v1271_v29 }
 0x15f   : > { %2085 = vmatpush.bf16.msra.mxu1 %v3129_v54 }
 0x160   : > { %1722 = vmatmul.bf16.vlgmr.msra.gmra.mxu0 %v1273_v58  ;;  %1736 = vmatmul.bf16.vlgmr.msrb.gmra.mxu1 %v1273_v58 }
 0x161   : > { %1750 = vmatmul.bf16.vlgmr.msrb.gmra.mxu2 %v1273_v58  ;;  %1764 = vmatmul.bf16.vlgmr.msra.gmra.mxu3 %v1273_v58 }
 0x170   : > { %1995 = vmatmul.bf16.vlgmr.msrb.gmra.mxu0 %v1273_v58 }
 0x19d   : > { %v1507_v59 = vpop.f32.mrf.mxu0  ;;  %v1521_v60 = vpop.f32.mrf.mxu1 }
 0x1a5   : > { %v1549_v61 = vpop.f32.mrf.mxu3  ;;  %v1535_v63 = vpop.f32.mrf.mxu2 }
 0x1a6   : > { %v1509_v0 = vpop.f32.mrf.mxu0  ;;  %v1523_v46 = vpop.f32.mrf.mxu1 }
 0x1ad   : > { %v1551_v3 = vpop.f32.mrf.mxu3  ;;  %v4300_v25 = vpop.f32.mrf.mxu2 }
 0x1dd   : > { %v1723_v7 = vpop.f32.mrf.mxu0  ;;  %v1737_v1 = vpop.f32.mrf.mxu1 }
 0x1de   : > { %v1724_v62 = vadd.f32 %v1723_v7, %v1507_v59  ;;  %v1738_v16 = vadd.f32 %v1737_v1, %v1521_v60 }
 0x1e0   : > { %v1780_v11 = vadd.f32 %v1772_v4, %v1724_v62  ;;  %v1781_v12 = vadd.f32 %v1773_v6, %v1738_v16 }
 0x1e2   : > { %v2882_v53 = vmul.f32 -1.442695, %v1780_v11  ;;  %v2884_v14 = vmul.f32 -1.442695, %v1781_v12 }
 0x1e4   : > { %3259 = vpow2.f32 %v2882_v53  ;;  %v1765_v5 = vpop.f32.mrf.mxu3  ;;  %v1751_v43 = vpop.f32.mrf.mxu2 }
 0x1e5   : > { %3261 = vpow2.f32 %v2884_v14  ;;  %v1766_v17 = vadd.f32 %v1765_v5, %v1549_v61  ;;  %v1725_v19 = vpop.f32.mrf.mxu0  ;;  %v1739_v8 = vpop.f32.mrf.mxu1  ;;  %v1752_v38 = vadd.f32 %v1751_v43, %v1535_v63  ;;  %v625_v14 = vld [vmem:[#allocation3 + $0x8] sm:$0xff] }
 0x1e6   : > { %v1726_v21 = vadd.f32 %v1725_v19, %v1509_v0  ;;  %v1740_v26 = vadd.f32 %v1739_v8, %v1523_v46 }
 0x1e7   : > { %v1783_v27 = vadd.f32 %v1775_v15, %v1766_v17  ;;  %v1782_v32 = vadd.f32 %v1774_v40, %v1752_v38 }
 0x1e8   : > { %v1784_v28 = vadd.f32 %v1772_v4, %v1726_v21  ;;  %v1785_v23 = vadd.f32 %v1773_v6, %v1740_v26 }
 0x1e9   : > { %v2886_v24 = vmul.f32 -1.442695, %v1783_v27 }
 0x1ea   : > { %v3260_v33 = vpop.eup %3259  ;;  %v2883_v34 = vmul.f32 -1.442695, %v1784_v28  ;;  %v2885_v31 = vmul.f32 -1.442695, %v1785_v23 }
 0x1eb   : > { %v3262_v18 = vpop.eup %3261  ;;  %v4303_v36 = vadd.f32 1.0, %v3260_v33  ;;  %3263 = vpow2.f32 %v2886_v24 }
 0x1ec   : > { %v4305_v37 = vadd.f32 1.0, %v3262_v18  ;;  %3265 = vpow2.f32 %v2883_v34  ;;  %v1767_v57 = vpop.f32.mrf.mxu3  ;;  %v1753_v50 = vpop.f32.mrf.mxu2 }
 0x1ed   : > { %3267 = vrcp.f32 %v4303_v36  ;;  %v1996_v41 = vpop.f32.mrf.mxu0  ;;  %v1768_v22 = vadd.f32 %v1767_v57, %v1551_v3  ;;  %v1754_v60 = vadd.f32 %v1753_v50, %v4300_v25  ;;  %v1805_v0 = vand.u32 2147483647, %v4303_v36 }
 0x1ee   : > { %3269 = vrcp.f32 %v4305_v37  ;;  %v1997_v48 = vadd.f32 %v4311_v42, %v1996_v41  ;;  %v1807_v47 = vand.u32 2147483648, %v4303_v36  ;;  %v1845_v4 = vand.u32 2147483648, %v4305_v37 }
 0x1ef   : > { %3271 = vpow2.f32 %v2885_v31  ;;  %v1787_v51 = vadd.f32 %v1775_v15, %v1768_v22  ;;  %v1843_v1 = vand.u32 2147483647, %v4305_v37  ;;  %v1786_v9 = vadd.f32 %v1774_v40, %v1754_v60 }
 0x1f0   : > { %2006 = vst [vmem:[#allocation2 + $0x10] sm:$0xff] %v1997_v48  ;;  %3273 = vtanh.f32 %v1782_v32  ;;  %vm1801_vm11 = vweird.f32 %v4303_v36  ;;  %vm1839_vm12 = vweird.f32 %v4305_v37  ;;  %v1808_v11 = vor.u32 1.1754944e-38, %v1807_v47 }
 0x1f1   : > { %v3264_v10 = vpop.eup %3263  ;;  %v2887_v56 = vmul.f32 -1.442695, %v1787_v51  ;;  %v1846_v53 = vor.u32 1.1754944e-38, %v1845_v4  ;;  %vm1806_vm15 = vcmp.eq.f32.partialorder %v1805_v0, 8.507059e+37  ;;  %vm1844_vm0 = vcmp.eq.f32.partialorder %v1843_v1, 8.507059e+37 }
 0x1f2   : > { %v3266_v49 = vpop.eup %3265  ;;  %v4316_v39 = vadd.f32 1.0, %v3264_v10 }
 0x1f3   : > { %v3268_v52 = vpop.eup %3267  ;;  %v4318_v35 = vadd.f32 1.0, %v3266_v49  ;;  %v626_v49 = vld [vmem:[#allocation3 + $0x10] sm:$0xff] }
 0x1f4   : > { %v3270_v55 = vpop.eup %3269  ;;  %v1797_v29 = vmul.f32 %v3268_v52, %v4303_v36  ;;  %vm1802_vm9 = vweird.f32 %v3268_v52  ;;  %v1885_v60 = vand.u32 2147483648, %v4316_v39  ;;  %v1883_v0 = vand.u32 2147483647, %v4316_v39 }
 0x1f5   : > { %v3272_v58 = vpop.eup %3271  ;;  %v1835_v59 = vmul.f32 %v3270_v55, %v4305_v37  ;;  %3275 = vrcp.f32 %v4318_v35  ;;  %v1998_v61 = vpop.f32.mrf.mxu0  ;;  %vm1840_vm10 = vweird.f32 %v3270_v55  ;;  %vm1803_vm13 = vmor %vm1801_vm11, %vm1802_vm9  ;;  %v1820_v24 = vand.u32 2147483647, %v4318_v35 }
 0x1f6   : > { %v1798_v63 = vsub.f32 1.0, %v1797_v29  ;;  %3277 = vrcp.f32 %v4316_v39  ;;  %v4326_v46 = vadd.f32 1.0, %v3272_v58  ;;  %v1999_v3 = vadd.f32 %v4311_v42, %v1998_v61  ;;  %v3274_v25 = vpop.eup %3273  ;;  %vm1841_vm14 = vmor %vm1839_vm12, %vm1840_vm10 }
 0x1f7   : > { %v1836_v2 = vsub.f32 1.0, %v1835_v59  ;;  %3279 = vpow2.f32 %v2887_v56  ;;  %v1822_v30 = vand.u32 2147483648, %v4318_v35  ;;  %vm1816_vm2 = vweird.f32 %v4318_v35 }
 0x1f8   : > { %v1799_v6 = vmul.f32 %v3268_v52, %v1798_v63  ;;  %3281 = vrcp.f32 %v4326_v46  ;;  %2007 = vst [vmem:[#allocation2] sm:$0xff] %v1999_v3  ;;  %v1860_v31 = vand.u32 2147483648, %v4326_v46  ;;  %v1858_v41 = vand.u32 2147483647, %v4326_v46 }
 0x1f9   : > { %v1837_v7 = vmul.f32 %v3270_v55, %v1836_v2  ;;  %3283 = vtanh.f32 %v1786_v9  ;;  %v1823_v57 = vor.u32 1.1754944e-38, %v1822_v30  ;;  %vm1821_vm5 = vcmp.eq.f32.partialorder %v1820_v24, 8.507059e+37  ;;  %v3143_v30 = vld [vmem:[%s4389_s4 + $0x30] sm:$0xff] }
 0x1fa   : > { %v1800_v62 = vadd.f32 %v3268_v52, %v1799_v6  ;;  %vm1854_vm6 = vweird.f32 %v4326_v46  ;;  %v1861_v10 = vor.u32 1.1754944e-38, %v1860_v31  ;;  %vm1859_vm8 = vcmp.eq.f32.partialorder %v1858_v41, 8.507059e+37 }
 0x1fb   : > { %v3276_v16 = vpop.eup %3275  ;;  %v1838_v12 = vadd.f32 %v3270_v55, %v1837_v7  ;;  %vm1879_vm10 = vweird.f32 %v4316_v39  ;;  %v1886_v4 = vor.u32 1.1754944e-38, %v1885_v60 }
 0x1fc   : > { %v4335_v13 = vpop.eup %3277  ;;  %v1804_v15 = vsel %vm1803_vm13, %v3268_v52, %v1800_v62  ;;  %v1812_v5 = vmul.f32 %v3276_v16, %v4318_v35  ;;  %vm1817_vm1 = vweird.f32 %v3276_v16 }
 0x1fd   : > { %v3280_v17 = vpop.eup %3279  ;;  %v1809_v19 = vsel %vm1806_vm15, %v1808_v11, %v1804_v15  ;;  %v1842_v8 = vsel %vm1841_vm14, %v3270_v55, %v1838_v12  ;;  %v1875_v34 = vmul.f32 %v4335_v13, %v4316_v39  ;;  %vm1818_vm4 = vmor %vm1816_vm2, %vm1817_vm1  ;;  %vm1880_vm9 = vweird.f32 %v4335_v13  ;;  %v3226_v39 = vld [vmem:[#allocation15] ss:$0 sm:$0xff] }
 0x1fe   : > { %v3282_v20 = vpop.eup %3281  ;;  %v1847_v21 = vsel %vm1844_vm0, %v1846_v53, %v1842_v8  ;;  %v1906_v26 = vmul.f32 %v3274_v25, %v1809_v19  ;;  %v1813_v27 = vsub.f32 1.0, %v1812_v5  ;;  %v1873_v43 = vadd.f32 1.0, %v3280_v17  ;;  %vm1881_vm12 = vmor %vm1879_vm10, %vm1880_vm9 }
 0x1ff   : > { %v1904_v28 = vmul.f32 %v1847_v21, %v625_v14  ;;  %v1850_v23 = vmul.f32 %v3282_v20, %v4326_v46  ;;  %v3284_v38 = vpop.eup %3283  ;;  %vm1855_vm3 = vweird.f32 %v3282_v20  ;;  %v1876_v45 = vsub.f32 1.0, %v1875_v34  ;;  %v3141_v34 = vld [vmem:[%s4389_s4 + $0x20] sm:$0xff] }
 0x200   : > { %v1814_v33 = vmul.f32 %v3276_v16, %v1813_v27  ;;  %3285 = vrcp.f32 %v1873_v43  ;;  %vm1856_vm7 = vmor %vm1854_vm6, %vm1855_vm3  ;;  %v1900_v63 = vand.u32 2147483648, %v1873_v43  ;;  %vm1894_vm13 = vweird.f32 %v1873_v43 }
 0x201   : > { %v1908_v18 = vadd.f32 %v1906_v26, %v1904_v28  ;;  %v1851_v36 = vsub.f32 1.0, %v1850_v23  ;;  %v1877_v54 = vmul.f32 %v4335_v13, %v1876_v45  ;;  %v1898_v46 = vand.u32 2147483647, %v1873_v43  ;;  %v3139_v45 = vld [vmem:[%s4389_s4 + $0x10] sm:$0xff] }
 0x202   : > { %v1815_v37 = vadd.f32 %v3276_v16, %v1814_v33  ;;  %v1901_v6 = vor.u32 1.1754944e-38, %v1900_v63  ;;  %vm1884_vm15 = vcmp.eq.f32.partialorder %v1883_v0, 8.507059e+37  ;;  %v2094_v19 = vlaneseq  ;;  %v3142_v33 = vld [vmem:[%s4389_s4 + $0x28] sm:$0xff] }
 0x203   : > { %1916 = vst [vmem:[#allocation3 + $0x8] sm:$0xff] %v1908_v18  ;;  %v1852_v40 = vmul.f32 %v3282_v20, %v1851_v36  ;;  %3287 = vtanh.f32 %v1908_v18  ;;  %v1878_v59 = vadd.f32 %v4335_v13, %v1877_v54  ;;  %vm1899_vm0 = vcmp.eq.f32.partialorder %v1898_v46, 8.507059e+37  ;;  %v3140_v18 = vld [vmem:[%s4389_s4 + $0x18] sm:$0xff] }
 0x204   : > { %v1819_v44 = vsel %vm1818_vm4, %v3276_v16, %v1815_v37  ;;  %v2095_v8 = vand.u32 127, %v2094_v19 }
 0x205   : > { %v1824_v32 = vsel %vm1821_vm5, %v1823_v57, %v1819_v44  ;;  %v1853_v22 = vadd.f32 %v3282_v20, %v1852_v40  ;;  %v1882_v2 = vsel %vm1881_vm12, %v4335_v13, %v1878_v59 }
 0x206   : > { %v3286_v48 = vpop.eup %3285  ;;  %v1907_v51 = vmul.f32 %v3284_v38, %v1824_v32  ;;  %v1887_v1 = vsel %vm1884_vm15, %v1886_v4, %v1882_v2  ;;  %v3138_v32 = vld [vmem:[%s4389_s4 + $0x8] sm:$0xff] }
 0x207   : > { %v1857_v50 = vsel %vm1856_vm7, %v3282_v20, %v1853_v22  ;;  %v1890_v52 = vmul.f32 %v3286_v48, %v1873_v43  ;;  %vm1895_vm11 = vweird.f32 %v3286_v48  ;;  %v3137_v22 = vld [vmem:[%s4389_s4] sm:$0xff] }
 0x208   : > { %v1862_v35 = vsel %vm1859_vm8, %v1861_v10, %v1857_v50  ;;  %vm1896_vm14 = vmor %vm1894_vm13, %vm1895_vm11 }
 0x209   : > { %v1905_v55 = vmul.f32 %v1862_v35, %v626_v49  ;;  %v1891_v29 = vsub.f32 1.0, %v1890_v52  ;;  %v3288_v3 = vpop.eup %3287 }
 0x20a   : > { %v1912_v25 = vmul.f32 %v3288_v3, %v1887_v1 }
 0x20b   : > { %v1909_v56 = vadd.f32 %v1907_v51, %v1905_v55  ;;  %v1892_v58 = vmul.f32 %v3286_v48, %v1891_v29 }
 0x20d   : > { %1917 = vst [vmem:[#allocation3 + $0x10] sm:$0xff] %v1909_v56  ;;  %v1893_v61 = vadd.f32 %v3286_v48, %v1892_v58  ;;  %3289 = vtanh.f32 %v1909_v56  ;;  %v3520_v56 = vmov 1.0|1.0  }
 0x20f   : > { %v1897_v47 = vsel %vm1896_vm14, %v3286_v48, %v1893_v61 }
 0x210   : > { %v1902_v9 = vsel %vm1899_vm0, %v1901_v6, %v1897_v47 }
 0x213   : > { %v3290_v7 = vpop.eup %3289 }
 0x214   : > { %v1913_v62 = vmul.f32 %v3290_v7, %v1902_v9 }
 0x216   : > { %v1918_v16 = vpack.c.bf16 %v1913_v62, %v1912_v25 }
 0x218   : > { %2000 = vmatmul.bf16.gmra.mxu0 %v1918_v16  ;;  %2086 = vmatmul.bf16.vlgmr.msra.gmra.mxu1 %v1918_v16 }
 0x295   : > { %v2001_v11 = vpop.f32.mrf.mxu0  ;;  %v2087_v12 = vpop.f32.mrf.mxu1 }
 0x296   : > { %v2002_v13 = vadd.f32 %v4311_v42, %v2001_v11  ;;  %v2088_v53 = vadd.f32 %v3226_v39, %v2087_v12 }
 0x298   : > { %2008 = vst [vmem:[#allocation2 + $0x18] sm:$0xff] %v2002_v13  ;;  %2096 = vmax.xlane.f32.xlu0 %v2088_v53 }
 0x299   : > { %2092 = vst [vmem:[%s3684_s0] sm:$0xff] %v2088_v53 }
 0x29d   : > { %v2003_v14 = vpop.f32.mrf.mxu0  ;;  %v2089_v15 = vpop.f32.mrf.mxu1 }
 0x29e   : > { %v2004_v5 = vadd.f32 %v4311_v42, %v2003_v14  ;;  %v2090_v17 = vadd.f32 %v3226_v39, %v2089_v15  ;;  %v3144_v42 = vld [vmem:[%s4389_s4 + $0x38] sm:$0xff] }
 0x29f   : > { %2203 = vmatpush.bf16.msra.mxu2 %v3144_v42 }
 0x2a0   : > { %2009 = vst [vmem:[#allocation2 + $0x8] sm:$0xff] %v2004_v5  ;;  %2098 = vmax.xlane.f32.xlu0 %v2090_v17 }
 0x2a1   : > { %2093 = vst [vmem:[%s3684_s0 + $0x8] sm:$0xff] %v2090_v17 }
 0x2a3   : > { %2204 = vmatpush.bf16.msra.mxu2 %v3143_v30 }
 0x2a7   : > { %2205 = vmatpush.bf16.msra.mxu2 %v3142_v33 }
 0x2ab   : > { %2206 = vmatpush.bf16.msra.mxu2 %v3141_v34 }
 0x2af   : > { %2207 = vmatpush.bf16.msra.mxu2 %v3140_v18 }
 0x2b3   : > { %2208 = vmatpush.bf16.msra.mxu2 %v3139_v45 }
 0x2b7   : > { %2209 = vmatpush.bf16.msra.mxu2 %v3138_v32 }
 0x2bb   : > { %2210 = vmatpush.bf16.msra.mxu2 %v3137_v22 }
 0x30b   : > { %v2097_v20 = vpop.xlane.xlu0 %2096 }
 0x30c   : > { %vm2100_vm1 = vcmp.eq.f32.partialorder %v2088_v53, %v2097_v20 }
 0x30d   : > { %v2102_v21 = vsel %vm2100_vm1, %v2095_v8, 128 }
 0x30e   : > { %v2105_v26 = vshra.s32 %v2102_v21, 16  ;;  %v2104_v36 = vand.u32 65535, %v2102_v21 }
 0x310   : > { %v2107_v27 = vcvt.s32.f32 %v2105_v26  ;;  %v2106_v37 = vcvt.s32.f32 %v2104_v36 }
 0x312   : > { %2108 = vmin.xlane.f32.xlu1 %v2107_v27 }
 0x313   : > { %v2099_v43 = vpop.xlane.xlu0 %2098 }
 0x314   : > { %vm2101_vm2 = vcmp.eq.f32.partialorder %v2090_v17, %v2099_v43 }
 0x315   : > { %v2103_v28 = vsel %vm2101_vm2, %v2095_v8, 128 }
 0x316   : > { %v2119_v23 = vshra.s32 %v2103_v28, 16  ;;  %v2118_v40 = vand.u32 65535, %v2103_v28 }
 0x318   : > { %v2121_v24 = vcvt.s32.f32 %v2119_v23  ;;  %v2120_v41 = vcvt.s32.f32 %v2118_v40 }
 0x31a   : > { %2122 = vmin.xlane.f32.xlu1 %v2121_v24 }
 0x385   : > { %v2109_v31 = vpop.xlane.xlu1 %2108 }
 0x386   : > { %vm2110_vm3 = vcmp.eq.f32.partialorder %v2107_v27, %v2109_v31  ;;  %v2115_v10 = vcvt.f32.s32 %v2109_v31 }
 0x387   : > { %v2111_v38 = vsel %vm2110_vm3, %v2106_v37, inf }
 0x388   : > { %2112 = vmin.xlane.f32.xlu2 %v2111_v38  ;;  %v2116_v51 = vshll.u32 %v2115_v10, 16 }
 0x38d   : > { %v2123_v57 = vpop.xlane.xlu1 %2122 }
 0x38e   : > { %vm2124_vm4 = vcmp.eq.f32.partialorder %v2121_v24, %v2123_v57  ;;  %v2129_v49 = vcvt.f32.s32 %v2123_v57 }
 0x38f   : > { %v2125_v44 = vsel %vm2124_vm4, %v2120_v41, inf }
 0x390   : > { %2126 = vmin.xlane.f32.xlu2 %v2125_v44  ;;  %v2130_v35 = vshll.u32 %v2129_v49, 16 }
 0x3fb   : > { %v2113_v48 = vpop.xlane.xlu2 %2112 }
 0x3fc   : > { %v2114_v50 = vcvt.f32.s32 %v2113_v48 }
 0x3fe   : > { %v2117_v54 = vadd.s32 %v2116_v51, %v2114_v50 }
 0x400   : > { %vm2132_vm5 = vcmp.eq.s32.totalorder %v2095_v8, %v2117_v54 }
 0x403   : > { %v2127_v52 = vpop.xlane.xlu2 %2126 }
 0x404   : > { %v2128_v55 = vcvt.f32.s32 %v2127_v52 }
 0x406   : > { %v2131_v29 = vadd.s32 %v2130_v35, %v2128_v55 }
 0x408   : > { %vm2133_vm6 = vcmp.eq.s32.totalorder %v2095_v8, %v2131_v29 }
 0x409   : > { %vm2986_vm7 = vmpackc.low %vm2133_vm6, %vm2132_vm5 }
 0x40a   : > { %2987 = vmatmul.msk.bf16.vlgmr.msra.gmra.mxu2 %vm2986_vm7, %v3520_v56 }
 0x48d   : > { %v2212_v58 = vpop.f32.mrf.mxu2 }
 0x495   : > { %v2214_v59 = vpop.f32.mrf.mxu2 }
 0x496   : > { %v3148_v60 = vpack.c.bf16 %v2214_v59, %v2212_v58 }
 0x498   : > { %3149 = vst [vmem:[#allocation4] sm:$0xff] %v3148_v60  }
 0x499 PF: > { %s4425_s19 = sld [smem:[#allocation22_spill]] }
 0x49f   : > { %s37_s22 = sadd.s32 1, %s4425_s19  }
 0x4a0   : > { %p34_p10 = scmp.ge.s32.totalorder %s37_s22, 6  }
 0x4a2   :  { %36 = sbr.rel (!%p34_p10) target bundleno = 12 (0xc), region = 141 }
 0x4a7   :  { %2242 = vsyncpa [#allocation8], 1 }
 0x4a8   :  { %2244 = vsyncpa [#allocation8 + $0x1], 1 }
 0x4a9   :  { %2245 = vsyncpa [#allocation10], 1 }
 0x4aa   :  { %2246 = vsyncpa [#allocation13], 1 }
 0x4ab   :  { %2247 = vsyncpa [#allocation16], 1 }

</bundles_post_ra>
